<compile_context>
chip_gen: v5e
topology: v5e:2x2
jax: 0.10.0
libtpu: 0.0.40
codegen_flags: <defaults>
</compile_context>

<pallas_src>
import functools

import numpy as np
import jax
import jax.numpy as jnp
from jax.experimental import pallas as pl
from jax.experimental.pallas import tpu as pltpu

BN_EPS = 1e-5


def _decoder_kernel(pat_ref, w1t_ref, gamma_ref, beta_ref,
                    w2t_ref, b2_ref, bup_ref, o_ref):
    """Dropout(folded) + conv3x3 + BN(train) + ReLU + conv1x1 + bilinear up.

    Layout: channels on rows, flattened (n, h, w) spatial on lanes.
      pat_ref   (9*Cin, P)    bf16   im2col patches (dropout mask folded in)
      w1t_ref   (256, 9*Cin)  bf16
      gamma/beta (256, 1)     f32
      w2t_ref   (NCp, 256)    bf16   class rows padded to 8
      b2_ref    (NCp, 1)      f32
      bup_ref   (P, Po)       bf16   kron(I_N, kron(Ah, Aw))^T
      o_ref     (NCp, Po)     f32    lane-dense (Po = N*Ho*Wo = 2048)
    """
    P = pat_ref.shape[1]

    # --- 3x3 conv as a single im2col matmul (bf16 operands, f32 accumulate) --
    acc = jnp.dot(w1t_ref[...], pat_ref[...],
                  preferred_element_type=jnp.float32)             # (256, P)

    # --- BatchNorm2d: one-pass batch statistics over N*H*W (lane reduction) --
    # (Two jnp.sum XLU pushes; XLU slot has slack here so merging them is
    #  neutral per the bundle-level review.)
    inv_p = 1.0 / float(P)
    s1 = jnp.sum(acc, axis=1, keepdims=True)                      # (256, 1)
    s2 = jnp.sum(acc * acc, axis=1, keepdims=True)                # (256, 1)
    mean = s1 * inv_p
    var = jnp.maximum(s2 * inv_p - mean * mean, 0.0)              # clamp >= 0
    scale = gamma_ref[...] * jax.lax.rsqrt(var + BN_EPS)          # (256, 1)
    shift = beta_ref[...] - mean * scale                          # (256, 1)

    # --- fused normalize + affine + ReLU (single FMA-style pass, f32) --------
    y = jnp.maximum(acc * scale + shift, 0.0)                     # (256, P)

    # --- 1x1 conv (256 -> NCp) with bias; K=256 full-depth MXU contraction ---
    z = jnp.dot(w2t_ref[...], y.astype(jnp.bfloat16),
                preferred_element_type=jnp.float32) + b2_ref[...]  # (NCp, P)

    # --- fused align_corners=True bilinear upsample: one right-multiply ------
    o_ref[...] = jnp.dot(z.astype(jnp.bfloat16), bup_ref[...],
                         preferred_element_type=jnp.float32)       # (NCp, Po)


def _bilinear_matrix(n_in, n_out):
    """Interpolation matrix of nn.UpsamplingBilinear2d (align_corners=True)."""
    A = np.zeros((n_out, n_in), np.float32)
    if n_out == 1 or n_in == 1:
        A[:, 0] = 1.0
        return A
    scale = (n_in - 1) / (n_out - 1)
    for i in range(n_out):
        src = i * scale
        i0 = min(int(np.floor(src)), n_in - 1)
        i1 = min(i0 + 1, n_in - 1)
        f = src - i0
        A[i, i0] += 1.0 - f
        A[i, i1] += f
    return A


@functools.lru_cache(maxsize=16)
def _upsample_kron(n, h, w, ho, wo):
    """B = kron(I_N, kron(Ah, Aw)^T): (n*h*w, n*ho*wo), rows (n,h,w), cols (n,ho,wo).

    Only valid for small feature maps (dense kron scales as h*w*ho*wo); see
    TODO(synk) above for the large-map path.
    """
    ah = _bilinear_matrix(h, ho)                                   # (ho, h)
    aw = _bilinear_matrix(w, wo)                                   # (wo, w)
    m = np.kron(ah, aw).T.astype(np.float32)                       # (h*w, ho*wo)
    return np.kron(np.eye(n, dtype=np.float32), m)                 # (nhw, nhowo)


@functools.partial(jax.jit, static_argnames=("upscale",))
def dropout_decoder_forward(x_nchw, params, drop_mask, upscale):
    """x_nchw: (N, Cin, H, W) f32. Returns (N, num_classes, H*up, W*up) f32."""
    N, Cin, H, W = x_nchw.shape
    Ho, Wo = int(H * upscale), int(W * upscale)
    C1 = params["w1"].shape[-1]
    NC = params["w2"].shape[-1]
    NCp = ((NC + 7) // 8) * 8                     # pad classes to full sublanes
    P = N * H * W
    Po = N * Ho * Wo

    # ---- XLA-side glue: dropout mask fold, padding, transposed im2col -------
    x = jnp.transpose(x_nchw, (0, 2, 3, 1)) * drop_mask            # (N,H,W,Cin)
    xp = jnp.pad(x, ((0, 0), (1, 1), (1, 1), (0, 0)))
    taps = [xp[:, kh:kh + H, kw:kw + W, :] for kh in range(3) for kw in range(3)]
    patches_t = jnp.stack(taps, axis=0)                            # (9,N,H,W,Cin)
    patches_t = jnp.transpose(patches_t, (0, 4, 1, 2, 3))          # (9,Cin,N,H,W)
    patches_t = patches_t.reshape(9 * Cin, P).astype(jnp.bfloat16)

    # Weights in the transposed (row = out-channel) layout, bf16 for the MXU.
    w1t = jnp.transpose(params["w1"], (2, 0, 1)).reshape(C1, 9 * Cin)
    w1t = w1t.astype(jnp.bfloat16)
    w2t = jnp.pad(params["w2"].T.astype(jnp.bfloat16),
                  ((0, NCp - NC), (0, 0)))                         # (NCp, C1)
    b2 = jnp.pad(params["b2"].reshape(NC, 1).astype(jnp.float32),
                 ((0, NCp - NC), (0, 0)))                          # (NCp, 1)
    gamma = params["gamma"].reshape(C1, 1).astype(jnp.float32)
    beta = params["beta"].reshape(C1, 1).astype(jnp.float32)

    # Fused upsample operand (host-cached, becomes a traced constant).
    b_up = jnp.asarray(_upsample_kron(N, H, W, Ho, Wo)).astype(jnp.bfloat16)

    vmem = lambda: pl.BlockSpec(memory_space=pltpu.MemorySpace.VMEM)

    # ---- single fused kernel: dropout+conv3x3+BN+ReLU+conv1x1+upsample ------
    z_up = pl.pallas_call(
        _decoder_kernel,
        out_shape=jax.ShapeDtypeStruct((NCp, Po), jnp.float32),
        in_specs=[vmem() for _ in range(7)],
        out_specs=vmem(),
    )(patches_t, w1t, gamma, beta, w2t, b2, b_up)

    # Slice off class padding; (class, n, Ho, Wo) -> NCHW like the torch module.
    out = z_up[:NC].reshape(NC, N, Ho, Wo)
    return jnp.transpose(out, (1, 0, 2, 3))


def reference_forward(x_nchw, params, drop_mask, upscale):
    """Pure-JAX f32 reference with identical math (correctness check)."""
    x = jnp.transpose(x_nchw, (0, 2, 3, 1)) * drop_mask
    N, H, W, Cin = x.shape
    C1 = params["w1"].shape[-1]
    xp = jnp.pad(x, ((0, 0), (1, 1), (1, 1), (0, 0)))
    acc = jnp.zeros((N, H, W, C1), jnp.float32)
    for kh in range(3):
        for kw in range(3):
            acc = acc + jnp.einsum("nhwc,cd->nhwd",
                                   xp[:, kh:kh + H, kw:kw + W, :],
                                   params["w1"][kh * 3 + kw])
    mean = jnp.mean(acc, axis=(0, 1, 2), keepdims=True)
    var = jnp.mean((acc - mean) ** 2, axis=(0, 1, 2), keepdims=True)
    y = (acc - mean) * jax.lax.rsqrt(var + BN_EPS)
    y = y * params["gamma"].reshape(1, 1, 1, C1) + params["beta"].reshape(1, 1, 1, C1)
    y = jnp.maximum(y, 0.0)
    z = jnp.einsum("nhwc,cd->nhwd", y, params["w2"]) + params["b2"].reshape(1, 1, 1, -1)
    Ho, Wo = int(H * upscale), int(W * upscale)
    Ah = jnp.asarray(_bilinear_matrix(H, Ho))
    Aw = jnp.asarray(_bilinear_matrix(W, Wo))
    t = jnp.einsum("oh,nhwc->nowc", Ah, z)
    out = jnp.einsum("pw,nowc->nopc", Aw, t)
    return jnp.transpose(out, (0, 3, 1, 2))


if __name__ == "__main__":
    # Shapes consistent with DropOutDecoder(upscale=2, conv_in_ch=4, num_classes=5)
    # applied to input (N=2, C=4, H=16, W=16).
    N, Cin, H, W = 2, 4, 16, 16
    NC, upscale, drop_rate = 5, 2, 0.3
    C1 = 256

    key = jax.random.PRNGKey(0)
    kx, kd, k1, k2, k3, k4, k5 = jax.random.split(key, 7)

    x = jax.random.normal(kx, (N, Cin, H, W), jnp.float32)

    params = {
        # w1[kh*3+kw, ci, co] == torch Conv2d weight[co, ci, kh, kw]
        "w1": jax.random.normal(k1, (9, Cin, C1), jnp.float32) * 0.1,
        "gamma": 1.0 + 0.1 * jax.random.normal(k4, (C1,), jnp.float32),
        "beta": 0.1 * jax.random.normal(k5, (C1,), jnp.float32),
        "w2": jax.random.normal(k2, (C1, NC), jnp.float32) * 0.05,
        "b2": jax.random.normal(k3, (NC,), jnp.float32) * 0.01,
    }

    # Dropout2d (spatial): deterministic per-(sample, channel) keep mask with
    # survivors scaled by 1/(1-p), matching torch train-mode semantics.
    # TODO(synk): torch's own RNG stream is not reproduced; mask is supplied.
    keep = jax.random.bernoulli(kd, 1.0 - drop_rate, (N, 1, 1, Cin)).astype(jnp.float32)
    drop_mask = keep / (1.0 - drop_rate)

    out = dropout_decoder_forward(x, params, drop_mask, upscale)
    out = jax.block_until_ready(out)

    assert out.shape == (N, NC, H * upscale, W * upscale), out.shape
    ref = jax.block_until_ready(reference_forward(x, params, drop_mask, upscale))
    np.testing.assert_allclose(np.asarray(out), np.asarray(ref), rtol=5e-2, atol=5e-2)

    print("KERNEL_OK")
</pallas_src>

<mosaic_0001>
module attributes {stable_mosaic.version = 11 : i64} {
  func.func @_decoder_kernel(%arg0: memref<36x512xbf16, #tpu.memory_space<vmem>>, %arg1: memref<256x36xbf16, #tpu.memory_space<vmem>>, %arg2: memref<256x1xf32, #tpu.memory_space<vmem>>, %arg3: memref<256x1xf32, #tpu.memory_space<vmem>>, %arg4: memref<8x256xbf16, #tpu.memory_space<vmem>>, %arg5: memref<8x1xf32, #tpu.memory_space<vmem>>, %arg6: memref<512x2048xbf16, #tpu.memory_space<vmem>>, %arg7: memref<8x2048xf32, #tpu.memory_space<vmem>>) attributes {dimension_semantics = [], scalar_prefetch = 0 : i64, scratch_operands = 0 : i64, tpu.core_type = #tpu.core_type<tc>} {
    %c0 = arith.constant 0 : index
    %c0_0 = arith.constant 0 : index
    %0 = vector.load %arg1[%c0, %c0_0] : memref<256x36xbf16, #tpu.memory_space<vmem>>, vector<256x36xbf16>
    %c0_1 = arith.constant 0 : index
    %c0_2 = arith.constant 0 : index
    %1 = vector.load %arg0[%c0_1, %c0_2] : memref<36x512xbf16, #tpu.memory_space<vmem>>, vector<36x512xbf16>
    %cst = arith.constant dense<0.000000e+00> : vector<256x512xf32>
    %2 = tpu.matmul %0, %1, %cst {dimension_numbers = #tpu.dot_dimension_numbers<[1], [0], [0], [1], [0, 0, 1, 1], [], []>} : vector<256x36xbf16>, vector<36x512xbf16>, vector<256x512xf32> -> vector<256x512xf32>
    %cst_3 = arith.constant dense<0.000000e+00> : vector<256xf32>
    %3 = vector.multi_reduction <add>, %2, %cst_3 [1] : vector<256x512xf32> to vector<256xf32>
    %4 = vector.shape_cast %3 : vector<256xf32> to vector<256x1xf32>
    %5 = arith.mulf %2, %2 : vector<256x512xf32>
    %cst_4 = arith.constant dense<0.000000e+00> : vector<256xf32>
    %6 = vector.multi_reduction <add>, %5, %cst_4 [1] : vector<256x512xf32> to vector<256xf32>
    %7 = vector.shape_cast %6 : vector<256xf32> to vector<256x1xf32>
    %cst_5 = arith.constant 0.001953125 : f32
    %8 = vector.broadcast %cst_5 : f32 to vector<256x1xf32>
    %9 = arith.mulf %4, %8 : vector<256x1xf32>
    %cst_6 = arith.constant 0.001953125 : f32
    %10 = vector.broadcast %cst_6 : f32 to vector<256x1xf32>
    %11 = arith.mulf %7, %10 : vector<256x1xf32>
    %12 = arith.mulf %9, %9 : vector<256x1xf32>
    %13 = arith.subf %11, %12 : vector<256x1xf32>
    %cst_7 = arith.constant 0.000000e+00 : f32
    %14 = vector.broadcast %cst_7 : f32 to vector<256x1xf32>
    %15 = arith.maximumf %13, %14 : vector<256x1xf32>
    %c0_8 = arith.constant 0 : index
    %c0_9 = arith.constant 0 : index
    %16 = vector.load %arg2[%c0_8, %c0_9] : memref<256x1xf32, #tpu.memory_space<vmem>>, vector<256x1xf32>
    %cst_10 = arith.constant 9.99999974E-6 : f32
    %17 = vector.broadcast %cst_10 : f32 to vector<256x1xf32>
    %18 = arith.addf %15, %17 : vector<256x1xf32>
    %19 = math.rsqrt %18 : vector<256x1xf32>
    %20 = arith.mulf %16, %19 : vector<256x1xf32>
    %c0_11 = arith.constant 0 : index
    %c0_12 = arith.constant 0 : index
    %21 = vector.load %arg3[%c0_11, %c0_12] : memref<256x1xf32, #tpu.memory_space<vmem>>, vector<256x1xf32>
    %22 = arith.mulf %9, %20 : vector<256x1xf32>
    %23 = arith.subf %21, %22 : vector<256x1xf32>
    %24 = vector.broadcast %20 : vector<256x1xf32> to vector<256x512xf32>
    %25 = arith.mulf %2, %24 : vector<256x512xf32>
    %26 = vector.broadcast %23 : vector<256x1xf32> to vector<256x512xf32>
    %27 = arith.addf %25, %26 : vector<256x512xf32>
    %cst_13 = arith.constant 0.000000e+00 : f32
    %28 = vector.broadcast %cst_13 : f32 to vector<256x512xf32>
    %29 = arith.maximumf %27, %28 : vector<256x512xf32>
    %c0_14 = arith.constant 0 : index
    %c0_15 = arith.constant 0 : index
    %30 = vector.load %arg4[%c0_14, %c0_15] : memref<8x256xbf16, #tpu.memory_space<vmem>>, vector<8x256xbf16>
    %31 = arith.truncf %29 : vector<256x512xf32> to vector<256x512xbf16>
    %cst_16 = arith.constant dense<0.000000e+00> : vector<8x512xf32>
    %32 = tpu.matmul %30, %31, %cst_16 {dimension_numbers = #tpu.dot_dimension_numbers<[1], [0], [0], [1], [0, 0, 1, 1], [], []>} : vector<8x256xbf16>, vector<256x512xbf16>, vector<8x512xf32> -> vector<8x512xf32>
    %c0_17 = arith.constant 0 : index
    %c0_18 = arith.constant 0 : index
    %33 = vector.load %arg5[%c0_17, %c0_18] : memref<8x1xf32, #tpu.memory_space<vmem>>, vector<8x1xf32>
    %34 = vector.broadcast %33 : vector<8x1xf32> to vector<8x512xf32>
    %35 = arith.addf %32, %34 : vector<8x512xf32>
    %36 = arith.truncf %35 : vector<8x512xf32> to vector<8x512xbf16>
    %c0_19 = arith.constant 0 : index
    %c0_20 = arith.constant 0 : index
    %37 = vector.load %arg6[%c0_19, %c0_20] : memref<512x2048xbf16, #tpu.memory_space<vmem>>, vector<512x2048xbf16>
    %cst_21 = arith.constant dense<0.000000e+00> : vector<8x2048xf32>
    %38 = tpu.matmul %36, %37, %cst_21 {dimension_numbers = #tpu.dot_dimension_numbers<[1], [0], [0], [1], [0, 0, 1, 1], [], []>} : vector<8x512xbf16>, vector<512x2048xbf16>, vector<8x2048xf32> -> vector<8x2048xf32>
    %c0_22 = arith.constant 0 : index
    %c0_23 = arith.constant 0 : index
    %39 = vector.load %arg7[%c0_22, %c0_23] : memref<8x2048xf32, #tpu.memory_space<vmem>>, vector<8x2048xf32>
    tpu.vector_store %arg7[%c0_22, %c0_23], %38 {strides = array<i32>} : memref<8x2048xf32, #tpu.memory_space<vmem>>, vector<8x2048xf32>,
    return
  }
}

</mosaic_0001>

<bundles_post_ra>
// kernel: dropout_decoder_forward.1
= control target key start
LH: loop header
LB: loop body
LE: loop exit
PB: predicated region body
PF: predicated region fallthrough
CT: control target
= control target key end

     0   :  { %vm248_vm0 = vcmask 1041408   ;;  %vm199_vm1 = vcmask 293888   ;;  %s14710_s0 = inlined_call_operand.vmem [shape: bf16[36,512], index: 0, kind: input, shape index: {}]   ;;  %s14711_s1 = inlined_call_operand.vmem [shape: bf16[256,36], index: 1, kind: input, shape index: {}]   ;;  %s14712_s2 = inlined_call_operand.vmem [shape: f32[256,1], index: 2, kind: input, shape index: {}]   ;;  %s14713_s3 = inlined_call_operand.vmem [shape: f32[256,1], index: 3, kind: input, shape index: {}]   ;;  %s14714_s5 = inlined_call_operand.vmem [shape: f32[8,1], index: 5, kind: input, shape index: {}]   ;;  %s14715_s4 = inlined_call_operand.vmem [shape: bf16[8,256], index: 4, kind: input, shape index: {}]   ;;  %s14716_s6 = inlined_call_operand.vmem [shape: bf16[512,2048], index: 6, kind: input, shape index: {}]   ;;  %s14717_s7 = inlined_call_operand.vmem [shape: f32[8,2048], index: 7, kind: output, shape index: {}]  }
   0x1   :  { %v67_v0 = vld [vmem:[%s14710_s0 + $0x40] sm:$0x33]  ;;  %v68_v1 = vld [vmem:[%s14710_s0 + $0x48] sm:$0x33]  ;;  %v8781_v7 = vld [vmem:[%s14710_s0 + $0x2c] sm:$0xf0] }
   0x2   :  { %v175_v2 = vunpack.c.l.b16 %v67_v0  ;;  %v176_v3 = vunpack.c.h.b16 %v67_v0  ;;  %v177_v4 = vunpack.c.l.b16 %v68_v1  ;;  %v178_v5 = vunpack.c.h.b16 %v68_v1  ;;  %v6633_v6 = vld [vmem:[%s14710_s0 + $0x20] sm:$0xf]  ;;  %v8779_v12 = vld [vmem:[%s14710_s0 + $0x24] sm:$0xf]  ;;  %v6635_v13 = vld [vmem:[%s14710_s0 + $0x30] sm:$0xf0] }
   0x3   :  { %v6641_v14 = vld [vmem:[%s14710_s0 + $0x28] sm:$0xf]  ;;  %v8782_v15 = vld [vmem:[%s14710_s0 + $0x34] sm:$0xf0]  ;;  %v8780_v16 = vld [vmem:[%s14710_s0 + $0x2c] sm:$0xf]  ;;  %v6634_v22 = vor.u32 %v8781_v7, %v6633_v6  ;;  %v6638_v23 = vor.u32 %v8779_v12, %v6635_v13 }
   0x4   :  { %v187_v8 = vpack.c.b16 %v175_v2, %v175_v2  ;;  %v188_v9 = vpack.c.b16 %v176_v3, %v176_v3  ;;  %v189_v10 = vpack.c.b16 %v177_v4, %v177_v4  ;;  %v190_v11 = vpack.c.b16 %v178_v5, %v178_v5  ;;  %v6643_v17 = vld [vmem:[%s14710_s0 + $0x38] sm:$0xf0]  ;;  %v6617_v24 = vld [vmem:[%s14710_s0] sm:$0xf]  ;;  %v8777_v25 = vld [vmem:[%s14710_s0 + $0xc] sm:$0xf0] }
   0x5   :  { %v6642_v26 = vor.u32 %v8782_v15, %v6641_v14  ;;  %v6646_v27 = vor.u32 %v8780_v16, %v6643_v17  ;;  %v8775_v28 = vld [vmem:[%s14710_s0 + $0x4] sm:$0xf]  ;;  %v6619_v29 = vld [vmem:[%s14710_s0 + $0x10] sm:$0xf0]  ;;  %v6625_v30 = vld [vmem:[%s14710_s0 + $0x8] sm:$0xf]  ;;  %v6618_v34 = vor.u32 %v8777_v25, %v6617_v24 }
   0x6   :  { %v250_v18 = vsel %vm248_vm0, %v187_v8, 0  ;;  %v253_v19 = vsel %vm248_vm0, %v188_v9, 0  ;;  %v256_v20 = vsel %vm248_vm0, %v189_v10, 0  ;;  %v259_v21 = vsel %vm248_vm0, %v190_v11, 0  ;;  %v8778_v31 = vld [vmem:[%s14710_s0 + $0x14] sm:$0xf0] }
   0x7   :  { %266 = vmatpush.bf16.msra.mxu0 %v250_v18  ;;  %355 = vmatpush.bf16.msra.mxu1 %v253_v19  ;;  %v8776_v32 = vld [vmem:[%s14710_s0 + $0xc] sm:$0xf]  ;;  %v6627_v33 = vld [vmem:[%s14710_s0 + $0x18] sm:$0xf0]  ;;  %v6622_v35 = vor.u32 %v8775_v28, %v6619_v29  ;;  %v6626_v36 = vor.u32 %v8778_v31, %v6625_v30  ;;  %v8759_v38 = vld [vmem:[%s14711_s1] sm:$0xff] }
   0x8   :  { %444 = vmatpush.bf16.msra.mxu2 %v256_v20  ;;  %533 = vmatpush.bf16.msra.mxu3 %v259_v21  ;;  %v6630_v37 = vor.u32 %v8776_v32, %v6627_v33  ;;  %v8760_v39 = vld [vmem:[%s14711_s1 + $0x8] sm:$0xff]  ;;  %v8761_v40 = vld [vmem:[%s14711_s1 + $0x10] sm:$0xff]  ;;  %v8762_v41 = vld [vmem:[%s14711_s1 + $0x18] sm:$0xff] }
   0x9   :  { %v8763_v42 = vld [vmem:[%s14711_s1 + $0x20] sm:$0xff]  ;;  %v8764_v43 = vld [vmem:[%s14711_s1 + $0x28] sm:$0xff]  ;;  %v8765_v44 = vld [vmem:[%s14711_s1 + $0x30] sm:$0xff] }
   0xa   :  { %v8766_v45 = vld [vmem:[%s14711_s1 + $0x38] sm:$0xff]  ;;  %v8767_v46 = vld [vmem:[%s14711_s1 + $0x40] sm:$0xff]  ;;  %v8768_v63 = vld [vmem:[%s14711_s1 + $0x48] sm:$0xff] }
   0xb   :  { %267 = vmatpush.bf16.msra.mxu0 %v6634_v22  ;;  %356 = vmatpush.bf16.msra.mxu1 %v6638_v23  ;;  %v8769_v24 = vld [vmem:[%s14711_s1 + $0x50] sm:$0xff] }
   0xc   :  { %445 = vmatpush.bf16.msra.mxu2 %v6642_v26  ;;  %534 = vmatpush.bf16.msra.mxu3 %v6646_v27 }
   0xf   :  { %268 = vmatpush.bf16.msra.mxu0 %v6618_v34  ;;  %357 = vmatpush.bf16.msra.mxu1 %v6622_v35 }
  0x10   :  { %446 = vmatpush.bf16.msra.mxu2 %v6626_v36  ;;  %535 = vmatpush.bf16.msra.mxu3 %v6630_v37 }
  0x12   :  { %6647 = vmatmul.msk.bf16.vlgmr.msra.gmra.mxu0 %vm199_vm1, %v8759_v38  ;;  %6663 = vmatmul.msk.bf16.vlgmr.msra.gmra.mxu1 %vm199_vm1, %v8759_v38 }
  0x13   :  { %6679 = vmatmul.msk.bf16.vlgmr.msra.gmra.mxu2 %vm199_vm1, %v8759_v38  ;;  %6695 = vmatmul.msk.bf16.vlgmr.msra.gmra.mxu3 %vm199_vm1, %v8759_v38 }
  0x22   :  { %6648 = vmatmul.msk.bf16.gmra.mxu0 %vm199_vm1, %v8760_v39  ;;  %6664 = vmatmul.msk.bf16.gmra.mxu1 %vm199_vm1, %v8760_v39 }
  0x23   :  { %6680 = vmatmul.msk.bf16.gmra.mxu2 %vm199_vm1, %v8760_v39  ;;  %6696 = vmatmul.msk.bf16.gmra.mxu3 %vm199_vm1, %v8760_v39 }
  0x32   :  { %6649 = vmatmul.msk.bf16.gmra.mxu0 %vm199_vm1, %v8761_v40  ;;  %6665 = vmatmul.msk.bf16.gmra.mxu1 %vm199_vm1, %v8761_v40 }
  0x33   :  { %6681 = vmatmul.msk.bf16.gmra.mxu2 %vm199_vm1, %v8761_v40  ;;  %6697 = vmatmul.msk.bf16.gmra.mxu3 %vm199_vm1, %v8761_v40 }
  0x42   :  { %6650 = vmatmul.msk.bf16.gmra.mxu0 %vm199_vm1, %v8762_v41  ;;  %6666 = vmatmul.msk.bf16.gmra.mxu1 %vm199_vm1, %v8762_v41 }
  0x43   :  { %6682 = vmatmul.msk.bf16.gmra.mxu2 %vm199_vm1, %v8762_v41  ;;  %6698 = vmatmul.msk.bf16.gmra.mxu3 %vm199_vm1, %v8762_v41 }
  0x52   :  { %6651 = vmatmul.msk.bf16.gmra.mxu0 %vm199_vm1, %v8763_v42  ;;  %6667 = vmatmul.msk.bf16.gmra.mxu1 %vm199_vm1, %v8763_v42 }
  0x53   :  { %6683 = vmatmul.msk.bf16.gmra.mxu2 %vm199_vm1, %v8763_v42  ;;  %6699 = vmatmul.msk.bf16.gmra.mxu3 %vm199_vm1, %v8763_v42 }
  0x62   :  { %6652 = vmatmul.msk.bf16.gmra.mxu0 %vm199_vm1, %v8764_v43  ;;  %6668 = vmatmul.msk.bf16.gmra.mxu1 %vm199_vm1, %v8764_v43 }
  0x63   :  { %6684 = vmatmul.msk.bf16.gmra.mxu2 %vm199_vm1, %v8764_v43  ;;  %6700 = vmatmul.msk.bf16.gmra.mxu3 %vm199_vm1, %v8764_v43 }
  0x72   :  { %6653 = vmatmul.msk.bf16.gmra.mxu0 %vm199_vm1, %v8765_v44  ;;  %6669 = vmatmul.msk.bf16.gmra.mxu1 %vm199_vm1, %v8765_v44 }
  0x73   :  { %6685 = vmatmul.msk.bf16.gmra.mxu2 %vm199_vm1, %v8765_v44  ;;  %6701 = vmatmul.msk.bf16.gmra.mxu3 %vm199_vm1, %v8765_v44 }
  0x82   :  { %6654 = vmatmul.msk.bf16.gmra.mxu0 %vm199_vm1, %v8766_v45  ;;  %6670 = vmatmul.msk.bf16.gmra.mxu1 %vm199_vm1, %v8766_v45 }
  0x83   :  { %6686 = vmatmul.msk.bf16.gmra.mxu2 %vm199_vm1, %v8766_v45  ;;  %6702 = vmatmul.msk.bf16.gmra.mxu3 %vm199_vm1, %v8766_v45 }
  0x8f   :  { %v9521_v47 = vpop.f32.mrf.mxu0  ;;  %v9523_v48 = vpop.f32.mrf.mxu1 }
  0x90   :  { %14834 = vst [vmem:[#allocation2_spill] sm:$0xff] %v9521_v47  ;;  %v617_v49 = vadd.f32 %v9523_v48, %v9521_v47  ;;  %v777_v50 = vmul.f32 %v9521_v47, %v9521_v47  ;;  %v778_v51 = vmul.f32 %v9523_v48, %v9523_v48 }
  0x91   :  { %14835 = vst [vmem:[#allocation3_spill] sm:$0xff] %v9523_v48 }
  0x92   :  { %6655 = vmatmul.msk.bf16.gmra.mxu0 %vm199_vm1, %v8767_v46  ;;  %6671 = vmatmul.msk.bf16.gmra.mxu1 %vm199_vm1, %v8767_v46  ;;  %v905_v59 = vadd.f32 %v778_v51, %v777_v50 }
  0x93   :  { %6687 = vmatmul.msk.bf16.gmra.mxu2 %vm199_vm1, %v8767_v46  ;;  %6703 = vmatmul.msk.bf16.gmra.mxu3 %vm199_vm1, %v8767_v46 }
  0x96   :  { %v9535_v52 = vpop.f32.mrf.mxu2  ;;  %v9537_v53 = vpop.f32.mrf.mxu3 }
  0x97   :  { %14836 = vst [vmem:[#allocation4_spill] sm:$0xff] %v9535_v52  ;;  %v9539_v54 = vpop.f32.mrf.mxu0  ;;  %v9541_v55 = vpop.f32.mrf.mxu1  ;;  %v618_v56 = vadd.f32 %v617_v49, %v9535_v52  ;;  %v779_v58 = vmul.f32 %v9535_v52, %v9535_v52  ;;  %v780_v0 = vmul.f32 %v9537_v53, %v9537_v53 }
  0x98   :  { %14837 = vst [vmem:[#allocation5_spill] sm:$0xff] %v9537_v53  ;;  %v622_v60 = vadd.f32 %v9541_v55, %v9539_v54  ;;  %v781_v5 = vmul.f32 %v9539_v54, %v9539_v54  ;;  %v782_v6 = vmul.f32 %v9541_v55, %v9541_v55 }
  0x99   :  { %14838 = vst [vmem:[#allocation6_spill] sm:$0xff] %v9539_v54  ;;  %v619_v57 = vadd.f32 %v618_v56, %v9537_v53  ;;  %v906_v1 = vadd.f32 %v905_v59, %v779_v58 }
  0x9a   :  { %14839 = vst [vmem:[#allocation7_spill] sm:$0xff] %v9541_v55  ;;  %v910_v10 = vadd.f32 %v782_v6, %v781_v5 }
  0x9b   :  { %620 = vadd.xlane.f32.xlu0 %v619_v57  ;;  %v907_v8 = vadd.f32 %v906_v1, %v780_v0 }
  0x9e   :  { %v9549_v61 = vpop.f32.mrf.mxu2  ;;  %v9551_v62 = vpop.f32.mrf.mxu3 }
  0x9f   :  { %14840 = vst [vmem:[#allocation8_spill] sm:$0xff] %v9549_v61  ;;  %v9558_v2 = vpop.f32.mrf.mxu0  ;;  %v9560_v3 = vpop.f32.mrf.mxu1  ;;  %v623_v4 = vadd.f32 %v622_v60, %v9549_v61  ;;  %v783_v9 = vmul.f32 %v9549_v61, %v9549_v61  ;;  %v784_v16 = vmul.f32 %v9551_v62, %v9551_v62 }
  0xa0   :  { %14841 = vst [vmem:[#allocation9_spill] sm:$0xff] %v9551_v62  ;;  %v627_v17 = vadd.f32 %v9560_v3, %v9558_v2  ;;  %v785_v19 = vmul.f32 %v9558_v2, %v9558_v2  ;;  %v786_v20 = vmul.f32 %v9560_v3, %v9560_v3 }
  0xa1   :  { %14842 = vst [vmem:[#allocation10_spill] sm:$0xff] %v9558_v2  ;;  %v624_v7 = vadd.f32 %v623_v4, %v9551_v62  ;;  %v911_v13 = vadd.f32 %v910_v10, %v783_v9 }
  0xa2   :  { %14843 = vst [vmem:[#allocation11_spill] sm:$0xff] %v9560_v3  ;;  %6656 = vmatmul.msk.bf16.gmra.mxu0 %vm199_vm1, %v8768_v63  ;;  %6672 = vmatmul.msk.bf16.gmra.mxu1 %vm199_vm1, %v8768_v63  ;;  %v915_v32 = vadd.f32 %v786_v20, %v785_v19 }
  0xa3   :  { %6688 = vmatmul.msk.bf16.gmra.mxu2 %vm199_vm1, %v8768_v63  ;;  %6704 = vmatmul.msk.bf16.gmra.mxu3 %vm199_vm1, %v8768_v63  ;;  %v912_v18 = vadd.f32 %v911_v13, %v784_v16  ;;  %v8770_v16 = vld [vmem:[%s14711_s1 + $0x58] sm:$0xff] }
  0xa4   :  { %908 = vadd.xlane.f32.xlu0 %v907_v8  ;;  %625 = vadd.xlane.f32.xlu1 %v624_v7 }
  0xa6   :  { %v9574_v11 = vpop.f32.mrf.mxu2  ;;  %v9576_v12 = vpop.f32.mrf.mxu3 }
  0xa7   :  { %14844 = vst [vmem:[#allocation12_spill] sm:$0xff] %v9574_v11  ;;  %v9578_v14 = vpop.f32.mrf.mxu0  ;;  %v9580_v15 = vpop.f32.mrf.mxu1  ;;  %v628_v25 = vadd.f32 %v627_v17, %v9574_v11  ;;  %v787_v33 = vmul.f32 %v9574_v11, %v9574_v11  ;;  %v788_v39 = vmul.f32 %v9576_v12, %v9576_v12 }
  0xa8   :  { %14845 = vst [vmem:[#allocation13_spill] sm:$0xff] %v9576_v12  ;;  %v632_v21 = vadd.f32 %v9580_v15, %v9578_v14  ;;  %v789_v29 = vmul.f32 %v9578_v14, %v9578_v14  ;;  %v790_v30 = vmul.f32 %v9580_v15, %v9580_v15 }
  0xa9   :  { %14846 = vst [vmem:[#allocation14_spill] sm:$0xff] %v9578_v14  ;;  %v629_v34 = vadd.f32 %v628_v25, %v9576_v12  ;;  %v916_v40 = vadd.f32 %v915_v32, %v787_v33 }
  0xaa   :  { %14847 = vst [vmem:[#allocation15_spill] sm:$0xff] %v9580_v15  ;;  %v920_v36 = vadd.f32 %v790_v30, %v789_v29 }
  0xab   :  { %v917_v46 = vadd.f32 %v916_v40, %v788_v39 }
  0xac   :  { %913 = vadd.xlane.f32.xlu1 %v912_v18 }
  0xae   :  { %v9592_v22 = vpop.f32.mrf.mxu2  ;;  %v9594_v23 = vpop.f32.mrf.mxu3 }
  0xaf   :  { %14848 = vst [vmem:[#allocation16_spill] sm:$0xff] %v9592_v22  ;;  %v9600_v26 = vpop.f32.mrf.mxu0  ;;  %v9602_v27 = vpop.f32.mrf.mxu1  ;;  %v633_v28 = vadd.f32 %v632_v21, %v9592_v22  ;;  %v791_v35 = vmul.f32 %v9592_v22, %v9592_v22  ;;  %v792_v44 = vmul.f32 %v9594_v23, %v9594_v23 }
  0xb0   :  { %14849 = vst [vmem:[#allocation17_spill] sm:$0xff] %v9594_v23  ;;  %v637_v45 = vadd.f32 %v9602_v27, %v9600_v26  ;;  %v793_v51 = vmul.f32 %v9600_v26, %v9600_v26  ;;  %v794_v56 = vmul.f32 %v9602_v27, %v9602_v27 }
  0xb1   :  { %v634_v31 = vadd.f32 %v633_v28, %v9594_v23  ;;  %v921_v41 = vadd.f32 %v920_v36, %v791_v35 }
  0xb2   :  { %6657 = vmatmul.msk.bf16.gmra.mxu0 %vm199_vm1, %v8769_v24  ;;  %6673 = vmatmul.msk.bf16.gmra.mxu1 %vm199_vm1, %v8769_v24  ;;  %v925_v9 = vadd.f32 %v794_v56, %v793_v51 }
  0xb3   :  { %6689 = vmatmul.msk.bf16.gmra.mxu2 %vm199_vm1, %v8769_v24  ;;  %6705 = vmatmul.msk.bf16.gmra.mxu3 %vm199_vm1, %v8769_v24  ;;  %v922_v49 = vadd.f32 %v921_v41, %v792_v44 }
  0xb4   :  { %630 = vadd.xlane.f32.xlu1 %v629_v34  ;;  %635 = vadd.xlane.f32.xlu2 %v634_v31 }
  0xb6   :  { %v9619_v37 = vpop.f32.mrf.mxu2  ;;  %v9621_v38 = vpop.f32.mrf.mxu3 }
  0xb7   :  { %14850 = vst [vmem:[#allocation18_spill] sm:$0xff] %v9619_v37  ;;  %v9625_v42 = vpop.f32.mrf.mxu0  ;;  %v9627_v43 = vpop.f32.mrf.mxu1  ;;  %v638_v59 = vadd.f32 %v637_v45, %v9619_v37  ;;  %v795_v7 = vmul.f32 %v9619_v37, %v9619_v37  ;;  %v796_v19 = vmul.f32 %v9621_v38, %v9621_v38 }
  0xb8   :  { %14851 = vst [vmem:[#allocation19_spill] sm:$0xff] %v9621_v38  ;;  %v642_v50 = vadd.f32 %v9627_v43, %v9625_v42  ;;  %v797_v60 = vmul.f32 %v9625_v42, %v9625_v42  ;;  %v798_v63 = vmul.f32 %v9627_v43, %v9627_v43 }
  0xb9   :  { %v639_v8 = vadd.f32 %v638_v59, %v9621_v38  ;;  %v926_v20 = vadd.f32 %v925_v9, %v795_v7 }
  0xba   :  { %v930_v10 = vadd.f32 %v798_v63, %v797_v60 }
  0xbb   :  { %v927_v30 = vadd.f32 %v926_v20, %v796_v19 }
  0xbc   :  { %918 = vadd.xlane.f32.xlu1 %v917_v46  ;;  %923 = vadd.xlane.f32.xlu2 %v922_v49 }
  0xbe   :  { %v9639_v57 = vpop.f32.mrf.mxu2  ;;  %v9641_v58 = vpop.f32.mrf.mxu3 }
  0xbf   :  { %v9648_v0 = vpop.f32.mrf.mxu0  ;;  %v9650_v1 = vpop.f32.mrf.mxu1  ;;  %v643_v4 = vadd.f32 %v642_v50, %v9639_v57  ;;  %v799_v6 = vmul.f32 %v9639_v57, %v9639_v57  ;;  %v800_v25 = vmul.f32 %v9641_v58, %v9641_v58 }
  0xc0   :  { %v647_v28 = vadd.f32 %v9650_v1, %v9648_v0  ;;  %v801_v31 = vmul.f32 %v9648_v0, %v9648_v0  ;;  %v802_v32 = vmul.f32 %v9650_v1, %v9650_v1 }
  0xc1   :  { %v644_v5 = vadd.f32 %v643_v4, %v9641_v58  ;;  %v931_v13 = vadd.f32 %v930_v10, %v799_v6 }
  0xc2   :  { %6658 = vmatmul.msk.bf16.gmra.mxu0 %vm199_vm1, %v8770_v16  ;;  %6674 = vmatmul.msk.bf16.gmra.mxu1 %vm199_vm1, %v8770_v16  ;;  %v935_v46 = vadd.f32 %v802_v32, %v801_v31 }
  0xc3   :  { %645 = vadd.xlane.f32.xlu0 %v644_v5  ;;  %6690 = vmatmul.msk.bf16.gmra.mxu2 %vm199_vm1, %v8770_v16  ;;  %v932_v29 = vadd.f32 %v931_v13, %v800_v25 }
  0xc4   :  { %640 = vadd.xlane.f32.xlu2 %v639_v8  ;;  %6706 = vmatmul.msk.bf16.gmra.mxu3 %vm199_vm1, %v8770_v16 }
  0xc6   :  { %v9662_v17 = vpop.f32.mrf.mxu2  ;;  %v9664_v18 = vpop.f32.mrf.mxu3 }
  0xc7   :  { %v9668_v21 = vpop.f32.mrf.mxu0  ;;  %v9670_v24 = vpop.f32.mrf.mxu1  ;;  %v648_v33 = vadd.f32 %v647_v28, %v9662_v17  ;;  %v803_v49 = vmul.f32 %v9662_v17, %v9662_v17  ;;  %v804_v60 = vmul.f32 %v9664_v18, %v9664_v18 }
  0xc8   :  { %v652_v34 = vadd.f32 %v9670_v24, %v9668_v21  ;;  %v805_v39 = vmul.f32 %v9668_v21, %v9668_v21  ;;  %v806_v40 = vmul.f32 %v9670_v24, %v9670_v24 }
  0xc9   :  { %v649_v50 = vadd.f32 %v648_v33, %v9664_v18  ;;  %v936_v63 = vadd.f32 %v935_v46, %v803_v49 }
  0xca   :  { %v940_v59 = vadd.f32 %v806_v40, %v805_v39 }
  0xcb   :  { %933 = vadd.xlane.f32.xlu0 %v932_v29  ;;  %v937_v13 = vadd.f32 %v936_v63, %v804_v60  ;;  %v8771_v29 = vld [vmem:[%s14711_s1 + $0x60] sm:$0xff] }
  0xcc   :  { %928 = vadd.xlane.f32.xlu2 %v927_v30 }
  0xce   :  { %v9687_v35 = vpop.f32.mrf.mxu2  ;;  %v9689_v36 = vpop.f32.mrf.mxu3 }
  0xcf   :  { %v9695_v41 = vpop.f32.mrf.mxu0  ;;  %v9697_v44 = vpop.f32.mrf.mxu1  ;;  %v653_v45 = vadd.f32 %v652_v34, %v9687_v35  ;;  %v807_v56 = vmul.f32 %v9687_v35, %v9687_v35  ;;  %v808_v9 = vmul.f32 %v9689_v36, %v9689_v36 }
  0xd0   :  { %v657_v10 = vadd.f32 %v9697_v44, %v9695_v41  ;;  %v809_v19 = vmul.f32 %v9695_v41, %v9695_v41  ;;  %v810_v20 = vmul.f32 %v9697_v44, %v9697_v44 }
  0xd1   :  { %v654_v51 = vadd.f32 %v653_v45, %v9689_v36  ;;  %v941_v4 = vadd.f32 %v940_v59, %v807_v56 }
  0xd2   :  { %v945_v45 = vadd.f32 %v810_v20, %v809_v19  ;;  %6659 = vmatmul.msk.bf16.gmra.mxu0 %vm199_vm1, %v8771_v29  ;;  %6675 = vmatmul.msk.bf16.gmra.mxu1 %vm199_vm1, %v8771_v29 }
  0xd3   :  { %650 = vadd.xlane.f32.xlu0 %v649_v50  ;;  %655 = vadd.xlane.f32.xlu1 %v654_v51  ;;  %v942_v16 = vadd.f32 %v941_v4, %v808_v9 }
  0xd4   :  { %6691 = vmatmul.msk.bf16.gmra.mxu2 %vm199_vm1, %v8771_v29  ;;  %6707 = vmatmul.msk.bf16.gmra.mxu3 %vm199_vm1, %v8771_v29 }
  0xd6   :  { %v9708_v5 = vpop.f32.mrf.mxu2  ;;  %v9710_v6 = vpop.f32.mrf.mxu3 }
  0xd7   :  { %v9712_v7 = vpop.f32.mrf.mxu0  ;;  %v9714_v8 = vpop.f32.mrf.mxu1  ;;  %v658_v25 = vadd.f32 %v657_v10, %v9708_v5  ;;  %v811_v46 = vmul.f32 %v9708_v5, %v9708_v5  ;;  %v812_v59 = vmul.f32 %v9710_v6, %v9710_v6 }
  0xd8   :  { %14852 = vst [vmem:[#allocation20_spill] sm:$0xff] %v9712_v7  ;;  %v662_v28 = vadd.f32 %v9714_v8, %v9712_v7  ;;  %v813_v32 = vmul.f32 %v9712_v7, %v9712_v7  ;;  %v814_v33 = vmul.f32 %v9714_v8, %v9714_v8 }
  0xd9   :  { %14853 = vst [vmem:[#allocation21_spill] sm:$0xff] %v9714_v8  ;;  %v659_v49 = vadd.f32 %v658_v25, %v9710_v6  ;;  %v946_v60 = vadd.f32 %v945_v45, %v811_v46 }
  0xda   :  { %v950_v56 = vadd.f32 %v814_v33, %v813_v32 }
  0xdb   :  { %938 = vadd.xlane.f32.xlu0 %v937_v13  ;;  %943 = vadd.xlane.f32.xlu1 %v942_v16  ;;  %v947_v20 = vadd.f32 %v946_v60, %v812_v59 }
  0xde   :  { %v9730_v30 = vpop.f32.mrf.mxu2  ;;  %v9732_v31 = vpop.f32.mrf.mxu3 }
  0xdf   :  { %14854 = vst [vmem:[#allocation22_spill] sm:$0xff] %v9730_v30  ;;  %v9738_v34 = vpop.f32.mrf.mxu0  ;;  %v9740_v39 = vpop.f32.mrf.mxu1  ;;  %v663_v40 = vadd.f32 %v662_v28, %v9730_v30  ;;  %v815_v51 = vmul.f32 %v9730_v30, %v9730_v30  ;;  %v816_v16 = vmul.f32 %v9732_v31, %v9732_v31 }
  0xe0   :  { %14855 = vst [vmem:[#allocation23_spill] sm:$0xff] %v9732_v31  ;;  %v667_v19 = vadd.f32 %v9740_v39, %v9738_v34  ;;  %v817_v28 = vmul.f32 %v9738_v34, %v9738_v34  ;;  %v818_v29 = vmul.f32 %v9740_v39, %v9740_v39 }
  0xe1   :  { %14856 = vst [vmem:[#allocation24_spill] sm:$0xff] %v9738_v34  ;;  %v664_v50 = vadd.f32 %v663_v40, %v9732_v31  ;;  %v951_v63 = vadd.f32 %v950_v56, %v815_v51 }
  0xe2   :  { %14857 = vst [vmem:[#allocation25_spill] sm:$0xff] %v9740_v39  ;;  %v955_v59 = vadd.f32 %v818_v29, %v817_v28 }
  0xe3   :  { %660 = vadd.xlane.f32.xlu1 %v659_v49  ;;  %665 = vadd.xlane.f32.xlu2 %v664_v50  ;;  %v952_v25 = vadd.f32 %v951_v63, %v816_v16 }
  0xe6   :  { %v9755_v4 = vpop.f32.mrf.mxu2  ;;  %v9757_v9 = vpop.f32.mrf.mxu3 }
  0xe7   :  { %14858 = vst [vmem:[#allocation26_spill] sm:$0xff] %v9755_v4  ;;  %v9759_v10 = vpop.f32.mrf.mxu0  ;;  %v9761_v13 = vpop.f32.mrf.mxu1  ;;  %v668_v32 = vadd.f32 %v667_v19, %v9755_v4  ;;  %v819_v60 = vmul.f32 %v9755_v4, %v9755_v4 }
  0xe8   :  { %14859 = vst [vmem:[#allocation27_spill] sm:$0xff] %v9757_v9  ;;  %v672_v33 = vadd.f32 %v9761_v13, %v9759_v10  ;;  %v821_v46 = vmul.f32 %v9759_v10, %v9759_v10  ;;  %v822_v49 = vmul.f32 %v9761_v13, %v9761_v13 }
  0xe9   :  { %14860 = vst [vmem:[#allocation28_spill] sm:$0xff] %v9759_v10  ;;  %v669_v63 = vadd.f32 %v668_v32, %v9757_v9  ;;  %v956_v62 = vadd.f32 %v955_v59, %v819_v60 }
  0xea   :  { %14861 = vst [vmem:[#allocation29_spill] sm:$0xff] %v9761_v13 }
  0xeb   :  { %948 = vadd.xlane.f32.xlu1 %v947_v20  ;;  %953 = vadd.xlane.f32.xlu2 %v952_v25  ;;  %v960_v20 = vadd.f32 %v822_v49, %v821_v46  ;;  %v820_v25 = vmul.f32 %v9757_v9, %v9757_v9 }
  0xed   :  { %v957_v46 = vadd.f32 %v956_v62, %v820_v25 }
  0xee   :  { %v9774_v40 = vpop.f32.mrf.mxu2  ;;  %v9776_v45 = vpop.f32.mrf.mxu3 }
  0xef   :  { %14862 = vst [vmem:[#allocation30_spill] sm:$0xff] %v9774_v40  ;;  %v9782_v50 = vpop.f32.mrf.mxu0  ;;  %v9784_v51 = vpop.f32.mrf.mxu1  ;;  %v673_v56 = vadd.f32 %v672_v33, %v9774_v40  ;;  %v823_v19 = vmul.f32 %v9774_v40, %v9774_v40 }
  0xf0   :  { %14863 = vst [vmem:[#allocation31_spill] sm:$0xff] %v9776_v45  ;;  %v825_v59 = vmul.f32 %v9782_v50, %v9782_v50  ;;  %v826_v60 = vmul.f32 %v9784_v51, %v9784_v51 }
  0xf1   :  { %14864 = vst [vmem:[#allocation32_spill] sm:$0xff] %v9782_v50  ;;  %v674_v16 = vadd.f32 %v673_v56, %v9776_v45  ;;  %v961_v61 = vadd.f32 %v960_v20, %v823_v19  ;;  %v824_v56 = vmul.f32 %v9776_v45, %v9776_v45 }
  0xf2   :  { %14865 = vst [vmem:[#allocation33_spill] sm:$0xff] %v9784_v51  ;;  %v965_v52 = vadd.f32 %v826_v60, %v825_v59 }
  0xf3   :  { %670 = vadd.xlane.f32.xlu2 %v669_v63  ;;  %675 = vadd.xlane.f32.xlu0 %v674_v16  ;;  %v677_v63 = vadd.f32 %v9784_v51, %v9782_v50  ;;  %v962_v49 = vadd.f32 %v961_v61, %v824_v56 }
  0xf6   :  { %v9795_v33 = vpop.f32.mrf.mxu2  ;;  %v9797_v28 = vpop.f32.mrf.mxu3 }
  0xf7   :  { %14866 = vst [vmem:[#allocation34_spill] sm:$0xff] %v9795_v33  ;;  %v9799_v29 = vpop.f32.mrf.mxu0  ;;  %v9801_v32 = vpop.f32.mrf.mxu1  ;;  %v678_v16 = vadd.f32 %v677_v63, %v9795_v33  ;;  %v827_v63 = vmul.f32 %v9795_v33, %v9795_v33  ;;  %v828_v12 = vmul.f32 %v9797_v28, %v9797_v28 }
  0xf8   :  { %14867 = vst [vmem:[#allocation35_spill] sm:$0xff] %v9797_v28  ;;  %v682_v19 = vadd.f32 %v9801_v32, %v9799_v29  ;;  %v829_v61 = vmul.f32 %v9799_v29, %v9799_v29  ;;  %v830_v62 = vmul.f32 %v9801_v32, %v9801_v32 }
  0xf9   :  { %14868 = vst [vmem:[#allocation36_spill] sm:$0xff] %v9799_v29  ;;  %v966_v11 = vadd.f32 %v965_v52, %v827_v63 }
  0xfa   :  { %14869 = vst [vmem:[#allocation37_spill] sm:$0xff] %v9801_v32 }
  0xfb   :  { %958 = vadd.xlane.f32.xlu2 %v957_v46  ;;  %963 = vadd.xlane.f32.xlu0 %v962_v49  ;;  %v679_v49 = vadd.f32 %v678_v16, %v9797_v28  ;;  %v967_v52 = vadd.f32 %v966_v11, %v828_v12 }
  0xfe   :  { %v9814_v20 = vpop.f32.mrf.mxu2  ;;  %v9816_v53 = vpop.f32.mrf.mxu3 }
  0xff   :  { %14870 = vst [vmem:[#allocation38_spill] sm:$0xff] %v9814_v20  ;;  %v9822_v25 = vpop.f32.mrf.mxu0  ;;  %v9824_v56 = vpop.f32.mrf.mxu1  ;;  %v683_v46 = vadd.f32 %v682_v19, %v9814_v20  ;;  %v831_v54 = vmul.f32 %v9814_v20, %v9814_v20  ;;  %v970_v19 = vadd.f32 %v830_v62, %v829_v61 }
 0x100   :  { %14871 = vst [vmem:[#allocation39_spill] sm:$0xff] %v9816_v53  ;;  %v833_v48 = vmul.f32 %v9822_v25, %v9822_v25  ;;  %v834_v47 = vmul.f32 %v9824_v56, %v9824_v56 }
 0x101   :  { %14872 = vst [vmem:[#allocation40_spill] sm:$0xff] %v9822_v25  ;;  %v684_v55 = vadd.f32 %v683_v46, %v9816_v53  ;;  %v971_v16 = vadd.f32 %v970_v19, %v831_v54 }
 0x102   :  { %14873 = vst [vmem:[#allocation41_spill] sm:$0xff] %v9824_v56  ;;  %v975_v59 = vadd.f32 %v834_v47, %v833_v48  ;;  %v687_v47 = vadd.f32 %v9824_v56, %v9822_v25  ;;  %v8772_v48 = vld [vmem:[%s14711_s1 + $0x68] sm:$0xff] }
 0x103   :  { %680 = vadd.xlane.f32.xlu0 %v679_v49  ;;  %685 = vadd.xlane.f32.xlu1 %v684_v55  ;;  %v832_v55 = vmul.f32 %v9816_v53, %v9816_v53 }
 0x104   :  { %6692 = vmatmul.msk.bf16.gmra.mxu2 %vm199_vm1, %v8772_v48  ;;  %6708 = vmatmul.msk.bf16.gmra.mxu3 %vm199_vm1, %v8772_v48 }
 0x105   :  { %v972_v54 = vadd.f32 %v971_v16, %v832_v55  ;;  %6660 = vmatmul.msk.bf16.gmra.mxu0 %vm199_vm1, %v8772_v48  ;;  %6676 = vmatmul.msk.bf16.gmra.mxu1 %vm199_vm1, %v8772_v48 }
 0x106   :  { %v9839_v60 = vpop.f32.mrf.mxu2  ;;  %v9841_v3 = vpop.f32.mrf.mxu3 }
 0x107   :  { %14874 = vst [vmem:[#allocation42_spill] sm:$0xff] %v9839_v60  ;;  %v835_v2 = vmul.f32 %v9839_v60, %v9839_v60  ;;  %v9845_v46 = vpop.f32.mrf.mxu0  ;;  %v9847_v15 = vpop.f32.mrf.mxu1  ;;  %v836_v61 = vmul.f32 %v9841_v3, %v9841_v3  ;;  %v688_v14 = vadd.f32 %v687_v47, %v9839_v60 }
 0x108   :  { %14875 = vst [vmem:[#allocation43_spill] sm:$0xff] %v9841_v3  ;;  %v837_v63 = vmul.f32 %v9845_v46, %v9845_v46  ;;  %v838_v49 = vmul.f32 %v9847_v15, %v9847_v15 }
 0x109   :  { %14876 = vst [vmem:[#allocation44_spill] sm:$0xff] %v9845_v46  ;;  %v976_v62 = vadd.f32 %v975_v59, %v835_v2 }
 0x10a   :  { %14877 = vst [vmem:[#allocation45_spill] sm:$0xff] %v9847_v15  ;;  %v980_v55 = vadd.f32 %v838_v49, %v837_v63  ;;  %v692_v63 = vadd.f32 %v9847_v15, %v9845_v46 }
 0x10b   :  { %968 = vadd.xlane.f32.xlu0 %v967_v52  ;;  %973 = vadd.xlane.f32.xlu1 %v972_v54  ;;  %v977_v19 = vadd.f32 %v976_v62, %v836_v61  ;;  %v689_v61 = vadd.f32 %v688_v14, %v9841_v3 }
 0x10d   :  { %978 = vadd.xlane.f32.xlu2 %v977_v19 }
 0x10e   :  { %v9867_v2 = vpop.f32.mrf.mxu2  ;;  %v9869_v11 = vpop.f32.mrf.mxu3 }
 0x10f   :  { %14878 = vst [vmem:[#allocation46_spill] sm:$0xff] %v9867_v2  ;;  %v621_v12 = vpop.xlane.xlu0 %620  ;;  %v9871_v16 = vpop.f32.mrf.mxu0  ;;  %v839_v59 = vmul.f32 %v9867_v2, %v9867_v2  ;;  %v840_v54 = vmul.f32 %v9869_v11, %v9869_v11  ;;  %v693_v14 = vadd.f32 %v692_v63, %v9867_v2 }
 0x110   :  { %14879 = vst [vmem:[#allocation47_spill] sm:$0xff] %v9869_v11  ;;  %v9875_v52 = vpop.f32.mrf.mxu1  ;;  %v841_v47 = vmul.f32 %v9871_v16, %v9871_v16  ;;  %v9888_v49 = vmul.f32 0.001953125, %v621_v12 }
 0x111   :  { %14880 = vst [vmem:[#allocation48_spill] sm:$0xff] %v9871_v16  ;;  %v842_v48 = vmul.f32 %v9875_v52, %v9875_v52  ;;  %v981_v62 = vadd.f32 %v980_v55, %v839_v59  ;;  %v697_v19 = vadd.f32 %v9875_v52, %v9871_v16 }
 0x112   :  { %14881 = vst [vmem:[#allocation49_spill] sm:$0xff] %v9875_v52 }
 0x113   :  { %690 = vadd.xlane.f32.xlu0 %v689_v61  ;;  %v982_v23 = vadd.f32 %v981_v62, %v840_v54  ;;  %v985_v22 = vadd.f32 %v842_v48, %v841_v47  ;;  %v694_v48 = vadd.f32 %v693_v14, %v9869_v11 }
 0x115   :  { %983 = vadd.xlane.f32.xlu2 %v982_v23  ;;  %v1129_v23 = vmul.f32 %v9888_v49, %v9888_v49 }
 0x116   :  { %v9891_v13 = vpop.f32.mrf.mxu2  ;;  %v9893_v10 = vpop.f32.mrf.mxu3 }
 0x117   :  { %14882 = vst [vmem:[#allocation50_spill] sm:$0xff] %v9891_v13  ;;  %v843_v59 = vmul.f32 %v9891_v13, %v9891_v13  ;;  %v909_v55 = vpop.xlane.xlu0 %908  ;;  %v626_v52 = vpop.xlane.xlu1 %625  ;;  %v698_v61 = vadd.f32 %v697_v19, %v9891_v13  ;;  %v844_v54 = vmul.f32 %v9893_v10, %v9893_v10 }
 0x118   :  { %14883 = vst [vmem:[#allocation51_spill] sm:$0xff] %v9893_v10  ;;  %v1097_v12 = vmul.f32 0.001953125, %v909_v55  ;;  %v9902_v62 = vpop.f32.mrf.mxu0  ;;  %v9904_v47 = vpop.f32.mrf.mxu1  ;;  %v9912_v60 = vmul.f32 0.001953125, %v626_v52 }
 0x119   :  { %14884 = vst [vmem:[#allocation52_spill] sm:$0xff] %v9902_v62  ;;  %v699_v63 = vadd.f32 %v698_v61, %v9893_v10  ;;  %v986_v16 = vadd.f32 %v985_v22, %v843_v59  ;;  %v845_v19 = vmul.f32 %v9902_v62, %v9902_v62  ;;  %v846_v13 = vmul.f32 %v9904_v47, %v9904_v47 }
 0x11a   :  { %14885 = vst [vmem:[#allocation53_spill] sm:$0xff] %v9904_v47  ;;  %v1161_v56 = vsub.f32 %v1097_v12, %v1129_v23  ;;  %v702_v14 = vadd.f32 %v9904_v47, %v9902_v62 }
 0x11b   :  { %695 = vadd.xlane.f32.xlu0 %v694_v48  ;;  %700 = vadd.xlane.f32.xlu1 %v699_v63  ;;  %v987_v3 = vadd.f32 %v986_v16, %v844_v54  ;;  %v990_v12 = vadd.f32 %v846_v13, %v845_v19 }
 0x11c   :  { %v1193_v55 = vmax.f32 %v1161_v56, 0.0 }
 0x11d   :  { %988 = vadd.xlane.f32.xlu2 %v987_v3  ;;  %v1130_v3 = vmul.f32 %v9912_v60, %v9912_v60 }
 0x11e   :  { %v9916_v25 = vadd.f32 1e-05, %v1193_v55  ;;  %v9918_v22 = vpop.f32.mrf.mxu2  ;;  %v9920_v59 = vpop.f32.mrf.mxu3 }
 0x11f   :  { %14886 = vst [vmem:[#allocation54_spill] sm:$0xff] %v9918_v22  ;;  %v914_v61 = vpop.xlane.xlu1 %913  ;;  %v847_v23 = vmul.f32 %v9918_v22, %v9918_v22  ;;  %v703_v16 = vadd.f32 %v702_v14, %v9918_v22  ;;  %v848_v48 = vmul.f32 %v9920_v59, %v9920_v59 }
 0x120   :  { %14887 = vst [vmem:[#allocation55_spill] sm:$0xff] %v9920_v59  ;;  %9299 = vrsqrt.f32 %v9916_v25  ;;  %v1098_v56 = vmul.f32 0.001953125, %v914_v61  ;;  %v9928_v52 = vpop.f32.mrf.mxu0  ;;  %v9930_v54 = vpop.f32.mrf.mxu1  ;;  %vm1295_vm3 = vweird.f32 %v9916_v25 }
 0x121   :  { %14888 = vst [vmem:[#allocation56_spill] sm:$0xff] %v9928_v52  ;;  %v991_v63 = vadd.f32 %v990_v12, %v847_v23  ;;  %v707_v13 = vadd.f32 %v9930_v54, %v9928_v52  ;;  %v704_v14 = vadd.f32 %v703_v16, %v9920_v59  ;;  %v849_v12 = vmul.f32 %v9928_v52, %v9928_v52 }
 0x122   :  { %14889 = vst [vmem:[#allocation57_spill] sm:$0xff] %v9930_v54  ;;  %v1162_v55 = vsub.f32 %v1098_v56, %v1130_v3  ;;  %v850_v16 = vmul.f32 %v9930_v54, %v9930_v54 }
 0x123   :  { %v992_v19 = vadd.f32 %v991_v63, %v848_v48 }
 0x124   :  { %v1194_v22 = vmax.f32 %v1162_v55, 0.0  ;;  %v995_v52 = vadd.f32 %v850_v16, %v849_v12 }
 0x125   :  { %993 = vadd.xlane.f32.xlu0 %v992_v19  ;;  %705 = vadd.xlane.f32.xlu2 %v704_v14 }
 0x126   :  { %v9937_v10 = vpop.eup %9299  ;;  %v9939_v61 = vadd.f32 1e-05, %v1194_v22  ;;  %v9941_v47 = vpop.f32.mrf.mxu2 }
 0x127   :  { %14890 = vst [vmem:[#allocation58_spill] sm:$0xff] %v9941_v47  ;;  %v9943_v62 = vpop.f32.mrf.mxu3  ;;  %v1290_v23 = vmul.f32 %v9937_v10, %v9916_v25  ;;  %v631_v3 = vpop.xlane.xlu1 %630  ;;  %v708_v48 = vadd.f32 %v707_v13, %v9941_v47  ;;  %v851_v59 = vmul.f32 %v9941_v47, %v9941_v47  ;;  %vm1296_vm2 = vweird.f32 %v9937_v10 }
 0x128   :  { %14891 = vst [vmem:[#allocation59_spill] sm:$0xff] %v9943_v62  ;;  %v636_v56 = vpop.xlane.xlu2 %635  ;;  %9301 = vrsqrt.f32 %v9939_v61  ;;  %v9953_v22 = vpop.f32.mrf.mxu0  ;;  %v9958_v19 = vmul.f32 0.001953125, %v631_v3  ;;  %v852_v32 = vmul.f32 %v9943_v62, %v9943_v62  ;;  %vm1297_vm4 = vmor %vm1295_vm3, %vm1296_vm2  ;;  %vm1305_vm6 = vweird.f32 %v9939_v61 }
 0x129   :  { %14892 = vst [vmem:[#allocation60_spill] sm:$0xff] %v9953_v22  ;;  %v9955_v63 = vpop.f32.mrf.mxu1  ;;  %v1291_v55 = vmul.f32 %v9937_v10, %v1290_v23  ;;  %v709_v54 = vadd.f32 %v708_v48, %v9943_v62  ;;  %v9963_v51 = vmul.f32 0.001953125, %v636_v56  ;;  %v9363_v56 = vmov 0  }
 0x12a   :  { %14893 = vst [vmem:[#allocation61_spill] sm:$0xff] %v9955_v63  ;;  %v712_v15 = vadd.f32 %v9955_v63, %v9953_v22  ;;  %v1131_v3 = vmul.f32 %v9958_v19, %v9958_v19  ;;  %v854_v12 = vmul.f32 %v9955_v63, %v9955_v63  ;;  %9296 = vset.pattern.permute.xlu2 %v9363_v56 }
 0x12b   :  { %v1292_v14 = vmul.f32 0.5, %v1291_v55  ;;  %v853_v55 = vmul.f32 %v9953_v22, %v9953_v22  ;;  %9298 = vset.pattern.permute.xlu0 %v9363_v56  ;;  %v996_v29 = vadd.f32 %v995_v52, %v851_v59  ;;  %9297 = vset.pattern.permute.xlu1 %v9363_v56  ;;  %v1132_v63 = vmul.f32 %v9963_v51, %v9963_v51 }
 0x12d   :  { %v1293_v13 = vsub.f32 1.5, %v1292_v14  ;;  %710 = vadd.xlane.f32.xlu2 %v709_v54  ;;  %v997_v4 = vadd.f32 %v996_v29, %v852_v32  ;;  %v8773_v29 = vld [vmem:[%s14711_s1 + $0x70] sm:$0xff]  ;;  %v1226_v32 = vld [vmem:[%s14712_s2 + $0x8] sm:$0xff] }
 0x12e   :  { %v9969_v23 = vpop.eup %9301  ;;  %v9977_v16 = vpop.f32.mrf.mxu2  ;;  %6693 = vmatmul.msk.bf16.gmra.mxu2 %vm199_vm1, %v8773_v29  ;;  %6709 = vmatmul.msk.bf16.gmra.mxu3 %vm199_vm1, %v8773_v29 }
 0x12f   :  { %14894 = vst [vmem:[#allocation62_spill] sm:$0xff] %v9977_v16  ;;  %v9979_v54 = vpop.f32.mrf.mxu3  ;;  %v1300_v48 = vmul.f32 %v9969_v23, %v9939_v61  ;;  %v919_v14 = vpop.xlane.xlu1 %918  ;;  %v713_v47 = vadd.f32 %v712_v15, %v9977_v16  ;;  %v1294_v33 = vmul.f32 %v9937_v10, %v1293_v13  ;;  %v1225_v15 = vld [vmem:[%s14712_s2] sm:$0xff]  ;;  %vm1306_vm5 = vweird.f32 %v9969_v23  ;;  %6661 = vmatmul.msk.bf16.gmra.mxu0 %vm199_vm1, %v8773_v29 }
 0x130   :  { %14895 = vst [vmem:[#allocation63_spill] sm:$0xff] %v9979_v54  ;;  %v924_v62 = vpop.xlane.xlu2 %923  ;;  %v1099_v22 = vmul.f32 0.001953125, %v919_v14  ;;  %v9987_v46 = vpop.f32.mrf.mxu0  ;;  %vm1307_vm7 = vmor %vm1305_vm6, %vm1306_vm5  ;;  %6677 = vmatmul.msk.bf16.gmra.mxu1 %vm199_vm1, %v8773_v29 }
 0x131   :  { %v1100_v50 = vmul.f32 0.001953125, %v924_v62  ;;  %14896 = vst [vmem:[#allocation64_spill] sm:$0xff] %v9987_v46  ;;  %v9989_v28 = vpop.f32.mrf.mxu1  ;;  %v1301_v9 = vmul.f32 %v9969_v23, %v1300_v48  ;;  %v714_v56 = vadd.f32 %v713_v47, %v9979_v54  ;;  %v855_v62 = vmul.f32 %v9977_v16, %v9977_v16 }
 0x132   :  { %14897 = vst [vmem:[#allocation65_spill] sm:$0xff] %v9989_v28  ;;  %v1163_v59 = vsub.f32 %v1099_v22, %v1131_v3  ;;  %v1298_v13 = vsel %vm1297_vm4, %v9937_v10, %v1294_v33  ;;  %v1000_v48 = vadd.f32 %v854_v12, %v853_v55 }
 0x133   :  { %v1164_v52 = vsub.f32 %v1100_v50, %v1132_v63  ;;  %v1302_v14 = vmul.f32 0.5, %v1301_v9  ;;  %715 = vadd.xlane.f32.xlu0 %v714_v56  ;;  %v10001_v34 = vmul.f32 %v1298_v13, %v1225_v15 }
 0x134   :  { %v1195_v39 = vmax.f32 %v1163_v59, 0.0  ;;  %v1001_v9 = vadd.f32 %v1000_v48, %v855_v62  ;;  %v857_v59 = vmul.f32 %v9987_v46, %v9987_v46 }
 0x135   :  { %v1196_v25 = vmax.f32 %v1164_v52, 0.0  ;;  %14898 = vst [vmem:[#allocation66_spill] sm:$0xff] %v10001_v34  ;;  %v1303_v11 = vsub.f32 1.5, %v1302_v14  ;;  %998 = vadd.xlane.f32.xlu2 %v997_v4  ;;  %v10013_v10 = vmul.f32 %v10001_v34, %v9888_v49  ;;  %v858_v52 = vmul.f32 %v9989_v28, %v9989_v28 }
 0x136   :  { %v10003_v22 = vadd.f32 1e-05, %v1195_v39  ;;  %v10007_v47 = vpop.f32.mrf.mxu2  ;;  %v646_v33 = vpop.xlane.xlu0 %645  ;;  %v856_v39 = vmul.f32 %v9979_v54, %v9979_v54 }
 0x137   :  { %v10005_v50 = vadd.f32 1e-05, %v1196_v25  ;;  %14899 = vst [vmem:[#allocation67_spill] sm:$0xff] %v10007_v47  ;;  %v10009_v63 = vpop.f32.mrf.mxu3  ;;  %v1304_v4 = vmul.f32 %v9969_v23, %v1303_v11  ;;  %v717_v11 = vadd.f32 %v9989_v28, %v9987_v46  ;;  %v10039_v12 = vmul.f32 0.001953125, %v646_v33 }
 0x138   :  { %14900 = vst [vmem:[#allocation68_spill] sm:$0xff] %v10009_v63  ;;  %9303 = vrsqrt.f32 %v10003_v22  ;;  %v10032_v49 = vpop.f32.mrf.mxu0  ;;  %v1002_v55 = vadd.f32 %v1001_v9, %v856_v39  ;;  %v1005_v54 = vadd.f32 %v858_v52, %v857_v59  ;;  %vm1315_vm9 = vweird.f32 %v10003_v22 }
 0x139   :  { %14901 = vst [vmem:[#allocation69_spill] sm:$0xff] %v10013_v10  ;;  %9305 = vrsqrt.f32 %v10005_v50  ;;  %v10034_v3 = vpop.f32.mrf.mxu1  ;;  %v1308_v61 = vsel %vm1307_vm7, %v9969_v23, %v1304_v4  ;;  %v718_v13 = vadd.f32 %v717_v11, %v10007_v47  ;;  %v861_v9 = vmul.f32 %v10032_v49, %v10032_v49 }
 0x13a   :  { %14902 = vst [vmem:[#allocation70_spill] sm:$0xff] %v10032_v49  ;;  %v10041_v15 = vmul.f32 %v1308_v61, %v1226_v32  ;;  %v722_v56 = vadd.f32 %v10034_v3, %v10032_v49  ;;  %v862_v33 = vmul.f32 %v10034_v3, %v10034_v3  ;;  %v1134_v32 = vmul.f32 %v10039_v12, %v10039_v12 }
 0x13b   :  { %14903 = vst [vmem:[#allocation71_spill] sm:$0xff] %v10034_v3  ;;  %1003 = vadd.xlane.f32.xlu0 %v1002_v55  ;;  %v859_v10 = vmul.f32 %v10007_v47, %v10007_v47  ;;  %v10073_v3 = vpop.xlane.xlu2 %640  ;;  %vm1325_vm11 = vweird.f32 %v10005_v50 }
 0x13c   :  { %14904 = vst [vmem:[#allocation72_spill] sm:$0xff] %v10041_v15  ;;  %v10054_v23 = vmul.f32 %v10041_v15, %v9912_v60  ;;  %v719_v15 = vadd.f32 %v718_v13, %v10009_v63  ;;  %v1010_v28 = vadd.f32 %v862_v33, %v861_v9 }
 0x13d   :  { %v1006_v47 = vadd.f32 %v1005_v54, %v859_v10 }
 0x13e   :  { %v9304_v62 = vpop.eup %9303  ;;  %v10049_v14 = vpop.f32.mrf.mxu2  ;;  %14906 = vst [vmem:[#allocation74_spill] sm:$0xff] %v10054_v23 }
 0x13f   :  { %14905 = vst [vmem:[#allocation73_spill] sm:$0xff] %v10049_v14  ;;  %v9306_v25 = vpop.eup %9305  ;;  %v1310_v48 = vmul.f32 %v9304_v62, %v10003_v22  ;;  %v934_v29 = vpop.xlane.xlu0 %933  ;;  %v723_v4 = vadd.f32 %v722_v56, %v10049_v14  ;;  %v863_v16 = vmul.f32 %v10049_v14, %v10049_v14  ;;  %vm1316_vm8 = vweird.f32 %v9304_v62 }
 0x140   :  { %v1320_v39 = vmul.f32 %v9306_v25, %v10005_v50  ;;  %v10065_v11 = vpop.f32.mrf.mxu3  ;;  %v1102_v60 = vmul.f32 0.001953125, %v934_v29  ;;  %vm1326_vm10 = vweird.f32 %v9306_v25  ;;  %vm1317_vm12 = vmor %vm1315_vm9, %vm1316_vm8 }
 0x141   :  { %14907 = vst [vmem:[#allocation75_spill] sm:$0xff] %v10065_v11  ;;  %v1311_v55 = vmul.f32 %v9304_v62, %v1310_v48  ;;  %v724_v61 = vadd.f32 %v723_v4, %v10065_v11  ;;  %v1011_v59 = vadd.f32 %v1010_v28, %v863_v16  ;;  %v864_v9 = vmul.f32 %v10065_v11, %v10065_v11  ;;  %vm1327_vm13 = vmor %vm1325_vm11, %vm1326_vm10 }
 0x142   :  { %v1321_v23 = vmul.f32 %v9306_v25, %v1320_v39  ;;  %v1166_v56 = vsub.f32 %v1102_v60, %v1134_v32  ;;  %v860_v39 = vmul.f32 %v10009_v63, %v10009_v63 }
 0x143   :  { %v1312_v34 = vmul.f32 0.5, %v1311_v55  ;;  %725 = vadd.xlane.f32.xlu1 %v724_v61  ;;  %720 = vadd.xlane.f32.xlu0 %v719_v15  ;;  %v10092_v60 = vpop.xlane.xlu2 %928 }
 0x144   :  { %v1322_v46 = vmul.f32 0.5, %v1321_v23  ;;  %v1198_v48 = vmax.f32 %v1166_v56, 0.0  ;;  %v1227_v23 = vld [vmem:[%s14712_s2 + $0x10] sm:$0xff]  ;;  %v1007_v54 = vadd.f32 %v1006_v47, %v860_v39 }
 0x145   :  { %v1313_v29 = vsub.f32 1.5, %v1312_v34  ;;  %v1012_v34 = vadd.f32 %v1011_v59, %v864_v9 }
 0x146   :  { %v1323_v52 = vsub.f32 1.5, %v1322_v46  ;;  %v1262_v4 = vadd.f32 1e-05, %v1198_v48  ;;  %v1228_v46 = vld [vmem:[%s14712_s2 + $0x18] sm:$0xff]  ;;  %v656_v39 = vpop.xlane.xlu1 %655 }
 0x147   :  { %v651_v13 = vpop.xlane.xlu0 %650  ;;  %v1314_v15 = vmul.f32 %v9304_v62, %v1313_v29 }
 0x148   :  { %9307 = vrsqrt.f32 %v1262_v4  ;;  %v1324_v16 = vmul.f32 %v9306_v25, %v1323_v52  ;;  %v10087_v33 = vmul.f32 0.001953125, %v651_v13  ;;  %vm1345_vm15 = vweird.f32 %v1262_v4 }
 0x149   :  { %v1318_v28 = vsel %vm1317_vm12, %v9304_v62, %v1314_v15  ;;  %v8774_v62 = vld [vmem:[%s14711_s1 + $0x78] sm:$0xff]  ;;  %v1230_v15 = vld [vmem:[%s14712_s2 + $0x28] sm:$0xff] }
 0x14a   :  { %v1611_v22 = vmul.f32 %v1318_v28, %v1227_v23  ;;  %v1328_v10 = vsel %vm1327_vm13, %v9306_v25, %v1324_v16  ;;  %v1135_v56 = vmul.f32 %v10087_v33, %v10087_v33  ;;  %6694 = vmatmul.msk.bf16.gmra.mxu2 %vm199_vm1, %v8774_v62  ;;  %6710 = vmatmul.msk.bf16.gmra.mxu3 %vm199_vm1, %v8774_v62  ;;  %v10111_v28 = vpop.f32.mrf.mxu0 }
 0x14b   :  { %1013 = vadd.xlane.f32.xlu1 %v1012_v34  ;;  %1008 = vadd.xlane.f32.xlu0 %v1007_v54  ;;  %v1612_v32 = vmul.f32 %v1328_v10, %v1228_v46  ;;  %14910 = vst [vmem:[#allocation78_spill] sm:$0xff] %v10111_v28  ;;  %v10113_v46 = vpop.f32.mrf.mxu1 }
 0x14c   :  { %v10090_v50 = vmul.f32 %v1611_v22, %v9958_v19  ;;  %6662 = vmatmul.msk.bf16.gmra.mxu0 %vm199_vm1, %v8774_v62  ;;  %6678 = vmatmul.msk.bf16.gmra.mxu1 %vm199_vm1, %v8774_v62  ;;  %14911 = vst [vmem:[#allocation79_spill] sm:$0xff] %v10113_v46 }
 0x14d   :  { %1749 = vperm.xlu2 %9296, %v1611_v22   ;;  %v10098_v47 = vmul.f32 %v1612_v32, %v9963_v51 }
 0x14e   :  { %14908 = vst [vmem:[#allocation76_spill] sm:$0xff] %v10090_v50  ;;  %v9308_v55 = vpop.eup %9307  ;;  %v944_v62 = vpop.xlane.xlu1 %943 }
 0x14f   :  { %14909 = vst [vmem:[#allocation77_spill] sm:$0xff] %v10098_v47  ;;  %v939_v61 = vpop.xlane.xlu0 %938  ;;  %v1340_v25 = vmul.f32 %v9308_v55, %v1262_v4  ;;  %vm1346_vm14 = vweird.f32 %v9308_v55 }
 0x150   :  { %v1103_v48 = vmul.f32 0.001953125, %v939_v61  ;;  %vm1347_vm0 = vmor %vm1345_vm15, %vm1346_vm14 }
 0x151   :  { %v1341_v19 = vmul.f32 %v9308_v55, %v1340_v25  ;;  %v10117_v25 = vpop.f32.mrf.mxu2 }
 0x152   :  { %v1167_v29 = vsub.f32 %v1103_v48, %v1135_v56  ;;  %14912 = vst [vmem:[#allocation80_spill] sm:$0xff] %v10117_v25 }
 0x153   :  { %v1342_v59 = vmul.f32 0.5, %v1341_v19  ;;  %v10123_v19 = vpop.f32.mrf.mxu3 }
 0x154   :  { %v1199_v51 = vmax.f32 %v1167_v29, 0.0  ;;  %14913 = vst [vmem:[#allocation81_spill] sm:$0xff] %v10123_v19 }
 0x155   :  { %v1343_v52 = vsub.f32 1.5, %v1342_v59 }
 0x156   :  { %v1263_v13 = vadd.f32 1e-05, %v1199_v51  ;;  %v10106_v9 = vpop.xlane.xlu2 %665 }
 0x157   :  { %v1344_v23 = vmul.f32 %v9308_v55, %v1343_v52  ;;  %v10127_v52 = vpop.f32.mrf.mxu0 }
 0x158   :  { %9309 = vrsqrt.f32 %v1263_v13  ;;  %14914 = vst [vmem:[#allocation82_spill] sm:$0xff] %v10127_v52  ;;  %vm1355_vm2 = vweird.f32 %v1263_v13 }
 0x159   :  { %v1348_v34 = vsel %vm1347_vm0, %v9308_v55, %v1344_v23  ;;  %v1646_v55 = vld [vmem:[%s14713_s3 + $0x28] sm:$0xff]  ;;  %v10129_v23 = vpop.f32.mrf.mxu1 }
 0x15a   :  { %v1614_v22 = vmul.f32 %v1348_v34, %v1230_v15  ;;  %14915 = vst [vmem:[#allocation83_spill] sm:$0xff] %v10129_v23  ;;  %v661_v15 = vpop.xlane.xlu1 %660 }
 0x15b   :  { %v10149_v47 = vpop.f32.mrf.mxu3 }
 0x15c   :  { %v1678_v4 = vmul.f32 %v1614_v22, %v10039_v12  ;;  %14917 = vst [vmem:[#allocation85_spill] sm:$0xff] %v10149_v47 }
 0x15e   :  { %v9310_v16 = vpop.eup %9309  ;;  %v10115_v54 = vpop.xlane.xlu2 %953  ;;  %v1710_v51 = vsub.f32 %v1646_v55, %v1678_v4 }
 0x15f   :  { %v1350_v10 = vmul.f32 %v9310_v16, %v1263_v13  ;;  %1764 = vperm.xlu0 %9298, %v1614_v22   ;;  %vm1356_vm1 = vweird.f32 %v9310_v16  ;;  %v1231_v22 = vld [vmem:[%s14712_s2 + $0x30] sm:$0xff]  ;;  %v869_v13 = vmul.f32 %v10127_v52, %v10127_v52 }
 0x160   :  { %vm1357_vm3 = vmor %vm1355_vm2, %vm1356_vm1 }
 0x161   :  { %v1351_v61 = vmul.f32 %v9310_v16, %v1350_v10 }
 0x162   :  { %v949_v11 = vpop.xlane.xlu1 %948 }
 0x163   :  { %v1352_v56 = vmul.f32 0.5, %v1351_v61  ;;  %v10138_v61 = vpop.f32.mrf.mxu2 }
 0x164   :  { %1754 = vperm.xlu1 %9297, %v1612_v32   ;;  %v732_v32 = vadd.f32 %v10129_v23, %v10127_v52  ;;  %14916 = vst [vmem:[#allocation84_spill] sm:$0xff] %v10138_v61 }
 0x165   :  { %v1353_v48 = vsub.f32 1.5, %v1352_v56 }
 0x166   :  { %v671_v29 = vpop.xlane.xlu2 %670  ;;  %v10125_v59 = vpop.xlane.xlu0 %675 }
 0x167   :  { %2052 = vperm.xlu0 %9298, %v1710_v51   ;;  %v1354_v12 = vmul.f32 %v9310_v16, %v1353_v48  ;;  %v10133_v34 = vmul.f32 0.001953125, %v671_v29  ;;  %v870_v48 = vmul.f32 %v10129_v23, %v10129_v23  ;;  %v733_v29 = vadd.f32 %v732_v32, %v10138_v61 }
 0x168   :  { %v1104_v23 = vmul.f32 0.001953125, %v944_v62  ;;  %v10167_v62 = vmul.f32 0.001953125, %v10073_v3 }
 0x169   :  { %v1358_v10 = vsel %vm1357_vm3, %v9310_v16, %v1354_v12  ;;  %v1139_v51 = vmul.f32 %v10133_v34, %v10133_v34  ;;  %v10151_v16 = vmul.f32 0.001953125, %v656_v39  ;;  %v734_v63 = vadd.f32 %v733_v29, %v10149_v47 }
 0x16a   :  { %v1615_v55 = vmul.f32 %v1358_v10, %v1231_v22  ;;  %v871_v22 = vmul.f32 %v10138_v61, %v10138_v61  ;;  %v1020_v10 = vadd.f32 %v870_v48, %v869_v13  ;;  %v10169_v48 = vpop.f32.mrf.mxu0 }
 0x16b   :  { %v1136_v39 = vmul.f32 %v10151_v16, %v10151_v16  ;;  %14918 = vst [vmem:[#allocation86_spill] sm:$0xff] %v10169_v48 }
 0x16c   :  { %v1679_v52 = vmul.f32 %v1615_v55, %v10087_v33  ;;  %v872_v33 = vmul.f32 %v10149_v47, %v10149_v47 }
 0x16d   :  { %v1168_v13 = vsub.f32 %v1104_v23, %v1136_v39 }
 0x16e   :  { %v959_v4 = vpop.xlane.xlu2 %958  ;;  %v10140_v56 = vpop.xlane.xlu0 %963 }
 0x16f   :  { %v1107_v50 = vmul.f32 0.001953125, %v959_v4  ;;  %1769 = vperm.xlu0 %9298, %v1615_v55   ;;  %v1647_v4 = vld [vmem:[%s14713_s3 + $0x30] sm:$0xff]  ;;  %v1021_v55 = vadd.f32 %v1020_v10, %v871_v22  ;;  %v1200_v22 = vmax.f32 %v1168_v13, 0.0  ;;  %v10178_v10 = vpop.f32.mrf.mxu2  ;;  %v10191_v13 = vpop.f32.mrf.mxu3 }
 0x170   :  { %v1711_v29 = vsub.f32 %v1647_v4, %v1679_v52  ;;  %v1133_v52 = vmul.f32 %v10167_v62, %v10167_v62  ;;  %14920 = vst [vmem:[#allocation88_spill] sm:$0xff] %v10178_v10 }
 0x171   :  { %v1171_v12 = vsub.f32 %v1107_v50, %v1139_v51  ;;  %v10171_v51 = vpop.f32.mrf.mxu1  ;;  %14921 = vst [vmem:[#allocation89_spill] sm:$0xff] %v10191_v13 }
 0x172   :  { %14919 = vst [vmem:[#allocation87_spill] sm:$0xff] %v10171_v51 }
 0x173   :  { %v1203_v32 = vmax.f32 %v1171_v12, 0.0  ;;  %v1101_v12 = vmul.f32 0.001953125, %v10092_v60  ;;  %v873_v60 = vmul.f32 %v10169_v48, %v10169_v48 }
 0x175   :  { %v1267_v14 = vadd.f32 1e-05, %v1203_v32  ;;  %v1022_v32 = vadd.f32 %v1021_v55, %v872_v33  ;;  %v1165_v4 = vsub.f32 %v1101_v12, %v1133_v52  ;;  %v10189_v55 = vadd.f32 1e-05, %v1200_v22 }
 0x176   :  { %v10162_v50 = vpop.xlane.xlu0 %680  ;;  %735 = vadd.xlane.f32.xlu2 %v734_v63  ;;  %v737_v63 = vadd.f32 %v10171_v51, %v10169_v48  ;;  %v10180_v3 = vpop.xlane.xlu1 %685  ;;  %v10193_v12 = vmul.f32 0.001953125, %v661_v15  ;;  %v875_v48 = vmul.f32 %v10178_v10, %v10178_v10 }
 0x177   :  { %9311 = vrsqrt.f32 %v1267_v14  ;;  %2057 = vperm.xlu0 %9298, %v1711_v29   ;;  %v874_v29 = vmul.f32 %v10171_v51, %v10171_v51  ;;  %v1197_v2 = vmax.f32 %v1165_v4, 0.0  ;;  %vm1395_vm5 = vweird.f32 %v1267_v14 }
 0x178   :  { %v738_v33 = vadd.f32 %v737_v63, %v10178_v10  ;;  %9313 = vrsqrt.f32 %v10189_v55  ;;  %v1105_v63 = vmul.f32 0.001953125, %v949_v11  ;;  %v1137_v15 = vmul.f32 %v10193_v12, %v10193_v12 }
 0x179   :  { %v1025_v8 = vadd.f32 %v874_v29, %v873_v60  ;;  %v10201_v31 = vadd.f32 1e-05, %v1197_v2  ;;  %v1235_v2 = vld [vmem:[%s14712_s2 + $0x50] sm:$0xff]  ;;  %v865_v10 = vmul.f32 %v10111_v28, %v10111_v28  ;;  %vm1365_vm7 = vweird.f32 %v10189_v55 }
 0x17a   :  { %v739_v51 = vadd.f32 %v738_v33, %v10191_v13  ;;  %v876_v33 = vmul.f32 %v10191_v13, %v10191_v13  ;;  %v867_v13 = vmul.f32 %v10117_v25, %v10117_v25 }
 0x17b   :  { %v1026_v60 = vadd.f32 %v1025_v8, %v875_v48  ;;  %9315 = vrsqrt.f32 %v10201_v31  ;;  %vm1335_vm15 = vweird.f32 %v10201_v31 }
 0x17d   :  { %v9312_v23 = vpop.eup %9311 }
 0x17e   :  { %v1390_v39 = vmul.f32 %v9312_v23, %v1267_v14  ;;  %v10182_v47 = vpop.xlane.xlu0 %968  ;;  %1023 = vadd.xlane.f32.xlu2 %v1022_v32  ;;  %v727_v32 = vadd.f32 %v10113_v46, %v10111_v28  ;;  %vm1396_vm4 = vweird.f32 %v9312_v23  ;;  %v10205_v4 = vpop.xlane.xlu1 %973 }
 0x17f   :  { %vm1397_vm6 = vmor %vm1395_vm5, %vm1396_vm4  ;;  %v10222_v8 = vpop.eup %9313 }
 0x180   :  { %v1391_v61 = vmul.f32 %v9312_v23, %v1390_v39  ;;  %v979_v49 = vpop.xlane.xlu2 %978  ;;  %v1360_v28 = vmul.f32 %v10222_v8, %v10189_v55  ;;  %vm1366_vm8 = vweird.f32 %v10222_v8 }
 0x181   :  { %v1111_v14 = vmul.f32 0.001953125, %v979_v49  ;;  %vm10299_vm10 = vmor %vm1365_vm7, %vm1366_vm8 }
 0x182   :  { %v1392_v52 = vmul.f32 0.5, %v1391_v61  ;;  %v728_v61 = vadd.f32 %v727_v32, %v10117_v25 }
 0x184   :  { %v1393_v22 = vsub.f32 1.5, %v1392_v52  ;;  %v1169_v52 = vsub.f32 %v1105_v63, %v1137_v15  ;;  %v729_v63 = vadd.f32 %v728_v61, %v10123_v19  ;;  %v1027_v15 = vadd.f32 %v1026_v60, %v876_v33  ;;  %v10242_v60 = vpop.eup %9315 }
 0x185   :  { %vm1336_vm13 = vweird.f32 %v10242_v60 }
 0x186   :  { %v691_v39 = vpop.xlane.xlu0 %690  ;;  %740 = vadd.xlane.f32.xlu2 %v739_v51  ;;  %v1394_v29 = vmul.f32 %v9312_v23, %v1393_v22  ;;  %v866_v51 = vmul.f32 %v10113_v46, %v10113_v46  ;;  %v1201_v30 = vmax.f32 %v1169_v52, 0.0  ;;  %vm10356_vm1 = vmor %vm1335_vm15, %vm1336_vm13 }
 0x187   :  { %v10210_v11 = vmul.f32 0.001953125, %v691_v39 }
 0x188   :  { %v10219_v32 = vpop.xlane.xlu2 %983  ;;  %v1398_v22 = vsel %vm1397_vm6, %v9312_v23, %v1394_v29  ;;  %v1015_v49 = vadd.f32 %v866_v51, %v865_v10 }
 0x189   :  { %v1143_v48 = vmul.f32 %v10210_v11, %v10210_v11  ;;  %v10228_v39 = vmul.f32 %v1398_v22, %v1235_v2  ;;  %v1361_v2 = vmul.f32 %v10222_v8, %v1360_v28  ;;  %v10254_v22 = vpop.f32.mrf.mxu0 }
 0x18a   :  { %14924 = vst [vmem:[#allocation92_spill] sm:$0xff] %v10254_v22 }
 0x18b   :  { %14922 = vst [vmem:[#allocation90_spill] sm:$0xff] %v10228_v39  ;;  %v1175_v46 = vsub.f32 %v1111_v14, %v1143_v48  ;;  %v10236_v7 = vmul.f32 %v10228_v39, %v10133_v34  ;;  %v10245_v14 = vadd.f32 1e-05, %v1201_v30  ;;  %v868_v34 = vmul.f32 %v10123_v19, %v10123_v19 }
 0x18c   :  { %v1330_v30 = vmul.f32 %v10242_v60, %v10201_v31  ;;  %v1362_v28 = vmul.f32 0.5, %v1361_v2  ;;  %v1241_v31 = vld [vmem:[%s14712_s2 + $0x80] sm:$0xff] }
 0x18d   :  { %14923 = vst [vmem:[#allocation91_spill] sm:$0xff] %v10236_v7  ;;  %v1207_v23 = vmax.f32 %v1175_v46, 0.0  ;;  %v1016_v46 = vadd.f32 %v1015_v49, %v867_v13  ;;  %vm1375_vm4 = vweird.f32 %v10245_v14 }
 0x18e   :  { %v701_v29 = vpop.xlane.xlu1 %700  ;;  %730 = vadd.xlane.f32.xlu1 %v729_v63  ;;  %1028 = vadd.xlane.f32.xlu2 %v1027_v15  ;;  %v10247_v52 = vpop.xlane.xlu0 %695  ;;  %v1331_v19 = vmul.f32 %v10242_v60, %v1330_v30  ;;  %v1363_v25 = vsub.f32 1.5, %v1362_v28  ;;  %v877_v30 = vmul.f32 %v10254_v22, %v10254_v22 }
 0x18f   :  { %v10238_v61 = vadd.f32 1e-05, %v1207_v23  ;;  %v10240_v33 = vmul.f32 0.001953125, %v701_v29  ;;  %v10256_v63 = vpop.f32.mrf.mxu1  ;;  %v1017_v23 = vadd.f32 %v1016_v46, %v868_v34  ;;  %v10263_v29 = vpop.f32.mrf.mxu2 }
 0x190   :  { %v989_v10 = vpop.xlane.xlu2 %988  ;;  %14925 = vst [vmem:[#allocation93_spill] sm:$0xff] %v10256_v63  ;;  %v742_v13 = vadd.f32 %v10256_v63, %v10254_v22  ;;  %v878_v28 = vmul.f32 %v10256_v63, %v10256_v63  ;;  %v1364_v39 = vmul.f32 %v10222_v8, %v1363_v25  ;;  %v879_v40 = vmul.f32 %v10263_v29, %v10263_v29 }
 0x191   :  { %9317 = vrsqrt.f32 %v10238_v61  ;;  %v1145_v51 = vmul.f32 %v10240_v33, %v10240_v33  ;;  %v1113_v48 = vmul.f32 0.001953125, %v989_v10  ;;  %vm1435_vm11 = vweird.f32 %v10238_v61  ;;  %v10325_v25 = vpop.f32.mrf.mxu0 }
 0x192   :  { %9319 = vrsqrt.f32 %v10245_v14  ;;  %v743_v46 = vadd.f32 %v742_v13, %v10263_v29  ;;  %v1108_v13 = vmul.f32 0.001953125, %v10140_v56  ;;  %v1030_v56 = vadd.f32 %v878_v28, %v877_v30  ;;  %v1232_v30 = vld [vmem:[%s14712_s2 + $0x38] sm:$0xff]  ;;  %14928 = vst [vmem:[#allocation94_spill] sm:$0xff] %v10325_v25 }
 0x193   :  { %v1177_v15 = vsub.f32 %v1113_v48, %v1145_v51  ;;  %v10270_v51 = vmul.f32 0.001953125, %v10125_v59  ;;  %v1368_v55 = vsel %vm10299_vm10, %v10222_v8, %v1364_v39 }
 0x195   :  { %v1209_v49 = vmax.f32 %v1177_v15, 0.0  ;;  %v1140_v63 = vmul.f32 %v10270_v51, %v10270_v51 }
 0x196   :  { %1018 = vadd.xlane.f32.xlu1 %v1017_v23  ;;  %v10282_v23 = vpop.f32.mrf.mxu3 }
 0x197   :  { %v9318_v10 = vpop.eup %9317  ;;  %v10267_v20 = vadd.f32 1e-05, %v1209_v49  ;;  %v1332_v49 = vmul.f32 0.5, %v1331_v19  ;;  %v744_v45 = vadd.f32 %v743_v46, %v10282_v23  ;;  %v1172_v37 = vsub.f32 %v1108_v13, %v1140_v63  ;;  %v1239_v46 = vld [vmem:[%s14712_s2 + $0x70] sm:$0xff]  ;;  %v10327_v8 = vpop.f32.mrf.mxu1 }
 0x198   :  { %v1430_v53 = vmul.f32 %v9318_v10, %v10238_v61  ;;  %v994_v2 = vpop.xlane.xlu0 %993  ;;  %v706_v7 = vpop.xlane.xlu2 %705  ;;  %vm1436_vm9 = vweird.f32 %v9318_v10  ;;  %14929 = vst [vmem:[#allocation95_spill] sm:$0xff] %v10327_v8 }
 0x199   :  { %v10272_v34 = vmul.f32 0.001953125, %v706_v7  ;;  %v10275_v48 = vpop.eup %9319  ;;  %9321 = vrsqrt.f32 %v10267_v20  ;;  %v1114_v7 = vmul.f32 0.001953125, %v994_v2  ;;  %v1333_v28 = vsub.f32 1.5, %v1332_v49  ;;  %vm1437_vm12 = vmor %vm1435_vm11, %vm1436_vm9 }
 0x19a   :  { %v1431_v15 = vmul.f32 %v9318_v10, %v1430_v53  ;;  %v1370_v22 = vmul.f32 %v10275_v48, %v10245_v14  ;;  %v1616_v49 = vmul.f32 %v1368_v55, %v1232_v30  ;;  %vm1455_vm0 = vweird.f32 %v10267_v20 }
 0x19b   :  { %v1146_v59 = vmul.f32 %v10272_v34, %v10272_v34  ;;  %vm1376_vm3 = vweird.f32 %v10275_v48 }
 0x19c   :  { %v1432_v53 = vmul.f32 0.5, %v1431_v15  ;;  %vm1377_vm6 = vmor %vm1375_vm4, %vm1376_vm3 }
 0x19d   :  { %v1178_v19 = vsub.f32 %v1114_v7, %v1146_v59  ;;  %v1371_v59 = vmul.f32 %v10275_v48, %v1370_v22 }
 0x19e   :  { %v1433_v2 = vsub.f32 1.5, %v1432_v53  ;;  %v10321_v53 = vmul.f32 0.001953125, %v10162_v50  ;;  %v1109_v50 = vmul.f32 0.001953125, %v10182_v47 }
 0x19f   :  { %v1210_v15 = vmax.f32 %v1178_v19, 0.0  ;;  %v10303_v38 = vpop.eup %9321  ;;  %v880_v19 = vmul.f32 %v10282_v23, %v10282_v23 }
 0x1a0   :  { %v1434_v7 = vmul.f32 %v9318_v10, %v1433_v2  ;;  %v1450_v63 = vmul.f32 %v10303_v38, %v10267_v20  ;;  %v1031_v2 = vadd.f32 %v1030_v56, %v879_v40  ;;  %v747_v56 = vadd.f32 %v10327_v8, %v10325_v25 }
 0x1a1   :  { %v10318_v13 = vadd.f32 1e-05, %v1210_v15  ;;  %745 = vadd.xlane.f32.xlu0 %v744_v45  ;;  %v1204_v15 = vmax.f32 %v1172_v37, 0.0  ;;  %v1334_v37 = vmul.f32 %v10242_v60, %v1333_v28  ;;  %vm1456_vm14 = vweird.f32 %v10303_v38 }
 0x1a2   :  { %v1438_v61 = vsel %vm1437_vm12, %v9318_v10, %v1434_v7  ;;  %v1451_v22 = vmul.f32 %v10303_v38, %v1450_v63  ;;  %v1372_v10 = vmul.f32 0.5, %v1371_v59  ;;  %v1032_v7 = vadd.f32 %v1031_v2, %v880_v19  ;;  %v10342_v63 = vpop.f32.mrf.mxu2  ;;  %v1648_v59 = vld [vmem:[%s14713_s3 + $0x38] sm:$0xff]  ;;  %vm1457_vm2 = vmor %vm1455_vm0, %vm1456_vm14 }
 0x1a3   :  { %v10329_v39 = vmul.f32 %v1438_v61, %v1239_v46  ;;  %9323 = vrsqrt.f32 %v10318_v13  ;;  %v1141_v46 = vmul.f32 %v10321_v53, %v10321_v53  ;;  %14932 = vst [vmem:[#allocation98_spill] sm:$0xff] %v10342_v63  ;;  %v10349_v30 = vadd.f32 1e-05, %v1204_v15  ;;  %v10369_v15 = vpop.f32.mrf.mxu3 }
 0x1a4   :  { %v1452_v40 = vmul.f32 0.5, %v1451_v22  ;;  %v1373_v19 = vsub.f32 1.5, %v1372_v10  ;;  %v882_v20 = vmul.f32 %v10327_v8, %v10327_v8  ;;  %14935 = vst [vmem:[#allocation99_spill] sm:$0xff] %v10369_v15  ;;  %v1338_v10 = vsel %vm10356_vm1, %v10242_v60, %v1334_v37 }
 0x1a5   :  { %14930 = vst [vmem:[#allocation96_spill] sm:$0xff] %v10329_v39  ;;  %v10336_v45 = vmul.f32 %v10329_v39, %v10210_v11  ;;  %v1680_v11 = vmul.f32 %v1616_v49, %v10151_v16  ;;  %v1173_v55 = vsub.f32 %v1109_v50, %v1141_v46  ;;  %v748_v16 = vadd.f32 %v747_v56, %v10342_v63  ;;  %v1229_v50 = vld [vmem:[%s14712_s2 + $0x20] sm:$0xff] }
 0x1a6   :  { %1774 = vperm.xlu2 %9296, %v1616_v49   ;;  %v1453_v47 = vsub.f32 1.5, %v1452_v40  ;;  %v881_v49 = vmul.f32 %v10325_v25, %v10325_v25  ;;  %9325 = vrsqrt.f32 %v10349_v30  ;;  %v1613_v25 = vmul.f32 %v1338_v10, %v1229_v50 }
 0x1a7   :  { %14931 = vst [vmem:[#allocation97_spill] sm:$0xff] %v10336_v45  ;;  %v1712_v40 = vsub.f32 %v1648_v59, %v1680_v11  ;;  %v1205_v46 = vmax.f32 %v1173_v55, 0.0  ;;  %v749_v45 = vadd.f32 %v748_v16, %v10369_v15  ;;  %v1374_v39 = vmul.f32 %v10275_v48, %v1373_v19  ;;  %v1233_v59 = vld [vmem:[%s14712_s2 + $0x40] sm:$0xff] }
 0x1a8   :  { %v1454_v28 = vmul.f32 %v10303_v38, %v1453_v47  ;;  %v10379_v47 = vpop.xlane.xlu0 %715  ;;  %v883_v60 = vmul.f32 %v10342_v63, %v10342_v63  ;;  %vm1465_vm7 = vweird.f32 %v10318_v13  ;;  %vm1405_vm10 = vweird.f32 %v10349_v30 }
 0x1a9   :  { %v9324_v61 = vpop.eup %9323  ;;  %1033 = vadd.xlane.f32.xlu0 %v1032_v7  ;;  %v10393_v11 = vadd.f32 1e-05, %v1205_v46  ;;  %v1378_v19 = vsel %vm1377_vm6, %v10275_v48, %v1374_v39 }
 0x1aa   :  { %v1460_v22 = vmul.f32 %v9324_v61, %v10318_v13  ;;  %v1458_v56 = vsel %vm1457_vm2, %v10303_v38, %v1454_v28  ;;  %v1035_v38 = vadd.f32 %v882_v20, %v881_v49  ;;  %vm1466_vm5 = vweird.f32 %v9324_v61 }
 0x1ab   :  { %v10381_v8 = vmul.f32 %v1458_v56, %v1241_v31  ;;  %v1677_v28 = vmul.f32 %v1613_v25, %v10167_v62  ;;  %v1645_v31 = vld [vmem:[%s14713_s3 + $0x20] sm:$0xff]  ;;  %vm1467_vm8 = vmor %vm1465_vm7, %vm1466_vm5  ;;  %9327 = vrsqrt.f32 %v10393_v11  ;;  %v1617_v48 = vmul.f32 %v1378_v19, %v1233_v59  ;;  %v10428_v59 = vpop.f32.mrf.mxu1 }
 0x1ac   :  { %v1461_v7 = vmul.f32 %v9324_v61, %v1460_v22  ;;  %v9326_v16 = vpop.eup %9325  ;;  %v884_v22 = vmul.f32 %v10369_v15, %v10369_v15  ;;  %v1036_v49 = vadd.f32 %v1035_v38, %v883_v60  ;;  %14941 = vst [vmem:[#allocation105_spill] sm:$0xff] %v10428_v59  ;;  %vm1415_vm13 = vweird.f32 %v10393_v11 }
 0x1ad   :  { %14936 = vst [vmem:[#allocation100_spill] sm:$0xff] %v10381_v8  ;;  %v10390_v37 = vmul.f32 %v10381_v8, %v10240_v33  ;;  %v1242_v33 = vld [vmem:[%s14712_s2 + $0x88] sm:$0xff]  ;;  %v1709_v20 = vsub.f32 %v1645_v31, %v1677_v28  ;;  %v1681_v10 = vmul.f32 %v1617_v48, %v10193_v12  ;;  %vm1406_vm9 = vweird.f32 %v9326_v16 }
 0x1ae   :  { %v1462_v2 = vmul.f32 0.5, %v1461_v7  ;;  %2062 = vperm.xlu2 %9296, %v1712_v40   ;;  %v10431_v28 = vmul.f32 0.001953125, %v10106_v9  ;;  %vm1407_vm11 = vmor %vm1405_vm10, %vm1406_vm9 }
 0x1af   :  { %14937 = vst [vmem:[#allocation101_spill] sm:$0xff] %v10390_v37  ;;  %1759 = vperm.xlu1 %9297, %v1613_v25   ;;  %v1400_v25 = vmul.f32 %v9326_v16, %v10349_v30 }
 0x1b0   :  { %v1463_v55 = vsub.f32 1.5, %v1462_v2  ;;  %v10413_v13 = vpop.xlane.xlu0 %1003 }
 0x1b1   :  { %750 = vadd.xlane.f32.xlu0 %v749_v45  ;;  %v1037_v45 = vadd.f32 %v1036_v49, %v884_v22  ;;  %v1401_v40 = vmul.f32 %v9326_v16, %v1400_v25  ;;  %v9328_v56 = vpop.eup %9327  ;;  %v1236_v22 = vld [vmem:[%s14712_s2 + $0x58] sm:$0xff]  ;;  %v10444_v25 = vpop.f32.mrf.mxu3 }
 0x1b2   :  { %v1464_v14 = vmul.f32 %v9324_v61, %v1463_v55  ;;  %v1410_v2 = vmul.f32 %v9328_v56, %v10393_v11  ;;  %v10426_v55 = vpop.f32.mrf.mxu0  ;;  %14943 = vst [vmem:[#allocation107_spill] sm:$0xff] %v10444_v25  ;;  %vm1416_vm12 = vweird.f32 %v9328_v56 }
 0x1b3   :  { %v1402_v7 = vmul.f32 0.5, %v1401_v40  ;;  %14940 = vst [vmem:[#allocation104_spill] sm:$0xff] %v10426_v55  ;;  %vm1417_vm14 = vmor %vm1415_vm13, %vm1416_vm12 }
 0x1b4   :  { %v1468_v62 = vsel %vm1467_vm8, %v9324_v61, %v1464_v14  ;;  %v1649_v61 = vld [vmem:[%s14713_s3 + $0x40] sm:$0xff]  ;;  %v1106_v14 = vmul.f32 0.001953125, %v10115_v54 }
 0x1b5   :  { %v10411_v39 = vmul.f32 %v1468_v62, %v1242_v33  ;;  %v1713_v46 = vsub.f32 %v1649_v61, %v1681_v10  ;;  %v1403_v38 = vsub.f32 1.5, %v1402_v7  ;;  %v10434_v33 = vpop.f32.mrf.mxu2  ;;  %v10450_v10 = vpop.f32.mrf.mxu1  ;;  %v1652_v61 = vld [vmem:[%s14713_s3 + $0x58] sm:$0xff] }
 0x1b6   :  { %1779 = vperm.xlu2 %9296, %v1617_v48   ;;  %14942 = vst [vmem:[#allocation106_spill] sm:$0xff] %v10434_v33  ;;  %v1138_v48 = vmul.f32 %v10431_v28, %v10431_v28 }
 0x1b7   :  { %14938 = vst [vmem:[#allocation102_spill] sm:$0xff] %v10411_v39  ;;  %v10417_v50 = vmul.f32 %v10411_v39, %v10272_v34  ;;  %2047 = vperm.xlu1 %9297, %v1709_v20   ;;  %v1411_v34 = vmul.f32 %v9328_v56, %v1410_v2  ;;  %v1404_v19 = vmul.f32 %v9326_v16, %v1403_v38 }
 0x1b8   :  { %v10424_v60 = vpop.xlane.xlu0 %720  ;;  %v1170_v30 = vsub.f32 %v1106_v14, %v1138_v48 }
 0x1b9   :  { %14939 = vst [vmem:[#allocation103_spill] sm:$0xff] %v10417_v50  ;;  %1038 = vadd.xlane.f32.xlu0 %v1037_v45  ;;  %v1412_v12 = vmul.f32 0.5, %v1411_v34  ;;  %v1408_v49 = vsel %vm1407_vm11, %v9326_v16, %v1404_v19  ;;  %v10446_v45 = vpop.xlane.xlu2 %710  ;;  %v10469_v19 = vpop.f32.mrf.mxu3 }
 0x1ba   :  { %v1620_v9 = vmul.f32 %v1408_v49, %v1236_v22  ;;  %v10448_v54 = vpop.f32.mrf.mxu0  ;;  %v1202_v40 = vmax.f32 %v1170_v30, 0.0 }
 0x1bb   :  { %v1413_v31 = vsub.f32 1.5, %v1412_v12 }
 0x1bc   :  { %v1684_v16 = vmul.f32 %v1620_v9, %v10270_v51  ;;  %v10464_v11 = vadd.f32 1e-05, %v1202_v40  ;;  %v10467_v51 = vmul.f32 0.001953125, %v10180_v3 }
 0x1bd   :  { %v1414_v20 = vmul.f32 %v9328_v56, %v1413_v31  ;;  %v10460_v38 = vpop.f32.mrf.mxu2  ;;  %v752_v31 = vadd.f32 %v10428_v59, %v10426_v55  ;;  %v10480_v48 = vpop.f32.mrf.mxu1 }
 0x1be   :  { %2067 = vperm.xlu2 %9296, %v1713_v46   ;;  %v1237_v46 = vld [vmem:[%s14712_s2 + $0x60] sm:$0xff]  ;;  %v1716_v34 = vsub.f32 %v1652_v61, %v1684_v16  ;;  %14945 = vst [vmem:[#allocation109_spill] sm:$0xff] %v10480_v48  ;;  %9329 = vrsqrt.f32 %v10464_v11  ;;  %v1142_v3 = vmul.f32 %v10467_v51, %v10467_v51  ;;  %vm1385_vm0 = vweird.f32 %v10464_v11 }
 0x1bf   :  { %v1418_v7 = vsel %vm1417_vm14, %v9328_v56, %v1414_v20  ;;  %v1110_v56 = vmul.f32 0.001953125, %v10205_v4  ;;  %v1653_v4 = vld [vmem:[%s14713_s3 + $0x60] sm:$0xff]  ;;  %v886_v20 = vmul.f32 %v10428_v59, %v10428_v59 }
 0x1c0   :  { %v10440_v62 = vpop.xlane.xlu0 %1008  ;;  %v10462_v12 = vmul.f32 %v1418_v7, %v1237_v46 }
 0x1c1   :  { %v10471_v14 = vpop.xlane.xlu2 %998 }
 0x1c2   :  { %v1685_v22 = vmul.f32 %v10462_v12, %v10321_v53  ;;  %v10478_v49 = vpop.f32.mrf.mxu0  ;;  %v885_v53 = vmul.f32 %v10426_v55, %v10426_v55 }
 0x1c3   :  { %14944 = vst [vmem:[#allocation108_spill] sm:$0xff] %v10478_v49  ;;  %v762_v7 = vadd.f32 %v10480_v48, %v10478_v49 }
 0x1c4   :  { %v1717_v15 = vsub.f32 %v1653_v4, %v1685_v22  ;;  %v887_v22 = vmul.f32 %v10434_v33, %v10434_v33 }
 0x1c5   :  { %v10503_v63 = vpop.f32.mrf.mxu2 }
 0x1c6   :  { %14946 = vst [vmem:[#allocation110_spill] sm:$0xff] %v10503_v63 }
 0x1cd   :  { %1794 = vperm.xlu0 %9298, %v1620_v9  }
 0x1d1   :  { %v1765_v2 = vpop.permute.xlu0 %1764 }
 0x1d2   :  { %v1919_v9 = vmul.f32 %v1765_v2, %v9639_v57  ;;  %v1920_v30 = vmul.f32 %v1765_v2, %v9641_v58  ;;  %v1917_v16 = vmul.f32 %v1765_v2, %v9625_v42  ;;  %v1918_v40 = vmul.f32 %v1765_v2, %v9627_v43  ;;  %v10513_v2 = vpop.eup %9329 }
 0x1d3   :  { %v753_v58 = vadd.f32 %v752_v31, %v10434_v33  ;;  %v893_v42 = vmul.f32 %v10478_v49, %v10478_v49  ;;  %v894_v43 = vmul.f32 %v10480_v48, %v10480_v48  ;;  %v10539_v48 = vpop.xlane.xlu1 %725  ;;  %vm1386_vm15 = vweird.f32 %v10513_v2 }
 0x1d4   :  { %vm1387_vm1 = vmor %vm1385_vm0, %vm1386_vm15 }
 0x1d5   :  { %2082 = vperm.xlu0 %9298, %v1716_v34   ;;  %v1174_v34 = vsub.f32 %v1110_v56, %v1142_v3  ;;  %v754_v31 = vadd.f32 %v753_v58, %v10444_v25  ;;  %v763_v56 = vadd.f32 %v762_v7, %v10503_v63  ;;  %v1040_v3 = vadd.f32 %v886_v20, %v885_v53  ;;  %v10530_v20 = vpop.f32.mrf.mxu0 }
 0x1d6   :  { %v888_v7 = vmul.f32 %v10444_v25, %v10444_v25  ;;  %v10548_v25 = vpop.f32.mrf.mxu2 }
 0x1d7   :  { %v1041_v53 = vadd.f32 %v1040_v3, %v887_v22  ;;  %14949 = vst [vmem:[#allocation113_spill] sm:$0xff] %v10548_v25 }
 0x1d9   :  { %v2053_v61 = vpop.permute.xlu0 %2052 }
 0x1da   :  { %v10496_v46 = vadd.f32 %v2053_v61, %v1919_v9  ;;  %v10498_v57 = vadd.f32 %v2053_v61, %v1920_v30  ;;  %v10505_v55 = vadd.f32 %v2053_v61, %v1917_v16  ;;  %v10507_v59 = vadd.f32 %v2053_v61, %v1918_v40  ;;  %v10519_v30 = vpop.f32.mrf.mxu3 }
 0x1db   :  { %v1206_v9 = vmax.f32 %v1174_v34, 0.0  ;;  %14947 = vst [vmem:[#allocation111_spill] sm:$0xff] %v10519_v30  ;;  %v895_v16 = vmul.f32 %v10503_v63, %v10503_v63  ;;  %v1050_v40 = vadd.f32 %v894_v43, %v893_v42  ;;  %v1380_v61 = vmul.f32 %v10513_v2, %v10464_v11  ;;  %v10532_v34 = vpop.f32.mrf.mxu1  ;;  %v1234_v11 = vld [vmem:[%s14712_s2 + $0x48] sm:$0xff] }
 0x1dc   :  { %v764_v58 = vadd.f32 %v763_v56, %v10519_v30  ;;  %v897_v42 = vmul.f32 %v10530_v20, %v10530_v20  ;;  %v898_v43 = vmul.f32 %v10532_v34, %v10532_v34  ;;  %v896_v56 = vmul.f32 %v10519_v30, %v10519_v30 }
 0x1dd   :  { %2087 = vperm.xlu0 %9298, %v1717_v15   ;;  %v10521_v15 = vpop.permute.xlu2 %1749  ;;  %v10534_v33 = vadd.f32 1e-05, %v1206_v9  ;;  %v1051_v22 = vadd.f32 %v1050_v40, %v895_v16  ;;  %v1381_v3 = vmul.f32 %v10513_v2, %v1380_v61  ;;  %v1042_v9 = vadd.f32 %v1041_v53, %v888_v7 }
 0x1de   :  { %14948 = vst [vmem:[#allocation112_spill] sm:$0xff] %v10521_v15  ;;  %v10555_v15 = vmul.f32 0.001953125, %v10379_v47  ;;  %v1116_v7 = vmul.f32 0.001953125, %v10413_v13  ;;  %v899_v30 = vmul.f32 %v10548_v25, %v10548_v25  ;;  %v1055_v47 = vadd.f32 %v898_v43, %v897_v42 }
 0x1df   :  { %9331 = vrsqrt.f32 %v10534_v33  ;;  %v1052_v53 = vadd.f32 %v1051_v22, %v896_v56  ;;  %v10581_v22 = vmul.f32 0.001953125, %v10424_v60  ;;  %v1382_v42 = vmul.f32 0.5, %v1381_v3 }
 0x1e0   :  { %14950 = vst [vmem:[#allocation114_spill] sm:$0xff] %v10555_v15  ;;  %v1056_v43 = vadd.f32 %v1055_v47, %v899_v30  ;;  %v10595_v47 = vpop.f32.mrf.mxu0  ;;  %vm1425_vm3 = vweird.f32 %v10534_v33 }
 0x1e1   :  { %755 = vadd.xlane.f32.xlu1 %v754_v31  ;;  %v1770_v4 = vpop.permute.xlu0 %1769  ;;  %v10537_v31 = vmul.f32 0.001953125, %v10247_v52  ;;  %v1112_v52 = vmul.f32 0.001953125, %v10219_v32  ;;  %v1149_v60 = vmul.f32 %v10581_v22, %v10581_v22 }
 0x1e2   :  { %v1921_v63 = vmul.f32 %v1770_v4, %v9648_v0  ;;  %v1922_v16 = vmul.f32 %v1770_v4, %v9650_v1  ;;  %v1923_v40 = vmul.f32 %v1770_v4, %v9662_v17  ;;  %v1924_v61 = vmul.f32 %v1770_v4, %v9664_v18 }
 0x1e3   :  { %v1144_v49 = vmul.f32 %v10537_v31, %v10537_v31  ;;  %v1148_v4 = vmul.f32 %v10555_v15, %v10555_v15 }
 0x1e5   :  { %v1176_v18 = vsub.f32 %v1112_v52, %v1144_v49  ;;  %v10578_v13 = vpop.eup %9331  ;;  %v1180_v56 = vsub.f32 %v1116_v7, %v1148_v4  ;;  %v1117_v49 = vmul.f32 0.001953125, %v10440_v62  ;;  %v1014_v52 = vpop.xlane.xlu1 %1013  ;;  %v1383_v7 = vsub.f32 1.5, %v1382_v42 }
 0x1e6   :  { %v10597_v62 = vpop.f32.mrf.mxu1  ;;  %vm1426_vm2 = vweird.f32 %v10578_v13 }
 0x1e7   :  { %765 = vadd.xlane.f32.xlu2 %v764_v58  ;;  %v1181_v4 = vsub.f32 %v1117_v49, %v1149_v60  ;;  %v1384_v8 = vmul.f32 %v10513_v2, %v1383_v7  ;;  %vm1427_vm4 = vmor %vm1425_vm3, %vm1426_vm2 }
 0x1e9   :  { %v10561_v58 = vpop.xlane.xlu2 %735  ;;  %1043 = vadd.xlane.f32.xlu1 %v1042_v9  ;;  %v2058_v32 = vpop.permute.xlu0 %2057  ;;  %v1388_v60 = vsel %vm1387_vm1, %v10513_v2, %v1384_v8 }
 0x1ea   :  { %14951 = vst [vmem:[#allocation115_spill] sm:$0xff] %v10561_v58  ;;  %v10566_v50 = vadd.f32 %v2058_v32, %v1923_v40  ;;  %v10568_v0 = vadd.f32 %v2058_v32, %v1924_v61  ;;  %v10570_v1 = vadd.f32 %v2058_v32, %v1921_v63  ;;  %v10572_v17 = vadd.f32 %v2058_v32, %v1922_v16  ;;  %v10576_v9 = vpop.f32.mrf.mxu3 }
 0x1eb   :  { %14952 = vst [vmem:[#allocation116_spill] sm:$0xff] %v10576_v9  ;;  %v900_v63 = vmul.f32 %v10576_v9, %v10576_v9  ;;  %v1208_v16 = vmax.f32 %v1176_v18, 0.0  ;;  %v1420_v40 = vmul.f32 %v10578_v13, %v10534_v33  ;;  %v1212_v32 = vmax.f32 %v1180_v56, 0.0 }
 0x1ec   :  { %v1213_v56 = vmax.f32 %v1181_v4, 0.0  ;;  %v1618_v8 = vmul.f32 %v1388_v60, %v1234_v11 }
 0x1ed   :  { %v1057_v3 = vadd.f32 %v1056_v43, %v900_v63  ;;  %v1421_v30 = vmul.f32 %v10578_v13, %v1420_v40  ;;  %v10599_v18 = vadd.f32 1e-05, %v1212_v32  ;;  %v10604_v42 = vpop.permute.xlu1 %1754  ;;  %v901_v63 = vmul.f32 %v10595_v47, %v10595_v47  ;;  %v10613_v40 = vpop.f32.mrf.mxu2 }
 0x1ee   :  { %14954 = vst [vmem:[#allocation118_spill] sm:$0xff] %v10604_v42  ;;  %v902_v43 = vmul.f32 %v10597_v62, %v10597_v62  ;;  %v10617_v32 = vmul.f32 0.001953125, %v10539_v48  ;;  %v10620_v7 = vadd.f32 1e-05, %v1213_v56  ;;  %v903_v4 = vmul.f32 %v10613_v40, %v10613_v40 }
 0x1ef   :  { %1053 = vadd.xlane.f32.xlu2 %v1052_v53  ;;  %v10592_v53 = vadd.f32 1e-05, %v1208_v16  ;;  %v1422_v16 = vmul.f32 0.5, %v1421_v30  ;;  %14956 = vst [vmem:[#allocation120_spill] sm:$0xff] %v10613_v40  ;;  %vm1485_vm6 = vweird.f32 %v10599_v18 }
 0x1f0   :  { %v1060_v30 = vadd.f32 %v902_v43, %v901_v63  ;;  %v1150_v48 = vmul.f32 %v10617_v32, %v10617_v32  ;;  %vm1495_vm12 = vweird.f32 %v10620_v7 }
 0x1f1   :  { %v10588_v61 = vpop.xlane.xlu2 %1023  ;;  %9333 = vrsqrt.f32 %v10592_v53  ;;  %v1423_v42 = vsub.f32 1.5, %v1422_v16  ;;  %vm1445_vm9 = vweird.f32 %v10592_v53 }
 0x1f2   :  { %14953 = vst [vmem:[#allocation117_spill] sm:$0xff] %v10588_v61  ;;  %9335 = vrsqrt.f32 %v10599_v18  ;;  %v10627_v15 = vpop.f32.mrf.mxu3  ;;  %v1061_v39 = vadd.f32 %v1060_v30, %v903_v4  ;;  %v1682_v4 = vmul.f32 %v1618_v8, %v10431_v28 }
 0x1f3   :  { %14957 = vst [vmem:[#allocation121_spill] sm:$0xff] %v10627_v15  ;;  %9337 = vrsqrt.f32 %v10620_v7  ;;  %v904_v56 = vmul.f32 %v10627_v15, %v10627_v15 }
 0x1f5   :  { %v1062_v11 = vadd.f32 %v1061_v39, %v904_v56 }
 0x1f7   :  { %1058 = vadd.xlane.f32.xlu2 %v1057_v3  ;;  %v1118_v3 = vmul.f32 0.001953125, %v1014_v52  ;;  %v10629_v37 = vpop.eup %9333 }
 0x1f8   :  { %v10633_v2 = vpop.eup %9335  ;;  %v1440_v63 = vmul.f32 %v10629_v37, %v10592_v53  ;;  %vm1446_vm5 = vweird.f32 %v10629_v37  ;;  %v1240_v53 = vld [vmem:[%s14712_s2 + $0x78] sm:$0xff] }
 0x1f9   :  { %v10611_v49 = vpop.xlane.xlu2 %740  ;;  %v1182_v52 = vsub.f32 %v1118_v3, %v1150_v48  ;;  %v1480_v60 = vmul.f32 %v10633_v2, %v10599_v18  ;;  %v1650_v48 = vld [vmem:[%s14713_s3 + $0x48] sm:$0xff]  ;;  %vm1486_vm7 = vweird.f32 %v10633_v2  ;;  %vm1447_vm10 = vmor %vm1445_vm9, %vm1446_vm5 }
 0x1fa   :  { %14955 = vst [vmem:[#allocation119_spill] sm:$0xff] %v10611_v49  ;;  %v1424_v49 = vmul.f32 %v10578_v13, %v1423_v42  ;;  %v1441_v30 = vmul.f32 %v10629_v37, %v1440_v63  ;;  %v1238_v42 = vld [vmem:[%s14712_s2 + $0x68] sm:$0xff]  ;;  %v1714_v28 = vsub.f32 %v1650_v48, %v1682_v4  ;;  %vm10691_vm8 = vmor %vm1485_vm6, %vm1486_vm7 }
 0x1fb   :  { %v1214_v3 = vmax.f32 %v1182_v52, 0.0  ;;  %v1481_v52 = vmul.f32 %v10633_v2, %v1480_v60 }
 0x1fc   :  { %v1428_v33 = vsel %vm1427_vm4, %v10578_v13, %v1424_v49  ;;  %v1442_v56 = vmul.f32 0.5, %v1441_v30 }
 0x1fd   :  { %v10659_v39 = vadd.f32 1e-05, %v1214_v3  ;;  %v1482_v40 = vmul.f32 0.5, %v1481_v52 }
 0x1fe   :  { %v1443_v60 = vsub.f32 1.5, %v1442_v56 }
 0x1ff   :  { %9339 = vrsqrt.f32 %v10659_v39  ;;  %vm1505_vm15 = vweird.f32 %v10659_v39 }
 0x201   :  { %v731_v43 = vpop.xlane.xlu1 %730  ;;  %v10640_v16 = vpop.xlane.xlu2 %1028 }
 0x202   :  { %14958 = vst [vmem:[#allocation122_spill] sm:$0xff] %v10640_v16  ;;  %1784 = vperm.xlu1 %9297, %v1618_v8   ;;  %v10656_v16 = vpop.eup %9337  ;;  %v1622_v8 = vmul.f32 %v1428_v33, %v1238_v42  ;;  %v10663_v58 = vmul.f32 0.001953125, %v731_v43  ;;  %v1483_v43 = vsub.f32 1.5, %v1482_v40  ;;  %v1444_v42 = vmul.f32 %v10629_v37, %v1443_v60 }
 0x203   :  { %v1490_v63 = vmul.f32 %v10656_v16, %v10620_v7  ;;  %vm1496_vm11 = vweird.f32 %v10656_v16 }
 0x204   :  { %v1686_v49 = vmul.f32 %v1622_v8, %v10467_v51  ;;  %v1151_v4 = vmul.f32 %v10663_v58, %v10663_v58  ;;  %vm1497_vm13 = vmor %vm1495_vm12, %vm1496_vm11 }
 0x205   :  { %v1491_v3 = vmul.f32 %v10656_v16, %v1490_v63  ;;  %v10679_v63 = vpop.eup %9339 }
 0x206   :  { %vm1506_vm14 = vweird.f32 %v10679_v63 }
 0x207   :  { %1063 = vadd.xlane.f32.xlu0 %v1062_v11  ;;  %v1654_v11 = vld [vmem:[%s14713_s3 + $0x68] sm:$0xff]  ;;  %v1492_v33 = vmul.f32 0.5, %v1491_v3  ;;  %vm10779_vm0 = vmor %vm1505_vm15, %vm1506_vm14 }
 0x208   :  { %v1718_v51 = vsub.f32 %v1654_v11, %v1686_v49  ;;  %v2339_v49 = vmax.f32 %v10566_v50, 0.0  ;;  %v1500_v11 = vmul.f32 %v10679_v63, %v10659_v39  ;;  %v2338_v50 = vmax.f32 %v10572_v17, 0.0 }
 0x209   :  { %v1019_v61 = vpop.xlane.xlu1 %1018  ;;  %v1775_v15 = vpop.permute.xlu2 %1774 }
 0x20a   :  { %2072 = vperm.xlu1 %9297, %v1714_v28   ;;  %v1119_v13 = vmul.f32 0.001953125, %v1019_v61  ;;  %v1927_v48 = vmul.f32 %v1775_v15, %v9687_v35  ;;  %v1928_v61 = vmul.f32 %v1775_v15, %v9689_v36  ;;  %v1925_v52 = vmul.f32 %v1775_v15, %v9668_v21 }
 0x20b   :  { %v1926_v28 = vmul.f32 %v1775_v15, %v9670_v24  ;;  %v1484_v35 = vmul.f32 %v10633_v2, %v1483_v43  ;;  %v2340_v21 = vmax.f32 %v10568_v0, 0.0  ;;  %v1493_v15 = vsub.f32 1.5, %v1492_v33  ;;  %v1656_v43 = vld [vmem:[%s14713_s3 + $0x78] sm:$0xff] }
 0x20c   :  { %v1183_v30 = vsub.f32 %v1119_v13, %v1151_v4 }
 0x20d   :  { %v1488_v18 = vsel %vm10691_vm8, %v10633_v2, %v1484_v35  ;;  %v1494_v35 = vmul.f32 %v10656_v16, %v1493_v15 }
 0x20e   :  { %v1215_v60 = vmax.f32 %v1183_v30, 0.0 }
 0x20f   :  { %1804 = vperm.xlu2 %9296, %v1622_v8  }
 0x210   :  { %v10709_v17 = vadd.f32 1e-05, %v1215_v60  ;;  %v1245_v60 = vld [vmem:[%s14712_s2 + $0xa0] sm:$0xff] }
 0x211   :  { %v2063_v56 = vpop.permute.xlu2 %2062 }
 0x212   :  { %v2215_v40 = vadd.f32 %v2063_v56, %v1927_v48  ;;  %v2216_v8 = vadd.f32 %v2063_v56, %v1928_v61  ;;  %v2213_v36 = vadd.f32 %v2063_v56, %v1925_v52  ;;  %v2214_v13 = vadd.f32 %v2063_v56, %v1926_v28 }
 0x213   :  { %v2337_v48 = vmax.f32 %v10570_v1, 0.0  ;;  %v1244_v1 = vld [vmem:[%s14712_s2 + $0x98] sm:$0xff]  ;;  %9341 = vrsqrt.f32 %v10709_v17  ;;  %vm1515_vm5 = vweird.f32 %v10709_v17 }
 0x214   :  { %v2343_v3 = vmax.f32 %v2215_v40, 0.0  ;;  %v2344_v24 = vmax.f32 %v2216_v8, 0.0  ;;  %v746_v4 = vpop.xlane.xlu0 %745  ;;  %v2341_v61 = vmax.f32 %v2213_v36, 0.0  ;;  %v2342_v30 = vmax.f32 %v2214_v13, 0.0 }
 0x215   :  { %v10711_v33 = vmul.f32 0.001953125, %v746_v4  ;;  %v1501_v40 = vmul.f32 %v10679_v63, %v1500_v11  ;;  %v10722_v8 = vmul.f32 %v1488_v18, %v1244_v1 }
 0x216   :  { %v10696_v52 = vpack.c.bf16 %v2343_v3, %v2339_v49  ;;  %v10698_v0 = vpack.c.bf16 %v2344_v24, %v2340_v21  ;;  %v10713_v28 = vpack.c.bf16 %v2341_v61, %v2337_v48  ;;  %v10715_v56 = vpack.c.bf16 %v2342_v30, %v2338_v50 }
 0x217   :  { %2092 = vperm.xlu2 %9296, %v1718_v51   ;;  %v1448_v51 = vsel %vm1447_vm10, %v10629_v37, %v1444_v42  ;;  %v1154_v13 = vmul.f32 %v10711_v33, %v10711_v33  ;;  %v1502_v37 = vmul.f32 0.5, %v1501_v40  ;;  %v1498_v3 = vsel %vm1497_vm13, %v10656_v16, %v1494_v35 }
 0x218   :  { %14961 = vst [vmem:[#allocation123_spill] sm:$0xff] %v10696_v52  ;;  %v1624_v36 = vmul.f32 %v1448_v51, %v1240_v53  ;;  %v1629_v61 = vmul.f32 %v1498_v3, %v1245_v60  ;;  %v889_v35 = vmul.f32 %v10448_v54, %v10448_v54  ;;  %v14963_v60 = vld [vmem:[#allocation18_spill] sm:$0xff]  ;;  %v14991_v52 = vld [vmem:[#allocation68_spill] sm:$0xff] }
 0x219   :  { %14962 = vst [vmem:[#allocation124_spill] sm:$0xff] %v10698_v0  ;;  %v1780_v2 = vpop.permute.xlu2 %1779  ;;  %v1503_v24 = vsub.f32 1.5, %v1502_v37  ;;  %v10741_v50 = vpop.eup %9341 }
 0x21a   :  { %v1688_v7 = vmul.f32 %v1624_v36, %v10537_v31  ;;  %v1931_v15 = vmul.f32 %v1780_v2, %v9708_v5  ;;  %v1932_v11 = vmul.f32 %v1780_v2, %v9710_v6  ;;  %v1929_v16 = vmul.f32 %v1780_v2, %v9695_v41 }
 0x21b   :  { %1834 = vperm.xlu0 %9298, %v10722_v8   ;;  %v1930_v31 = vmul.f32 %v1780_v2, %v9697_v44  ;;  %v1510_v51 = vmul.f32 %v10741_v50, %v10709_v17  ;;  %v1693_v41 = vmul.f32 %v1629_v61, %v10581_v22  ;;  %v1504_v44 = vmul.f32 %v10679_v63, %v1503_v24 }
 0x21c   :  { %v1034_v42 = vpop.xlane.xlu0 %1033  ;;  %v1720_v6 = vsub.f32 %v1656_v43, %v1688_v7  ;;  %v890_v22 = vmul.f32 %v10450_v10, %v10450_v10  ;;  %v14964_v7 = vld [vmem:[#allocation19_spill] sm:$0xff]  ;;  %vm1516_vm4 = vweird.f32 %v10741_v50 }
 0x21d   :  { %v1122_v49 = vmul.f32 0.001953125, %v1034_v42  ;;  %v1511_v24 = vmul.f32 %v10741_v50, %v1510_v51  ;;  %v2334_v51 = vmax.f32 %v10507_v59, 0.0  ;;  %vm1517_vm6 = vmor %vm1515_vm5, %vm1516_vm4 }
 0x21f   :  { %1814 = vperm.xlu2 %9296, %v1624_v36   ;;  %v1186_v21 = vsub.f32 %v1122_v49, %v1154_v13  ;;  %v1661_v36 = vld [vmem:[%s14713_s3 + $0xa0] sm:$0xff]  ;;  %v757_v13 = vadd.f32 %v10450_v10, %v10448_v54 }
 0x221   :  { %v1760_v4 = vpop.permute.xlu1 %1759  ;;  %v2068_v48 = vpop.permute.xlu2 %2067  ;;  %v1218_v30 = vmax.f32 %v1186_v21, 0.0 }
 0x222   :  { %v10745_v1 = vadd.f32 %v2068_v48, %v1931_v15  ;;  %v10747_v18 = vadd.f32 %v2068_v48, %v1932_v11  ;;  %v10752_v53 = vadd.f32 %v2068_v48, %v1929_v16  ;;  %v10758_v2 = vadd.f32 %v2068_v48, %v1930_v31 }
 0x223   :  { %v10749_v5 = vadd.f32 1e-05, %v1218_v30  ;;  %1839 = vperm.xlu0 %9298, %v1629_v61   ;;  %v1913_v42 = vmul.f32 %v1760_v4, %v9600_v26  ;;  %v1914_v49 = vmul.f32 %v1760_v4, %v9602_v27  ;;  %v1915_v3 = vmul.f32 %v1760_v4, %v14963_v60 }
 0x224   :  { %v751_v40 = vpop.xlane.xlu0 %750  ;;  %v1916_v21 = vmul.f32 %v1760_v4, %v14964_v7  ;;  %v1725_v11 = vsub.f32 %v1661_v36, %v1693_v41  ;;  %v1508_v26 = vsel %vm10779_vm0, %v10679_v63, %v1504_v44  ;;  %v2335_v27 = vmax.f32 %v10496_v46, 0.0  ;;  %v1246_v4 = vld [vmem:[%s14712_s2 + $0xa8] sm:$0xff] }
 0x225   :  { %9343 = vrsqrt.f32 %v10749_v5  ;;  %v10771_v37 = vmul.f32 0.001953125, %v751_v40  ;;  %v758_v31 = vadd.f32 %v757_v13, %v10460_v38  ;;  %v1512_v36 = vmul.f32 0.5, %v1511_v24 }
 0x226   :  { %vm1545_vm1 = vweird.f32 %v10749_v5 }
 0x227   :  { %2102 = vperm.xlu2 %9296, %v1720_v6   ;;  %v1155_v30 = vmul.f32 %v10771_v37, %v10771_v37  ;;  %v2333_v6 = vmax.f32 %v10505_v55, 0.0  ;;  %v759_v24 = vadd.f32 %v758_v31, %v10469_v19  ;;  %v892_v31 = vmul.f32 %v10469_v19, %v10469_v19 }
 0x229   :  { %v2048_v15 = vpop.permute.xlu1 %2047 }
 0x22a   :  { %v2203_v48 = vadd.f32 %v2048_v15, %v1915_v3  ;;  %v2204_v61 = vadd.f32 %v2048_v15, %v1916_v21  ;;  %v2201_v43 = vadd.f32 %v2048_v15, %v1913_v42  ;;  %v2202_v16 = vadd.f32 %v2048_v15, %v1914_v49 }
 0x22b   :  { %v9344_v63 = vpop.eup %9343  ;;  %2127 = vperm.xlu0 %9298, %v1725_v11   ;;  %v1630_v49 = vmul.f32 %v1508_v26, %v1246_v4  ;;  %v2336_v3 = vmax.f32 %v10498_v57, 0.0  ;;  %v891_v57 = vmul.f32 %v10460_v38, %v10460_v38  ;;  %v1045_v4 = vadd.f32 %v890_v22, %v889_v35 }
 0x22c   :  { %v2329_v46 = vmax.f32 %v2201_v43, 0.0  ;;  %v2330_v40 = vmax.f32 %v2202_v16, 0.0  ;;  %v2331_v41 = vmax.f32 %v2203_v48, 0.0  ;;  %v2332_v44 = vmax.f32 %v2204_v61, 0.0  ;;  %v1039_v42 = vpop.xlane.xlu0 %1038 }
 0x22d   :  { %v1540_v60 = vmul.f32 %v9344_v63, %v10749_v5  ;;  %v1123_v7 = vmul.f32 0.001953125, %v1039_v42  ;;  %v1694_v26 = vmul.f32 %v1630_v49, %v10617_v32  ;;  %vm1546_vm2 = vweird.f32 %v9344_v63  ;;  %v1250_v32 = vld [vmem:[%s14712_s2 + $0xc8] sm:$0xff] }
 0x22e   :  { %v10798_v21 = vpack.c.bf16 %v2333_v6, %v2329_v46  ;;  %v10800_v13 = vpack.c.bf16 %v2334_v51, %v2330_v40  ;;  %v10802_v55 = vpack.c.bf16 %v2335_v27, %v2331_v41  ;;  %v10804_v39 = vpack.c.bf16 %v2336_v3, %v2332_v44  ;;  %v1662_v27 = vld [vmem:[%s14713_s3 + $0xa8] sm:$0xff]  ;;  %vm1547_vm3 = vmor %vm1545_vm1, %vm1546_vm2  ;;  %v1247_v40 = vld [vmem:[%s14712_s2 + $0xb0] sm:$0xff] }
 0x22f   :  { %v1541_v59 = vmul.f32 %v9344_v63, %v1540_v60  ;;  %1844 = vperm.xlu2 %9296, %v1630_v49   ;;  %v1187_v15 = vsub.f32 %v1123_v7, %v1155_v30  ;;  %v1513_v48 = vsub.f32 1.5, %v1512_v36  ;;  %v1726_v30 = vsub.f32 %v1662_v27, %v1694_v26  ;;  %v1666_v36 = vld [vmem:[%s14713_s3 + $0xc8] sm:$0xff]  ;;  %v14969_v26 = vld [vmem:[#allocation30_spill] sm:$0xff] }
 0x230   :  { %14967 = vst [vmem:[#allocation18_spill] sm:$0xff] %v10802_v55  ;;  %v1046_v6 = vadd.f32 %v1045_v4, %v891_v57  ;;  %v14990_v55 = vld [vmem:[#allocation67_spill] sm:$0xff] }
 0x231   :  { %14968 = vst [vmem:[#allocation19_spill] sm:$0xff] %v10804_v39  ;;  %v1542_v11 = vmul.f32 0.5, %v1541_v59  ;;  %v1219_v61 = vmax.f32 %v1187_v15, 0.0  ;;  %v1514_v51 = vmul.f32 %v10741_v50, %v1513_v48  ;;  %v14970_v48 = vld [vmem:[#allocation31_spill] sm:$0xff] }
 0x232   :  { %v1047_v46 = vadd.f32 %v1046_v6, %v892_v31  ;;  %v14971_v6 = vld [vmem:[#allocation90_spill] sm:$0xff] }
 0x233   :  { %v1543_v43 = vsub.f32 1.5, %v1542_v11  ;;  %v1283_v16 = vadd.f32 1e-05, %v1219_v61  ;;  %v1518_v41 = vsel %vm1517_vm6, %v10741_v50, %v1514_v51  ;;  %v1651_v51 = vld [vmem:[%s14713_s3 + $0x50] sm:$0xff] }
 0x234   :  { %760 = vadd.xlane.f32.xlu1 %v759_v24  ;;  %v1631_v17 = vmul.f32 %v1518_v41, %v1247_v40  ;;  %v1251_v24 = vld [vmem:[%s14712_s2 + $0xd0] sm:$0xff] }
 0x235   :  { %v1544_v5 = vmul.f32 %v9344_v63, %v1543_v43  ;;  %9345 = vrsqrt.f32 %v1283_v16  ;;  %vm1555_vm7 = vweird.f32 %v1283_v16 }
 0x236   :  { %v1695_v59 = vmul.f32 %v1631_v17, %v10663_v58 }
 0x237   :  { %2132 = vperm.xlu2 %9296, %v1726_v30   ;;  %v1548_v35 = vsel %vm1547_vm3, %v9344_v63, %v1544_v5 }
 0x238   :  { %v1634_v22 = vmul.f32 %v1548_v35, %v1250_v32  ;;  %v1667_v32 = vld [vmem:[%s14713_s3 + $0xd0] sm:$0xff] }
 0x23a   :  { %1864 = vperm.xlu0 %9298, %v1634_v22   ;;  %v1698_v44 = vmul.f32 %v1634_v22, %v10711_v33  ;;  %v1663_v33 = vld [vmem:[%s14713_s3 + $0xb0] sm:$0xff] }
 0x23b   :  { %v9346_v60 = vpop.eup %9345  ;;  %v1727_v15 = vsub.f32 %v1663_v33, %v1695_v59 }
 0x23c   :  { %1048 = vadd.xlane.f32.xlu1 %v1047_v46  ;;  %v1550_v63 = vmul.f32 %v9346_v60, %v1283_v16  ;;  %v1730_v42 = vsub.f32 %v1666_v36, %v1698_v44  ;;  %vm1556_vm8 = vweird.f32 %v9346_v60  ;;  %v14972_v46 = vld [vmem:[#allocation91_spill] sm:$0xff] }
 0x23d   :  { %vm1557_vm9 = vmor %vm1555_vm7, %vm1556_vm8  ;;  %v1715_v40 = vsub.f32 %v1651_v51, %v14972_v46 }
 0x23e   :  { %v1551_v49 = vmul.f32 %v9346_v60, %v1550_v63 }
 0x23f   :  { %1849 = vperm.xlu2 %9296, %v1631_v17   ;;  %v10830_v3 = vpop.permute.xlu0 %1794 }
 0x240   :  { %v1552_v7 = vmul.f32 0.5, %v1551_v49  ;;  %v1943_v57 = vmul.f32 %v10830_v3, %v14969_v26  ;;  %v1944_v58 = vmul.f32 %v10830_v3, %v14970_v48 }
 0x242   :  { %2152 = vperm.xlu0 %9298, %v1730_v42   ;;  %v1553_v50 = vsub.f32 1.5, %v1552_v7 }
 0x244   :  { %v1554_v11 = vmul.f32 %v9346_v60, %v1553_v50 }
 0x246   :  { %v1558_v61 = vsel %vm1557_vm9, %v9346_v60, %v1554_v11  ;;  %v1252_v11 = vld [vmem:[%s14712_s2 + $0xd8] sm:$0xff] }
 0x247   :  { %2137 = vperm.xlu2 %9296, %v1727_v15   ;;  %v10843_v27 = vpop.permute.xlu0 %2082  ;;  %v1635_v4 = vmul.f32 %v1558_v61, %v1251_v24 }
 0x248   :  { %v10846_v43 = vadd.f32 %v10843_v27, %v1943_v57  ;;  %v10849_v16 = vadd.f32 %v10843_v27, %v1944_v58  ;;  %v14973_v58 = vld [vmem:[#allocation38_spill] sm:$0xff] }
 0x249   :  { %v1699_v30 = vmul.f32 %v1635_v4, %v10771_v37 }
 0x24a   :  { %1869 = vperm.xlu0 %9298, %v1635_v4   ;;  %v14974_v4 = vld [vmem:[#allocation39_spill] sm:$0xff] }
 0x24b   :  { %v1731_v5 = vsub.f32 %v1667_v32, %v1699_v30  ;;  %v767_v32 = vadd.f32 %v10532_v34, %v10530_v20 }
 0x252   :  { %2157 = vperm.xlu0 %9298, %v1731_v5   ;;  %v14975_v5 = vld [vmem:[#allocation20_spill] sm:$0xff] }
 0x254   :  { %v756_v31 = vpop.xlane.xlu1 %755 }
 0x255   :  { %1789 = vperm.xlu1 %9297, %v14971_v6   ;;  %v1092_v35 = vmul.f32 0.001953125, %v756_v31  ;;  %v14976_v6 = vld [vmem:[#allocation22_spill] sm:$0xff] }
 0x257   :  { %v1156_v37 = vmul.f32 %v1092_v35, %v1092_v35 }
 0x25a   :  { %v10859_v22 = vpop.xlane.xlu2 %765 }
 0x25c   :  { %v1044_v41 = vpop.xlane.xlu1 %1043 }
 0x25d   :  { %v1124_v44 = vmul.f32 0.001953125, %v1044_v41  ;;  %2077 = vperm.xlu1 %9297, %v1715_v40   ;;  %v14977_v40 = vld [vmem:[#allocation23_spill] sm:$0xff] }
 0x25f   :  { %v1188_v36 = vsub.f32 %v1124_v44, %v1156_v37 }
 0x261   :  { %v1220_v60 = vmax.f32 %v1188_v36, 0.0 }
 0x262   :  { %v10862_v63 = vpop.xlane.xlu2 %1053 }
 0x263   :  { %v1284_v17 = vadd.f32 1e-05, %v1220_v60  ;;  %v10888_v60 = vpop.permute.xlu0 %2087 }
 0x265   :  { %9347 = vrsqrt.f32 %v1284_v17  ;;  %vm1565_vm11 = vweird.f32 %v1284_v17 }
 0x26a   :  { %v10864_v42 = vpop.xlane.xlu2 %1058 }
 0x26b   :  { %v9348_v49 = vpop.eup %9347 }
 0x26c   :  { %v1560_v7 = vmul.f32 %v9348_v49, %v1284_v17  ;;  %vm1566_vm10 = vweird.f32 %v9348_v49  ;;  %v14978_v17 = vld [vmem:[#allocation21_spill] sm:$0xff] }
 0x26d   :  { %vm1567_vm12 = vmor %vm1565_vm11, %vm1566_vm10 }
 0x26e   :  { %v1561_v59 = vmul.f32 %v9348_v49, %v1560_v7 }
 0x270   :  { %v1562_v33 = vmul.f32 0.5, %v1561_v59  ;;  %v1668_v59 = vld [vmem:[%s14713_s3 + $0xd8] sm:$0xff] }
 0x272   :  { %v1563_v50 = vsub.f32 1.5, %v1562_v33  ;;  %v10866_v15 = vpop.permute.xlu2 %1804 }
 0x273   :  { %v1951_v61 = vmul.f32 %v10866_v15, %v14973_v58  ;;  %v1952_v30 = vmul.f32 %v10866_v15, %v14974_v4  ;;  %v2345_v58 = vmax.f32 %v10752_v53, 0.0 }
 0x274   :  { %v1785_v24 = vpop.permute.xlu1 %1784  ;;  %v1564_v26 = vmul.f32 %v9348_v49, %v1563_v50 }
 0x275   :  { %v1933_v31 = vmul.f32 %v1785_v24, %v14975_v5  ;;  %v1935_v51 = vmul.f32 %v1785_v24, %v14976_v6  ;;  %v1936_v41 = vmul.f32 %v1785_v24, %v14977_v40  ;;  %v2346_v5 = vmax.f32 %v10758_v2, 0.0 }
 0x276   :  { %v1568_v57 = vsel %vm1567_vm12, %v9348_v49, %v1564_v26  ;;  %v1934_v49 = vmul.f32 %v1785_v24, %v14978_v17  ;;  %v2347_v26 = vmax.f32 %v10745_v1, 0.0 }
 0x277   :  { %v1636_v48 = vmul.f32 %v1568_v57, %v1252_v11  ;;  %v768_v57 = vadd.f32 %v767_v32, %v10548_v25 }
 0x279   :  { %1874 = vperm.xlu2 %9296, %v1636_v48   ;;  %v1700_v36 = vmul.f32 %v1636_v48, %v1092_v35  ;;  %v2348_v35 = vmax.f32 %v10747_v18, 0.0  ;;  %v769_v18 = vadd.f32 %v768_v57, %v10576_v9 }
 0x27a   :  { %v10879_v46 = vpop.permute.xlu2 %2092  ;;  %v10910_v40 = vpop.xlane.xlu0 %1063 }
 0x27b   :  { %v10883_v37 = vadd.f32 %v10879_v46, %v1951_v61  ;;  %v10886_v44 = vadd.f32 %v10879_v46, %v1952_v30  ;;  %v1732_v48 = vsub.f32 %v1668_v59, %v1700_v36  ;;  %v14982_v36 = vld [vmem:[#allocation47_spill] sm:$0xff] }
 0x27c   :  { %v2073_v7 = vpop.permute.xlu1 %2072 }
 0x27d   :  { %v2223_v33 = vadd.f32 %v2073_v7, %v1935_v51  ;;  %v2224_v50 = vadd.f32 %v2073_v7, %v1936_v41  ;;  %v2221_v11 = vadd.f32 %v2073_v7, %v1933_v31  ;;  %v2222_v61 = vadd.f32 %v2073_v7, %v1934_v49  ;;  %v14981_v41 = vld [vmem:[#allocation46_spill] sm:$0xff] }
 0x27f   :  { %v2349_v4 = vmax.f32 %v2221_v11, 0.0  ;;  %v2351_v24 = vmax.f32 %v2223_v33, 0.0  ;;  %v2352_v30 = vmax.f32 %v2224_v50, 0.0  ;;  %v2350_v6 = vmax.f32 %v2222_v61, 0.0 }
 0x281   :  { %2162 = vperm.xlu2 %9296, %v1732_v48   ;;  %v10899_v51 = vpack.c.bf16 %v2349_v4, %v2345_v58  ;;  %v10901_v31 = vpack.c.bf16 %v2351_v24, %v2347_v26  ;;  %v10903_v1 = vpack.c.bf16 %v2352_v30, %v2348_v35  ;;  %v10907_v53 = vpack.c.bf16 %v2350_v6, %v2346_v5  ;;  %v14984_v26 = vld [vmem:[#allocation70_spill] sm:$0xff]  ;;  %v14985_v58 = vld [vmem:[#allocation71_spill] sm:$0xff]  ;;  %v14986_v35 = vld [vmem:[#allocation73_spill] sm:$0xff] }
 0x282   :  { %v10905_v32 = vpop.permute.xlu2 %1814  ;;  %v14987_v4 = vld [vmem:[#allocation75_spill] sm:$0xff] }
 0x283   :  { %14979 = vst [vmem:[#allocation30_spill] sm:$0xff] %v10901_v31  ;;  %v1959_v2 = vmul.f32 %v10905_v32, %v14981_v41  ;;  %v1960_v17 = vmul.f32 %v10905_v32, %v14982_v36 }
 0x284   :  { %14980 = vst [vmem:[#allocation31_spill] sm:$0xff] %v10903_v1 }
 0x287   :  { %770 = vadd.xlane.f32.xlu1 %v769_v18 }
 0x28a   :  { %v10916_v49 = vpop.permute.xlu2 %2102 }
 0x28b   :  { %v10919_v7 = vadd.f32 %v10916_v49, %v1959_v2  ;;  %v10922_v59 = vadd.f32 %v10916_v49, %v1960_v17  ;;  %v14988_v2 = vld [vmem:[#allocation64_spill] sm:$0xff]  ;;  %v14989_v17 = vld [vmem:[#allocation65_spill] sm:$0xff] }
 0x28d   :  { %v10924_v33 = vpop.permute.xlu0 %1834 }
 0x28e   :  { %14983 = vst [vmem:[#allocation90_spill] sm:$0xff] %v10924_v33 }
 0x292   :  { %v1845_v50 = vpop.permute.xlu2 %1844 }
 0x293   :  { %v1981_v57 = vmul.f32 %v1845_v50, %v14984_v26  ;;  %v1982_v61 = vmul.f32 %v1845_v50, %v14985_v58  ;;  %v1983_v48 = vmul.f32 %v1845_v50, %v14986_v35  ;;  %v1984_v24 = vmul.f32 %v1845_v50, %v14987_v4 }
 0x295   :  { %v1840_v11 = vpop.permute.xlu0 %1839 }
 0x296   :  { %v1977_v36 = vmul.f32 %v1840_v11, %v14988_v2  ;;  %v1978_v39 = vmul.f32 %v1840_v11, %v14989_v17  ;;  %v1979_v0 = vmul.f32 %v1840_v11, %v14990_v55  ;;  %v1980_v1 = vmul.f32 %v1840_v11, %v14991_v52 }
 0x29a   :  { %v2133_v30 = vpop.permute.xlu2 %2132 }
 0x29b   :  { %v2271_v5 = vadd.f32 %v2133_v30, %v1983_v48  ;;  %v2272_v6 = vadd.f32 %v2133_v30, %v1984_v24  ;;  %v2269_v18 = vadd.f32 %v2133_v30, %v1981_v57  ;;  %v2270_v41 = vadd.f32 %v2133_v30, %v1982_v61 }
 0x29d   :  { %v2128_v26 = vpop.permute.xlu0 %2127  ;;  %v2397_v24 = vmax.f32 %v2269_v18, 0.0  ;;  %v2398_v30 = vmax.f32 %v2270_v41, 0.0  ;;  %v2399_v2 = vmax.f32 %v2271_v5, 0.0  ;;  %v2400_v17 = vmax.f32 %v2272_v6, 0.0 }
 0x29e   :  { %v2267_v31 = vadd.f32 %v2128_v26, %v1979_v0  ;;  %v2268_v58 = vadd.f32 %v2128_v26, %v1980_v1  ;;  %v2265_v9 = vadd.f32 %v2128_v26, %v1977_v36  ;;  %v2266_v35 = vadd.f32 %v2128_v26, %v1978_v39  ;;  %v14996_v1 = vld [vmem:[#allocation78_spill] sm:$0xff]  ;;  %v14999_v26 = vld [vmem:[#allocation81_spill] sm:$0xff] }
 0x2a0   :  { %1799 = vperm.xlu1 %9297, %v10462_v12   ;;  %v2393_v50 = vmax.f32 %v2265_v9, 0.0  ;;  %v2394_v48 = vmax.f32 %v2266_v35, 0.0  ;;  %v2395_v4 = vmax.f32 %v2267_v31, 0.0  ;;  %v2396_v57 = vmax.f32 %v2268_v58, 0.0  ;;  %v14997_v9 = vld [vmem:[#allocation79_spill] sm:$0xff]  ;;  %v14998_v31 = vld [vmem:[#allocation80_spill] sm:$0xff] }
 0x2a2   :  { %v1850_v61 = vpop.permute.xlu2 %1849  ;;  %v10935_v25 = vpack.c.bf16 %v2397_v24, %v2393_v50  ;;  %v10937_v55 = vpack.c.bf16 %v2398_v30, %v2394_v48  ;;  %v10939_v52 = vpack.c.bf16 %v2399_v2, %v2395_v4  ;;  %v10941_v0 = vpack.c.bf16 %v2400_v17, %v2396_v57 }
 0x2a3   :  { %v1985_v12 = vmul.f32 %v1850_v61, %v14996_v1  ;;  %v1986_v11 = vmul.f32 %v1850_v61, %v14997_v9  ;;  %v1987_v36 = vmul.f32 %v1850_v61, %v14998_v31  ;;  %v1988_v18 = vmul.f32 %v1850_v61, %v14999_v26 }
 0x2a4   :  { %14992 = vst [vmem:[#allocation91_spill] sm:$0xff] %v10935_v25  ;;  %v10970_v31 = vmul.f32 0.001953125, %v10446_v45  ;;  %v15007_v25 = vld [vmem:[#allocation25_spill] sm:$0xff] }
 0x2a5   :  { %14993 = vst [vmem:[#allocation38_spill] sm:$0xff] %v10937_v55 }
 0x2a6   :  { %14994 = vst [vmem:[#allocation39_spill] sm:$0xff] %v10939_v52 }
 0x2a7   :  { %14995 = vst [vmem:[#allocation20_spill] sm:$0xff] %v10941_v0  ;;  %v761_v39 = vpop.xlane.xlu1 %760 }
 0x2a8   :  { %v1093_v50 = vmul.f32 0.001953125, %v761_v39 }
 0x2aa   :  { %v2138_v41 = vpop.permute.xlu2 %2137  ;;  %v1157_v57 = vmul.f32 %v1093_v50, %v1093_v50 }
 0x2ab   :  { %v10947_v5 = vadd.f32 %v2138_v41, %v1987_v36  ;;  %v10949_v6 = vadd.f32 %v2138_v41, %v1988_v18  ;;  %v10951_v58 = vadd.f32 %v2138_v41, %v1985_v12  ;;  %v10953_v35 = vadd.f32 %v2138_v41, %v1986_v11 }
 0x2ac   :  { %v10955_v48 = vpop.permute.xlu0 %1864  ;;  %v1147_v18 = vmul.f32 %v10970_v31, %v10970_v31 }
 0x2ad   :  { %15000 = vst [vmem:[#allocation22_spill] sm:$0xff] %v10955_v48  ;;  %v1999_v2 = vmul.f32 %v10955_v48, %v10263_v29  ;;  %v2000_v61 = vmul.f32 %v10955_v48, %v10282_v23  ;;  %v772_v29 = vadd.f32 %v10597_v62, %v10595_v47  ;;  %v1115_v23 = vmul.f32 0.001953125, %v10471_v14 }
 0x2af   :  { %v1049_v4 = vpop.xlane.xlu1 %1048 }
 0x2b0   :  { %v1125_v24 = vmul.f32 0.001953125, %v1049_v4  ;;  %v15002_v4 = vld [vmem:[#allocation120_spill] sm:$0xff] }
 0x2b2   :  { %v1189_v30 = vsub.f32 %v1125_v24, %v1157_v57  ;;  %v773_v57 = vadd.f32 %v772_v29, %v15002_v4  ;;  %v1179_v24 = vsub.f32 %v1115_v23, %v1147_v18  ;;  %v15005_v23 = vld [vmem:[#allocation117_spill] sm:$0xff]  ;;  %v15006_v4 = vld [vmem:[#allocation24_spill] sm:$0xff] }
 0x2b4   :  { %v1221_v17 = vmax.f32 %v1189_v30, 0.0  ;;  %v10961_v1 = vpop.permute.xlu0 %2152  ;;  %v15003_v30 = vld [vmem:[#allocation115_spill] sm:$0xff]  ;;  %v1211_v52 = vmax.f32 %v1179_v24, 0.0 }
 0x2b5   :  { %15001 = vst [vmem:[#allocation23_spill] sm:$0xff] %v10961_v1  ;;  %v10964_v12 = vadd.f32 %v10961_v1, %v1999_v2  ;;  %v10967_v39 = vadd.f32 %v10961_v1, %v2000_v61  ;;  %v10979_v2 = vmul.f32 0.001953125, %v15003_v30 }
 0x2b6   :  { %v1285_v9 = vadd.f32 1e-05, %v1221_v17  ;;  %v1253_v17 = vld [vmem:[%s14712_s2 + $0xe0] sm:$0xff] }
 0x2b7   :  { %v1152_v29 = vmul.f32 %v10979_v2, %v10979_v2 }
 0x2b8   :  { %9349 = vrsqrt.f32 %v1285_v9  ;;  %vm1575_vm14 = vweird.f32 %v1285_v9 }
 0x2be   :  { %v9350_v11 = vpop.eup %9349 }
 0x2bf   :  { %v1570_v36 = vmul.f32 %v9350_v11, %v1285_v9  ;;  %vm1576_vm13 = vweird.f32 %v9350_v11  ;;  %v1275_v9 = vadd.f32 1e-05, %v1211_v52 }
 0x2c0   :  { %vm1577_vm15 = vmor %vm1575_vm14, %vm1576_vm13 }
 0x2c1   :  { %v1571_v26 = vmul.f32 %v9350_v11, %v1570_v36  ;;  %v15004_v36 = vld [vmem:[#allocation121_spill] sm:$0xff]  ;;  %9351 = vrsqrt.f32 %v1275_v9  ;;  %vm1475_vm1 = vweird.f32 %v1275_v9 }
 0x2c2   :  { %v774_v0 = vadd.f32 %v773_v57, %v15004_v36  ;;  %v15009_v57 = vld [vmem:[#allocation27_spill] sm:$0xff] }
 0x2c3   :  { %v1572_v41 = vmul.f32 0.5, %v1571_v26  ;;  %v1120_v26 = vmul.f32 0.001953125, %v15005_v23  ;;  %v1669_v23 = vld [vmem:[%s14713_s3 + $0xe0] sm:$0xff] }
 0x2c5   :  { %v1573_v61 = vsub.f32 1.5, %v1572_v41  ;;  %v1184_v30 = vsub.f32 %v1120_v26, %v1152_v29  ;;  %v2359_v26 = vmax.f32 %v10846_v43, 0.0 }
 0x2c7   :  { %v1790_v45 = vpop.permute.xlu1 %1789  ;;  %v1574_v14 = vmul.f32 %v9350_v11, %v1573_v61  ;;  %v15008_v61 = vld [vmem:[#allocation26_spill] sm:$0xff] }
 0x2c8   :  { %v1937_v55 = vmul.f32 %v1790_v45, %v15006_v4  ;;  %v1938_v33 = vmul.f32 %v1790_v45, %v15007_v25  ;;  %v1939_v1 = vmul.f32 %v1790_v45, %v15008_v61  ;;  %v1940_v36 = vmul.f32 %v1790_v45, %v15009_v57 }
 0x2c9   :  { %v1578_v18 = vsel %vm1577_vm15, %v9350_v11, %v1574_v14  ;;  %v1216_v4 = vmax.f32 %v1184_v30, 0.0 }
 0x2ca   :  { %775 = vadd.xlane.f32.xlu1 %v774_v0  ;;  %v1637_v41 = vmul.f32 %v1578_v18, %v1253_v17  ;;  %v15010_v18 = vld [vmem:[#allocation119_spill] sm:$0xff] }
 0x2cb   :  { %v1280_v45 = vadd.f32 1e-05, %v1216_v4 }
 0x2cc   :  { %1879 = vperm.xlu2 %9296, %v1637_v41   ;;  %v1701_v24 = vmul.f32 %v1637_v41, %v1093_v50  ;;  %v2360_v50 = vmax.f32 %v10849_v16, 0.0  ;;  %v11002_v41 = vmul.f32 0.001953125, %v15010_v18  ;;  %v1126_v18 = vmul.f32 0.001953125, %v10862_v63 }
 0x2cd   :  { %9353 = vrsqrt.f32 %v1280_v45  ;;  %vm1525_vm3 = vweird.f32 %v1280_v45 }
 0x2ce   :  { %v1733_v14 = vsub.f32 %v1669_v23, %v1701_v24 }
 0x2cf   :  { %v2078_v48 = vpop.permute.xlu1 %2077 }
 0x2d0   :  { %v2227_v11 = vadd.f32 %v2078_v48, %v1939_v1  ;;  %v2228_v0 = vadd.f32 %v2078_v48, %v1940_v36  ;;  %v10995_v17 = vadd.f32 %v2078_v48, %v1937_v55  ;;  %v10997_v52 = vadd.f32 %v2078_v48, %v1938_v33  ;;  %v9352_v33 = vpop.eup %9351  ;;  %v15011_v36 = vld [vmem:[#allocation122_spill] sm:$0xff] }
 0x2d1   :  { %v1153_v48 = vmul.f32 %v11002_v41, %v11002_v41  ;;  %v1121_v30 = vmul.f32 0.001953125, %v15011_v36  ;;  %v1470_v61 = vmul.f32 %v9352_v33, %v1275_v9  ;;  %vm1476_vm0 = vweird.f32 %v9352_v33 }
 0x2d2   :  { %v2355_v25 = vmax.f32 %v2227_v11, 0.0  ;;  %v2356_v29 = vmax.f32 %v2228_v0, 0.0  ;;  %v15012_v0 = vld [vmem:[#allocation96_spill] sm:$0xff]  ;;  %vm1477_vm2 = vmor %vm1475_vm1, %vm1476_vm0 }
 0x2d3   :  { %v1185_v43 = vsub.f32 %v1121_v30, %v1153_v48  ;;  %v1471_v57 = vmul.f32 %v9352_v33, %v1470_v61  ;;  %v9354_v16 = vpop.eup %9353  ;;  %v15013_v48 = vld [vmem:[#allocation97_spill] sm:$0xff] }
 0x2d4   :  { %2167 = vperm.xlu2 %9296, %v1733_v14   ;;  %v11004_v1 = vpack.c.bf16 %v2359_v26, %v2355_v25  ;;  %v11006_v55 = vpack.c.bf16 %v2360_v50, %v2356_v29  ;;  %v1520_v11 = vmul.f32 %v9354_v16, %v1280_v45  ;;  %v11013_v14 = vmul.f32 0.001953125, %v10859_v22  ;;  %v1655_v26 = vld [vmem:[%s14713_s3 + $0x70] sm:$0xff] }
 0x2d5   :  { %v1217_v24 = vmax.f32 %v1185_v43, 0.0  ;;  %v1472_v23 = vmul.f32 0.5, %v1471_v57  ;;  %v1719_v36 = vsub.f32 %v1655_v26, %v15013_v48  ;;  %v1243_v57 = vld [vmem:[%s14712_s2 + $0x90] sm:$0xff]  ;;  %vm1526_vm4 = vweird.f32 %v9354_v16  ;;  %v1248_v26 = vld [vmem:[%s14712_s2 + $0xb8] sm:$0xff] }
 0x2d6   :  { %v1521_v29 = vmul.f32 %v9354_v16, %v1520_v11  ;;  %v1158_v50 = vmul.f32 %v11013_v14, %v11013_v14  ;;  %vm1527_vm5 = vmor %vm1525_vm3, %vm1526_vm4  ;;  %v1127_v48 = vmul.f32 0.001953125, %v10864_v42 }
 0x2d7   :  { %v1281_v4 = vadd.f32 1e-05, %v1217_v24  ;;  %v1473_v25 = vsub.f32 1.5, %v1472_v23 }
 0x2d8   :  { %v1522_v30 = vmul.f32 0.5, %v1521_v29  ;;  %v1190_v22 = vsub.f32 %v1126_v18, %v1158_v50 }
 0x2d9   :  { %9355 = vrsqrt.f32 %v1281_v4  ;;  %v1474_v61 = vmul.f32 %v9352_v33, %v1473_v25  ;;  %vm1535_vm6 = vweird.f32 %v1281_v4 }
 0x2da   :  { %v1523_v43 = vsub.f32 1.5, %v1522_v30  ;;  %v1222_v11 = vmax.f32 %v1190_v22, 0.0 }
 0x2db   :  { %v1478_v24 = vsel %vm1477_vm2, %v9352_v33, %v1474_v61 }
 0x2dc   :  { %v11025_v63 = vmul.f32 %v1478_v24, %v1243_v57  ;;  %v1524_v29 = vmul.f32 %v9354_v16, %v1523_v43  ;;  %v1286_v9 = vadd.f32 1e-05, %v1222_v11  ;;  %v1664_v43 = vld [vmem:[%s14713_s3 + $0xb8] sm:$0xff] }
 0x2de   :  { %v1528_v50 = vsel %vm1527_vm5, %v9354_v16, %v1524_v29  ;;  %9357 = vrsqrt.f32 %v1286_v9  ;;  %vm1585_vm9 = vweird.f32 %v1286_v9 }
 0x2df   :  { %v9356_v23 = vpop.eup %9355  ;;  %v1632_v33 = vmul.f32 %v1528_v50, %v1248_v26 }
 0x2e0   :  { %vm1536_vm7 = vweird.f32 %v9356_v23 }
 0x2e1   :  { %v1696_v61 = vmul.f32 %v1632_v33, %v10979_v2  ;;  %vm1537_vm8 = vmor %vm1535_vm6, %vm1536_vm7  ;;  %v1249_v2 = vld [vmem:[%s14712_s2 + $0xc0] sm:$0xff] }
 0x2e3   :  { %1809 = vperm.xlu1 %9297, %v15012_v0   ;;  %v1530_v0 = vmul.f32 %v9356_v23, %v1281_v4  ;;  %v1728_v11 = vsub.f32 %v1664_v43, %v1696_v61  ;;  %v1665_v61 = vld [vmem:[%s14713_s3 + $0xc0] sm:$0xff] }
 0x2e4   :  { %v9358_v16 = vpop.eup %9357 }
 0x2e5   :  { %v1531_v25 = vmul.f32 %v9356_v23, %v1530_v0  ;;  %v1580_v42 = vmul.f32 %v9358_v16, %v1286_v9  ;;  %vm1586_vm10 = vweird.f32 %v9358_v16  ;;  %v1255_v9 = vld [vmem:[%s14712_s2 + $0xf0] sm:$0xff] }
 0x2e6   :  { %vm11053_vm12 = vmor %vm1585_vm9, %vm1586_vm10 }
 0x2e7   :  { %v1532_v18 = vmul.f32 0.5, %v1531_v25  ;;  %v1581_v25 = vmul.f32 %v9358_v16, %v1580_v42 }
 0x2e9   :  { %v1533_v22 = vsub.f32 1.5, %v1532_v18 }
 0x2eb   :  { %2097 = vperm.xlu1 %9297, %v1719_v36   ;;  %v1534_v0 = vmul.f32 %v9356_v23, %v1533_v22 }
 0x2ed   :  { %v1538_v26 = vsel %vm1537_vm8, %v9356_v23, %v1534_v0  ;;  %v15015_v0 = vld [vmem:[#allocation35_spill] sm:$0xff] }
 0x2ee   :  { %v1633_v50 = vmul.f32 %v1538_v26, %v1249_v2 }
 0x2f3   :  { %1829 = vperm.xlu1 %9297, %v11025_v63  }
 0x2fa   :  { %v771_v45 = vpop.xlane.xlu1 %770 }
 0x2fb   :  { %v11032_v36 = vmul.f32 0.001953125, %v771_v45  ;;  %1854 = vperm.xlu1 %9297, %v1632_v33   ;;  %v1582_v33 = vmul.f32 0.5, %v1581_v25  ;;  %v1697_v45 = vmul.f32 %v1633_v50, %v11002_v41  ;;  %v1691_v25 = vmul.f32 %v11025_v63, %v10970_v31  ;;  %v1657_v31 = vld [vmem:[%s14713_s3 + $0x80] sm:$0xff]  ;;  %v15020_v63 = vld [vmem:[#allocation101_spill] sm:$0xff] }
 0x2fd   :  { %v1159_v30 = vmul.f32 %v11032_v36, %v11032_v36  ;;  %v1729_v43 = vsub.f32 %v1665_v61, %v1697_v45  ;;  %v2367_v61 = vmax.f32 %v10883_v37, 0.0 }
 0x2ff   :  { %v1191_v57 = vsub.f32 %v1127_v48, %v1159_v30  ;;  %v1583_v48 = vsub.f32 1.5, %v1582_v33 }
 0x301   :  { %v1223_v24 = vmax.f32 %v1191_v57, 0.0 }
 0x303   :  { %v1287_v29 = vadd.f32 1e-05, %v1223_v24  ;;  %2142 = vperm.xlu1 %9297, %v1728_v11   ;;  %v1584_v24 = vmul.f32 %v9358_v16, %v1583_v48  ;;  %v15014_v11 = vld [vmem:[#allocation34_spill] sm:$0xff] }
 0x305   :  { %9359 = vrsqrt.f32 %v1287_v29  ;;  %vm1595_vm13 = vweird.f32 %v1287_v29  ;;  %v1588_v45 = vsel %vm11053_vm12, %v9358_v16, %v1584_v24  ;;  %v1670_v16 = vld [vmem:[%s14713_s3 + $0xe8] sm:$0xff] }
 0x30b   :  { %v9360_v18 = vpop.eup %9359  ;;  %1859 = vperm.xlu1 %9297, %v1633_v50  }
 0x30c   :  { %v1590_v4 = vmul.f32 %v9360_v18, %v1287_v29  ;;  %vm1596_vm11 = vweird.f32 %v9360_v18  ;;  %v2368_v29 = vmax.f32 %v10886_v44, 0.0  ;;  %v1671_v44 = vld [vmem:[%s14713_s3 + $0xf0] sm:$0xff] }
 0x30d   :  { %vm1597_vm14 = vmor %vm1595_vm13, %vm1596_vm11 }
 0x30e   :  { %v1591_v30 = vmul.f32 %v9360_v18, %v1590_v4  ;;  %v1254_v4 = vld [vmem:[%s14712_s2 + $0xe8] sm:$0xff] }
 0x310   :  { %v1592_v22 = vmul.f32 0.5, %v1591_v30 }
 0x312   :  { %v1593_v57 = vsub.f32 1.5, %v1592_v22  ;;  %v11047_v23 = vpop.permute.xlu1 %1799 }
 0x313   :  { %v1947_v42 = vmul.f32 %v11047_v23, %v15014_v11  ;;  %v1948_v41 = vmul.f32 %v11047_v23, %v15015_v0  ;;  %2147 = vperm.xlu1 %9297, %v1729_v43   ;;  %v1638_v43 = vmul.f32 %v1588_v45, %v1254_v4  ;;  %v1644_v0 = vld [vmem:[%s14713_s3 + $0x18] sm:$0xff]  ;;  %v15019_v45 = vld [vmem:[#allocation102_spill] sm:$0xff] }
 0x314   :  { %v1594_v2 = vmul.f32 %v9360_v18, %v1593_v57 }
 0x315   :  { %v2235_v26 = vadd.f32 %v10888_v60, %v1947_v42  ;;  %v2236_v50 = vadd.f32 %v10888_v60, %v1948_v41  ;;  %v15018_v41 = vld [vmem:[#allocation77_spill] sm:$0xff] }
 0x316   :  { %v1598_v33 = vsel %vm1597_vm14, %v9360_v18, %v1594_v2  ;;  %v1702_v18 = vmul.f32 %v1638_v43, %v11013_v14  ;;  %v1708_v14 = vsub.f32 %v1644_v0, %v15018_v41  ;;  %v15022_v41 = vld [vmem:[#allocation32_spill] sm:$0xff] }
 0x317   :  { %v1639_v48 = vmul.f32 %v1598_v33, %v1255_v9  ;;  %v2363_v30 = vmax.f32 %v2235_v26, 0.0  ;;  %v2364_v22 = vmax.f32 %v2236_v50, 0.0  ;;  %v1128_v50 = vmul.f32 0.001953125, %v10910_v40 }
 0x318   :  { %v1734_v24 = vsub.f32 %v1670_v16, %v1702_v18 }
 0x319   :  { %1889 = vperm.xlu0 %9298, %v1639_v48   ;;  %v11069_v57 = vpack.c.bf16 %v2367_v61, %v2363_v30  ;;  %v11071_v11 = vpack.c.bf16 %v2368_v29, %v2364_v22  ;;  %v1703_v37 = vmul.f32 %v1639_v48, %v11032_v36  ;;  %v1659_v36 = vld [vmem:[%s14713_s3 + $0x90] sm:$0xff]  ;;  %v1721_v61 = vsub.f32 %v1657_v31, %v15020_v63  ;;  %v15027_v31 = vld [vmem:[#allocation33_spill] sm:$0xff] }
 0x31a   :  { %v1723_v9 = vsub.f32 %v1659_v36, %v1691_v25  ;;  %v15023_v36 = vld [vmem:[#allocation36_spill] sm:$0xff]  ;;  %v1946_v63 = vmul.f32 %v11047_v23, %v15027_v31 }
 0x31b   :  { %1884 = vperm.xlu1 %9297, %v1638_v43   ;;  %v1735_v42 = vsub.f32 %v1671_v44, %v1703_v37  ;;  %v1643_v44 = vld [vmem:[%s14713_s3 + $0x10] sm:$0xff] }
 0x323   :  { %2172 = vperm.xlu1 %9297, %v1734_v24   ;;  %v1256_v24 = vld [vmem:[%s14712_s2 + $0xf8] sm:$0xff] }
 0x32b   :  { %2177 = vperm.xlu1 %9297, %v1735_v42   ;;  %v15021_v42 = vld [vmem:[#allocation44_spill] sm:$0xff] }
 0x32c   :  { %v1957_v0 = vmul.f32 %v10905_v32, %v15021_v42 }
 0x333   :  { %2042 = vperm.xlu1 %9297, %v1708_v14   ;;  %v1945_v14 = vmul.f32 %v11047_v23, %v15022_v41 }
 0x335   :  { %v2233_v23 = vadd.f32 %v10888_v60, %v1945_v14 }
 0x33b   :  { %2117 = vperm.xlu1 %9297, %v1723_v9   ;;  %v1949_v9 = vmul.f32 %v10866_v15, %v15023_v36 }
 0x33d   :  { %v776_v2 = vpop.xlane.xlu1 %775 }
 0x33e   :  { %v1096_v26 = vmul.f32 0.001953125, %v776_v2 }
 0x340   :  { %v1160_v33 = vmul.f32 %v1096_v26, %v1096_v26 }
 0x342   :  { %v1192_v4 = vsub.f32 %v1128_v50, %v1160_v33  ;;  %v15024_v50 = vld [vmem:[#allocation76_spill] sm:$0xff] }
 0x343   :  { %1824 = vperm.xlu1 %9297, %v15019_v45   ;;  %v1707_v33 = vsub.f32 %v1643_v44, %v15024_v50 }
 0x344   :  { %v1224_v48 = vmax.f32 %v1192_v4, 0.0  ;;  %v15025_v4 = vld [vmem:[#allocation37_spill] sm:$0xff] }
 0x345   :  { %v1950_v45 = vmul.f32 %v10866_v15, %v15025_v4  ;;  %v15031_v15 = vld [vmem:[#allocation41_spill] sm:$0xff]  ;;  %v2375_v4 = vmax.f32 %v10919_v7, 0.0 }
 0x346   :  { %v1288_v30 = vadd.f32 1e-05, %v1224_v48  ;;  %v15026_v48 = vld [vmem:[#allocation45_spill] sm:$0xff] }
 0x348   :  { %9361 = vrsqrt.f32 %v1288_v30  ;;  %vm1605_vm0 = vweird.f32 %v1288_v30 }
 0x34b   :  { %2107 = vperm.xlu1 %9297, %v1721_v61   ;;  %v1672_v61 = vld [vmem:[%s14713_s3 + $0xf8] sm:$0xff] }
 0x34e   :  { %v9362_v22 = vpop.eup %9361 }
 0x34f   :  { %v1600_v29 = vmul.f32 %v9362_v22, %v1288_v30  ;;  %vm1606_vm15 = vweird.f32 %v9362_v22  ;;  %v1958_v30 = vmul.f32 %v10905_v32, %v15026_v48  ;;  %v2376_v48 = vmax.f32 %v10922_v59, 0.0 }
 0x350   :  { %vm1607_vm1 = vmor %vm1605_vm0, %vm1606_vm15 }
 0x351   :  { %v1601_v43 = vmul.f32 %v9362_v22, %v1600_v29  ;;  %v2246_v41 = vadd.f32 %v10916_v49, %v1958_v30  ;;  %v15032_v30 = vld [vmem:[#allocation28_spill] sm:$0xff] }
 0x352   :  { %v1941_v14 = vmul.f32 %v10830_v3, %v15032_v30  ;;  %v15040_v30 = vld [vmem:[#allocation85_spill] sm:$0xff] }
 0x353   :  { %v1602_v18 = vmul.f32 0.5, %v1601_v43  ;;  %v15028_v43 = vld [vmem:[#allocation40_spill] sm:$0xff] }
 0x355   :  { %v1603_v16 = vsub.f32 1.5, %v1602_v18  ;;  %v1810_v40 = vpop.permute.xlu1 %1809 }
 0x356   :  { %v1953_v18 = vmul.f32 %v1810_v40, %v15028_v43  ;;  %v1954_v42 = vmul.f32 %v1810_v40, %v15031_v15  ;;  %v2229_v15 = vadd.f32 %v10843_v27, %v1941_v14 }
 0x357   :  { %v1604_v37 = vmul.f32 %v9362_v22, %v1603_v16  ;;  %v15029_v16 = vld [vmem:[#allocation42_spill] sm:$0xff] }
 0x359   :  { %v1608_v25 = vsel %vm1607_vm1, %v9362_v22, %v1604_v37  ;;  %v2245_v22 = vadd.f32 %v10916_v49, %v1957_v0  ;;  %v15030_v37 = vld [vmem:[#allocation43_spill] sm:$0xff] }
 0x35a   :  { %v1640_v2 = vmul.f32 %v1608_v25, %v1256_v24  ;;  %v1955_v24 = vmul.f32 %v1810_v40, %v15029_v16  ;;  %v1956_v44 = vmul.f32 %v1810_v40, %v15030_v37  ;;  %v2237_v25 = vadd.f32 %v10879_v46, %v1949_v9  ;;  %v15033_v37 = vld [vmem:[#allocation29_spill] sm:$0xff] }
 0x35b   :  { %v2373_v49 = vmax.f32 %v2245_v22, 0.0 }
 0x35c   :  { %v1704_v29 = vmul.f32 %v1640_v2, %v1096_v26  ;;  %1894 = vperm.xlu2 %9296, %v1640_v2   ;;  %v2234_v2 = vadd.f32 %v10888_v60, %v1946_v63  ;;  %v1942_v60 = vmul.f32 %v10830_v3, %v15033_v37  ;;  %v2365_v22 = vmax.f32 %v2237_v25, 0.0  ;;  %v15034_v3 = vld [vmem:[#allocation66_spill] sm:$0xff]  ;;  %v1642_v37 = vld [vmem:[%s14713_s3 + $0x8] sm:$0xff] }
 0x35d   :  { %v2098_v32 = vpop.permute.xlu1 %2097 }
 0x35e   :  { %v2243_v36 = vadd.f32 %v2098_v32, %v1955_v24  ;;  %v2244_v50 = vadd.f32 %v2098_v32, %v1956_v44  ;;  %v1736_v0 = vsub.f32 %v1672_v61, %v1704_v29  ;;  %v2241_v26 = vadd.f32 %v2098_v32, %v1953_v18 }
 0x35f   :  { %v2242_v31 = vadd.f32 %v2098_v32, %v1954_v42  ;;  %v2374_v24 = vmax.f32 %v2246_v41, 0.0  ;;  %v2238_v61 = vadd.f32 %v10879_v46, %v1950_v45  ;;  %v2361_v18 = vmax.f32 %v2233_v23, 0.0 }
 0x360   :  { %v2371_v43 = vmax.f32 %v2243_v36, 0.0  ;;  %v2372_v40 = vmax.f32 %v2244_v50, 0.0  ;;  %2182 = vperm.xlu0 %9298, %v1736_v0   ;;  %v2369_v16 = vmax.f32 %v2241_v26, 0.0  ;;  %v2362_v44 = vmax.f32 %v2234_v2, 0.0  ;;  %v15035_v0 = vld [vmem:[#allocation114_spill] sm:$0xff] }
 0x361   :  { %v2370_v9 = vmax.f32 %v2242_v31, 0.0  ;;  %v2366_v46 = vmax.f32 %v2238_v61, 0.0  ;;  %v2230_v45 = vadd.f32 %v10843_v27, %v1942_v60  ;;  %v2466_v32 = vpack.c.bf16 %v2365_v22, %v2361_v18  ;;  %v1660_v27 = vld [vmem:[%s14713_s3 + $0x98] sm:$0xff]  ;;  %v15037_v31 = vld [vmem:[#allocation82_spill] sm:$0xff] }
 0x362   :  { %v2470_v29 = vpack.c.bf16 %v2373_v49, %v2369_v16  ;;  %v11132_v7 = vpack.c.bf16 %v2375_v4, %v2371_v43  ;;  %v11134_v59 = vpack.c.bf16 %v2376_v48, %v2372_v40  ;;  %v2353_v41 = vmax.f32 %v10995_v17, 0.0  ;;  %v15036_v48 = vld [vmem:[#allocation72_spill] sm:$0xff]  ;;  %v15038_v43 = vld [vmem:[#allocation83_spill] sm:$0xff] }
 0x363   :  { %v2471_v63 = vpack.c.bf16 %v2374_v24, %v2370_v9  ;;  %v2467_v23 = vpack.c.bf16 %v2366_v46, %v2362_v44  ;;  %v2354_v36 = vmax.f32 %v10997_v52, 0.0  ;;  %v2358_v25 = vmax.f32 %v2230_v45, 0.0  ;;  %v15039_v16 = vld [vmem:[#allocation84_spill] sm:$0xff]  ;;  %v11162_v24 = vpop.permute.xlu2 %1874 }
 0x364   :  { %2037 = vperm.xlu2 %9296, %v1707_v33   ;;  %2519 = vmatpush.bf16.msrb.mxu0 %v2470_v29  ;;  %v2357_v33 = vmax.f32 %v2229_v15, 0.0  ;;  %v1692_v26 = vmul.f32 %v10722_v8, %v15035_v0  ;;  %v1641_v8 = vld [vmem:[%s14713_s3] sm:$0xff]  ;;  %v15041_v9 = vld [vmem:[#allocation100_spill] sm:$0xff]  ;;  %v2401_v44 = vmax.f32 %v10951_v58, 0.0  ;;  %v2402_v22 = vmax.f32 %v10953_v35, 0.0 }
 0x365   :  { %2545 = vmatpush.bf16.msrb.mxu2 %v2471_v63  ;;  %v11139_v42 = vpop.permute.xlu1 %1829  ;;  %v2463_v4 = vpack.c.bf16 %v2358_v25, %v2354_v36  ;;  %v2404_v15 = vmax.f32 %v10949_v6, 0.0 }
 0x366   :  { %v2462_v50 = vpack.c.bf16 %v2357_v33, %v2353_v41  ;;  %v1724_v52 = vsub.f32 %v1660_v27, %v1692_v26  ;;  %v15043_v41 = vld [vmem:[#allocation74_spill] sm:$0xff]  ;;  %v15046_v26 = vld [vmem:[#allocation87_spill] sm:$0xff]  ;;  %v15047_v27 = vld [vmem:[#allocation88_spill] sm:$0xff] }
 0x368   :  { %1739 = vperm.xlu0 %9298, %v15034_v3   ;;  %2520 = vmatpush.bf16.msrb.mxu0 %v2466_v32  ;;  %v15044_v3 = vld [vmem:[#allocation103_spill] sm:$0xff] }
 0x369   :  { %2546 = vmatpush.bf16.msrb.mxu2 %v2467_v23  ;;  %v1706_v23 = vsub.f32 %v1642_v37, %v15043_v41 }
 0x36b   :  { %v11188_v25 = vpop.permute.xlu2 %2162 }
 0x36c   :  { %1744 = vperm.xlu2 %9296, %v15036_v48   ;;  %2521 = vmatpush.bf16.msrb.mxu0 %v2462_v50  ;;  %v15045_v50 = vld [vmem:[#allocation86_spill] sm:$0xff] }
 0x36d   :  { %2547 = vmatpush.bf16.msrb.mxu2 %v2463_v4  ;;  %v1855_v17 = vpop.permute.xlu1 %1854 }
 0x36e   :  { %v1989_v2 = vmul.f32 %v1855_v17, %v15037_v31  ;;  %v1990_v40 = vmul.f32 %v1855_v17, %v15038_v43  ;;  %v1991_v49 = vmul.f32 %v1855_v17, %v15039_v16  ;;  %v1992_v14 = vmul.f32 %v1855_v17, %v15040_v30  ;;  %v15048_v17 = vld [vmem:[#allocation89_spill] sm:$0xff] }
 0x36f   :  { %v2415_v30 = vmax.f32 %v10964_v12, 0.0 }
 0x370   :  { %2122 = vperm.xlu0 %9298, %v1724_v52   ;;  %2522 = vmatpush.bf16.msrb.mxu0 %v10899_v51 }
 0x371   :  { %2548 = vmatpush.bf16.msrb.mxu2 %v10907_v53  ;;  %v15042_v53 = vld [vmem:[#allocation69_spill] sm:$0xff] }
 0x372   :  { %v1705_v61 = vsub.f32 %v1641_v8, %v15042_v53 }
 0x373   :  { %v11201_v16 = vpop.permute.xlu2 %1879 }
 0x374   :  { %1819 = vperm.xlu2 %9296, %v15041_v9   ;;  %2523 = vmatpush.bf16.msrb.mxu0 %v10713_v28  ;;  %v2403_v28 = vmax.f32 %v10947_v5, 0.0  ;;  %v2416_v9 = vmax.f32 %v10967_v39, 0.0  ;;  %v2012_v37 = vmul.f32 %v11201_v16, %v10469_v19  ;;  %v15050_v39 = vld [vmem:[#allocation111_spill] sm:$0xff] }
 0x375   :  { %2549 = vmatpush.bf16.msrb.mxu2 %v10715_v56  ;;  %v2143_v51 = vpop.permute.xlu1 %2142 }
 0x376   :  { %v2279_v29 = vadd.f32 %v2143_v51, %v1991_v49  ;;  %v2280_v18 = vadd.f32 %v2143_v51, %v1992_v14  ;;  %v2277_v60 = vadd.f32 %v2143_v51, %v1989_v2  ;;  %v2278_v63 = vadd.f32 %v2143_v51, %v1990_v40 }
 0x378   :  { %2027 = vperm.xlu0 %9298, %v1705_v61   ;;  %2524 = vmatpush.bf16.msrb.mxu0 %v10798_v21  ;;  %v2405_v56 = vmax.f32 %v2277_v60, 0.0  ;;  %v2406_v46 = vmax.f32 %v2278_v63, 0.0  ;;  %v2407_v45 = vmax.f32 %v2279_v29, 0.0  ;;  %v2408_v32 = vmax.f32 %v2280_v18, 0.0  ;;  %v1658_v21 = vld [vmem:[%s14713_s3 + $0x88] sm:$0xff]  ;;  %v15049_v63 = vld [vmem:[#allocation110_spill] sm:$0xff] }
 0x379   :  { %2550 = vmatpush.bf16.msrb.mxu2 %v10800_v13  ;;  %v1722_v33 = vsub.f32 %v1658_v21, %v15044_v3  ;;  %v2506_v13 = vld [vmem:[%s14714_s5] sm:$0xff]  ;;  %v2011_v18 = vmul.f32 %v11201_v16, %v10460_v38  ;;  %v15051_v21 = vld [vmem:[#allocation16_spill] sm:$0xff] }
 0x37a   :  { %v11176_v36 = vpack.c.bf16 %v2405_v56, %v2401_v44  ;;  %v11178_v58 = vpack.c.bf16 %v2406_v46, %v2402_v22  ;;  %v11180_v35 = vpack.c.bf16 %v2407_v45, %v2403_v28  ;;  %v11182_v5 = vpack.c.bf16 %v2408_v32, %v2404_v15 }
 0x37b   :  { %v11209_v29 = vpop.permute.xlu2 %2167 }
 0x37c   :  { %2032 = vperm.xlu2 %9296, %v1706_v23   ;;  %v2299_v60 = vadd.f32 %v11209_v29, %v2011_v18  ;;  %v2300_v12 = vadd.f32 %v11209_v29, %v2012_v37  ;;  %v15059_v37 = vld [vmem:[#allocation12_spill] sm:$0xff] }
 0x37d   :  { %v1860_v6 = vpop.permute.xlu1 %1859 }
 0x37e   :  { %v1993_v0 = vmul.f32 %v1860_v6, %v15045_v50  ;;  %v1994_v4 = vmul.f32 %v1860_v6, %v15046_v26  ;;  %v1995_v48 = vmul.f32 %v1860_v6, %v15047_v27  ;;  %v1996_v52 = vmul.f32 %v1860_v6, %v15048_v17  ;;  %v15052_v6 = vld [vmem:[#allocation118_spill] sm:$0xff]  ;;  %v11231_v27 = vpop.permute.xlu0 %1869 }
 0x37f   :  { %v2427_v46 = vmax.f32 %v2299_v60, 0.0  ;;  %v2428_v32 = vmax.f32 %v2300_v12, 0.0  ;;  %v1911_v3 = vmul.f32 %v15052_v6, %v15051_v21  ;;  %v15060_v12 = vld [vmem:[#allocation13_spill] sm:$0xff] }
 0x380   :  { %2112 = vperm.xlu0 %9298, %v1722_v33   ;;  %v15053_v33 = vld [vmem:[#allocation17_spill] sm:$0xff] }
 0x384   :  { %2509 = vperm.xlu2 %9296, %v2506_v13   ;;  %v1912_v13 = vmul.f32 %v15052_v6, %v15053_v33 }
 0x385   :  { %v2148_v8 = vpop.permute.xlu1 %2147 }
 0x386   :  { %v2283_v31 = vadd.f32 %v2148_v8, %v1995_v48  ;;  %v2284_v2 = vadd.f32 %v2148_v8, %v1996_v52  ;;  %v11197_v43 = vadd.f32 %v2148_v8, %v1993_v0  ;;  %v11199_v40 = vadd.f32 %v2148_v8, %v1994_v4  ;;  %v15054_v48 = vld [vmem:[#allocation14_spill] sm:$0xff]  ;;  %v15055_v52 = vld [vmem:[#allocation15_spill] sm:$0xff] }
 0x387   :  { %v1909_v17 = vmul.f32 %v15052_v6, %v15054_v48  ;;  %v1910_v8 = vmul.f32 %v15052_v6, %v15055_v52 }
 0x388   :  { %v2411_v49 = vmax.f32 %v2283_v31, 0.0  ;;  %v2412_v14 = vmax.f32 %v2284_v2, 0.0 }
 0x38a   :  { %v11205_v51 = vpack.c.bf16 %v2415_v30, %v2411_v49  ;;  %v11207_v53 = vpack.c.bf16 %v2416_v9, %v2412_v14  ;;  %v15056_v49 = vld [vmem:[#allocation10_spill] sm:$0xff]  ;;  %v15057_v30 = vld [vmem:[#allocation112_spill] sm:$0xff]  ;;  %v15058_v9 = vld [vmem:[#allocation11_spill] sm:$0xff] }
 0x38b   :  { %v1905_v14 = vmul.f32 %v15057_v30, %v15056_v49  ;;  %v1906_v18 = vmul.f32 %v15057_v30, %v15058_v9  ;;  %v1907_v60 = vmul.f32 %v15057_v30, %v15059_v37  ;;  %v15062_v49 = vld [vmem:[#allocation109_spill] sm:$0xff] }
 0x38d   :  { %v1885_v61 = vpop.permute.xlu1 %1884 }
 0x38e   :  { %v2015_v44 = vmul.f32 %v1885_v61, %v15049_v63  ;;  %v2016_v22 = vmul.f32 %v1885_v61, %v15050_v39  ;;  %v1908_v63 = vmul.f32 %v15057_v30, %v15060_v12  ;;  %v2014_v30 = vmul.f32 %v1885_v61, %v15062_v49 }
 0x395   :  { %v2173_v28 = vpop.permute.xlu1 %2172 }
 0x396   :  { %v2303_v15 = vadd.f32 %v2173_v28, %v2015_v44  ;;  %v2304_v56 = vadd.f32 %v2173_v28, %v2016_v22 }
 0x398   :  { %v2431_v45 = vmax.f32 %v2303_v15, 0.0  ;;  %v2432_v41 = vmax.f32 %v2304_v56, 0.0 }
 0x39a   :  { %v11219_v23 = vpack.c.bf16 %v2431_v45, %v2427_v46  ;;  %v11221_v38 = vpack.c.bf16 %v2432_v41, %v2428_v32 }
 0x39d   :  { %v11223_v19 = vpop.permute.xlu1 %2177 }
 0x3a5   :  { %v2043_v50 = vpop.permute.xlu1 %2042 }
 0x3a6   :  { %v2199_v0 = vadd.f32 %v2043_v50, %v1911_v3  ;;  %v2200_v26 = vadd.f32 %v2043_v50, %v1912_v13  ;;  %v2197_v31 = vadd.f32 %v2043_v50, %v1909_v17  ;;  %v2198_v2 = vadd.f32 %v2043_v50, %v1910_v8  ;;  %v11245_v13 = vpop.permute.xlu0 %2157 }
 0x3a8   :  { %v2325_v46 = vmax.f32 %v2197_v31, 0.0  ;;  %v2326_v45 = vmax.f32 %v2198_v2, 0.0  ;;  %v2327_v32 = vmax.f32 %v2199_v0, 0.0  ;;  %v2328_v41 = vmax.f32 %v2200_v26, 0.0  ;;  %v15061_v31 = vld [vmem:[#allocation108_spill] sm:$0xff] }
 0x3a9   :  { %v2013_v2 = vmul.f32 %v1885_v61, %v15061_v31 }
 0x3ae   :  { %v11251_v8 = vpop.permute.xlu0 %1889 }
 0x3af   :  { %v2017_v0 = vmul.f32 %v11251_v8, %v10530_v20  ;;  %v2018_v26 = vmul.f32 %v11251_v8, %v10532_v34  ;;  %v2009_v20 = vmul.f32 %v11201_v16, %v10448_v54  ;;  %v2010_v34 = vmul.f32 %v11201_v16, %v10450_v10 }
 0x3b1   :  { %v2305_v37 = vadd.f32 %v11223_v19, %v2017_v0  ;;  %v2298_v54 = vadd.f32 %v11209_v29, %v2010_v34 }
 0x3b6   :  { %v11229_v4 = vpop.permute.xlu2 %1894 }
 0x3b7   :  { %v2022_v9 = vmul.f32 %v11229_v4, %v10597_v62  ;;  %v2302_v62 = vadd.f32 %v2173_v28, %v2014_v30 }
 0x3b9   :  { %v2430_v0 = vmax.f32 %v2302_v62, 0.0 }
 0x3be   :  { %v2038_v44 = vpop.permute.xlu2 %2037 }
 0x3bf   :  { %v2195_v39 = vadd.f32 %v2038_v44, %v1907_v60  ;;  %v2196_v22 = vadd.f32 %v2038_v44, %v1908_v63  ;;  %v2193_v15 = vadd.f32 %v2038_v44, %v1905_v14  ;;  %v2194_v56 = vadd.f32 %v2038_v44, %v1906_v18  ;;  %v15063_v44 = vld [vmem:[#allocation104_spill] sm:$0xff] }
 0x3c0   :  { %v2021_v14 = vmul.f32 %v11229_v4, %v10595_v47  ;;  %v2306_v60 = vadd.f32 %v11223_v19, %v2018_v26  ;;  %v2301_v63 = vadd.f32 %v2173_v28, %v2013_v2  ;;  %v15067_v26 = vld [vmem:[#allocation92_spill] sm:$0xff]  ;;  %v15069_v2 = vld [vmem:[#allocation93_spill] sm:$0xff] }
 0x3c1   :  { %v2321_v21 = vmax.f32 %v2193_v15, 0.0  ;;  %v2322_v6 = vmax.f32 %v2194_v56, 0.0  ;;  %v2323_v3 = vmax.f32 %v2195_v39, 0.0  ;;  %v2324_v33 = vmax.f32 %v2196_v22, 0.0  ;;  %v15064_v22 = vld [vmem:[#allocation105_spill] sm:$0xff] }
 0x3c2   :  { %v2005_v39 = vmul.f32 %v11162_v24, %v15063_v44  ;;  %v2006_v15 = vmul.f32 %v11162_v24, %v15064_v22  ;;  %v2297_v56 = vadd.f32 %v11209_v29, %v2009_v20  ;;  %v2434_v16 = vmax.f32 %v2306_v60, 0.0  ;;  %v15068_v29 = vld [vmem:[#allocation22_spill] sm:$0xff]  ;;  %v15070_v20 = vld [vmem:[#allocation23_spill] sm:$0xff]  ;;  %v15071_v22 = vld [vmem:[#allocation60_spill] sm:$0xff] }
 0x3c3   :  { %v2446_v50 = vpack.c.bf16 %v2325_v46, %v2321_v21  ;;  %v2447_v48 = vpack.c.bf16 %v2326_v45, %v2322_v6  ;;  %v11247_v17 = vpack.c.bf16 %v2327_v32, %v2323_v3  ;;  %v11249_v52 = vpack.c.bf16 %v2328_v41, %v2324_v33  ;;  %v15065_v32 = vld [vmem:[#allocation94_spill] sm:$0xff]  ;;  %v15066_v21 = vld [vmem:[#allocation95_spill] sm:$0xff] }
 0x3c4   :  { %v2433_v46 = vmax.f32 %v2305_v37, 0.0  ;;  %v2001_v41 = vmul.f32 %v11231_v27, %v15065_v32  ;;  %v2002_v28 = vmul.f32 %v11231_v27, %v15066_v21  ;;  %v2293_v6 = vadd.f32 %v11188_v25, %v2005_v39  ;;  %v15075_v21 = vld [vmem:[#allocation58_spill] sm:$0xff] }
 0x3c5   :  { %2525 = vmatpush.bf16.msrb.mxu0 %v2446_v50  ;;  %2551 = vmatpush.bf16.msrb.mxu2 %v2447_v48  ;;  %v2294_v3 = vadd.f32 %v11188_v25, %v2006_v15  ;;  %v2429_v48 = vmax.f32 %v2301_v63, 0.0  ;;  %v1997_v31 = vmul.f32 %v15068_v29, %v15067_v26  ;;  %v1998_v49 = vmul.f32 %v15068_v29, %v15069_v2  ;;  %v15072_v15 = vld [vmem:[#allocation90_spill] sm:$0xff] }
 0x3c6   :  { %v11263_v18 = vpop.permute.xlu2 %1744  ;;  %v2425_v30 = vmax.f32 %v2297_v56, 0.0  ;;  %v2290_v37 = vadd.f32 %v11245_v13, %v2002_v28  ;;  %v2421_v44 = vmax.f32 %v2293_v6, 0.0  ;;  %v1973_v56 = vmul.f32 %v15072_v15, %v15071_v22 }
 0x3c7   :  { %v2285_v34 = vadd.f32 %v15070_v20, %v1997_v31  ;;  %v2422_v39 = vmax.f32 %v2294_v3, 0.0  ;;  %v1971_v28 = vmul.f32 %v11139_v42, %v15075_v21  ;;  %v2409_v3 = vmax.f32 %v11197_v43, 0.0 }
 0x3c8   :  { %v2498_v63 = vpack.c.bf16 %v2429_v48, %v2425_v30 }
 0x3c9   :  { %v2413_v26 = vmax.f32 %v2285_v34, 0.0 }
 0x3d2   :  { %v11271_v12 = vpop.permute.xlu0 %2182 }
 0x3d3   :  { %v2309_v61 = vadd.f32 %v11271_v12, %v2021_v14  ;;  %v2310_v47 = vadd.f32 %v11271_v12, %v2022_v9  ;;  %v2426_v14 = vmax.f32 %v2298_v54, 0.0  ;;  %v2289_v9 = vadd.f32 %v11245_v13, %v2001_v41  ;;  %v2118_v54 = vpop.permute.xlu1 %2117 }
 0x3d4   :  { %v2418_v41 = vmax.f32 %v2290_v37, 0.0  ;;  %v2259_v31 = vadd.f32 %v2118_v54, %v1971_v28  ;;  %v15078_v37 = vld [vmem:[#allocation62_spill] sm:$0xff] }
 0x3d5   :  { %v2437_v10 = vmax.f32 %v2309_v61, 0.0  ;;  %v2438_v45 = vmax.f32 %v2310_v47, 0.0  ;;  %v2286_v61 = vadd.f32 %v15070_v20, %v1998_v49  ;;  %v11297_v47 = vpop.permute.xlu2 %1819  ;;  %v2499_v62 = vpack.c.bf16 %v2430_v0, %v2426_v14  ;;  %v15077_v14 = vld [vmem:[#allocation61_spill] sm:$0xff]  ;;  %v15080_v28 = vld [vmem:[#allocation6_spill] sm:$0xff] }
 0x3d6   :  { %v2417_v32 = vmax.f32 %v2289_v9, 0.0  ;;  %v2495_v0 = vpack.c.bf16 %v2422_v39, %v2418_v41  ;;  %v1974_v9 = vmul.f32 %v15072_v15, %v15077_v14  ;;  %v1975_v20 = vmul.f32 %v15072_v15, %v15078_v37  ;;  %v2441_v14 = vld [vmem:[%s14715_s4] sm:$0xff] }
 0x3d7   :  { %v2502_v33 = vpack.c.bf16 %v2437_v10, %v2433_v46  ;;  %v2503_v50 = vpack.c.bf16 %v2438_v45, %v2434_v16  ;;  %v15073_v46 = vld [vmem:[#allocation56_spill] sm:$0xff]  ;;  %v15074_v16 = vld [vmem:[#allocation57_spill] sm:$0xff]  ;;  %v2414_v29 = vmax.f32 %v2286_v61, 0.0 }
 0x3d8   :  { %v1969_v10 = vmul.f32 %v11139_v42, %v15073_v46  ;;  %v1970_v45 = vmul.f32 %v11139_v42, %v15074_v16  ;;  %v2494_v48 = vpack.c.bf16 %v2421_v44, %v2417_v32  ;;  %v2387_v46 = vmax.f32 %v2259_v31, 0.0 }
 0x3d9   :  { %2532 = vmatpush.bf16.msrb.mxu1 %v2502_v33  ;;  %2558 = vmatpush.bf16.msrb.mxu3 %v2503_v50  ;;  %v15076_v33 = vld [vmem:[#allocation59_spill] sm:$0xff]  ;;  %v2410_v50 = vmax.f32 %v11199_v40, 0.0  ;;  %v2490_v40 = vpack.c.bf16 %v2413_v26, %v2409_v3 }
 0x3da   :  { %v11293_v60 = vpop.permute.xlu0 %1739  ;;  %v1972_v6 = vmul.f32 %v11139_v42, %v15076_v33  ;;  %v2257_v49 = vadd.f32 %v2118_v54, %v1969_v10  ;;  %v2258_v30 = vadd.f32 %v2118_v54, %v1970_v45  ;;  %v1901_v33 = vmul.f32 %v11263_v18, %v15080_v28 }
 0x3db   :  { %v11319_v21 = vpop.permute.xlu1 %1824 }
 0x3dc   :  { %v2260_v2 = vadd.f32 %v2118_v54, %v1972_v6  ;;  %v2385_v22 = vmax.f32 %v2257_v49, 0.0  ;;  %v2386_v54 = vmax.f32 %v2258_v30, 0.0  ;;  %v15081_v6 = vld [vmem:[#allocation7_spill] sm:$0xff] }
 0x3dd   :  { %2533 = vmatpush.bf16.msrb.mxu1 %v2498_v63  ;;  %2559 = vmatpush.bf16.msrb.mxu3 %v2499_v62  ;;  %v15079_v63 = vld [vmem:[#allocation63_spill] sm:$0xff]  ;;  %v2491_v62 = vpack.c.bf16 %v2414_v29, %v2410_v50  ;;  %v11317_v16 = vpop.permute.xlu2 %2032  ;;  %v15082_v29 = vld [vmem:[#allocation2_spill] sm:$0xff] }
 0x3de   :  { %v1976_v42 = vmul.f32 %v15072_v15, %v15079_v63  ;;  %v2388_v10 = vmax.f32 %v2260_v2, 0.0  ;;  %v2189_v26 = vadd.f32 %v11317_v16, %v1901_v33  ;;  %v1897_v31 = vmul.f32 %v11293_v60, %v15082_v29  ;;  %v15083_v2 = vld [vmem:[#allocation3_spill] sm:$0xff]  ;;  %v15084_v63 = vld [vmem:[#allocation48_spill] sm:$0xff] }
 0x3df   :  { %v1898_v49 = vmul.f32 %v11293_v60, %v15083_v2  ;;  %v15092_v29 = vld [vmem:[#allocation52_spill] sm:$0xff] }
 0x3e1   :  { %2534 = vmatpush.bf16.msrb.mxu1 %v2494_v48  ;;  %2560 = vmatpush.bf16.msrb.mxu3 %v2495_v0 }
 0x3e2   :  { %v2123_v43 = vpop.permute.xlu0 %2122 }
 0x3e3   :  { %v2263_v34 = vadd.f32 %v2123_v43, %v1975_v20  ;;  %v2264_v61 = vadd.f32 %v2123_v43, %v1976_v42  ;;  %v2261_v44 = vadd.f32 %v2123_v43, %v1973_v56  ;;  %v2262_v39 = vadd.f32 %v2123_v43, %v1974_v9  ;;  %v15085_v43 = vld [vmem:[#allocation49_spill] sm:$0xff] }
 0x3e4   :  { %v1902_v56 = vmul.f32 %v11263_v18, %v15081_v6  ;;  %v1961_v42 = vmul.f32 %v11297_v47, %v15084_v63  ;;  %v11358_v6 = vpop.permute.xlu1 %2107 }
 0x3e5   :  { %2535 = vmatpush.bf16.msrb.mxu1 %v2490_v40  ;;  %2561 = vmatpush.bf16.msrb.mxu3 %v2491_v62  ;;  %v2389_v45 = vmax.f32 %v2261_v44, 0.0  ;;  %v2390_v32 = vmax.f32 %v2262_v39, 0.0  ;;  %v2391_v15 = vmax.f32 %v2263_v34, 0.0  ;;  %v2392_v41 = vmax.f32 %v2264_v61, 0.0  ;;  %v15087_v62 = vld [vmem:[#allocation38_spill] sm:$0xff] }
 0x3e6   :  { %v2190_v30 = vadd.f32 %v11317_v16, %v1902_v56  ;;  %v2513_v40 = vunpack.c.l.b16 %v2441_v14  ;;  %v2317_v61 = vmax.f32 %v2189_v26, 0.0 }
 0x3e7   :  { %v2478_v3 = vpack.c.bf16 %v2389_v45, %v2385_v22  ;;  %v2479_v50 = vpack.c.bf16 %v2390_v32, %v2386_v54  ;;  %v11325_v48 = vpack.c.bf16 %v2391_v15, %v2387_v46  ;;  %v11327_v0 = vpack.c.bf16 %v2392_v41, %v2388_v10  ;;  %v15088_v22 = vld [vmem:[#allocation120_spill] sm:$0xff]  ;;  %v15089_v46 = vld [vmem:[#allocation121_spill] sm:$0xff] }
 0x3e8   :  { %v2318_v39 = vmax.f32 %v2190_v30, 0.0  ;;  %v2023_v54 = vmul.f32 %v11229_v4, %v15088_v22  ;;  %v2024_v10 = vmul.f32 %v11229_v4, %v15089_v46  ;;  %v15090_v45 = vld [vmem:[#allocation113_spill] sm:$0xff]  ;;  %v15091_v15 = vld [vmem:[#allocation116_spill] sm:$0xff]  ;;  %v11364_v2 = vpack.c.b16 %v2513_v40, %v2513_v40  ;;  %v15097_v46 = vld [vmem:[#allocation99_spill] sm:$0xff] }
 0x3e9   :  { %2536 = vmatpush.bf16.msrb.mxu1 %v11176_v36  ;;  %2562 = vmatpush.bf16.msrb.mxu3 %v11178_v58  ;;  %v1962_v36 = vmul.f32 %v11297_v47, %v15085_v43  ;;  %v15086_v58 = vld [vmem:[#allocation91_spill] sm:$0xff]  ;;  %v2019_v32 = vmul.f32 %v11251_v8, %v15090_v45  ;;  %v2020_v41 = vmul.f32 %v11251_v8, %v15091_v15  ;;  %v15093_v4 = vld [vmem:[#allocation53_spill] sm:$0xff] }
 0x3ea   :  { %v11340_v9 = vpop.permute.xlu0 %2027  ;;  %v2311_v56 = vadd.f32 %v11271_v12, %v2023_v54  ;;  %v2312_v26 = vadd.f32 %v11271_v12, %v2024_v10  ;;  %v2249_v8 = vadd.f32 %v11358_v6, %v1961_v42 }
 0x3eb   :  { %v2185_v37 = vadd.f32 %v11340_v9, %v1897_v31  ;;  %v2186_v20 = vadd.f32 %v11340_v9, %v1898_v49  ;;  %v1965_v31 = vmul.f32 %v11319_v21, %v15092_v29  ;;  %v1966_v49 = vmul.f32 %v11319_v21, %v15093_v4  ;;  %v15102_v4 = vld [vmem:[#allocation5_spill] sm:$0xff] }
 0x3ec   :  { %v2250_v30 = vadd.f32 %v11358_v6, %v1962_v36  ;;  %v2439_v42 = vmax.f32 %v2311_v56, 0.0  ;;  %v15098_v56 = vld [vmem:[#allocation30_spill] sm:$0xff] }
 0x3ed   :  { %2537 = vmatpush.bf16.msrb.mxu1 %v15086_v58  ;;  %2563 = vmatpush.bf16.msrb.mxu3 %v15087_v62  ;;  %v2313_v34 = vmax.f32 %v2185_v37, 0.0  ;;  %v2314_v44 = vmax.f32 %v2186_v20, 0.0  ;;  %v2307_v37 = vadd.f32 %v11223_v19, %v2019_v32  ;;  %v2308_v20 = vadd.f32 %v11223_v19, %v2020_v41 }
 0x3ee   :  { %v2440_v58 = vmax.f32 %v2312_v26, 0.0  ;;  %v2514_v19 = vunpack.c.h.b16 %v2441_v14  ;;  %v2378_v62 = vmax.f32 %v2250_v30, 0.0 }
 0x3ef   :  { %v2442_v28 = vpack.c.bf16 %v2317_v61, %v2313_v34  ;;  %v2443_v33 = vpack.c.bf16 %v2318_v39, %v2314_v44  ;;  %v15095_v61 = vld [vmem:[#allocation98_spill] sm:$0xff]  ;;  %v2435_v22 = vmax.f32 %v2307_v37, 0.0  ;;  %v2436_v54 = vmax.f32 %v2308_v20, 0.0  ;;  %v15105_v37 = vld [vmem:[#allocation9_spill] sm:$0xff] }
 0x3f0   :  { %v2003_v44 = vmul.f32 %v11231_v27, %v15095_v61  ;;  %v1904_v20 = vmul.f32 %v11263_v18, %v15105_v37 }
 0x3f1   :  { %2526 = vmatpush.bf16.msrb.mxu0 %v2442_v28  ;;  %2538 = vmatpush.bf16.msrb.mxu1 %v2478_v3  ;;  %v15094_v3 = vld [vmem:[#allocation106_spill] sm:$0xff]  ;;  %v2504_v15 = vpack.c.bf16 %v2439_v42, %v2435_v22  ;;  %v2505_v41 = vpack.c.bf16 %v2440_v58, %v2436_v54  ;;  %v11392_v28 = vpack.c.b16 %v2514_v19, %v2514_v19  ;;  %v15112_v54 = vld [vmem:[#allocation39_spill] sm:$0xff] }
 0x3f2   :  { %2552 = vmatpush.bf16.msrb.mxu2 %v2443_v33  ;;  %2564 = vmatpush.bf16.msrb.mxu3 %v2479_v50  ;;  %v11372_v12 = vpop.permute.xlu0 %2112  ;;  %v2007_v40 = vmul.f32 %v11162_v24, %v15094_v3  ;;  %v2377_v50 = vmax.f32 %v2249_v8, 0.0  ;;  %v15106_v3 = vld [vmem:[#allocation18_spill] sm:$0xff] }
 0x3f3   :  { %v2253_v63 = vadd.f32 %v11372_v12, %v1965_v31  ;;  %v2254_v43 = vadd.f32 %v11372_v12, %v1966_v49  ;;  %v15101_v31 = vld [vmem:[#allocation123_spill] sm:$0xff]  ;;  %v15103_v49 = vld [vmem:[#allocation124_spill] sm:$0xff]  ;;  %v7161_v58 = vld [vmem:[%s14716_s6 + $0x380] sm:$0xf] }
 0x3f4   :  { %2527 = vmatmul.bf16.vlgmr.msrb.gmra.mxu0 %v11364_v2  ;;  %v2295_v10 = vadd.f32 %v11188_v25, %v2007_v40  ;;  %v15107_v40 = vld [vmem:[#allocation19_spill] sm:$0xff] }
 0x3f5   :  { %2571 = vmatpush.bf16.msra.mxu0 %v11132_v7  ;;  %2553 = vmatmul.bf16.vlgmr.msrb.gmra.mxu2 %v11364_v2  ;;  %v2381_v36 = vmax.f32 %v2253_v63, 0.0  ;;  %v2382_v34 = vmax.f32 %v2254_v43, 0.0  ;;  %v15096_v7 = vld [vmem:[#allocation107_spill] sm:$0xff] }
 0x3f6   :  { %2597 = vmatpush.bf16.msra.mxu2 %v11134_v59  ;;  %v2008_v39 = vmul.f32 %v11162_v24, %v15096_v7  ;;  %v2004_v59 = vmul.f32 %v11231_v27, %v15097_v46  ;;  %v2291_v24 = vadd.f32 %v11245_v13, %v2003_v44 }
 0x3f7   :  { %v2474_v14 = vpack.c.bf16 %v2381_v36, %v2377_v50  ;;  %v2475_v45 = vpack.c.bf16 %v2382_v34, %v2378_v62  ;;  %v15110_v50 = vld [vmem:[#allocation54_spill] sm:$0xff]  ;;  %v15111_v62 = vld [vmem:[#allocation55_spill] sm:$0xff] }
 0x3f8   :  { %v2296_v32 = vadd.f32 %v11188_v25, %v2008_v39  ;;  %v2292_v27 = vadd.f32 %v11245_v13, %v2004_v59  ;;  %v2419_v25 = vmax.f32 %v2291_v24, 0.0  ;;  %v15099_v13 = vld [vmem:[#allocation31_spill] sm:$0xff]  ;;  %v1968_v34 = vmul.f32 %v11319_v21, %v15111_v62  ;;  %v8185_v39 = vld [vmem:[%s14716_s6 + $0xb80] sm:$0xf]  ;;  %v15113_v59 = vld [vmem:[#allocation20_spill] sm:$0xff] }
 0x3f9   :  { %2572 = vmatpush.bf16.msra.mxu0 %v11069_v57  ;;  %2539 = vmatpush.bf16.msrb.mxu1 %v2474_v14  ;;  %v2423_v57 = vmax.f32 %v2295_v10, 0.0  ;;  %v6841_v62 = vld [vmem:[%s14716_s6 + $0x100] sm:$0xf] }
 0x3fa   :  { %2598 = vmatpush.bf16.msra.mxu2 %v11071_v11  ;;  %2565 = vmatpush.bf16.msrb.mxu3 %v2475_v45  ;;  %v2424_v11 = vmax.f32 %v2296_v32, 0.0  ;;  %v2420_v33 = vmax.f32 %v2292_v27, 0.0  ;;  %v9143_v45 = vld [vmem:[%s14716_s6 + $0xb3c] sm:$0xf0] }
 0x3fb   :  { %v2496_v26 = vpack.c.bf16 %v2423_v57, %v2419_v25  ;;  %v7033_v27 = vld [vmem:[%s14716_s6 + $0x280] sm:$0xf] }
 0x3fc   :  { %2540 = vmatmul.bf16.vlgmr.msrb.gmra.mxu1 %v11392_v28  ;;  %v8871_v57 = vld [vmem:[%s14716_s6 + $0x2bc] sm:$0xf0] }
 0x3fd   :  { %2584 = vmatpush.bf16.msra.mxu1 %v2504_v15  ;;  %2573 = vmatpush.bf16.msra.mxu0 %v11004_v1  ;;  %v2497_v1 = vpack.c.bf16 %v2424_v11, %v2420_v33 }
 0x3fe   :  { %2610 = vmatpush.bf16.msra.mxu3 %v2505_v41  ;;  %2599 = vmatpush.bf16.msra.mxu2 %v11006_v55  ;;  %v15100_v55 = vld [vmem:[#allocation4_spill] sm:$0xff]  ;;  %v7673_v41 = vld [vmem:[%s14716_s6 + $0x780] sm:$0xf] }
 0x3ff   :  { %2566 = vmatmul.bf16.vlgmr.msrb.gmra.mxu3 %v11392_v28  ;;  %v1899_v29 = vmul.f32 %v11293_v60, %v15100_v55  ;;  %v7034_v55 = vor.u32 %v8871_v57, %v7033_v27  ;;  %v9023_v57 = vld [vmem:[%s14716_s6 + $0x784] sm:$0xf] }
 0x401   :  { %2585 = vmatpush.bf16.msra.mxu1 %v11219_v23  ;;  %2574 = vmatpush.bf16.msra.mxu0 %v15098_v56  ;;  %v1900_v23 = vmul.f32 %v11293_v60, %v15102_v4  ;;  %v2187_v30 = vadd.f32 %v11340_v9, %v1899_v29  ;;  %v2192_v60 = vadd.f32 %v11317_v16, %v1904_v20  ;;  %v8057_v29 = vld [vmem:[%s14716_s6 + $0xa80] sm:$0xf] }
 0x402   :  { %2611 = vmatpush.bf16.msra.mxu3 %v11221_v38  ;;  %2600 = vmatpush.bf16.msra.mxu2 %v15099_v13  ;;  %v15104_v38 = vld [vmem:[#allocation8_spill] sm:$0xff]  ;;  %v7609_v13 = vld [vmem:[%s14716_s6 + $0x700] sm:$0xf] }
 0x403   :  { %v1903_v8 = vmul.f32 %v11263_v18, %v15104_v38  ;;  %v2188_v63 = vadd.f32 %v11340_v9, %v1900_v23  ;;  %v2315_v42 = vmax.f32 %v2187_v30, 0.0  ;;  %v8903_v18 = vld [vmem:[%s14716_s6 + $0x3bc] sm:$0xf0]  ;;  %v15109_v9 = vld [vmem:[#allocation51_spill] sm:$0xff]  ;;  %v2320_v7 = vmax.f32 %v2192_v60, 0.0 }
 0x404   :  { %v1964_v19 = vmul.f32 %v11297_v47, %v15109_v9  ;;  %v6969_v23 = vld [vmem:[%s14716_s6 + $0x200] sm:$0xf] }
 0x405   :  { %2586 = vmatpush.bf16.msra.mxu1 %v2496_v26  ;;  %2575 = vmatpush.bf16.msra.mxu0 %v15101_v31  ;;  %v2191_v43 = vadd.f32 %v11317_v16, %v1903_v8  ;;  %v1967_v16 = vmul.f32 %v11319_v21, %v15110_v50  ;;  %v2316_v36 = vmax.f32 %v2188_v63, 0.0  ;;  %v8697_v26 = vld [vmem:[%s14716_s6 + $0xf80] sm:$0xf] }
 0x406   :  { %2612 = vmatpush.bf16.msra.mxu3 %v2497_v1  ;;  %2601 = vmatpush.bf16.msra.mxu2 %v15103_v49  ;;  %v2252_v14 = vadd.f32 %v11358_v6, %v1964_v19  ;;  %v9287_v1 = vld [vmem:[%s14716_s6 + $0xfbc] sm:$0xf0] }
 0x407   :  { %v2319_v61 = vmax.f32 %v2191_v43, 0.0  ;;  %v2255_v44 = vadd.f32 %v11372_v12, %v1967_v16  ;;  %v2445_v46 = vpack.c.bf16 %v2320_v7, %v2316_v36  ;;  %v9127_v31 = vld [vmem:[%s14716_s6 + $0xabc] sm:$0xf0] }
 0x408   :  { %v2380_v33 = vmax.f32 %v2252_v14, 0.0  ;;  %v8855_v49 = vld [vmem:[%s14716_s6 + $0x23c] sm:$0xf0]  ;;  %v8058_v38 = vor.u32 %v9127_v31, %v8057_v29  ;;  %v8991_v31 = vld [vmem:[%s14716_s6 + $0x684] sm:$0xf] }
 0x409   :  { %2587 = vmatpush.bf16.msra.mxu1 %v11205_v51  ;;  %2576 = vmatpush.bf16.msra.mxu0 %v15106_v3  ;;  %v15108_v51 = vld [vmem:[#allocation50_spill] sm:$0xff]  ;;  %v2444_v21 = vpack.c.bf16 %v2319_v61, %v2315_v42  ;;  %v2383_v32 = vmax.f32 %v2255_v44, 0.0  ;;  %v6970_v43 = vor.u32 %v8855_v49, %v6969_v23 }
 0x40a   :  { %2613 = vmatpush.bf16.msra.mxu3 %v11207_v53  ;;  %2602 = vmatpush.bf16.msra.mxu2 %v15107_v40  ;;  %v1963_v53 = vmul.f32 %v11297_v47, %v15108_v51  ;;  %v7162_v47 = vor.u32 %v8903_v18, %v7161_v58  ;;  %v8633_v8 = vld [vmem:[%s14716_s6 + $0xf00] sm:$0xf] }
 0x40b   :  { %v9271_v30 = vld [vmem:[%s14716_s6 + $0xf3c] sm:$0xf0] }
 0x40c   :  { %v2251_v10 = vadd.f32 %v11358_v6, %v1963_v53  ;;  %v9031_v6 = vld [vmem:[%s14716_s6 + $0x7bc] sm:$0xf0]  ;;  %v8634_v60 = vor.u32 %v9271_v30, %v8633_v8  ;;  %v8831_v8 = vld [vmem:[%s14716_s6 + $0x184] sm:$0xf] }
 0x40d   :  { %2588 = vmatpush.bf16.msra.mxu1 %v11180_v35  ;;  %2577 = vmatpush.bf16.msra.mxu0 %v11247_v17  ;;  %v9159_v35 = vld [vmem:[%s14716_s6 + $0xbbc] sm:$0xf0]  ;;  %v7674_v56 = vor.u32 %v9031_v6, %v7673_v41 }
 0x40e   :  { %2614 = vmatpush.bf16.msra.mxu3 %v11182_v5  ;;  %2603 = vmatpush.bf16.msra.mxu2 %v11249_v52  ;;  %v2256_v5 = vadd.f32 %v11372_v12, %v1968_v34  ;;  %v7097_v17 = vld [vmem:[%s14716_s6 + $0x300] sm:$0xf]  ;;  %v8186_v22 = vor.u32 %v9159_v35, %v8185_v39  ;;  %v2379_v25 = vmax.f32 %v2251_v10, 0.0 }
 0x40f   :  { %v8887_v52 = vld [vmem:[%s14716_s6 + $0x33c] sm:$0xf0] }
 0x410   :  { %v8121_v12 = vld [vmem:[%s14716_s6 + $0xb00] sm:$0xf]  ;;  %v7098_v15 = vor.u32 %v8887_v52, %v7097_v17  ;;  %v2384_v24 = vmax.f32 %v2256_v5, 0.0 }
 0x411   :  { %2589 = vmatpush.bf16.msra.mxu1 %v15112_v54  ;;  %2578 = vmatpush.bf16.msra.mxu0 %v2444_v21  ;;  %v8122_v11 = vor.u32 %v9143_v45, %v8121_v12  ;;  %v7545_v20 = vld [vmem:[%s14716_s6 + $0x680] sm:$0xf]  ;;  %v8895_v54 = vld [vmem:[%s14716_s6 + $0x384] sm:$0xf] }
 0x412   :  { %2615 = vmatpush.bf16.msra.mxu3 %v15113_v59  ;;  %2604 = vmatpush.bf16.msra.mxu2 %v2445_v46  ;;  %v2477_v4 = vpack.c.bf16 %v2384_v24, %v2380_v33  ;;  %v8999_v63 = vld [vmem:[%s14716_s6 + $0x6bc] sm:$0xf0]  ;;  %v7163_v46 = vld [vmem:[%s14716_s6 + $0x3c0] sm:$0xf0] }
 0x413   :  { %v6905_v3 = vld [vmem:[%s14716_s6 + $0x180] sm:$0xf]  ;;  %v7546_v9 = vor.u32 %v8999_v63, %v7545_v20  ;;  %v7166_v45 = vor.u32 %v8895_v54, %v7163_v46  ;;  %v7035_v33 = vld [vmem:[%s14716_s6 + $0x2c0] sm:$0xf0] }
 0x414   :  { %2579 = vmatmul.bf16.vlgmr.msra.gmra.mxu0 %v11364_v2  ;;  %v7993_v40 = vld [vmem:[%s14716_s6 + $0xa00] sm:$0xf] }
 0x415   :  { %5699 = vmatpush.bf16.msrb.mxu0 %v7162_v47  ;;  %2590 = vmatpush.bf16.msra.mxu1 %v11325_v48  ;;  %v2476_v48 = vpack.c.bf16 %v2383_v32, %v2379_v25  ;;  %v9111_v42 = vld [vmem:[%s14716_s6 + $0xa3c] sm:$0xf0]  ;;  %v8879_v32 = vld [vmem:[%s14716_s6 + $0x304] sm:$0xf] }
 0x416   :  { %5725 = vmatpush.bf16.msrb.mxu2 %v8186_v22  ;;  %2616 = vmatpush.bf16.msra.mxu3 %v11327_v0  ;;  %v9015_v0 = vld [vmem:[%s14716_s6 + $0x73c] sm:$0xf0]  ;;  %v7994_v18 = vor.u32 %v9111_v42, %v7993_v40  ;;  %v8863_v25 = vld [vmem:[%s14716_s6 + $0x284] sm:$0xf] }
 0x417   :  { %2605 = vmatmul.bf16.vlgmr.msra.gmra.mxu2 %v11364_v2  ;;  %v8698_v2 = vor.u32 %v9287_v1, %v8697_v26  ;;  %v7610_v37 = vor.u32 %v9015_v0, %v7609_v13  ;;  %v8839_v58 = vld [vmem:[%s14716_s6 + $0x1bc] sm:$0xf0]  ;;  %v7038_v26 = vor.u32 %v8863_v25, %v7035_v33  ;;  %v9007_v1 = vld [vmem:[%s14716_s6 + $0x704] sm:$0xf] }
 0x418   :  { %v8569_v51 = vld [vmem:[%s14716_s6 + $0xe80] sm:$0xf]  ;;  %v6906_v19 = vor.u32 %v8839_v58, %v6905_v3  ;;  %v6971_v0 = vld [vmem:[%s14716_s6 + $0x240] sm:$0xf0] }
 0x419   :  { %5700 = vmatpush.bf16.msrb.mxu0 %v7098_v15  ;;  %2591 = vmatpush.bf16.msra.mxu1 %v2476_v48  ;;  %v9255_v53 = vld [vmem:[%s14716_s6 + $0xebc] sm:$0xf0]  ;;  %v7099_v15 = vld [vmem:[%s14716_s6 + $0x340] sm:$0xf0] }
 0x41a   :  { %5726 = vmatpush.bf16.msrb.mxu2 %v8122_v11  ;;  %2617 = vmatpush.bf16.msra.mxu3 %v2477_v4  ;;  %v7481_v50 = vld [vmem:[%s14716_s6 + $0x600] sm:$0xf]  ;;  %v8570_v36 = vor.u32 %v9255_v53, %v8569_v51  ;;  %v7102_v27 = vor.u32 %v8879_v32, %v7099_v15  ;;  %v7675_v11 = vld [vmem:[%s14716_s6 + $0x7c0] sm:$0xf0] }
 0x41b   :  { %v8983_v16 = vld [vmem:[%s14716_s6 + $0x63c] sm:$0xf0]  ;;  %v7678_v13 = vor.u32 %v9023_v57, %v7675_v11  ;;  %v7611_v48 = vld [vmem:[%s14716_s6 + $0x740] sm:$0xf0] }
 0x41c   :  { %2592 = vmatmul.bf16.vlgmr.msra.gmra.mxu1 %v11392_v28  ;;  %v7482_v34 = vor.u32 %v8983_v16, %v7481_v50  ;;  %v7417_v44 = vld [vmem:[%s14716_s6 + $0x580] sm:$0xf]  ;;  %v7547_v4 = vld [vmem:[%s14716_s6 + $0x6c0] sm:$0xf0] }
 0x41d   :  { %5712 = vmatpush.bf16.msrb.mxu1 %v7674_v56  ;;  %5701 = vmatpush.bf16.msrb.mxu0 %v7034_v55  ;;  %v8967_v7 = vld [vmem:[%s14716_s6 + $0x5bc] sm:$0xf0]  ;;  %v8847_v55 = vld [vmem:[%s14716_s6 + $0x204] sm:$0xf]  ;;  %v7550_v23 = vor.u32 %v8991_v31, %v7547_v4 }
 0x41e   :  { %5738 = vmatpush.bf16.msrb.mxu3 %v8698_v2  ;;  %5727 = vmatpush.bf16.msrb.mxu2 %v8058_v38  ;;  %v6777_v47 = vld [vmem:[%s14716_s6 + $0x80] sm:$0xf]  ;;  %v7418_v35 = vor.u32 %v8967_v7, %v7417_v44  ;;  %v7614_v2 = vor.u32 %v9007_v1, %v7611_v48  ;;  %v6974_v29 = vor.u32 %v8847_v55, %v6971_v0  ;;  %v7483_v40 = vld [vmem:[%s14716_s6 + $0x640] sm:$0xf0] }
 0x41f   :  { %2618 = vmatmul.bf16.vlgmr.msra.gmra.mxu3 %v11392_v28  ;;  %v8823_v28 = vld [vmem:[%s14716_s6 + $0x13c] sm:$0xf0]  ;;  %v8815_v51 = vld [vmem:[%s14716_s6 + $0x104] sm:$0xf] }
 0x420   :  { %v6842_v61 = vor.u32 %v8823_v28, %v6841_v62  ;;  %v8807_v39 = vld [vmem:[%s14716_s6 + $0xbc] sm:$0xf0]  ;;  %v6843_v53 = vld [vmem:[%s14716_s6 + $0x140] sm:$0xf0] }
 0x421   :  { %5713 = vmatpush.bf16.msrb.mxu1 %v7610_v37  ;;  %5702 = vmatpush.bf16.msrb.mxu0 %v6970_v43  ;;  %v6778_v5 = vor.u32 %v8807_v39, %v6777_v47  ;;  %v7353_v21 = vld [vmem:[%s14716_s6 + $0x500] sm:$0xf]  ;;  %v6907_v37 = vld [vmem:[%s14716_s6 + $0x1c0] sm:$0xf0] }
 0x422   :  { %5739 = vmatpush.bf16.msrb.mxu3 %v8634_v60  ;;  %5728 = vmatpush.bf16.msrb.mxu2 %v7994_v18  ;;  %v8951_v17 = vld [vmem:[%s14716_s6 + $0x53c] sm:$0xf0]  ;;  %v6910_v43 = vor.u32 %v8831_v8, %v6907_v37  ;;  %v8975_v60 = vld [vmem:[%s14716_s6 + $0x604] sm:$0xf] }
 0x423   :  { %v6713_v52 = vld [vmem:[%s14716_s6] sm:$0xf]  ;;  %v7354_v59 = vor.u32 %v8951_v17, %v7353_v21  ;;  %v7486_v58 = vor.u32 %v8975_v60, %v7483_v40  ;;  %v7419_v28 = vld [vmem:[%s14716_s6 + $0x5c0] sm:$0xf0] }
 0x424   :  { %v8791_v22 = vld [vmem:[%s14716_s6 + $0x3c] sm:$0xf0]  ;;  %v8799_v7 = vld [vmem:[%s14716_s6 + $0x84] sm:$0xf] }
 0x425   :  { %5714 = vmatpush.bf16.msrb.mxu1 %v7546_v9  ;;  %5703 = vmatpush.bf16.msrb.mxu0 %v6906_v19  ;;  %v6714_v10 = vor.u32 %v8791_v22, %v6713_v52  ;;  %v7289_v14 = vld [vmem:[%s14716_s6 + $0x480] sm:$0xf]  ;;  %v6846_v19 = vor.u32 %v8815_v51, %v6843_v53  ;;  %v6779_v39 = vld [vmem:[%s14716_s6 + $0xc0] sm:$0xf0] }
 0x426   :  { %5740 = vmatpush.bf16.msrb.mxu3 %v8570_v36  ;;  %v8935_v12 = vld [vmem:[%s14716_s6 + $0x4bc] sm:$0xf0]  ;;  %v8959_v36 = vld [vmem:[%s14716_s6 + $0x584] sm:$0xf]  ;;  %v6782_v21 = vor.u32 %v8799_v7, %v6779_v39  ;;  %v7169_v7 = vld [vmem:[%s14716_s6 + $0x388] sm:$0xf] }
 0x427   :  { %v7290_v41 = vor.u32 %v8935_v12, %v7289_v14  ;;  %v7225_v6 = vld [vmem:[%s14716_s6 + $0x400] sm:$0xf]  ;;  %v8943_v52 = vld [vmem:[%s14716_s6 + $0x504] sm:$0xf] }
 0x428   :  { %v8919_v24 = vld [vmem:[%s14716_s6 + $0x43c] sm:$0xf0]  ;;  %v7355_v22 = vld [vmem:[%s14716_s6 + $0x540] sm:$0xf0] }
 0x429   :  { %5715 = vmatpush.bf16.msrb.mxu1 %v7482_v34  ;;  %5704 = vmatpush.bf16.msrb.mxu0 %v6842_v61  ;;  %v7226_v56 = vor.u32 %v8919_v24, %v7225_v6  ;;  %v7929_v49 = vld [vmem:[%s14716_s6 + $0x980] sm:$0xf]  ;;  %v7422_v34 = vor.u32 %v8959_v36, %v7419_v28  ;;  %v7358_v46 = vor.u32 %v8943_v52, %v7355_v22  ;;  %v6715_v14 = vld [vmem:[%s14716_s6 + $0x40] sm:$0xf0] }
 0x42a   :  { %v9095_v38 = vld [vmem:[%s14716_s6 + $0x9bc] sm:$0xf0]  ;;  %v9151_v32 = vld [vmem:[%s14716_s6 + $0xb84] sm:$0xf] }
 0x42b   :  { %v7930_v30 = vor.u32 %v9095_v38, %v7929_v49  ;;  %v8505_v20 = vld [vmem:[%s14716_s6 + $0xe00] sm:$0xf]  ;;  %v8187_v15 = vld [vmem:[%s14716_s6 + $0xbc0] sm:$0xf0] }
 0x42c   :  { %v9239_v63 = vld [vmem:[%s14716_s6 + $0xe3c] sm:$0xf0]  ;;  %v7291_v11 = vld [vmem:[%s14716_s6 + $0x4c0] sm:$0xf0] }
 0x42d   :  { %5716 = vmatpush.bf16.msrb.mxu1 %v7418_v35  ;;  %5705 = vmatpush.bf16.msrb.mxu0 %v6778_v5  ;;  %v8506_v3 = vor.u32 %v9239_v63, %v8505_v20  ;;  %v7865_v42 = vld [vmem:[%s14716_s6 + $0x900] sm:$0xf]  ;;  %v9135_v25 = vld [vmem:[%s14716_s6 + $0xb04] sm:$0xf] }
 0x42e   :  { %5729 = vmatpush.bf16.msrb.mxu2 %v7930_v30  ;;  %v9079_v18 = vld [vmem:[%s14716_s6 + $0x93c] sm:$0xf0]  ;;  %v8123_v33 = vld [vmem:[%s14716_s6 + $0xb40] sm:$0xf0] }
 0x42f   :  { %5741 = vmatpush.bf16.msrb.mxu3 %v8506_v3  ;;  %v7866_v9 = vor.u32 %v9079_v18, %v7865_v42  ;;  %v8441_v50 = vld [vmem:[%s14716_s6 + $0xd80] sm:$0xf]  ;;  %v8911_v48 = vld [vmem:[%s14716_s6 + $0x404] sm:$0xf] }
 0x430   :  { %v9223_v16 = vld [vmem:[%s14716_s6 + $0xdbc] sm:$0xf0]  ;;  %v7227_v55 = vld [vmem:[%s14716_s6 + $0x440] sm:$0xf0] }
 0x431   :  { %5717 = vmatpush.bf16.msrb.mxu1 %v7354_v59  ;;  %5706 = vmatpush.bf16.msrb.mxu0 %v6714_v10  ;;  %v8442_v62 = vor.u32 %v9223_v16, %v8441_v50  ;;  %v7801_v61 = vld [vmem:[%s14716_s6 + $0x880] sm:$0xf]  ;;  %v8783_v10 = vld [vmem:[%s14716_s6 + $0x4] sm:$0xf] }
 0x432   :  { %5730 = vmatpush.bf16.msrb.mxu2 %v7866_v9  ;;  %v9063_v44 = vld [vmem:[%s14716_s6 + $0x8bc] sm:$0xf0]  ;;  %v8699_v31 = vld [vmem:[%s14716_s6 + $0xfc0] sm:$0xf0] }
 0x433   :  { %5742 = vmatpush.bf16.msrb.mxu3 %v8442_v62  ;;  %v7802_v47 = vor.u32 %v9063_v44, %v7801_v61  ;;  %v8377_v35 = vld [vmem:[%s14716_s6 + $0xd00] sm:$0xf]  ;;  %v8059_v49 = vld [vmem:[%s14716_s6 + $0xac0] sm:$0xf0]  ;;  %v11794_v62 = vpop.permute.xlu2 %2509 }
 0x434   :  { %v9207_v5 = vld [vmem:[%s14716_s6 + $0xd3c] sm:$0xf0]  ;;  %v9263_v8 = vld [vmem:[%s14716_s6 + $0xf04] sm:$0xf] }
 0x435   :  { %5751 = vmatpush.bf16.msra.mxu0 %v7166_v45  ;;  %5718 = vmatpush.bf16.msrb.mxu1 %v7290_v41  ;;  %v8378_v17 = vor.u32 %v9207_v5, %v8377_v35  ;;  %v7737_v54 = vld [vmem:[%s14716_s6 + $0x800] sm:$0xf]  ;;  %v6718_v45 = vor.u32 %v8783_v10, %v6715_v14  ;;  %v8190_v41 = vor.u32 %v9151_v32, %v8187_v15  ;;  %v8635_v30 = vld [vmem:[%s14716_s6 + $0xf40] sm:$0xf0]  ;;  %v8888_v32 = vld [vmem:[%s14716_s6 + $0x344] sm:$0xf0] }
 0x436   :  { %5731 = vmatpush.bf16.msrb.mxu2 %v7802_v47  ;;  %v9047_v59 = vld [vmem:[%s14716_s6 + $0x83c] sm:$0xf0]  ;;  %v8638_v37 = vor.u32 %v9263_v8, %v8635_v30  ;;  %v9103_v20 = vld [vmem:[%s14716_s6 + $0xa04] sm:$0xf]  ;;  %v8904_v47 = vld [vmem:[%s14716_s6 + $0x3c4] sm:$0xf0] }
 0x437   :  { %5743 = vmatpush.bf16.msrb.mxu3 %v8378_v17  ;;  %v7738_v12 = vor.u32 %v9047_v59, %v7737_v54  ;;  %v8313_v6 = vld [vmem:[%s14716_s6 + $0xc80] sm:$0xf]  ;;  %v7995_v63 = vld [vmem:[%s14716_s6 + $0xa40] sm:$0xf0]  ;;  %v7170_v59 = vor.u32 %v8904_v47, %v7169_v7  ;;  %v6977_v8 = vld [vmem:[%s14716_s6 + $0x208] sm:$0xf] }
 0x438   :  { %v9191_v24 = vld [vmem:[%s14716_s6 + $0xcbc] sm:$0xf0]  ;;  %v8571_v3 = vld [vmem:[%s14716_s6 + $0xec0] sm:$0xf0]  ;;  %v7998_v60 = vor.u32 %v9103_v20, %v7995_v63  ;;  %v8856_v30 = vld [vmem:[%s14716_s6 + $0x244] sm:$0xf0] }
 0x439   :  { %5752 = vmatpush.bf16.msra.mxu0 %v7102_v27  ;;  %5719 = vmatpush.bf16.msrb.mxu1 %v7226_v56  ;;  %v8927_v27 = vld [vmem:[%s14716_s6 + $0x484] sm:$0xf]  ;;  %v8314_v57 = vor.u32 %v9191_v24, %v8313_v6  ;;  %v9175_v1 = vld [vmem:[%s14716_s6 + $0xc3c] sm:$0xf0]  ;;  %v7681_v6 = vld [vmem:[%s14716_s6 + $0x788] sm:$0xf]  ;;  %v6978_v20 = vor.u32 %v8856_v30, %v6977_v8 }
 0x43a   :  { %5732 = vmatpush.bf16.msrb.mxu2 %v7738_v12  ;;  %v7294_v56 = vor.u32 %v8927_v27, %v7291_v11  ;;  %v9087_v42 = vld [vmem:[%s14716_s6 + $0x984] sm:$0xf]  ;;  %v7553_v63 = vld [vmem:[%s14716_s6 + $0x688] sm:$0xf]  ;;  %v7043_v8 = vld [vmem:[%s14716_s6 + $0x2c8] sm:$0xf0] }
 0x43b   :  { %5744 = vmatpush.bf16.msrb.mxu3 %v8314_v57  ;;  %v9231_v53 = vld [vmem:[%s14716_s6 + $0xe04] sm:$0xf]  ;;  %v9032_v57 = vld [vmem:[%s14716_s6 + $0x7c4] sm:$0xf0] }
 0x43c   :  { %v8507_v9 = vld [vmem:[%s14716_s6 + $0xe40] sm:$0xf0]  ;;  %v7361_v47 = vld [vmem:[%s14716_s6 + $0x508] sm:$0xf] }
 0x43d   :  { %5764 = vmatpush.bf16.msra.mxu1 %v7678_v13  ;;  %5753 = vmatpush.bf16.msra.mxu0 %v7038_v26  ;;  %v8126_v13 = vor.u32 %v9135_v25, %v8123_v33  ;;  %v8249_v26 = vld [vmem:[%s14716_s6 + $0xc00] sm:$0xf]  ;;  %v9071_v50 = vld [vmem:[%s14716_s6 + $0x904] sm:$0xf] }
 0x43e   :  { %5777 = vmatpush.bf16.msra.mxu2 %v8190_v41  ;;  %v8250_v0 = vor.u32 %v9175_v1, %v8249_v26  ;;  %v7867_v16 = vld [vmem:[%s14716_s6 + $0x940] sm:$0xf0] }
 0x43f   :  { %v7870_v36 = vor.u32 %v9071_v50, %v7867_v16  ;;  %v9215_v28 = vld [vmem:[%s14716_s6 + $0xd84] sm:$0xf] }
 0x440   :  { %5745 = vmatpush.bf16.msrb.mxu3 %v8250_v0  ;;  %v7803_v17 = vld [vmem:[%s14716_s6 + $0x8c0] sm:$0xf0] }
 0x441   :  { %5765 = vmatpush.bf16.msra.mxu1 %v7614_v2  ;;  %5754 = vmatpush.bf16.msra.mxu0 %v6974_v29  ;;  %v7230_v2 = vor.u32 %v8911_v48, %v7227_v55  ;;  %v9279_v29 = vld [vmem:[%s14716_s6 + $0xf84] sm:$0xf] }
 0x442   :  { %v8702_v4 = vor.u32 %v9279_v29, %v8699_v31  ;;  %5778 = vmatpush.bf16.msra.mxu2 %v8126_v13  ;;  %v9199_v54 = vld [vmem:[%s14716_s6 + $0xd04] sm:$0xf]  ;;  %v8872_v13 = vld [vmem:[%s14716_s6 + $0x2c4] sm:$0xf0] }
 0x443   :  { %v9039_v14 = vld [vmem:[%s14716_s6 + $0x804] sm:$0xf] }
 0x444   :  { %5790 = vmatpush.bf16.msra.mxu3 %v8702_v4  ;;  %v7739_v15 = vld [vmem:[%s14716_s6 + $0x840] sm:$0xf0] }
 0x445   :  { %5766 = vmatpush.bf16.msra.mxu1 %v7550_v23  ;;  %5755 = vmatpush.bf16.msra.mxu0 %v6910_v43  ;;  %v9119_v23 = vld [vmem:[%s14716_s6 + $0xa84] sm:$0xf]  ;;  %v7742_v41 = vor.u32 %v9039_v14, %v7739_v15  ;;  %v8936_v15 = vld [vmem:[%s14716_s6 + $0x4c4] sm:$0xf0] }
 0x446   :  { %v8062_v38 = vor.u32 %v9119_v23, %v8059_v49  ;;  %v9247_v43 = vld [vmem:[%s14716_s6 + $0xe84] sm:$0xf]  ;;  %v7617_v23 = vld [vmem:[%s14716_s6 + $0x708] sm:$0xf] }
 0x447   :  { %v8574_v40 = vor.u32 %v9247_v43, %v8571_v3  ;;  %v9183_v11 = vld [vmem:[%s14716_s6 + $0xc84] sm:$0xf]  ;;  %v9016_v49 = vld [vmem:[%s14716_s6 + $0x744] sm:$0xf0] }
 0x448   :  { %5779 = vmatpush.bf16.msra.mxu2 %v8062_v38  ;;  %5791 = vmatpush.bf16.msra.mxu3 %v8638_v37  ;;  %v8315_v25 = vld [vmem:[%s14716_s6 + $0xcc0] sm:$0xf0]  ;;  %v7618_v37 = vor.u32 %v9016_v49, %v7617_v23  ;;  %v9000_v43 = vld [vmem:[%s14716_s6 + $0x6c4] sm:$0xf0] }
 0x449   :  { %5767 = vmatpush.bf16.msra.mxu1 %v7486_v58  ;;  %5756 = vmatpush.bf16.msra.mxu0 %v6846_v19  ;;  %v7931_v58 = vld [vmem:[%s14716_s6 + $0x9c0] sm:$0xf0]  ;;  %v8510_v19 = vor.u32 %v9231_v53, %v8507_v9  ;;  %v8318_v1 = vor.u32 %v9183_v11, %v8315_v25  ;;  %v6913_v3 = vld [vmem:[%s14716_s6 + $0x188] sm:$0xf]  ;;  %v8880_v25 = vld [vmem:[%s14716_s6 + $0x30c] sm:$0xf] }
 0x44a   :  { %v7934_v51 = vor.u32 %v9087_v42, %v7931_v58  ;;  %v9167_v0 = vld [vmem:[%s14716_s6 + $0xc04] sm:$0xf]  ;;  %v7554_v42 = vor.u32 %v9000_v43, %v7553_v63  ;;  %v6849_v53 = vld [vmem:[%s14716_s6 + $0x108] sm:$0xf] }
 0x44b   :  { %v8251_v29 = vld [vmem:[%s14716_s6 + $0xc40] sm:$0xf0]  ;;  %v8824_v9 = vld [vmem:[%s14716_s6 + $0x144] sm:$0xf0] }
 0x44c   :  { %5780 = vmatpush.bf16.msra.mxu2 %v7998_v60  ;;  %5792 = vmatpush.bf16.msra.mxu3 %v8574_v40  ;;  %v8254_v38 = vor.u32 %v9167_v0, %v8251_v29  ;;  %v8840_v60 = vld [vmem:[%s14716_s6 + $0x1c4] sm:$0xf0]  ;;  %v6850_v16 = vor.u32 %v8824_v9, %v6849_v53  ;;  %v9024_v29 = vld [vmem:[%s14716_s6 + $0x78c] sm:$0xf] }
 0x44d   :  { %5768 = vmatpush.bf16.msra.mxu1 %v7422_v34  ;;  %5757 = vmatpush.bf16.msra.mxu0 %v6782_v21  ;;  %v8443_v34 = vld [vmem:[%s14716_s6 + $0xdc0] sm:$0xf0]  ;;  %v6914_v58 = vor.u32 %v8840_v60, %v6913_v3  ;;  %v9144_v11 = vld [vmem:[%s14716_s6 + $0xb44] sm:$0xf0]  ;;  %v7619_v53 = vld [vmem:[%s14716_s6 + $0x748] sm:$0xf0] }
 0x44e   :  { %v8446_v39 = vor.u32 %v9215_v28, %v8443_v34  ;;  %v9055_v21 = vld [vmem:[%s14716_s6 + $0x884] sm:$0xf]  ;;  %v8968_v28 = vld [vmem:[%s14716_s6 + $0x5c4] sm:$0xf0] }
 0x44f   :  { %v7806_v22 = vor.u32 %v9055_v21, %v7803_v17  ;;  %v6785_v34 = vld [vmem:[%s14716_s6 + $0x88] sm:$0xf] }
 0x450   :  { %5781 = vmatpush.bf16.msra.mxu2 %v7934_v51  ;;  %5793 = vmatpush.bf16.msra.mxu3 %v8510_v19  ;;  %v8984_v51 = vld [vmem:[%s14716_s6 + $0x644] sm:$0xf0] }
 0x451   :  { %5769 = vmatpush.bf16.msra.mxu1 %v7358_v46  ;;  %5758 = vmatpush.bf16.msra.mxu0 %v6718_v45  ;;  %v8379_v46 = vld [vmem:[%s14716_s6 + $0xd40] sm:$0xf0]  ;;  %v7105_v45 = vld [vmem:[%s14716_s6 + $0x308] sm:$0xf] }
 0x452   :  { %v8382_v10 = vor.u32 %v9199_v54, %v8379_v46  ;;  %v7106_v27 = vor.u32 %v8888_v32, %v7105_v45  ;;  %v8193_v21 = vld [vmem:[%s14716_s6 + $0xb88] sm:$0xf]  ;;  %v7171_v54 = vld [vmem:[%s14716_s6 + $0x3c8] sm:$0xf0] }
 0x453   :  { %v7297_v32 = vld [vmem:[%s14716_s6 + $0x488] sm:$0xf] }
 0x454   :  { %5782 = vmatpush.bf16.msra.mxu2 %v7870_v36  ;;  %5794 = vmatpush.bf16.msra.mxu3 %v8446_v39  ;;  %v7425_v36 = vld [vmem:[%s14716_s6 + $0x588] sm:$0xf] }
 0x455   :  { %5770 = vmatpush.bf16.msra.mxu1 %v7294_v56  ;;  %v7041_v56 = vld [vmem:[%s14716_s6 + $0x288] sm:$0xf] }
 0x456   :  { %v7042_v4 = vor.u32 %v8872_v13, %v7041_v56  ;;  %v8952_v39 = vld [vmem:[%s14716_s6 + $0x544] sm:$0xf0]  ;;  %v7298_v56 = vor.u32 %v8936_v15, %v7297_v32  ;;  %v8816_v15 = vld [vmem:[%s14716_s6 + $0x10c] sm:$0xf] }
 0x457   :  { %v7233_v13 = vld [vmem:[%s14716_s6 + $0x408] sm:$0xf] }
 0x458   :  { %5783 = vmatpush.bf16.msra.mxu2 %v7806_v22  ;;  %5795 = vmatpush.bf16.msra.mxu3 %v8382_v10  ;;  %v8896_v22 = vld [vmem:[%s14716_s6 + $0x38c] sm:$0xf]  ;;  %v7362_v10 = vor.u32 %v8952_v39, %v7361_v47  ;;  %v8065_v23 = vld [vmem:[%s14716_s6 + $0xa88] sm:$0xf] }
 0x459   :  { %5771 = vmatpush.bf16.msra.mxu1 %v7230_v2  ;;  %v7682_v2 = vor.u32 %v9032_v57, %v7681_v6  ;;  %v8641_v60 = vld [vmem:[%s14716_s6 + $0xf08] sm:$0xf]  ;;  %v8992_v47 = vld [vmem:[%s14716_s6 + $0x68c] sm:$0xf] }
 0x45a   :  { %v8001_v9 = vld [vmem:[%s14716_s6 + $0xa08] sm:$0xf]  ;;  %v7555_v39 = vld [vmem:[%s14716_s6 + $0x6c8] sm:$0xf0] }
 0x45c   :  { %5784 = vmatpush.bf16.msra.mxu2 %v7742_v41  ;;  %5796 = vmatpush.bf16.msra.mxu3 %v8318_v1  ;;  %v8705_v1 = vld [vmem:[%s14716_s6 + $0xf88] sm:$0xf] }
 0x460   :  { %5797 = vmatpush.bf16.msra.mxu3 %v8254_v38  ;;  %v8864_v38 = vld [vmem:[%s14716_s6 + $0x28c] sm:$0xf] }
 0x471   :  { %v2528_v18 = vpop.f32.mrf.mxu0 }
 0x472   :  { %v2529_v61 = vadd.f32 %v2528_v18, %v11794_v62  ;;  %v7489_v18 = vld [vmem:[%s14716_s6 + $0x608] sm:$0xf] }
 0x473   :  { %v7490_v19 = vor.u32 %v8984_v51, %v7489_v18  ;;  %v7046_v18 = vor.u32 %v8864_v38, %v7043_v8  ;;  %v9008_v51 = vld [vmem:[%s14716_s6 + $0x70c] sm:$0xf] }
 0x474   :  { %v8944_v38 = vld [vmem:[%s14716_s6 + $0x50c] sm:$0xf] }
 0x475   :  { %v7363_v8 = vld [vmem:[%s14716_s6 + $0x548] sm:$0xf0] }
 0x478   :  { %v2554_v44 = vpop.f32.mrf.mxu2 }
 0x479   :  { %v2541_v35 = vpop.f32.mrf.mxu1  ;;  %v2530_v5 = vpop.f32.mrf.mxu0  ;;  %v2555_v24 = vadd.f32 %v2554_v44, %v11794_v62  ;;  %v7426_v44 = vor.u32 %v8968_v28, %v7425_v36  ;;  %v7622_v28 = vor.u32 %v9008_v51, %v7619_v53  ;;  %v8195_v51 = vld [vmem:[%s14716_s6 + $0xbc8] sm:$0xf0]  ;;  %v8321_v53 = vld [vmem:[%s14716_s6 + $0xc88] sm:$0xf] }
 0x47a   :  { %v2542_v52 = vadd.f32 %v2541_v35, %v2529_v61  ;;  %v8808_v61 = vld [vmem:[%s14716_s6 + $0xc4] sm:$0xf0] }
 0x47b   :  { %v6786_v7 = vor.u32 %v8808_v61, %v6785_v34  ;;  %v6721_v35 = vld [vmem:[%s14716_s6 + $0x8] sm:$0xf] }
 0x47c   :  { %v11824_v12 = vpack.c.bf16 %v2542_v52, %v2542_v52  ;;  %v8792_v5 = vld [vmem:[%s14716_s6 + $0x44] sm:$0xf0] }
 0x47d   :  { %v9160_v52 = vld [vmem:[%s14716_s6 + $0xbc4] sm:$0xf0]  ;;  %v6722_v45 = vor.u32 %v8792_v5, %v6721_v35  ;;  %v8832_v35 = vld [vmem:[%s14716_s6 + $0x18c] sm:$0xf] }
 0x47e   :  { %5707 = vmatmul.bf16.vlgmr.msrb.gmra.mxu0 %v11824_v12  ;;  %v8194_v6 = vor.u32 %v9160_v52, %v8193_v21  ;;  %v8577_v34 = vld [vmem:[%s14716_s6 + $0xe88] sm:$0xf]  ;;  %v6915_v5 = vld [vmem:[%s14716_s6 + $0x1c8] sm:$0xf0] }
 0x47f   :  { %5803 = vmatpush.bf16.msrb.mxu0 %v7170_v59  ;;  %v9096_v52 = vld [vmem:[%s14716_s6 + $0x9c4] sm:$0xf0] }
 0x480   :  { %v2556_v26 = vpop.f32.mrf.mxu2 }
 0x481   :  { %v2543_v55 = vpop.f32.mrf.mxu1  ;;  %v8920_v26 = vld [vmem:[%s14716_s6 + $0x444] sm:$0xf0] }
 0x482   :  { %v2567_v33 = vpop.f32.mrf.mxu3 }
 0x483   :  { %v2568_v48 = vadd.f32 %v2567_v33, %v2555_v24  ;;  %5804 = vmatpush.bf16.msrb.mxu0 %v7106_v27  ;;  %v7174_v24 = vor.u32 %v8896_v22, %v7171_v54  ;;  %v8129_v27 = vld [vmem:[%s14716_s6 + $0xb08] sm:$0xf]  ;;  %v7107_v33 = vld [vmem:[%s14716_s6 + $0x348] sm:$0xf0]  ;;  %v7558_v54 = vor.u32 %v8992_v47, %v7555_v39 }
 0x484   :  { %v8130_v0 = vor.u32 %v9144_v11, %v8129_v27 }
 0x485   :  { %v11861_v31 = vpack.c.bf16 %v2568_v48, %v2568_v48  ;;  %v9288_v48 = vld [vmem:[%s14716_s6 + $0xfc4] sm:$0xf0] }
 0x486   :  { %v8706_v43 = vor.u32 %v9288_v48, %v8705_v1  ;;  %v8800_v48 = vld [vmem:[%s14716_s6 + $0x8c] sm:$0xf] }
 0x487   :  { %5720 = vmatmul.bf16.vlgmr.msrb.gmra.mxu1 %v11861_v31  ;;  %5805 = vmatpush.bf16.msrb.mxu0 %v7042_v4  ;;  %v7683_v4 = vld [vmem:[%s14716_s6 + $0x7c8] sm:$0xf0] }
 0x488   :  { %5816 = vmatpush.bf16.msrb.mxu1 %v7682_v2  ;;  %v7110_v2 = vor.u32 %v8880_v25, %v7107_v33  ;;  %v7686_v3 = vor.u32 %v9024_v29, %v7683_v4  ;;  %v8449_v25 = vld [vmem:[%s14716_s6 + $0xd88] sm:$0xf] }
 0x48a   :  { %v2569_v40 = vpop.f32.mrf.mxu3 }
 0x48b   :  { %5806 = vmatpush.bf16.msrb.mxu0 %v6978_v20  ;;  %v9272_v40 = vld [vmem:[%s14716_s6 + $0xf44] sm:$0xf0] }
 0x48c   :  { %5817 = vmatpush.bf16.msrb.mxu1 %v7618_v37  ;;  %v7234_v37 = vor.u32 %v8920_v26, %v7233_v13  ;;  %v8642_v36 = vor.u32 %v9272_v40, %v8641_v60  ;;  %v8960_v13 = vld [vmem:[%s14716_s6 + $0x58c] sm:$0xf]  ;;  %v8905_v60 = vld [vmem:[%s14716_s6 + $0x3cc] sm:$0xf0] }
 0x48d   :  { %v7427_v26 = vld [vmem:[%s14716_s6 + $0x5c8] sm:$0xf0] }
 0x48e   :  { %5759 = vmatmul.bf16.vlgmr.msra.gmra.mxu0 %v11824_v12  ;;  %v7430_v4 = vor.u32 %v8960_v13, %v7427_v26  ;;  %v7625_v13 = vld [vmem:[%s14716_s6 + $0x710] sm:$0xf] }
 0x48f   :  { %5807 = vmatpush.bf16.msrb.mxu0 %v6914_v58  ;;  %v9017_v26 = vld [vmem:[%s14716_s6 + $0x74c] sm:$0xf0] }
 0x490   :  { %5818 = vmatpush.bf16.msrb.mxu1 %v7554_v42 }
 0x491   :  { %v2580_v50 = vpop.f32.mrf.mxu0 }
 0x492   :  { %v2581_v17 = vadd.f32 %v2580_v50, %v11794_v62  ;;  %v8848_v50 = vld [vmem:[%s14716_s6 + $0x20c] sm:$0xf] }
 0x493   :  { %5808 = vmatpush.bf16.msrb.mxu0 %v6850_v16  ;;  %v6979_v16 = vld [vmem:[%s14716_s6 + $0x248] sm:$0xf0] }
 0x494   :  { %5819 = vmatpush.bf16.msrb.mxu1 %v7490_v19  ;;  %v9112_v19 = vld [vmem:[%s14716_s6 + $0xa44] sm:$0xf0] }
 0x495   :  { %v8002_v61 = vor.u32 %v9112_v19, %v8001_v9  ;;  %v9192_v19 = vld [vmem:[%s14716_s6 + $0xcc4] sm:$0xf0] }
 0x496   :  { %v8322_v47 = vor.u32 %v9192_v19, %v8321_v53  ;;  %v8985_v53 = vld [vmem:[%s14716_s6 + $0x64c] sm:$0xf0] }
 0x497   :  { %5772 = vmatmul.bf16.vlgmr.msra.gmra.mxu1 %v11861_v31  ;;  %5809 = vmatpush.bf16.msrb.mxu0 %v6786_v7  ;;  %v9256_v7 = vld [vmem:[%s14716_s6 + $0xec4] sm:$0xf0]  ;;  %v6857_v19 = vld [vmem:[%s14716_s6 + $0x110] sm:$0xf] }
 0x498   :  { %5820 = vmatpush.bf16.msrb.mxu1 %v7426_v44  ;;  %v6982_v44 = vor.u32 %v8848_v50, %v6979_v16  ;;  %v8578_v22 = vor.u32 %v9256_v7, %v8577_v34  ;;  %v8928_v50 = vld [vmem:[%s14716_s6 + $0x48c] sm:$0xf]  ;;  %v8889_v7 = vld [vmem:[%s14716_s6 + $0x34c] sm:$0xf0] }
 0x499   :  { %v2593_v59 = vpop.f32.mrf.mxu1  ;;  %v2582_v41 = vpop.f32.mrf.mxu0  ;;  %v7299_v16 = vld [vmem:[%s14716_s6 + $0x4c8] sm:$0xf0] }
 0x49a   :  { %v2606_v46 = vpop.f32.mrf.mxu2  ;;  %v2594_v14 = vadd.f32 %v2593_v59, %v2581_v17  ;;  %v7937_v17 = vld [vmem:[%s14716_s6 + $0x988] sm:$0xf]  ;;  %v6918_v59 = vor.u32 %v8832_v35, %v6915_v5  ;;  %v6851_v41 = vld [vmem:[%s14716_s6 + $0x148] sm:$0xf0]  ;;  %v7302_v39 = vor.u32 %v8928_v50, %v7299_v16  ;;  %v8825_v50 = vld [vmem:[%s14716_s6 + $0x14c] sm:$0xf0] }
 0x49b   :  { %5810 = vmatpush.bf16.msrb.mxu0 %v6722_v45  ;;  %v2607_v55 = vadd.f32 %v2606_v46, %v11794_v62  ;;  %v9128_v62 = vld [vmem:[%s14716_s6 + $0xac4] sm:$0xf0]  ;;  %v7491_v45 = vld [vmem:[%s14716_s6 + $0x648] sm:$0xf0]  ;;  %v7938_v32 = vor.u32 %v9096_v52, %v7937_v17  ;;  %v6854_v33 = vor.u32 %v8816_v15, %v6851_v41 }
 0x49c   :  { %v11948_v57 = vpack.c.bf16 %v2594_v14, %v2594_v14  ;;  %5821 = vmatpush.bf16.msrb.mxu1 %v7362_v10  ;;  %v8066_v58 = vor.u32 %v9128_v62, %v8065_v23  ;;  %v8513_v46 = vld [vmem:[%s14716_s6 + $0xe08] sm:$0xf]  ;;  %v8976_v14 = vld [vmem:[%s14716_s6 + $0x60c] sm:$0xf] }
 0x49d   :  { %v9240_v10 = vld [vmem:[%s14716_s6 + $0xe44] sm:$0xf0]  ;;  %v7494_v11 = vor.u32 %v8976_v14, %v7491_v45  ;;  %v8131_v35 = vld [vmem:[%s14716_s6 + $0xb48] sm:$0xf0]  ;;  %v7049_v45 = vld [vmem:[%s14716_s6 + $0x290] sm:$0xf] }
 0x49e   :  { %5733 = vmatmul.bf16.vlgmr.msrb.gmra.mxu2 %v11948_v57  ;;  %5811 = vmatmul.bf16.vlgmr.msrb.gmra.mxu0 %v11824_v12  ;;  %v8514_v27 = vor.u32 %v9240_v10, %v8513_v46  ;;  %v8385_v23 = vld [vmem:[%s14716_s6 + $0xd08] sm:$0xf]  ;;  %v8912_v17 = vld [vmem:[%s14716_s6 + $0x40c] sm:$0xf]  ;;  %v9033_v10 = vld [vmem:[%s14716_s6 + $0x7cc] sm:$0xf0] }
 0x49f   :  { %5829 = vmatpush.bf16.msrb.mxu2 %v8194_v6  ;;  %5855 = vmatpush.bf16.msra.mxu0 %v7174_v24  ;;  %v7873_v6 = vld [vmem:[%s14716_s6 + $0x908] sm:$0xf]  ;;  %v7235_v52 = vld [vmem:[%s14716_s6 + $0x448] sm:$0xf0] }
 0x4a0   :  { %5822 = vmatpush.bf16.msrb.mxu1 %v7298_v56  ;;  %v9080_v24 = vld [vmem:[%s14716_s6 + $0x944] sm:$0xf0]  ;;  %v8707_v46 = vld [vmem:[%s14716_s6 + $0xfc8] sm:$0xf0]  ;;  %v7238_v41 = vor.u32 %v8912_v17, %v7235_v52 }
 0x4a1   :  { %v2595_v63 = vpop.f32.mrf.mxu1  ;;  %v9224_v56 = vld [vmem:[%s14716_s6 + $0xdc4] sm:$0xf0]  ;;  %v7874_v1 = vor.u32 %v9080_v24, %v7873_v6  ;;  %v9120_v6 = vld [vmem:[%s14716_s6 + $0xa8c] sm:$0xf] }
 0x4a2   :  { %v2619_v49 = vpop.f32.mrf.mxu3  ;;  %v2608_v20 = vpop.f32.mrf.mxu2  ;;  %v8450_v29 = vor.u32 %v9224_v56, %v8449_v25  ;;  %v9208_v62 = vld [vmem:[%s14716_s6 + $0xd44] sm:$0xf0]  ;;  %v6723_v63 = vld [vmem:[%s14716_s6 + $0x48] sm:$0xf0] }
 0x4a3   :  { %v2620_v30 = vadd.f32 %v2619_v49, %v2607_v55  ;;  %5830 = vmatpush.bf16.msrb.mxu2 %v8130_v0  ;;  %5856 = vmatpush.bf16.msra.mxu0 %v7110_v2  ;;  %v6787_v55 = vld [vmem:[%s14716_s6 + $0xc8] sm:$0xf0]  ;;  %v7809_v0 = vld [vmem:[%s14716_s6 + $0x888] sm:$0xf]  ;;  %v8386_v40 = vor.u32 %v9208_v62, %v8385_v23 }
 0x4a4   :  { %5823 = vmatpush.bf16.msrb.mxu1 %v7234_v37  ;;  %v9064_v2 = vld [vmem:[%s14716_s6 + $0x8c4] sm:$0xf0]  ;;  %v6790_v49 = vor.u32 %v8800_v48, %v6787_v55  ;;  %v8784_v20 = vld [vmem:[%s14716_s6 + $0xc] sm:$0xf]  ;;  %v6985_v48 = vld [vmem:[%s14716_s6 + $0x210] sm:$0xf] }
 0x4a5   :  { %v11998_v42 = vpack.c.bf16 %v2620_v30, %v2620_v30  ;;  %v7810_v30 = vor.u32 %v9064_v2, %v7809_v0  ;;  %v7745_v37 = vld [vmem:[%s14716_s6 + $0x808] sm:$0xf]  ;;  %v6726_v9 = vor.u32 %v8784_v20, %v6723_v63  ;;  %v8067_v24 = vld [vmem:[%s14716_s6 + $0xac8] sm:$0xf0]  ;;  %v8857_v55 = vld [vmem:[%s14716_s6 + $0x24c] sm:$0xf0] }
 0x4a6   :  { %v8257_v5 = vld [vmem:[%s14716_s6 + $0xc08] sm:$0xf]  ;;  %v9264_v25 = vld [vmem:[%s14716_s6 + $0xf0c] sm:$0xf]  ;;  %v8841_v20 = vld [vmem:[%s14716_s6 + $0x1cc] sm:$0xf0] }
 0x4a7   :  { %5746 = vmatmul.bf16.vlgmr.msrb.gmra.mxu3 %v11998_v42  ;;  %5831 = vmatpush.bf16.msrb.mxu2 %v8066_v58  ;;  %v7366_v58 = vor.u32 %v8944_v38, %v7363_v8  ;;  %v8643_v56 = vld [vmem:[%s14716_s6 + $0xf48] sm:$0xf0]  ;;  %v7561_v38 = vld [vmem:[%s14716_s6 + $0x690] sm:$0xf] }
 0x4a8   :  { %5842 = vmatpush.bf16.msrb.mxu3 %v8706_v43  ;;  %5868 = vmatpush.bf16.msra.mxu1 %v7686_v3  ;;  %v9048_v43 = vld [vmem:[%s14716_s6 + $0x844] sm:$0xf0]  ;;  %v7177_v3 = vld [vmem:[%s14716_s6 + $0x390] sm:$0xf]  ;;  %v9104_v0 = vld [vmem:[%s14716_s6 + $0xa0c] sm:$0xf] }
 0x4a9   :  { %5857 = vmatpush.bf16.msra.mxu0 %v7046_v18  ;;  %5824 = vmatmul.bf16.vlgmr.msrb.gmra.mxu1 %v11861_v31  ;;  %v9152_v18 = vld [vmem:[%s14716_s6 + $0xb8c] sm:$0xf]  ;;  %v9001_v8 = vld [vmem:[%s14716_s6 + $0x6cc] sm:$0xf0] }
 0x4aa   :  { %v2621_v21 = vpop.f32.mrf.mxu3  ;;  %v8198_v34 = vor.u32 %v9152_v18, %v8195_v51  ;;  %v8003_v2 = vld [vmem:[%s14716_s6 + $0xa48] sm:$0xf0]  ;;  %v7497_v51 = vld [vmem:[%s14716_s6 + $0x610] sm:$0xf] }
 0x4ab   :  { %5832 = vmatpush.bf16.msrb.mxu2 %v8002_v61  ;;  %v9136_v61 = vld [vmem:[%s14716_s6 + $0xb0c] sm:$0xf]  ;;  %v9176_v21 = vld [vmem:[%s14716_s6 + $0xc44] sm:$0xf0] }
 0x4ac   :  { %5843 = vmatpush.bf16.msrb.mxu3 %v8642_v36  ;;  %5869 = vmatpush.bf16.msra.mxu1 %v7622_v28  ;;  %v7746_v36 = vor.u32 %v9048_v43, %v7745_v37  ;;  %v7178_v28 = vor.u32 %v8905_v60, %v7177_v3  ;;  %v8134_v14 = vor.u32 %v9136_v61, %v8131_v35  ;;  %v9248_v23 = vld [vmem:[%s14716_s6 + $0xe8c] sm:$0xf]  ;;  %v6921_v37 = vld [vmem:[%s14716_s6 + $0x190] sm:$0xf] }
 0x4ad   :  { %5858 = vmatpush.bf16.msra.mxu0 %v6982_v44  ;;  %v7113_v44 = vld [vmem:[%s14716_s6 + $0x310] sm:$0xf]  ;;  %v8258_v15 = vor.u32 %v9176_v21, %v8257_v5  ;;  %v8579_v62 = vld [vmem:[%s14716_s6 + $0xec8] sm:$0xf0]  ;;  %v7562_v60 = vor.u32 %v9001_v8, %v7561_v38 }
 0x4ae   :  { %5785 = vmatmul.bf16.vlgmr.msra.gmra.mxu2 %v11948_v57  ;;  %v9088_v63 = vld [vmem:[%s14716_s6 + $0x98c] sm:$0xf]  ;;  %v8582_v3 = vor.u32 %v9248_v23, %v8579_v62  ;;  %v6793_v5 = vld [vmem:[%s14716_s6 + $0x90] sm:$0xf]  ;;  %v7115_v62 = vld [vmem:[%s14716_s6 + $0x350] sm:$0xf0] }
 0x4af   :  { %5833 = vmatpush.bf16.msrb.mxu2 %v7938_v32  ;;  %v8873_v32 = vld [vmem:[%s14716_s6 + $0x2cc] sm:$0xf0]  ;;  %v7939_v43 = vld [vmem:[%s14716_s6 + $0x9c8] sm:$0xf0] }
 0x4b0   :  { %5844 = vmatpush.bf16.msrb.mxu3 %v8578_v22  ;;  %5870 = vmatpush.bf16.msra.mxu1 %v7558_v54  ;;  %v9280_v22 = vld [vmem:[%s14716_s6 + $0xf8c] sm:$0xf]  ;;  %v7114_v54 = vor.u32 %v8889_v7, %v7113_v44  ;;  %v6858_v44 = vor.u32 %v8825_v50, %v6857_v19  ;;  %v8809_v21 = vld [vmem:[%s14716_s6 + $0xcc] sm:$0xf0] }
 0x4b1   :  { %5859 = vmatpush.bf16.msra.mxu0 %v6918_v59  ;;  %v7689_v59 = vld [vmem:[%s14716_s6 + $0x790] sm:$0xf]  ;;  %v8515_v18 = vld [vmem:[%s14716_s6 + $0xe48] sm:$0xf0] }
 0x4b2   :  { %v9072_v16 = vld [vmem:[%s14716_s6 + $0x90c] sm:$0xf]  ;;  %v8137_v23 = vld [vmem:[%s14716_s6 + $0xb10] sm:$0xf] }
 0x4b3   :  { %5834 = vmatpush.bf16.msrb.mxu2 %v7874_v1  ;;  %v8070_v1 = vor.u32 %v9120_v6, %v8067_v24  ;;  %v9216_v61 = vld [vmem:[%s14716_s6 + $0xd8c] sm:$0xf]  ;;  %v8793_v6 = vld [vmem:[%s14716_s6 + $0x4c] sm:$0xf0] }
 0x4b4   :  { %5845 = vmatpush.bf16.msrb.mxu3 %v8514_v27  ;;  %5871 = vmatpush.bf16.msra.mxu1 %v7494_v11  ;;  %v8710_v27 = vor.u32 %v9280_v22, %v8707_v46  ;;  %v7690_v11 = vor.u32 %v9033_v10, %v7689_v59  ;;  %v8451_v7 = vld [vmem:[%s14716_s6 + $0xdc8] sm:$0xf0]  ;;  %v6794_v59 = vor.u32 %v8809_v21, %v6793_v5  ;;  %v6987_v5 = vld [vmem:[%s14716_s6 + $0x250] sm:$0xf0] }
 0x4b5   :  { %5860 = vmatpush.bf16.msra.mxu0 %v6854_v33  ;;  %v7050_v33 = vor.u32 %v8873_v32, %v7049_v45  ;;  %v9056_v17 = vld [vmem:[%s14716_s6 + $0x88c] sm:$0xf]  ;;  %v8454_v22 = vor.u32 %v9216_v61, %v8451_v7  ;;  %v8953_v45 = vld [vmem:[%s14716_s6 + $0x54c] sm:$0xf0] }
 0x4b6   :  { %v7811_v52 = vld [vmem:[%s14716_s6 + $0x8c8] sm:$0xf0]  ;;  %v8649_v61 = vld [vmem:[%s14716_s6 + $0xf10] sm:$0xf] }
 0x4b7   :  { %5798 = vmatmul.bf16.vlgmr.msra.gmra.mxu3 %v11998_v42  ;;  %5835 = vmatpush.bf16.msrb.mxu2 %v7810_v30  ;;  %v8006_v30 = vor.u32 %v9104_v0, %v8003_v2  ;;  %v9200_v46 = vld [vmem:[%s14716_s6 + $0xd0c] sm:$0xf]  ;;  %v7814_v32 = vor.u32 %v9056_v17, %v7811_v52  ;;  %v8937_v0 = vld [vmem:[%s14716_s6 + $0x4cc] sm:$0xf0] }
 0x4b8   :  { %5846 = vmatpush.bf16.msrb.mxu3 %v8450_v29  ;;  %5872 = vmatpush.bf16.msra.mxu1 %v7430_v4  ;;  %v8646_v29 = vor.u32 %v9264_v25, %v8643_v56  ;;  %v7626_v4 = vor.u32 %v9017_v26, %v7625_v13  ;;  %v8387_v10 = vld [vmem:[%s14716_s6 + $0xd48] sm:$0xf0]  ;;  %v8201_v56 = vld [vmem:[%s14716_s6 + $0xb90] sm:$0xf] }
 0x4b9   :  { %5861 = vmatpush.bf16.msra.mxu0 %v6790_v49  ;;  %v6986_v49 = vor.u32 %v8857_v55, %v6985_v48  ;;  %v7747_v24 = vld [vmem:[%s14716_s6 + $0x848] sm:$0xf0]  ;;  %v8390_v25 = vor.u32 %v9200_v46, %v8387_v10  ;;  %v9161_v13 = vld [vmem:[%s14716_s6 + $0xbcc] sm:$0xf0] }
 0x4ba   :  { %v9184_v26 = vld [vmem:[%s14716_s6 + $0xc8c] sm:$0xf]  ;;  %v7305_v55 = vld [vmem:[%s14716_s6 + $0x490] sm:$0xf] }
 0x4bb   :  { %5836 = vmatpush.bf16.msrb.mxu2 %v7746_v36  ;;  %v7875_v36 = vld [vmem:[%s14716_s6 + $0x948] sm:$0xf0]  ;;  %v7306_v8 = vor.u32 %v8937_v0, %v7305_v55  ;;  %v9273_v7 = vld [vmem:[%s14716_s6 + $0xf4c] sm:$0xf0] }
 0x4bc   :  { %5847 = vmatpush.bf16.msrb.mxu3 %v8386_v40  ;;  %5873 = vmatpush.bf16.msra.mxu1 %v7366_v58  ;;  %v9232_v40 = vld [vmem:[%s14716_s6 + $0xe0c] sm:$0xf]  ;;  %v6922_v58 = vor.u32 %v8841_v20, %v6921_v37  ;;  %v7878_v35 = vor.u32 %v9072_v16, %v7875_v36  ;;  %v8650_v17 = vor.u32 %v9273_v7, %v8649_v61  ;;  %v8585_v46 = vld [vmem:[%s14716_s6 + $0xe90] sm:$0xf]  ;;  %v9153_v7 = vld [vmem:[%s14716_s6 + $0xb94] sm:$0xf] }
 0x4bd   :  { %5862 = vmatpush.bf16.msra.mxu0 %v6726_v9  ;;  %v7942_v9 = vor.u32 %v9088_v63, %v7939_v43  ;;  %v8323_v48 = vld [vmem:[%s14716_s6 + $0xcc8] sm:$0xf0]  ;;  %v7241_v63 = vld [vmem:[%s14716_s6 + $0x410] sm:$0xf] }
 0x4be   :  { %5837 = vmatmul.bf16.vlgmr.msrb.gmra.mxu2 %v11948_v57  ;;  %v8326_v38 = vor.u32 %v9184_v26, %v8323_v48  ;;  %v9168_v37 = vld [vmem:[%s14716_s6 + $0xc0c] sm:$0xf]  ;;  %v8921_v43 = vld [vmem:[%s14716_s6 + $0x44c] sm:$0xf0]  ;;  %v7499_v26 = vld [vmem:[%s14716_s6 + $0x650] sm:$0xf0] }
 0x4bf   :  { %5881 = vmatpush.bf16.msra.mxu2 %v8198_v34  ;;  %v7498_v34 = vor.u32 %v8985_v53, %v7497_v51  ;;  %v8259_v20 = vld [vmem:[%s14716_s6 + $0xc48] sm:$0xf0]  ;;  %v8865_v53 = vld [vmem:[%s14716_s6 + $0x294] sm:$0xf]  ;;  %v7242_v50 = vor.u32 %v8921_v43, %v7241_v63  ;;  %v9257_v10 = vld [vmem:[%s14716_s6 + $0xecc] sm:$0xf0] }
 0x4c0   :  { %5848 = vmatpush.bf16.msrb.mxu3 %v8322_v47  ;;  %5874 = vmatpush.bf16.msra.mxu1 %v7302_v39  ;;  %v7433_v47 = vld [vmem:[%s14716_s6 + $0x590] sm:$0xf]  ;;  %v8262_v19 = vor.u32 %v9168_v37, %v8259_v20  ;;  %v6859_v48 = vld [vmem:[%s14716_s6 + $0x150] sm:$0xf0] }
 0x4c1   :  { %5907 = vmatpush.bf16.msrb.mxu0 %v7178_v28  ;;  %v8518_v28 = vor.u32 %v9232_v40, %v8515_v18  ;;  %v8969_v39 = vld [vmem:[%s14716_s6 + $0x5cc] sm:$0xf0]  ;;  %v7691_v18 = vld [vmem:[%s14716_s6 + $0x7d0] sm:$0xf0] }
 0x4c2   :  { %5863 = vmatmul.bf16.vlgmr.msra.gmra.mxu0 %v11824_v12  ;;  %v9289_v40 = vld [vmem:[%s14716_s6 + $0xfcc] sm:$0xf0]  ;;  %v6795_v37 = vld [vmem:[%s14716_s6 + $0xd0] sm:$0xf0] }
 0x4c3   :  { %5882 = vmatpush.bf16.msra.mxu2 %v8134_v14  ;;  %v7369_v14 = vld [vmem:[%s14716_s6 + $0x510] sm:$0xf] }
 0x4c4   :  { %5849 = vmatpush.bf16.msrb.mxu3 %v8258_v15  ;;  %5875 = vmatpush.bf16.msra.mxu1 %v7238_v41  ;;  %v9040_v15 = vld [vmem:[%s14716_s6 + $0x80c] sm:$0xf]  ;;  %v6729_v41 = vld [vmem:[%s14716_s6 + $0x10] sm:$0xf] }
 0x4c5   :  { %5908 = vmatpush.bf16.msrb.mxu0 %v7114_v54  ;;  %v7434_v54 = vor.u32 %v8969_v39, %v7433_v47  ;;  %v7750_v2 = vor.u32 %v9040_v15, %v7747_v24  ;;  %v9009_v47 = vld [vmem:[%s14716_s6 + $0x714] sm:$0xf]  ;;  %v7753_v61 = vld [vmem:[%s14716_s6 + $0x810] sm:$0xf] }
 0x4c6   :  { %v7627_v39 = vld [vmem:[%s14716_s6 + $0x750] sm:$0xf0] }
 0x4c7   :  { %5876 = vmatmul.bf16.vlgmr.msra.gmra.mxu1 %v11861_v31  ;;  %5883 = vmatpush.bf16.msra.mxu2 %v8070_v1  ;;  %v6730_v1 = vor.u32 %v8793_v6, %v6729_v41  ;;  %v7630_v52 = vor.u32 %v9009_v47, %v7627_v39  ;;  %v6923_v15 = vld [vmem:[%s14716_s6 + $0x1d0] sm:$0xf0]  ;;  %v8586_v6 = vor.u32 %v9257_v10, %v8585_v46  ;;  %v8890_v46 = vld [vmem:[%s14716_s6 + $0x354] sm:$0xf0] }
 0x4c8   :  { %5894 = vmatpush.bf16.msra.mxu3 %v8710_v27  ;;  %5920 = vmatpush.bf16.msrb.mxu1 %v7690_v11  ;;  %v8897_v27 = vld [vmem:[%s14716_s6 + $0x394] sm:$0xf] }
 0x4c9   :  { %5909 = vmatpush.bf16.msrb.mxu0 %v7050_v33  ;;  %5850 = vmatmul.bf16.vlgmr.msrb.gmra.mxu3 %v11998_v42  ;;  %v7179_v11 = vld [vmem:[%s14716_s6 + $0x3d0] sm:$0xf0]  ;;  %v7370_v33 = vor.u32 %v8953_v45, %v7369_v14 }
 0x4ca   :  { %v8993_v14 = vld [vmem:[%s14716_s6 + $0x694] sm:$0xf] }
 0x4cb   :  { %5884 = vmatpush.bf16.msra.mxu2 %v8006_v30  ;;  %v9145_v30 = vld [vmem:[%s14716_s6 + $0xb4c] sm:$0xf0]  ;;  %v7563_v45 = vld [vmem:[%s14716_s6 + $0x6d0] sm:$0xf0] }
 0x4cc   :  { %5895 = vmatpush.bf16.msra.mxu3 %v8646_v29  ;;  %5921 = vmatpush.bf16.msrb.mxu1 %v7626_v4  ;;  %v7182_v29 = vor.u32 %v8897_v27, %v7179_v11  ;;  %v8202_v4 = vor.u32 %v9161_v13, %v8201_v56  ;;  %v8138_v51 = vor.u32 %v9145_v30, %v8137_v23  ;;  %v7945_v27 = vld [vmem:[%s14716_s6 + $0x990] sm:$0xf]  ;;  %v8977_v13 = vld [vmem:[%s14716_s6 + $0x614] sm:$0xf] }
 0x4cd   :  { %5910 = vmatpush.bf16.msrb.mxu0 %v6986_v49  ;;  %v8881_v49 = vld [vmem:[%s14716_s6 + $0x314] sm:$0xf]  ;;  %v7566_v24 = vor.u32 %v8993_v14, %v7563_v45  ;;  %v9097_v11 = vld [vmem:[%s14716_s6 + $0x9cc] sm:$0xf0] }
 0x4ce   :  { %v9241_v56 = vld [vmem:[%s14716_s6 + $0xe4c] sm:$0xf0]  ;;  %v7946_v55 = vor.u32 %v9097_v11, %v7945_v27  ;;  %v8801_v30 = vld [vmem:[%s14716_s6 + $0x94] sm:$0xf] }
 0x4cf   :  { %5885 = vmatpush.bf16.msra.mxu2 %v7942_v9  ;;  %v7051_v9 = vld [vmem:[%s14716_s6 + $0x2d0] sm:$0xf0]  ;;  %v8457_v23 = vld [vmem:[%s14716_s6 + $0xd90] sm:$0xf] }
 0x4d0   :  { %5896 = vmatpush.bf16.msra.mxu3 %v8582_v3  ;;  %5922 = vmatpush.bf16.msrb.mxu1 %v7562_v60  ;;  %v8713_v3 = vld [vmem:[%s14716_s6 + $0xf90] sm:$0xf]  ;;  %v7118_v60 = vor.u32 %v8881_v49, %v7115_v62  ;;  %v8203_v39 = vld [vmem:[%s14716_s6 + $0xbd0] sm:$0xf0] }
 0x4d1   :  { %5911 = vmatpush.bf16.msrb.mxu0 %v6922_v58  ;;  %v9025_v58 = vld [vmem:[%s14716_s6 + $0x794] sm:$0xf]  ;;  %v8714_v16 = vor.u32 %v9289_v40, %v8713_v3  ;;  %v9225_v62 = vld [vmem:[%s14716_s6 + $0xdcc] sm:$0xf0] }
 0x4d2   :  { %v7694_v36 = vor.u32 %v9025_v58, %v7691_v18  ;;  %v8458_v63 = vor.u32 %v9225_v62, %v8457_v23  ;;  %v7817_v3 = vld [vmem:[%s14716_s6 + $0x890] sm:$0xf]  ;;  %v6798_v58 = vor.u32 %v8801_v30, %v6795_v37  ;;  %v9137_v14 = vld [vmem:[%s14716_s6 + $0xb14] sm:$0xf]  ;;  %v6993_v30 = vld [vmem:[%s14716_s6 + $0x218] sm:$0xf] }
 0x4d3   :  { %5886 = vmatpush.bf16.msra.mxu2 %v7878_v35  ;;  %v8849_v35 = vld [vmem:[%s14716_s6 + $0x214] sm:$0xf]  ;;  %v8393_v40 = vld [vmem:[%s14716_s6 + $0xd10] sm:$0xf]  ;;  %v8858_v37 = vld [vmem:[%s14716_s6 + $0x254] sm:$0xf0] }
 0x4d4   :  { %5897 = vmatpush.bf16.msra.mxu3 %v8518_v28  ;;  %5923 = vmatpush.bf16.msrb.mxu1 %v7498_v34  ;;  %v8073_v28 = vld [vmem:[%s14716_s6 + $0xa90] sm:$0xf]  ;;  %v8139_v45 = vld [vmem:[%s14716_s6 + $0xb50] sm:$0xf0] }
 0x4d5   :  { %5912 = vmatpush.bf16.msrb.mxu0 %v6858_v44  ;;  %v9129_v34 = vld [vmem:[%s14716_s6 + $0xacc] sm:$0xf0]  ;;  %v7054_v44 = vor.u32 %v8865_v53, %v7051_v9  ;;  %v7371_v53 = vld [vmem:[%s14716_s6 + $0x550] sm:$0xf0] }
 0x4d6   :  { %v8074_v21 = vor.u32 %v9129_v34, %v8073_v28  ;;  %v9209_v18 = vld [vmem:[%s14716_s6 + $0xd4c] sm:$0xf0]  ;;  %v8785_v9 = vld [vmem:[%s14716_s6 + $0x14] sm:$0xf] }
 0x4d7   :  { %5887 = vmatpush.bf16.msra.mxu2 %v7814_v32  ;;  %v8833_v32 = vld [vmem:[%s14716_s6 + $0x194] sm:$0xf]  ;;  %v8394_v28 = vor.u32 %v9209_v18, %v8393_v40 }
 0x4d8   :  { %5898 = vmatpush.bf16.msra.mxu3 %v8454_v22  ;;  %5924 = vmatpush.bf16.msrb.mxu1 %v7434_v54  ;;  %v8009_v22 = vld [vmem:[%s14716_s6 + $0xa10] sm:$0xf]  ;;  %v9281_v11 = vld [vmem:[%s14716_s6 + $0xf94] sm:$0xf] }
 0x4d9   :  { %5913 = vmatpush.bf16.msrb.mxu0 %v6794_v59  ;;  %v9113_v54 = vld [vmem:[%s14716_s6 + $0xa4c] sm:$0xf0]  ;;  %v6990_v59 = vor.u32 %v8849_v35, %v6987_v5  ;;  %v8651_v62 = vld [vmem:[%s14716_s6 + $0xf50] sm:$0xf0] }
 0x4da   :  { %v8010_v41 = vor.u32 %v9113_v54, %v8009_v22  ;;  %v8329_v35 = vld [vmem:[%s14716_s6 + $0xc90] sm:$0xf]  ;;  %v7121_v54 = vld [vmem:[%s14716_s6 + $0x318] sm:$0xf]  ;;  %v9249_v18 = vld [vmem:[%s14716_s6 + $0xe94] sm:$0xf] }
 0x4db   :  { %5888 = vmatpush.bf16.msra.mxu2 %v7750_v2  ;;  %v7502_v2 = vor.u32 %v8977_v13, %v7499_v26  ;;  %v9193_v5 = vld [vmem:[%s14716_s6 + $0xccc] sm:$0xf0]  ;;  %v7122_v27 = vor.u32 %v8890_v46, %v7121_v54  ;;  %v7057_v13 = vld [vmem:[%s14716_s6 + $0x298] sm:$0xf]  ;;  %v9073_v54 = vld [vmem:[%s14716_s6 + $0x914] sm:$0xf] }
 0x4dc   :  { %5899 = vmatpush.bf16.msra.mxu3 %v8390_v25  ;;  %5925 = vmatpush.bf16.msrb.mxu1 %v7370_v33  ;;  %v8521_v25 = vld [vmem:[%s14716_s6 + $0xe10] sm:$0xf]  ;;  %v6926_v33 = vor.u32 %v8833_v32, %v6923_v15  ;;  %v8330_v10 = vor.u32 %v9193_v5, %v8329_v35  ;;  %v8874_v26 = vld [vmem:[%s14716_s6 + $0x2d4] sm:$0xf0]  ;;  %v7883_v46 = vld [vmem:[%s14716_s6 + $0x950] sm:$0xf0] }
 0x4dd   :  { %5914 = vmatpush.bf16.msrb.mxu0 %v6730_v1  ;;  %v8817_v1 = vld [vmem:[%s14716_s6 + $0x114] sm:$0xf]  ;;  %v8522_v0 = vor.u32 %v9241_v56, %v8521_v25  ;;  %v8265_v32 = vld [vmem:[%s14716_s6 + $0xc10] sm:$0xf]  ;;  %v9034_v56 = vld [vmem:[%s14716_s6 + $0x7d4] sm:$0xf0]  ;;  %v7058_v23 = vor.u32 %v8874_v26, %v7057_v13 }
 0x4de   :  { %5889 = vmatmul.bf16.vlgmr.msra.gmra.mxu2 %v11948_v57  ;;  %v6862_v49 = vor.u32 %v8817_v1, %v6859_v48  ;;  %v8715_v25 = vld [vmem:[%s14716_s6 + $0xfd0] sm:$0xf0]  ;;  %v8142_v1 = vor.u32 %v9137_v14, %v8139_v45  ;;  %v8986_v35 = vld [vmem:[%s14716_s6 + $0x654] sm:$0xf0] }
 0x4df   :  { %5933 = vmatpush.bf16.msrb.mxu2 %v8202_v4  ;;  %v9081_v4 = vld [vmem:[%s14716_s6 + $0x94c] sm:$0xf0]  ;;  %v6865_v5 = vld [vmem:[%s14716_s6 + $0x118] sm:$0xf]  ;;  %v9217_v45 = vld [vmem:[%s14716_s6 + $0xd94] sm:$0xf] }
 0x4e0   :  { %5900 = vmatpush.bf16.msra.mxu3 %v8326_v38  ;;  %5926 = vmatpush.bf16.msrb.mxu1 %v7306_v8  ;;  %v8961_v38 = vld [vmem:[%s14716_s6 + $0x594] sm:$0xf] }
 0x4e1   :  { %5959 = vmatpush.bf16.msra.mxu0 %v7182_v29  ;;  %v7881_v29 = vld [vmem:[%s14716_s6 + $0x910] sm:$0xf]  ;;  %v7435_v8 = vld [vmem:[%s14716_s6 + $0x5d0] sm:$0xf0] }
 0x4e2   :  { %5915 = vmatmul.bf16.vlgmr.msrb.gmra.mxu0 %v11824_v12  ;;  %v7882_v20 = vor.u32 %v9081_v4, %v7881_v29  ;;  %v7438_v43 = vor.u32 %v8961_v38, %v7435_v8  ;;  %v8075_v29 = vld [vmem:[%s14716_s6 + $0xad0] sm:$0xf0]  ;;  %v7633_v38 = vld [vmem:[%s14716_s6 + $0x718] sm:$0xf] }
 0x4e3   :  { %5934 = vmatpush.bf16.msrb.mxu2 %v8138_v51  ;;  %v8945_v51 = vld [vmem:[%s14716_s6 + $0x514] sm:$0xf]  ;;  %v9018_v8 = vld [vmem:[%s14716_s6 + $0x754] sm:$0xf0] }
 0x4e4   :  { %5901 = vmatpush.bf16.msra.mxu3 %v8262_v19  ;;  %5927 = vmatpush.bf16.msrb.mxu1 %v7242_v50  ;;  %v6731_v19 = vld [vmem:[%s14716_s6 + $0x50] sm:$0xf0]  ;;  %v7374_v34 = vor.u32 %v8945_v51, %v7371_v53  ;;  %v7634_v40 = vor.u32 %v9018_v8, %v7633_v38  ;;  %v7569_v53 = vld [vmem:[%s14716_s6 + $0x698] sm:$0xf] }
 0x4e5   :  { %5960 = vmatpush.bf16.msra.mxu0 %v7118_v60  ;;  %v9065_v60 = vld [vmem:[%s14716_s6 + $0x8cc] sm:$0xf0]  ;;  %v6734_v47 = vor.u32 %v8785_v9, %v6731_v19  ;;  %v8587_v51 = vld [vmem:[%s14716_s6 + $0xed0] sm:$0xf0]  ;;  %v9002_v9 = vld [vmem:[%s14716_s6 + $0x6d4] sm:$0xf0] }
 0x4e6   :  { %v7818_v50 = vor.u32 %v9065_v60, %v7817_v3  ;;  %v8011_v3 = vld [vmem:[%s14716_s6 + $0xa50] sm:$0xf0]  ;;  %v6929_v19 = vld [vmem:[%s14716_s6 + $0x198] sm:$0xf] }
 0x4e7   :  { %5902 = vmatmul.bf16.vlgmr.msra.gmra.mxu3 %v11998_v42  ;;  %5928 = vmatmul.bf16.vlgmr.msrb.gmra.mxu1 %v11861_v31  ;;  %v9201_v26 = vld [vmem:[%s14716_s6 + $0xd14] sm:$0xf] }
 0x4e8   :  { %5946 = vmatpush.bf16.msrb.mxu3 %v8714_v16  ;;  %5972 = vmatpush.bf16.msra.mxu1 %v7694_v36  ;;  %v7185_v16 = vld [vmem:[%s14716_s6 + $0x398] sm:$0xf]  ;;  %v9041_v38 = vld [vmem:[%s14716_s6 + $0x814] sm:$0xf] }
 0x4e9   :  { %5961 = vmatpush.bf16.msra.mxu0 %v7054_v44  ;;  %5935 = vmatpush.bf16.msrb.mxu2 %v8074_v21  ;;  %v8906_v36 = vld [vmem:[%s14716_s6 + $0x3d4] sm:$0xf0]  ;;  %v9049_v44 = vld [vmem:[%s14716_s6 + $0x84c] sm:$0xf0]  ;;  %v7755_v8 = vld [vmem:[%s14716_s6 + $0x850] sm:$0xf0] }
 0x4ea   :  { %v7186_v21 = vor.u32 %v8906_v36, %v7185_v16  ;;  %v7754_v22 = vor.u32 %v9049_v44, %v7753_v61  ;;  %v8590_v36 = vor.u32 %v9249_v18, %v8587_v51  ;;  %v7570_v61 = vor.u32 %v9002_v9, %v7569_v53  ;;  %v7313_v18 = vld [vmem:[%s14716_s6 + $0x498] sm:$0xf]  ;;  %v8882_v9 = vld [vmem:[%s14716_s6 + $0x31c] sm:$0xf] }
 0x4eb   :  { %v8938_v51 = vld [vmem:[%s14716_s6 + $0x4d4] sm:$0xf0]  ;;  %v7758_v53 = vor.u32 %v9041_v38, %v7755_v8  ;;  %v6931_v38 = vld [vmem:[%s14716_s6 + $0x1d8] sm:$0xf0] }
 0x4ec   :  { %5947 = vmatpush.bf16.msrb.mxu3 %v8650_v17  ;;  %5973 = vmatpush.bf16.msra.mxu1 %v7630_v52  ;;  %v8929_v17 = vld [vmem:[%s14716_s6 + $0x494] sm:$0xf] }
 0x4ed   :  { %5962 = vmatpush.bf16.msra.mxu0 %v6990_v59  ;;  %5936 = vmatpush.bf16.msrb.mxu2 %v8010_v41  ;;  %v7307_v52 = vld [vmem:[%s14716_s6 + $0x4d0] sm:$0xf0]  ;;  %v8206_v59 = vor.u32 %v9153_v7, %v8203_v39  ;;  %v9177_v41 = vld [vmem:[%s14716_s6 + $0xc4c] sm:$0xf0]  ;;  %v7505_v39 = vld [vmem:[%s14716_s6 + $0x618] sm:$0xf] }
 0x4ee   :  { %v7310_v15 = vor.u32 %v8929_v17, %v7307_v52  ;;  %v8266_v48 = vor.u32 %v9177_v41, %v8265_v32  ;;  %v9233_v7 = vld [vmem:[%s14716_s6 + $0xe14] sm:$0xf]  ;;  %v8970_v41 = vld [vmem:[%s14716_s6 + $0x5d4] sm:$0xf0] }
 0x4ef   :  { %v8459_v32 = vld [vmem:[%s14716_s6 + $0xdd0] sm:$0xf0] }
 0x4f0   :  { %5948 = vmatpush.bf16.msrb.mxu3 %v8586_v6  ;;  %5974 = vmatpush.bf16.msra.mxu1 %v7566_v24  ;;  %v8913_v6 = vld [vmem:[%s14716_s6 + $0x414] sm:$0xf] }
 0x4f1   :  { %5963 = vmatpush.bf16.msra.mxu0 %v6926_v33  ;;  %5937 = vmatpush.bf16.msrb.mxu2 %v7946_v55  ;;  %v7243_v24 = vld [vmem:[%s14716_s6 + $0x450] sm:$0xf0]  ;;  %v7697_v33 = vld [vmem:[%s14716_s6 + $0x798] sm:$0xf] }
 0x4f2   :  { %v7246_v55 = vor.u32 %v8913_v6, %v7243_v24  ;;  %v7698_v4 = vor.u32 %v9034_v56, %v7697_v33  ;;  %v6801_v6 = vld [vmem:[%s14716_s6 + $0x98] sm:$0xf]  ;;  %v7819_v33 = vld [vmem:[%s14716_s6 + $0x8d0] sm:$0xf0] }
 0x4f3   :  { %v8810_v24 = vld [vmem:[%s14716_s6 + $0xd4] sm:$0xf0] }
 0x4f4   :  { %5949 = vmatpush.bf16.msrb.mxu3 %v8522_v0  ;;  %5975 = vmatpush.bf16.msra.mxu1 %v7502_v2  ;;  %v8718_v0 = vor.u32 %v9281_v11, %v8715_v25  ;;  %v9121_v2 = vld [vmem:[%s14716_s6 + $0xa94] sm:$0xf]  ;;  %v8462_v11 = vor.u32 %v9217_v45, %v8459_v32  ;;  %v6802_v13 = vor.u32 %v8810_v24, %v6801_v6 }
 0x4f5   :  { %5964 = vmatpush.bf16.msra.mxu0 %v6862_v49  ;;  %5938 = vmatpush.bf16.msrb.mxu2 %v7882_v20  ;;  %v9265_v49 = vld [vmem:[%s14716_s6 + $0xf14] sm:$0xf]  ;;  %v8078_v20 = vor.u32 %v9121_v2, %v8075_v29  ;;  %v8794_v2 = vld [vmem:[%s14716_s6 + $0x54] sm:$0xf0] }
 0x4f6   :  { %v9057_v25 = vld [vmem:[%s14716_s6 + $0x894] sm:$0xf] }
 0x4f7   :  { %v7822_v29 = vor.u32 %v9057_v25, %v7819_v33  ;;  %v9010_v25 = vld [vmem:[%s14716_s6 + $0x71c] sm:$0xf] }
 0x4f8   :  { %5950 = vmatpush.bf16.msrb.mxu3 %v8458_v63  ;;  %5976 = vmatpush.bf16.msra.mxu1 %v7438_v43  ;;  %v8654_v63 = vor.u32 %v9265_v49, %v8651_v62  ;;  %v9105_v43 = vld [vmem:[%s14716_s6 + $0xa14] sm:$0xf]  ;;  %v7635_v33 = vld [vmem:[%s14716_s6 + $0x758] sm:$0xf0] }
 0x4f9   :  { %5965 = vmatpush.bf16.msra.mxu0 %v6798_v58  ;;  %5939 = vmatpush.bf16.msrb.mxu2 %v7818_v50  ;;  %v6994_v58 = vor.u32 %v8858_v37, %v6993_v30  ;;  %v8842_v50 = vld [vmem:[%s14716_s6 + $0x1d4] sm:$0xf0]  ;;  %v8014_v16 = vor.u32 %v9105_v43, %v8011_v3  ;;  %v9185_v3 = vld [vmem:[%s14716_s6 + $0xc94] sm:$0xf] }
 0x4fa   :  { %v6930_v44 = vor.u32 %v8842_v50, %v6929_v19  ;;  %v8209_v30 = vld [vmem:[%s14716_s6 + $0xb98] sm:$0xf]  ;;  %v7123_v19 = vld [vmem:[%s14716_s6 + $0x358] sm:$0xf0] }
 0x4fb   :  { %v12608_v60 = vpop.f32.mrf.mxu0  ;;  %v9162_v43 = vld [vmem:[%s14716_s6 + $0xbd4] sm:$0xf0] }
 0x4fc   :  { %5951 = vmatpush.bf16.msrb.mxu3 %v8394_v28  ;;  %5977 = vmatpush.bf16.msra.mxu1 %v7374_v34  ;;  %v9089_v28 = vld [vmem:[%s14716_s6 + $0x994] sm:$0xf]  ;;  %v8210_v50 = vor.u32 %v9162_v43, %v8209_v30  ;;  %v7953_v43 = vld [vmem:[%s14716_s6 + $0x998] sm:$0xf] }
 0x4fd   :  { %5966 = vmatpush.bf16.msra.mxu0 %v6734_v47  ;;  %5940 = vmatpush.bf16.msrb.mxu2 %v7754_v22  ;;  %v7947_v34 = vld [vmem:[%s14716_s6 + $0x9d0] sm:$0xf0] }
 0x4fe   :  { %v8523_v47 = vld [vmem:[%s14716_s6 + $0xe50] sm:$0xf0]  ;;  %v7950_v17 = vor.u32 %v9089_v28, %v7947_v34  ;;  %v9146_v28 = vld [vmem:[%s14716_s6 + $0xb54] sm:$0xf0] }
 0x4ff   :  { %v8526_v22 = vor.u32 %v9233_v7, %v8523_v47  ;;  %v9169_v34 = vld [vmem:[%s14716_s6 + $0xc14] sm:$0xf]  ;;  %v7249_v7 = vld [vmem:[%s14716_s6 + $0x418] sm:$0xf] }
 0x500   :  { %5952 = vmatpush.bf16.msrb.mxu3 %v8330_v10  ;;  %5978 = vmatpush.bf16.msra.mxu1 %v7310_v15  ;;  %v7506_v10 = vor.u32 %v8986_v35, %v7505_v39  ;;  %v7441_v15 = vld [vmem:[%s14716_s6 + $0x598] sm:$0xf]  ;;  %v7126_v39 = vor.u32 %v8882_v9, %v7123_v19  ;;  %v7507_v9 = vld [vmem:[%s14716_s6 + $0x658] sm:$0xf0] }
 0x501   :  { %6011 = vmatpush.bf16.msrb.mxu0 %v7186_v21  ;;  %5985 = vmatpush.bf16.msra.mxu2 %v8206_v59  ;;  %v8826_v21 = vld [vmem:[%s14716_s6 + $0x154] sm:$0xf0]  ;;  %v7442_v56 = vor.u32 %v8970_v41, %v7441_v15  ;;  %v8818_v19 = vld [vmem:[%s14716_s6 + $0x11c] sm:$0xf] }
 0x502   :  { %5967 = vmatmul.bf16.vlgmr.msra.gmra.mxu0 %v11824_v12  ;;  %5941 = vmatmul.bf16.vlgmr.msrb.gmra.mxu2 %v11948_v57  ;;  %v6866_v14 = vor.u32 %v8826_v21, %v6865_v5  ;;  %v8922_v47 = vld [vmem:[%s14716_s6 + $0x454] sm:$0xf0]  ;;  %v9026_v21 = vld [vmem:[%s14716_s6 + $0x79c] sm:$0xf] }
 0x503   :  { %v5710_v59 = vpop.f32.mrf.mxu0  ;;  %v8721_v35 = vld [vmem:[%s14716_s6 + $0xf98] sm:$0xf]  ;;  %v7250_v45 = vor.u32 %v8922_v47, %v7249_v7 }
 0x504   :  { %5953 = vmatpush.bf16.msrb.mxu3 %v8266_v48  ;;  %5979 = vmatpush.bf16.msra.mxu1 %v7246_v55  ;;  %v12654_v52 = vpop.f32.mrf.mxu1  ;;  %v7377_v48 = vld [vmem:[%s14716_s6 + $0x518] sm:$0xf] }
 0x505   :  { %6012 = vmatpush.bf16.msrb.mxu0 %v7122_v27  ;;  %5986 = vmatpush.bf16.msra.mxu2 %v8142_v1  ;;  %v7886_v27 = vor.u32 %v9073_v54, %v7883_v46  ;;  %v8395_v1 = vld [vmem:[%s14716_s6 + $0xd50] sm:$0xf0]  ;;  %v8954_v55 = vld [vmem:[%s14716_s6 + $0x554] sm:$0xf0]  ;;  %v7059_v54 = vld [vmem:[%s14716_s6 + $0x2d8] sm:$0xf0] }
 0x506   :  { %v8398_v62 = vor.u32 %v9201_v26, %v8395_v1  ;;  %v9290_v5 = vld [vmem:[%s14716_s6 + $0xfd4] sm:$0xf0] }
 0x507   :  { %5954 = vmatmul.bf16.vlgmr.msrb.gmra.mxu3 %v11998_v42  ;;  %5980 = vmatmul.bf16.vlgmr.msra.gmra.mxu1 %v11861_v31  ;;  %v8722_v32 = vor.u32 %v9290_v5, %v8721_v35  ;;  %v8081_v15 = vld [vmem:[%s14716_s6 + $0xa98] sm:$0xf]  ;;  %v8962_v35 = vld [vmem:[%s14716_s6 + $0x59c] sm:$0xf] }
 0x508   :  { %5998 = vmatpush.bf16.msra.mxu3 %v8718_v0  ;;  %6024 = vmatpush.bf16.msrb.mxu1 %v7698_v4  ;;  %v6737_v0 = vld [vmem:[%s14716_s6 + $0x18] sm:$0xf]  ;;  %v8898_v4 = vld [vmem:[%s14716_s6 + $0x39c] sm:$0xf] }
 0x509   :  { %6013 = vmatpush.bf16.msrb.mxu0 %v7058_v23  ;;  %5987 = vmatpush.bf16.msra.mxu2 %v8078_v20  ;;  %v7187_v23 = vld [vmem:[%s14716_s6 + $0x3d8] sm:$0xf0]  ;;  %v7378_v20 = vor.u32 %v8954_v55, %v7377_v48  ;;  %v9130_v41 = vld [vmem:[%s14716_s6 + $0xad4] sm:$0xf0] }
 0x50a   :  { %v8082_v26 = vor.u32 %v9130_v41, %v8081_v15  ;;  %v8017_v48 = vld [vmem:[%s14716_s6 + $0xa18] sm:$0xf]  ;;  %v7443_v5 = vld [vmem:[%s14716_s6 + $0x5d8] sm:$0xf0] }
 0x50b   :  { %v12719_v37 = vpop.f32.mrf.mxu0  ;;  %v9114_v55 = vld [vmem:[%s14716_s6 + $0xa54] sm:$0xf0]  ;;  %v7446_v41 = vor.u32 %v8962_v35, %v7443_v5  ;;  %v7065_v35 = vld [vmem:[%s14716_s6 + $0x2a0] sm:$0xf] }
 0x50c   :  { %5999 = vmatpush.bf16.msra.mxu3 %v8654_v63  ;;  %6025 = vmatpush.bf16.msrb.mxu1 %v7634_v40  ;;  %v5723_v49 = vpop.f32.mrf.mxu1  ;;  %v6738_v63 = vor.u32 %v8794_v2, %v6737_v0  ;;  %v8331_v40 = vld [vmem:[%s14716_s6 + $0xcd0] sm:$0xf0]  ;;  %v7638_v0 = vor.u32 %v9010_v25, %v7635_v33  ;;  %v8018_v30 = vor.u32 %v9114_v55, %v8017_v48  ;;  %v8465_v47 = vld [vmem:[%s14716_s6 + $0xd98] sm:$0xf]  ;;  %v8786_v25 = vld [vmem:[%s14716_s6 + $0x1c] sm:$0xf] }
 0x50d   :  { %6014 = vmatpush.bf16.msrb.mxu0 %v6994_v58  ;;  %5988 = vmatpush.bf16.msra.mxu2 %v8014_v16  ;;  %v7190_v58 = vor.u32 %v8898_v4, %v7187_v23  ;;  %v8334_v16 = vor.u32 %v9185_v3, %v8331_v40  ;;  %v9258_v4 = vld [vmem:[%s14716_s6 + $0xed4] sm:$0xf0]  ;;  %v8994_v23 = vld [vmem:[%s14716_s6 + $0x69c] sm:$0xf]  ;;  %v8907_v48 = vld [vmem:[%s14716_s6 + $0x3dc] sm:$0xf0] }
 0x50e   :  { %v7571_v49 = vld [vmem:[%s14716_s6 + $0x6d8] sm:$0xf0]  ;;  %v9098_v3 = vld [vmem:[%s14716_s6 + $0x9d4] sm:$0xf0]  ;;  %v8875_v5 = vld [vmem:[%s14716_s6 + $0x2dc] sm:$0xf0] }
 0x50f   :  { %v7574_v40 = vor.u32 %v8994_v23, %v7571_v49  ;;  %v6739_v33 = vld [vmem:[%s14716_s6 + $0x58] sm:$0xf0] }
 0x510   :  { %6000 = vmatpush.bf16.msra.mxu3 %v8590_v36  ;;  %6026 = vmatpush.bf16.msrb.mxu1 %v7570_v61  ;;  %v8145_v36 = vld [vmem:[%s14716_s6 + $0xb18] sm:$0xf]  ;;  %v7314_v61 = vor.u32 %v8938_v51, %v7313_v18  ;;  %v6742_v23 = vor.u32 %v8786_v25, %v6739_v33  ;;  %v8211_v49 = vld [vmem:[%s14716_s6 + $0xbd8] sm:$0xf0] }
 0x511   :  { %6015 = vmatpush.bf16.msrb.mxu0 %v6930_v44  ;;  %5989 = vmatpush.bf16.msra.mxu2 %v7950_v17  ;;  %v8267_v44 = vld [vmem:[%s14716_s6 + $0xc50] sm:$0xf0]  ;;  %v7699_v17 = vld [vmem:[%s14716_s6 + $0x7d8] sm:$0xf0]  ;;  %v8146_v59 = vor.u32 %v9146_v28, %v8145_v36  ;;  %v8529_v18 = vld [vmem:[%s14716_s6 + $0xe18] sm:$0xf]  ;;  %v7954_v36 = vor.u32 %v9098_v3, %v7953_v43 }
 0x512   :  { %v7702_v6 = vor.u32 %v9026_v21, %v7699_v17  ;;  %v9242_v51 = vld [vmem:[%s14716_s6 + $0xe54] sm:$0xf0]  ;;  %v8802_v21 = vld [vmem:[%s14716_s6 + $0x9c] sm:$0xf] }
 0x513   :  { %v8530_v28 = vor.u32 %v9242_v51, %v8529_v18  ;;  %v6803_v17 = vld [vmem:[%s14716_s6 + $0xd8] sm:$0xf0] }
 0x514   :  { %6001 = vmatpush.bf16.msra.mxu3 %v8526_v22  ;;  %6027 = vmatpush.bf16.msrb.mxu1 %v7506_v10  ;;  %v8866_v22 = vld [vmem:[%s14716_s6 + $0x29c] sm:$0xf]  ;;  %v12778_v46 = vpop.f32.mrf.mxu1  ;;  %v8270_v10 = vor.u32 %v9169_v34, %v8267_v44  ;;  %v7889_v34 = vld [vmem:[%s14716_s6 + $0x918] sm:$0xf] }
 0x515   :  { %6016 = vmatpush.bf16.msrb.mxu0 %v6866_v14  ;;  %5990 = vmatpush.bf16.msra.mxu2 %v7886_v27  ;;  %v5762_v14 = vpop.f32.mrf.mxu0  ;;  %v7062_v24 = vor.u32 %v8866_v22, %v7059_v54  ;;  %v8657_v27 = vld [vmem:[%s14716_s6 + $0xf18] sm:$0xf]  ;;  %v5722_v22 = vadd.f32 %v12654_v52, %v12608_v60  ;;  %v6806_v60 = vor.u32 %v8802_v21, %v6803_v17 }
 0x516   :  { %v8401_v52 = vld [vmem:[%s14716_s6 + $0xd18] sm:$0xf] }
 0x518   :  { %6002 = vmatpush.bf16.msra.mxu3 %v8462_v11  ;;  %6028 = vmatpush.bf16.msrb.mxu1 %v7442_v56  ;;  %v9274_v11 = vld [vmem:[%s14716_s6 + $0xf54] sm:$0xf0]  ;;  %v8850_v56 = vld [vmem:[%s14716_s6 + $0x21c] sm:$0xf] }
 0x519   :  { %6017 = vmatpush.bf16.msrb.mxu0 %v6802_v13  ;;  %5991 = vmatpush.bf16.msra.mxu2 %v7822_v29  ;;  %v6995_v13 = vld [vmem:[%s14716_s6 + $0x258] sm:$0xf0]  ;;  %v8658_v1 = vor.u32 %v9274_v11, %v8657_v27  ;;  %v8593_v29 = vld [vmem:[%s14716_s6 + $0xe98] sm:$0xf] }
 0x51a   :  { %v6998_v2 = vor.u32 %v8850_v56, %v6995_v13  ;;  %v7379_v11 = vld [vmem:[%s14716_s6 + $0x558] sm:$0xf0] }
 0x51c   :  { %6003 = vmatpush.bf16.msra.mxu3 %v8398_v62  ;;  %6029 = vmatpush.bf16.msrb.mxu1 %v7378_v20  ;;  %v8834_v62 = vld [vmem:[%s14716_s6 + $0x19c] sm:$0xf]  ;;  %v5775_v8 = vpop.f32.mrf.mxu1 }
 0x51d   :  { %6018 = vmatpush.bf16.msrb.mxu0 %v6738_v63  ;;  %5992 = vmatpush.bf16.msra.mxu2 %v7758_v53  ;;  %v12832_v20 = vpop.f32.mrf.mxu0  ;;  %v8594_v63 = vor.u32 %v9258_v4, %v8593_v29  ;;  %v8978_v53 = vld [vmem:[%s14716_s6 + $0x61c] sm:$0xf] }
 0x51e   :  { %v7510_v44 = vor.u32 %v8978_v53, %v7507_v9  ;;  %v9154_v29 = vld [vmem:[%s14716_s6 + $0xb9c] sm:$0xf] }
 0x51f   :  { %v8214_v18 = vor.u32 %v9154_v29, %v8211_v49  ;;  %v9138_v53 = vld [vmem:[%s14716_s6 + $0xb1c] sm:$0xf]  ;;  %v9003_v29 = vld [vmem:[%s14716_s6 + $0x6dc] sm:$0xf0] }
 0x520   :  { %6004 = vmatpush.bf16.msra.mxu3 %v8334_v16  ;;  %6030 = vmatpush.bf16.msrb.mxu1 %v7314_v61  ;;  %v9082_v61 = vld [vmem:[%s14716_s6 + $0x954] sm:$0xf0]  ;;  %v8147_v9 = vld [vmem:[%s14716_s6 + $0xb58] sm:$0xf0] }
 0x521   :  { %6063 = vmatpush.bf16.msra.mxu0 %v7190_v58  ;;  %6037 = vmatpush.bf16.msrb.mxu2 %v8210_v50  ;;  %v6934_v58 = vor.u32 %v8834_v62, %v6931_v38  ;;  %v6867_v50 = vld [vmem:[%s14716_s6 + $0x158] sm:$0xf0]  ;;  %v5734_v16 = vpop.f32.mrf.mxu2  ;;  %v8337_v62 = vld [vmem:[%s14716_s6 + $0xc98] sm:$0xf]  ;;  %v8150_v17 = vor.u32 %v9138_v53, %v8147_v9  ;;  %v6873_v53 = vld [vmem:[%s14716_s6 + $0x120] sm:$0xf] }
 0x522   :  { %6019 = vmatmul.bf16.vlgmr.msrb.gmra.mxu0 %v11824_v12  ;;  %5993 = vmatmul.bf16.vlgmr.msra.gmra.mxu2 %v11948_v57  ;;  %v6870_v7 = vor.u32 %v8818_v19, %v6867_v50  ;;  %v5735_v15 = vadd.f32 %v5734_v16, %v5722_v22  ;;  %v9194_v38 = vld [vmem:[%s14716_s6 + $0xcd4] sm:$0xf0]  ;;  %v8827_v9 = vld [vmem:[%s14716_s6 + $0x15c] sm:$0xf0] }
 0x523   :  { %v8338_v51 = vor.u32 %v9194_v38, %v8337_v62  ;;  %v8273_v19 = vld [vmem:[%s14716_s6 + $0xc18] sm:$0xf] }
 0x524   :  { %6005 = vmatpush.bf16.msra.mxu3 %v8270_v10  ;;  %6031 = vmatpush.bf16.msrb.mxu1 %v7250_v45  ;;  %v7825_v45 = vld [vmem:[%s14716_s6 + $0x898] sm:$0xf] }
 0x525   :  { %6064 = vmatpush.bf16.msra.mxu0 %v7126_v39  ;;  %6038 = vmatpush.bf16.msrb.mxu2 %v8146_v59  ;;  %v9226_v39 = vld [vmem:[%s14716_s6 + $0xdd4] sm:$0xf0]  ;;  %v7890_v59 = vor.u32 %v9082_v61, %v7889_v34  ;;  %v5814_v10 = vpop.f32.mrf.mxu0 }
 0x526   :  { %v12884_v54 = vpop.f32.mrf.mxu1  ;;  %v8466_v14 = vor.u32 %v9226_v39, %v8465_v47  ;;  %v9178_v16 = vld [vmem:[%s14716_s6 + $0xc54] sm:$0xf0]  ;;  %v7705_v47 = vld [vmem:[%s14716_s6 + $0x7a0] sm:$0xf] }
 0x527   :  { %6006 = vmatmul.bf16.vlgmr.msra.gmra.mxu3 %v11998_v42  ;;  %6032 = vmatmul.bf16.vlgmr.msrb.gmra.mxu1 %v11861_v31  ;;  %v9035_v39 = vld [vmem:[%s14716_s6 + $0x7dc] sm:$0xf0]  ;;  %v8274_v22 = vor.u32 %v9178_v16, %v8273_v19  ;;  %v9074_v16 = vld [vmem:[%s14716_s6 + $0x91c] sm:$0xf] }
 0x528   :  { %6050 = vmatpush.bf16.msrb.mxu3 %v8722_v32  ;;  %6076 = vmatpush.bf16.msra.mxu1 %v7702_v6  ;;  %v9066_v32 = vld [vmem:[%s14716_s6 + $0x8d4] sm:$0xf0] }
 0x529   :  { %6065 = vmatpush.bf16.msra.mxu0 %v7062_v24  ;;  %6039 = vmatpush.bf16.msrb.mxu2 %v8082_v26  ;;  %v9210_v6 = vld [vmem:[%s14716_s6 + $0xd54] sm:$0xf0]  ;;  %v8946_v24 = vld [vmem:[%s14716_s6 + $0x51c] sm:$0xf]  ;;  %v5736_v13 = vpop.f32.mrf.mxu2  ;;  %v7826_v26 = vor.u32 %v9066_v32, %v7825_v45  ;;  %v7706_v32 = vor.u32 %v9035_v39, %v7705_v47  ;;  %v7449_v47 = vld [vmem:[%s14716_s6 + $0x5a0] sm:$0xf] }
 0x52a   :  { %v5747_v27 = vpop.f32.mrf.mxu3  ;;  %v8402_v55 = vor.u32 %v9210_v6, %v8401_v52  ;;  %v7382_v4 = vor.u32 %v8946_v24, %v7379_v11  ;;  %v8083_v45 = vld [vmem:[%s14716_s6 + $0xad8] sm:$0xf0]  ;;  %v7641_v52 = vld [vmem:[%s14716_s6 + $0x720] sm:$0xf]  ;;  %v5774_v6 = vadd.f32 %v12778_v46, %v12719_v37 }
 0x52b   :  { %v5748_v56 = vadd.f32 %v5747_v27, %v5735_v15  ;;  %v7066_v15 = vor.u32 %v8875_v5, %v7065_v35  ;;  %v9019_v24 = vld [vmem:[%s14716_s6 + $0x75c] sm:$0xf0]  ;;  %v9106_v37 = vld [vmem:[%s14716_s6 + $0xa1c] sm:$0xf] }
 0x52c   :  { %6051 = vmatpush.bf16.msrb.mxu3 %v8658_v1  ;;  %6077 = vmatpush.bf16.msra.mxu1 %v7638_v0  ;;  %v7193_v1 = vld [vmem:[%s14716_s6 + $0x3a0] sm:$0xf]  ;;  %v7761_v0 = vld [vmem:[%s14716_s6 + $0x818] sm:$0xf]  ;;  %v8019_v46 = vld [vmem:[%s14716_s6 + $0xa58] sm:$0xf0] }
 0x52d   :  { %6066 = vmatpush.bf16.msra.mxu0 %v6998_v2  ;;  %6040 = vmatpush.bf16.msrb.mxu2 %v8018_v30  ;;  %v9050_v2 = vld [vmem:[%s14716_s6 + $0x854] sm:$0xf0]  ;;  %6531 = vst [vmem:[%s14717_s7] sm:$0xff] %v5748_v56  ;;  %v7194_v8 = vor.u32 %v8907_v48, %v7193_v1  ;;  %v8930_v30 = vld [vmem:[%s14716_s6 + $0x49c] sm:$0xf]  ;;  %v7001_v27 = vld [vmem:[%s14716_s6 + $0x220] sm:$0xf]  ;;  %v8022_v62 = vor.u32 %v9106_v37, %v8019_v46 }
 0x52e   :  { %v5827_v43 = vpop.f32.mrf.mxu1  ;;  %v7762_v3 = vor.u32 %v9050_v2, %v7761_v0  ;;  %v8859_v11 = vld [vmem:[%s14716_s6 + $0x25c] sm:$0xf0]  ;;  %v9250_v48 = vld [vmem:[%s14716_s6 + $0xe9c] sm:$0xf] }
 0x52f   :  { %v7002_v1 = vor.u32 %v8859_v11, %v7001_v27  ;;  %v7577_v0 = vld [vmem:[%s14716_s6 + $0x6a0] sm:$0xf]  ;;  %v5826_v11 = vadd.f32 %v12884_v54, %v12832_v20  ;;  %v9042_v46 = vld [vmem:[%s14716_s6 + $0x81c] sm:$0xf] }
 0x530   :  { %6052 = vmatpush.bf16.msrb.mxu3 %v8594_v63  ;;  %6078 = vmatpush.bf16.msra.mxu1 %v7574_v40  ;;  %v7315_v63 = vld [vmem:[%s14716_s6 + $0x4d8] sm:$0xf0]  ;;  %v7129_v40 = vld [vmem:[%s14716_s6 + $0x320] sm:$0xf]  ;;  %v7578_v43 = vor.u32 %v9003_v29, %v7577_v0 }
 0x531   :  { %6067 = vmatpush.bf16.msra.mxu0 %v6934_v58  ;;  %6041 = vmatpush.bf16.msrb.mxu2 %v7954_v36  ;;  %v8891_v58 = vld [vmem:[%s14716_s6 + $0x35c] sm:$0xf0]  ;;  %v7318_v50 = vor.u32 %v8930_v30, %v7315_v63  ;;  %v8914_v36 = vld [vmem:[%s14716_s6 + $0x41c] sm:$0xf]  ;;  %v5786_v21 = vpop.f32.mrf.mxu2 }
 0x532   :  { %v5749_v34 = vpop.f32.mrf.mxu3  ;;  %v7130_v61 = vor.u32 %v8891_v58, %v7129_v40  ;;  %v5787_v33 = vadd.f32 %v5786_v21, %v5774_v6  ;;  %v7955_v30 = vld [vmem:[%s14716_s6 + $0x9d8] sm:$0xf0]  ;;  %v8971_v39 = vld [vmem:[%s14716_s6 + $0x5dc] sm:$0xf0] }
 0x533   :  { %v9234_v40 = vld [vmem:[%s14716_s6 + $0xe1c] sm:$0xf]  ;;  %v6809_v35 = vld [vmem:[%s14716_s6 + $0xa0] sm:$0xf] }
 0x534   :  { %6053 = vmatpush.bf16.msrb.mxu3 %v8530_v28  ;;  %6079 = vmatpush.bf16.msra.mxu1 %v7510_v44  ;;  %v7251_v28 = vld [vmem:[%s14716_s6 + $0x458] sm:$0xf0]  ;;  %v8811_v5 = vld [vmem:[%s14716_s6 + $0xdc] sm:$0xf0] }
 0x535   :  { %6068 = vmatpush.bf16.msra.mxu0 %v6870_v7  ;;  %6042 = vmatpush.bf16.msrb.mxu2 %v7890_v59  ;;  %v9282_v44 = vld [vmem:[%s14716_s6 + $0xf9c] sm:$0xf]  ;;  %v7254_v59 = vor.u32 %v8914_v36, %v7251_v28  ;;  %v8955_v6 = vld [vmem:[%s14716_s6 + $0x55c] sm:$0xf0] }
 0x536   :  { %v8723_v7 = vld [vmem:[%s14716_s6 + $0xfd8] sm:$0xf0]  ;;  %v8795_v27 = vld [vmem:[%s14716_s6 + $0x5c] sm:$0xf0] }
 0x537   :  { %v8726_v10 = vor.u32 %v9282_v44, %v8723_v7  ;;  %v8531_v58 = vld [vmem:[%s14716_s6 + $0xe58] sm:$0xf0]  ;;  %v8217_v54 = vld [vmem:[%s14716_s6 + $0xba0] sm:$0xf] }
 0x538   :  { %6054 = vmatpush.bf16.msrb.mxu3 %v8466_v14  ;;  %6080 = vmatpush.bf16.msra.mxu1 %v7446_v41  ;;  %v9122_v14 = vld [vmem:[%s14716_s6 + $0xa9c] sm:$0xf] }
 0x539   :  { %6069 = vmatpush.bf16.msra.mxu0 %v6806_v60  ;;  %6043 = vmatpush.bf16.msrb.mxu2 %v7826_v26  ;;  %v9266_v41 = vld [vmem:[%s14716_s6 + $0xf1c] sm:$0xf]  ;;  %v8086_v25 = vor.u32 %v9122_v14, %v8083_v45  ;;  %v7642_v26 = vor.u32 %v9019_v24, %v7641_v52  ;;  %v5788_v49 = vpop.f32.mrf.mxu2  ;;  %v7385_v52 = vld [vmem:[%s14716_s6 + $0x520] sm:$0xf] }
 0x53a   :  { %v8659_v60 = vld [vmem:[%s14716_s6 + $0xf58] sm:$0xf0]  ;;  %v5799_v13 = vpop.f32.mrf.mxu3  ;;  %v6745_v24 = vld [vmem:[%s14716_s6 + $0x20] sm:$0xf] }
 0x53b   :  { %v8662_v56 = vor.u32 %v9266_v41, %v8659_v60  ;;  %v5800_v2 = vadd.f32 %v5799_v13, %v5787_v33  ;;  %v7891_v36 = vld [vmem:[%s14716_s6 + $0x958] sm:$0xf0]  ;;  %v8899_v33 = vld [vmem:[%s14716_s6 + $0x3a4] sm:$0xf] }
 0x53c   :  { %6055 = vmatpush.bf16.msrb.mxu3 %v8402_v55  ;;  %6081 = vmatpush.bf16.msra.mxu1 %v7382_v4  ;;  %v8595_v55 = vld [vmem:[%s14716_s6 + $0xed8] sm:$0xf0]  ;;  %v6937_v4 = vld [vmem:[%s14716_s6 + $0x1a0] sm:$0xf] }
 0x53d   :  { %6070 = vmatpush.bf16.msra.mxu0 %v6742_v23  ;;  %6044 = vmatpush.bf16.msrb.mxu2 %v7762_v3  ;;  %v8843_v23 = vld [vmem:[%s14716_s6 + $0x1dc] sm:$0xf0]  ;;  %6532 = vst [vmem:[%s14717_s7 + $0x8] sm:$0xff] %v5800_v2  ;;  %v8598_v38 = vor.u32 %v9250_v48, %v8595_v55  ;;  %v9218_v44 = vld [vmem:[%s14716_s6 + $0xd9c] sm:$0xf] }
 0x53e   :  { %v6938_v3 = vor.u32 %v8843_v23, %v6937_v4  ;;  %v8467_v7 = vld [vmem:[%s14716_s6 + $0xdd8] sm:$0xf0]  ;;  %v9163_v48 = vld [vmem:[%s14716_s6 + $0xbdc] sm:$0xf0] }
 0x53f   :  { %v13048_v63 = vpop.f32.mrf.mxu0  ;;  %v7827_v14 = vld [vmem:[%s14716_s6 + $0x8d8] sm:$0xf0]  ;;  %v7321_v4 = vld [vmem:[%s14716_s6 + $0x4a0] sm:$0xf] }
 0x540   :  { %6056 = vmatpush.bf16.msrb.mxu3 %v8338_v51  ;;  %6082 = vmatpush.bf16.msra.mxu1 %v7318_v50  ;;  %v8987_v51 = vld [vmem:[%s14716_s6 + $0x65c] sm:$0xf0]  ;;  %v8534_v50 = vor.u32 %v9234_v40, %v8531_v58  ;;  %v9202_v41 = vld [vmem:[%s14716_s6 + $0xd1c] sm:$0xf]  ;;  %v8218_v40 = vor.u32 %v9163_v48, %v8217_v54  ;;  %v8835_v54 = vld [vmem:[%s14716_s6 + $0x1a4] sm:$0xf] }
 0x541   :  { %6115 = vmatpush.bf16.msrb.mxu0 %v7194_v8  ;;  %6089 = vmatpush.bf16.msra.mxu2 %v8214_v18  ;;  %v9090_v8 = vld [vmem:[%s14716_s6 + $0x99c] sm:$0xf]  ;;  %v7513_v18 = vld [vmem:[%s14716_s6 + $0x620] sm:$0xf] }
 0x542   :  { %6071 = vmatmul.bf16.vlgmr.msra.gmra.mxu0 %v11824_v12  ;;  %6045 = vmatmul.bf16.vlgmr.msrb.gmra.mxu2 %v11948_v57  ;;  %v7958_v19 = vor.u32 %v9090_v8, %v7955_v30  ;;  %v5801_v28 = vpop.f32.mrf.mxu3  ;;  %v7514_v34 = vor.u32 %v8987_v51, %v7513_v18  ;;  %v8403_v60 = vld [vmem:[%s14716_s6 + $0xd58] sm:$0xf0]  ;;  %v8939_v23 = vld [vmem:[%s14716_s6 + $0x4dc] sm:$0xf0] }
 0x543   :  { %v8406_v37 = vor.u32 %v9202_v41, %v8403_v60  ;;  %v7763_v20 = vld [vmem:[%s14716_s6 + $0x858] sm:$0xf0]  ;;  %v8153_v30 = vld [vmem:[%s14716_s6 + $0xb20] sm:$0xf]  ;;  %v7643_v41 = vld [vmem:[%s14716_s6 + $0x760] sm:$0xf0] }
 0x544   :  { %6057 = vmatpush.bf16.msrb.mxu3 %v8274_v22  ;;  %6083 = vmatpush.bf16.msra.mxu1 %v7254_v59  ;;  %v13092_v21 = vpop.f32.mrf.mxu1  ;;  %v7894_v22 = vor.u32 %v9074_v16, %v7891_v36  ;;  %v8470_v59 = vor.u32 %v9218_v44, %v8467_v7  ;;  %v9186_v55 = vld [vmem:[%s14716_s6 + $0xc9c] sm:$0xf]  ;;  %v7766_v8 = vor.u32 %v9042_v46, %v7763_v20  ;;  %v9147_v18 = vld [vmem:[%s14716_s6 + $0xb5c] sm:$0xf0]  ;;  %v8867_v44 = vld [vmem:[%s14716_s6 + $0x2a4] sm:$0xf] }
 0x545   :  { %6116 = vmatpush.bf16.msrb.mxu0 %v7130_v61  ;;  %6090 = vmatpush.bf16.msra.mxu2 %v8150_v17  ;;  %v6874_v61 = vor.u32 %v8827_v9, %v6873_v53  ;;  %v5838_v17 = vpop.f32.mrf.mxu2  ;;  %v8339_v0 = vld [vmem:[%s14716_s6 + $0xcd8] sm:$0xf0]  ;;  %v7322_v9 = vor.u32 %v8939_v23, %v7321_v4  ;;  %v8729_v36 = vld [vmem:[%s14716_s6 + $0xfa0] sm:$0xf]  ;;  %v7067_v7 = vld [vmem:[%s14716_s6 + $0x2e0] sm:$0xf0] }
 0x546   :  { %v5839_v13 = vadd.f32 %v5838_v17, %v5826_v11  ;;  %v8342_v58 = vor.u32 %v9186_v55, %v8339_v0  ;;  %v9170_v51 = vld [vmem:[%s14716_s6 + $0xc1c] sm:$0xf]  ;;  %v9291_v28 = vld [vmem:[%s14716_s6 + $0xfdc] sm:$0xf0]  ;;  %v8851_v60 = vld [vmem:[%s14716_s6 + $0x224] sm:$0xf] }
 0x547   :  { %6058 = vmatmul.bf16.vlgmr.msrb.gmra.mxu3 %v11998_v42  ;;  %6084 = vmatmul.bf16.vlgmr.msra.gmra.mxu1 %v11861_v31  ;;  %v5866_v45 = vpop.f32.mrf.mxu0  ;;  %v8275_v53 = vld [vmem:[%s14716_s6 + $0xc58] sm:$0xf0]  ;;  %v8089_v17 = vld [vmem:[%s14716_s6 + $0xaa0] sm:$0xf]  ;;  %v8995_v46 = vld [vmem:[%s14716_s6 + $0x6a4] sm:$0xf] }
 0x548   :  { %6102 = vmatpush.bf16.msra.mxu3 %v8726_v10  ;;  %6128 = vmatpush.bf16.msrb.mxu1 %v7706_v32  ;;  %v9058_v10 = vld [vmem:[%s14716_s6 + $0x89c] sm:$0xf]  ;;  %v7450_v32 = vor.u32 %v8971_v39, %v7449_v47  ;;  %v8154_v47 = vor.u32 %v9147_v18, %v8153_v30  ;;  %v8278_v39 = vor.u32 %v9170_v51, %v8275_v53  ;;  %v8665_v45 = vld [vmem:[%s14716_s6 + $0xf20] sm:$0xf]  ;;  %v7579_v20 = vld [vmem:[%s14716_s6 + $0x6e0] sm:$0xf0] }
 0x549   :  { %6117 = vmatpush.bf16.msrb.mxu0 %v7066_v15  ;;  %6091 = vmatpush.bf16.msra.mxu2 %v8086_v25  ;;  %v6810_v15 = vor.u32 %v8811_v5, %v6809_v35  ;;  %v7830_v25 = vor.u32 %v9058_v10, %v7827_v14  ;;  %v8730_v5 = vor.u32 %v9291_v28, %v8729_v36  ;;  %v9115_v11 = vld [vmem:[%s14716_s6 + $0xa5c] sm:$0xf0] }
 0x54a   :  { %v7070_v14 = vor.u32 %v8867_v44, %v7067_v7  ;;  %v7961_v48 = vld [vmem:[%s14716_s6 + $0x9a0] sm:$0xf] }
 0x54b   :  { %v9099_v55 = vld [vmem:[%s14716_s6 + $0x9dc] sm:$0xf0] }
 0x54c   :  { %6103 = vmatpush.bf16.msra.mxu3 %v8662_v56  ;;  %6129 = vmatpush.bf16.msrb.mxu1 %v7642_v26  ;;  %v7195_v56 = vld [vmem:[%s14716_s6 + $0x3e0] sm:$0xf0]  ;;  %v7386_v26 = vor.u32 %v8955_v6, %v7385_v52  ;;  %v5851_v2 = vpop.f32.mrf.mxu3  ;;  %v8537_v4 = vld [vmem:[%s14716_s6 + $0xe20] sm:$0xf]  ;;  %v7962_v30 = vor.u32 %v9099_v55, %v7961_v48  ;;  %v7137_v55 = vld [vmem:[%s14716_s6 + $0x328] sm:$0xf] }
 0x54d   :  { %6118 = vmatpush.bf16.msrb.mxu0 %v7002_v1  ;;  %6092 = vmatpush.bf16.msra.mxu2 %v8022_v62  ;;  %v6746_v1 = vor.u32 %v8795_v27, %v6745_v24  ;;  %v7198_v29 = vor.u32 %v8899_v33, %v7195_v56  ;;  %v5852_v49 = vadd.f32 %v5851_v2, %v5839_v13  ;;  %v5879_v62 = vpop.f32.mrf.mxu1  ;;  %v7003_v52 = vld [vmem:[%s14716_s6 + $0x260] sm:$0xf0]  ;;  %v8025_v27 = vld [vmem:[%s14716_s6 + $0xa20] sm:$0xf] }
 0x54e   :  { %v7006_v33 = vor.u32 %v8851_v60, %v7003_v52  ;;  %v8601_v56 = vld [vmem:[%s14716_s6 + $0xea0] sm:$0xf]  ;;  %v6939_v13 = vld [vmem:[%s14716_s6 + $0x1e0] sm:$0xf0]  ;;  %v7582_v2 = vor.u32 %v8995_v46, %v7579_v20 }
 0x54f   :  { %6533 = vst [vmem:[%s14717_s7 + $0x10] sm:$0xff] %v5852_v49  ;;  %v9243_v23 = vld [vmem:[%s14716_s6 + $0xe5c] sm:$0xf0]  ;;  %v8979_v49 = vld [vmem:[%s14716_s6 + $0x624] sm:$0xf] }
 0x550   :  { %6104 = vmatpush.bf16.msra.mxu3 %v8598_v38  ;;  %6130 = vmatpush.bf16.msrb.mxu1 %v7578_v43  ;;  %v5840_v38 = vpop.f32.mrf.mxu2  ;;  %v8883_v43 = vld [vmem:[%s14716_s6 + $0x324] sm:$0xf]  ;;  %v8473_v51 = vld [vmem:[%s14716_s6 + $0xda0] sm:$0xf] }
 0x551   :  { %6119 = vmatpush.bf16.msrb.mxu0 %v6938_v3  ;;  %6093 = vmatpush.bf16.msra.mxu2 %v7958_v19  ;;  %v7131_v3 = vld [vmem:[%s14716_s6 + $0x360] sm:$0xf0]  ;;  %v7257_v19 = vld [vmem:[%s14716_s6 + $0x420] sm:$0xf] }
 0x552   :  { %v7134_v16 = vor.u32 %v8883_v43, %v7131_v3  ;;  %v7515_v62 = vld [vmem:[%s14716_s6 + $0x660] sm:$0xf0]  ;;  %v8538_v43 = vor.u32 %v9243_v23, %v8537_v4  ;;  %v7897_v3 = vld [vmem:[%s14716_s6 + $0x920] sm:$0xf] }
 0x553   :  { %v8819_v38 = vld [vmem:[%s14716_s6 + $0x124] sm:$0xf]  ;;  %v9227_v53 = vld [vmem:[%s14716_s6 + $0xddc] sm:$0xf0] }
 0x554   :  { %6105 = vmatpush.bf16.msra.mxu3 %v8534_v50  ;;  %6131 = vmatpush.bf16.msrb.mxu1 %v7514_v34  ;;  %v8923_v50 = vld [vmem:[%s14716_s6 + $0x45c] sm:$0xf0]  ;;  %v9027_v34 = vld [vmem:[%s14716_s6 + $0x7a4] sm:$0xf] }
 0x555   :  { %6120 = vmatpush.bf16.msrb.mxu0 %v6874_v61  ;;  %6094 = vmatpush.bf16.msra.mxu2 %v7894_v22  ;;  %v7707_v61 = vld [vmem:[%s14716_s6 + $0x7e0] sm:$0xf0]  ;;  %v7258_v35 = vor.u32 %v8923_v50, %v7257_v19  ;;  %v9131_v22 = vld [vmem:[%s14716_s6 + $0xadc] sm:$0xf0] }
 0x556   :  { %v7710_v10 = vor.u32 %v9027_v34, %v7707_v61  ;;  %v8090_v6 = vor.u32 %v9131_v22, %v8089_v17  ;;  %v7451_v19 = vld [vmem:[%s14716_s6 + $0x5e0] sm:$0xf0]  ;;  %v8474_v61 = vor.u32 %v9227_v53, %v8473_v51  ;;  %v7833_v44 = vld [vmem:[%s14716_s6 + $0x8a0] sm:$0xf]  ;;  %v7073_v51 = vld [vmem:[%s14716_s6 + $0x2a8] sm:$0xf] }
 0x557   :  { %v8803_v50 = vld [vmem:[%s14716_s6 + $0xa4] sm:$0xf]  ;;  %v9067_v7 = vld [vmem:[%s14716_s6 + $0x8dc] sm:$0xf0]  ;;  %v8876_v53 = vld [vmem:[%s14716_s6 + $0x2e4] sm:$0xf0] }
 0x558   :  { %6106 = vmatpush.bf16.msra.mxu3 %v8470_v59  ;;  %6132 = vmatpush.bf16.msrb.mxu1 %v7450_v32  ;;  %v5853_v59 = vpop.f32.mrf.mxu3  ;;  %v9275_v32 = vld [vmem:[%s14716_s6 + $0xf5c] sm:$0xf0]  ;;  %v8947_v22 = vld [vmem:[%s14716_s6 + $0x524] sm:$0xf] }
 0x559   :  { %6121 = vmatpush.bf16.msrb.mxu0 %v6810_v15  ;;  %6095 = vmatpush.bf16.msra.mxu2 %v7830_v25  ;;  %v9011_v15 = vld [vmem:[%s14716_s6 + $0x724] sm:$0xf]  ;;  %v8666_v24 = vor.u32 %v9275_v32, %v8665_v45  ;;  %v9211_v17 = vld [vmem:[%s14716_s6 + $0xd5c] sm:$0xf0]  ;;  %v5878_v59 = vadd.f32 %v13092_v21, %v13048_v63  ;;  %v7834_v32 = vor.u32 %v9067_v7, %v7833_v44  ;;  %v8908_v63 = vld [vmem:[%s14716_s6 + $0x3e4] sm:$0xf0] }
 0x55a   :  { %v7646_v25 = vor.u32 %v9011_v15, %v7643_v41  ;;  %v6747_v45 = vld [vmem:[%s14716_s6 + $0x60] sm:$0xf0]  ;;  %v7201_v15 = vld [vmem:[%s14716_s6 + $0x3a8] sm:$0xf]  ;;  %v7769_v60 = vld [vmem:[%s14716_s6 + $0x820] sm:$0xf]  ;;  %v7074_v7 = vor.u32 %v8876_v53, %v7073_v51 }
 0x55b   :  { %v9051_v52 = vld [vmem:[%s14716_s6 + $0x85c] sm:$0xf0]  ;;  %v7202_v46 = vor.u32 %v8908_v63, %v7201_v15  ;;  %v8931_v20 = vld [vmem:[%s14716_s6 + $0x4a4] sm:$0xf] }
 0x55c   :  { %6107 = vmatpush.bf16.msra.mxu3 %v8406_v37  ;;  %6133 = vmatpush.bf16.msrb.mxu1 %v7386_v26  ;;  %v9259_v37 = vld [vmem:[%s14716_s6 + $0xedc] sm:$0xf0]  ;;  %v8026_v26 = vor.u32 %v9115_v11, %v8025_v27  ;;  %v9139_v48 = vld [vmem:[%s14716_s6 + $0xb24] sm:$0xf] }
 0x55d   :  { %6122 = vmatpush.bf16.msrb.mxu0 %v6746_v1  ;;  %6096 = vmatpush.bf16.msra.mxu2 %v7766_v8  ;;  %v8602_v1 = vor.u32 %v9259_v37, %v8601_v56  ;;  %v6875_v8 = vld [vmem:[%s14716_s6 + $0x160] sm:$0xf0]  ;;  %v9195_v56 = vld [vmem:[%s14716_s6 + $0xcdc] sm:$0xf0] }
 0x55e   :  { %v6878_v18 = vor.u32 %v8819_v38, %v6875_v8  ;;  %v8155_v23 = vld [vmem:[%s14716_s6 + $0xb60] sm:$0xf0]  ;;  %v9179_v38 = vld [vmem:[%s14716_s6 + $0xc5c] sm:$0xf0] }
 0x55f   :  { %v13253_v0 = vpop.f32.mrf.mxu0  ;;  %v8915_v8 = vld [vmem:[%s14716_s6 + $0x424] sm:$0xf] }
 0x560   :  { %6108 = vmatpush.bf16.msra.mxu3 %v8342_v58  ;;  %6134 = vmatpush.bf16.msrb.mxu1 %v7322_v9  ;;  %v7518_v58 = vor.u32 %v8979_v49, %v7515_v62  ;;  %v8963_v9 = vld [vmem:[%s14716_s6 + $0x5a4] sm:$0xf]  ;;  %v8281_v49 = vld [vmem:[%s14716_s6 + $0xc20] sm:$0xf] }
 0x561   :  { %6167 = vmatpush.bf16.msra.mxu0 %v7198_v29  ;;  %6141 = vmatpush.bf16.msrb.mxu2 %v8218_v40  ;;  %v6942_v29 = vor.u32 %v8835_v54, %v6939_v13  ;;  %v9083_v40 = vld [vmem:[%s14716_s6 + $0x95c] sm:$0xf0]  ;;  %v5890_v36 = vpop.f32.mrf.mxu2  ;;  %v7323_v54 = vld [vmem:[%s14716_s6 + $0x4e0] sm:$0xf0] }
 0x562   :  { %6123 = vmatmul.bf16.vlgmr.msrb.gmra.mxu0 %v11824_v12  ;;  %6097 = vmatmul.bf16.vlgmr.msra.gmra.mxu2 %v11948_v57  ;;  %v7898_v34 = vor.u32 %v9083_v40, %v7897_v3  ;;  %v5891_v21 = vadd.f32 %v5890_v36, %v5878_v59  ;;  %v7326_v62 = vor.u32 %v8931_v20, %v7323_v54  ;;  %v9283_v3 = vld [vmem:[%s14716_s6 + $0xfa4] sm:$0xf]  ;;  %v7521_v54 = vld [vmem:[%s14716_s6 + $0x628] sm:$0xf] }
 0x563   :  { %v8731_v40 = vld [vmem:[%s14716_s6 + $0xfe0] sm:$0xf0] }
 0x564   :  { %6109 = vmatpush.bf16.msra.mxu3 %v8278_v39  ;;  %6135 = vmatpush.bf16.msrb.mxu1 %v7258_v35  ;;  %v13297_v28 = vpop.f32.mrf.mxu1  ;;  %v7454_v39 = vor.u32 %v8963_v9, %v7451_v19  ;;  %v8158_v9 = vor.u32 %v9139_v48, %v8155_v23  ;;  %v8282_v19 = vor.u32 %v9179_v38, %v8281_v49  ;;  %v9251_v63 = vld [vmem:[%s14716_s6 + $0xea4] sm:$0xf]  ;;  %v7457_v38 = vld [vmem:[%s14716_s6 + $0x5a8] sm:$0xf] }
 0x565   :  { %6168 = vmatpush.bf16.msra.mxu0 %v7134_v16  ;;  %6142 = vmatpush.bf16.msrb.mxu2 %v8154_v47  ;;  %v6811_v16 = vld [vmem:[%s14716_s6 + $0xe0] sm:$0xf0]  ;;  %v8734_v36 = vor.u32 %v9283_v3, %v8731_v40 }
 0x566   :  { %v6814_v35 = vor.u32 %v8803_v50, %v6811_v16  ;;  %v8539_v20 = vld [vmem:[%s14716_s6 + $0xe60] sm:$0xf0] }
 0x567   :  { %6110 = vmatmul.bf16.vlgmr.msra.gmra.mxu3 %v11998_v42  ;;  %6136 = vmatmul.bf16.vlgmr.msrb.gmra.mxu1 %v11861_v31  ;;  %v5918_v47 = vpop.f32.mrf.mxu0  ;;  %v9219_v49 = vld [vmem:[%s14716_s6 + $0xda4] sm:$0xf] }
 0x568   :  { %6154 = vmatpush.bf16.msrb.mxu3 %v8730_v5  ;;  %6180 = vmatpush.bf16.msra.mxu1 %v7710_v10  ;;  %v8409_v5 = vld [vmem:[%s14716_s6 + $0xd20] sm:$0xf]  ;;  %v7387_v10 = vld [vmem:[%s14716_s6 + $0x560] sm:$0xf0] }
 0x569   :  { %6169 = vmatpush.bf16.msra.mxu0 %v7070_v14  ;;  %6143 = vmatpush.bf16.msrb.mxu2 %v8090_v6  ;;  %v8787_v14 = vld [vmem:[%s14716_s6 + $0x24] sm:$0xf]  ;;  %v8410_v41 = vor.u32 %v9211_v17, %v8409_v5  ;;  %v7390_v27 = vor.u32 %v8947_v22, %v7387_v10  ;;  %v5892_v13 = vpop.f32.mrf.mxu2  ;;  %v9020_v5 = vld [vmem:[%s14716_s6 + $0x764] sm:$0xf0] }
 0x56a   :  { %v9155_v6 = vld [vmem:[%s14716_s6 + $0xba4] sm:$0xf]  ;;  %v6750_v11 = vor.u32 %v8787_v14, %v6747_v45  ;;  %v7009_v17 = vld [vmem:[%s14716_s6 + $0x228] sm:$0xf] }
 0x56b   :  { %v9267_v47 = vld [vmem:[%s14716_s6 + $0xf24] sm:$0xf]  ;;  %v8860_v22 = vld [vmem:[%s14716_s6 + $0x264] sm:$0xf0] }
 0x56c   :  { %6155 = vmatpush.bf16.msrb.mxu3 %v8666_v24  ;;  %6181 = vmatpush.bf16.msra.mxu1 %v7646_v25  ;;  %v5903_v24 = vpop.f32.mrf.mxu3  ;;  %v8219_v25 = vld [vmem:[%s14716_s6 + $0xbe0] sm:$0xf0]  ;;  %v7010_v15 = vor.u32 %v8860_v22, %v7009_v17  ;;  %v8988_v13 = vld [vmem:[%s14716_s6 + $0x664] sm:$0xf0] }
 0x56d   :  { %6170 = vmatpush.bf16.msra.mxu0 %v7006_v33  ;;  %6144 = vmatpush.bf16.msrb.mxu2 %v8026_v26  ;;  %v8345_v33 = vld [vmem:[%s14716_s6 + $0xca0] sm:$0xf]  ;;  %v5904_v37 = vadd.f32 %v5903_v24, %v5891_v21  ;;  %v5931_v26 = vpop.f32.mrf.mxu1  ;;  %v9107_v14 = vld [vmem:[%s14716_s6 + $0xa24] sm:$0xf] }
 0x56e   :  { %v8346_v4 = vor.u32 %v9195_v56, %v8345_v33  ;;  %v8027_v45 = vld [vmem:[%s14716_s6 + $0xa60] sm:$0xf0]  ;;  %v6881_v26 = vld [vmem:[%s14716_s6 + $0x128] sm:$0xf] }
 0x56f   :  { %6534 = vst [vmem:[%s14717_s7 + $0x18] sm:$0xff] %v5904_v37  ;;  %v8603_v21 = vld [vmem:[%s14716_s6 + $0xee0] sm:$0xf0]  ;;  %v8030_v24 = vor.u32 %v9107_v14, %v8027_v45 }
 0x570   :  { %6156 = vmatpush.bf16.msrb.mxu3 %v8602_v1  ;;  %6182 = vmatpush.bf16.msra.mxu1 %v7582_v2  ;;  %v7770_v1 = vor.u32 %v9051_v52, %v7769_v60  ;;  %v8892_v2 = vld [vmem:[%s14716_s6 + $0x364] sm:$0xf0]  ;;  %v9059_v51 = vld [vmem:[%s14716_s6 + $0x8a4] sm:$0xf] }
 0x571   :  { %6171 = vmatpush.bf16.msra.mxu0 %v6942_v29  ;;  %6145 = vmatpush.bf16.msrb.mxu2 %v7962_v30  ;;  %v8222_v29 = vor.u32 %v9155_v6, %v8219_v25  ;;  %v7259_v30 = vld [vmem:[%s14716_s6 + $0x460] sm:$0xf0]  ;;  %v9004_v60 = vld [vmem:[%s14716_s6 + $0x6e4] sm:$0xf0] }
 0x572   :  { %v7262_v16 = vor.u32 %v8915_v8, %v7259_v30  ;;  %v6945_v52 = vld [vmem:[%s14716_s6 + $0x1a8] sm:$0xf]  ;;  %v7963_v25 = vld [vmem:[%s14716_s6 + $0x9e0] sm:$0xf0] }
 0x573   :  { %v8844_v6 = vld [vmem:[%s14716_s6 + $0x1e4] sm:$0xf0]  ;;  %v7835_v53 = vld [vmem:[%s14716_s6 + $0x8e0] sm:$0xf0] }
 0x574   :  { %6157 = vmatpush.bf16.msrb.mxu3 %v8538_v43  ;;  %6183 = vmatpush.bf16.msra.mxu1 %v7518_v58  ;;  %v7138_v43 = vor.u32 %v8892_v2, %v7137_v55  ;;  %v7713_v58 = vld [vmem:[%s14716_s6 + $0x7a8] sm:$0xf]  ;;  %v5905_v50 = vpop.f32.mrf.mxu3  ;;  %v6946_v37 = vor.u32 %v8844_v6, %v6945_v52  ;;  %v9075_v2 = vld [vmem:[%s14716_s6 + $0x924] sm:$0xf] }
 0x575   :  { %6172 = vmatpush.bf16.msra.mxu0 %v6878_v18  ;;  %6146 = vmatpush.bf16.msrb.mxu2 %v7898_v34  ;;  %v9036_v18 = vld [vmem:[%s14716_s6 + $0x7e4] sm:$0xf0]  ;;  %v9123_v34 = vld [vmem:[%s14716_s6 + $0xaa4] sm:$0xf] }
 0x576   :  { %v7714_v44 = vor.u32 %v9036_v18, %v7713_v58  ;;  %v8972_v8 = vld [vmem:[%s14716_s6 + $0x5e4] sm:$0xf0]  ;;  %v9043_v17 = vld [vmem:[%s14716_s6 + $0x824] sm:$0xf] }
 0x577   :  { %v6817_v30 = vld [vmem:[%s14716_s6 + $0xa8] sm:$0xf]  ;;  %v7771_v22 = vld [vmem:[%s14716_s6 + $0x860] sm:$0xf0] }
 0x578   :  { %6158 = vmatpush.bf16.msrb.mxu3 %v8474_v61  ;;  %6184 = vmatpush.bf16.msra.mxu1 %v7454_v39  ;;  %v8091_v61 = vld [vmem:[%s14716_s6 + $0xae0] sm:$0xf0]  ;;  %v8940_v52 = vld [vmem:[%s14716_s6 + $0x4e4] sm:$0xf0]  ;;  %v7774_v6 = vor.u32 %v9043_v17, %v7771_v22  ;;  %v7587_v17 = vld [vmem:[%s14716_s6 + $0x6e8] sm:$0xf0] }
 0x579   :  { %6173 = vmatpush.bf16.msra.mxu0 %v6814_v35  ;;  %6147 = vmatpush.bf16.msrb.mxu2 %v7834_v32  ;;  %v8667_v39 = vld [vmem:[%s14716_s6 + $0xf60] sm:$0xf0]  ;;  %v7649_v35 = vld [vmem:[%s14716_s6 + $0x728] sm:$0xf]  ;;  %v8094_v59 = vor.u32 %v9123_v34, %v8091_v61  ;;  %v5930_v61 = vadd.f32 %v13297_v28, %v13253_v0  ;;  %v7203_v0 = vld [vmem:[%s14716_s6 + $0x3e8] sm:$0xf0] }
 0x57a   :  { %v8670_v10 = vor.u32 %v9267_v47, %v8667_v39  ;;  %v7650_v32 = vor.u32 %v9020_v5, %v7649_v35  ;;  %v7393_v34 = vld [vmem:[%s14716_s6 + $0x528] sm:$0xf]  ;;  %v7838_v39 = vor.u32 %v9059_v51, %v7835_v53  ;;  %v8900_v35 = vld [vmem:[%s14716_s6 + $0x3ac] sm:$0xf] }
 0x57b   :  { %v8796_v47 = vld [vmem:[%s14716_s6 + $0x64] sm:$0xf0]  ;;  %v8836_v22 = vld [vmem:[%s14716_s6 + $0x1ac] sm:$0xf] }
 0x57c   :  { %6159 = vmatpush.bf16.msrb.mxu3 %v8410_v41  ;;  %6185 = vmatpush.bf16.msra.mxu1 %v7390_v27  ;;  %v7585_v41 = vld [vmem:[%s14716_s6 + $0x6a8] sm:$0xf]  ;;  %v8606_v27 = vor.u32 %v9251_v63, %v8603_v21  ;;  %v8347_v63 = vld [vmem:[%s14716_s6 + $0xce0] sm:$0xf0] }
 0x57d   :  { %6174 = vmatpush.bf16.msra.mxu0 %v6750_v11  ;;  %6148 = vmatpush.bf16.msrb.mxu2 %v7770_v1  ;;  %v9091_v11 = vld [vmem:[%s14716_s6 + $0x9a4] sm:$0xf]  ;;  %v7586_v56 = vor.u32 %v9004_v60, %v7585_v41  ;;  %v8828_v1 = vld [vmem:[%s14716_s6 + $0x164] sm:$0xf0]  ;;  %v7206_v41 = vor.u32 %v8900_v35, %v7203_v0 }
 0x57e   :  { %v7966_v48 = vor.u32 %v9091_v11, %v7963_v25  ;;  %v6882_v23 = vor.u32 %v8828_v1, %v6881_v26  ;;  %v7329_v60 = vld [vmem:[%s14716_s6 + $0x4a8] sm:$0xf]  ;;  %v7139_v11 = vld [vmem:[%s14716_s6 + $0x368] sm:$0xf0]  ;;  %v8283_v26 = vld [vmem:[%s14716_s6 + $0xc60] sm:$0xf0] }
 0x57f   :  { %v13458_v33 = vpop.f32.mrf.mxu0  ;;  %v7265_v1 = vld [vmem:[%s14716_s6 + $0x428] sm:$0xf] }
 0x580   :  { %6160 = vmatpush.bf16.msrb.mxu3 %v8346_v4  ;;  %6186 = vmatpush.bf16.msra.mxu1 %v7326_v62  ;;  %v7522_v4 = vor.u32 %v8988_v13, %v7521_v54  ;;  %v8475_v62 = vld [vmem:[%s14716_s6 + $0xde0] sm:$0xf0]  ;;  %v7330_v13 = vor.u32 %v8940_v52, %v7329_v60  ;;  %v8609_v0 = vld [vmem:[%s14716_s6 + $0xea8] sm:$0xf]  ;;  %v8980_v52 = vld [vmem:[%s14716_s6 + $0x62c] sm:$0xf] }
 0x581   :  { %6219 = vmatpush.bf16.msrb.mxu0 %v7202_v46  ;;  %6193 = vmatpush.bf16.msra.mxu2 %v8222_v29  ;;  %v9235_v46 = vld [vmem:[%s14716_s6 + $0xe24] sm:$0xf]  ;;  %v8478_v18 = vor.u32 %v9219_v49, %v8475_v62  ;;  %v8868_v49 = vld [vmem:[%s14716_s6 + $0x2ac] sm:$0xf]  ;;  %v9244_v60 = vld [vmem:[%s14716_s6 + $0xe64] sm:$0xf0] }
 0x582   :  { %6175 = vmatmul.bf16.vlgmr.msra.gmra.mxu0 %v11824_v12  ;;  %6149 = vmatmul.bf16.vlgmr.msrb.gmra.mxu2 %v11948_v57  ;;  %v8542_v55 = vor.u32 %v9235_v46, %v8539_v20  ;;  %v7899_v29 = vld [vmem:[%s14716_s6 + $0x960] sm:$0xf0]  ;;  %v9148_v20 = vld [vmem:[%s14716_s6 + $0xb64] sm:$0xf0]  ;;  %v7075_v62 = vld [vmem:[%s14716_s6 + $0x2e8] sm:$0xf0] }
 0x583   :  { %v7902_v3 = vor.u32 %v9075_v2, %v7899_v29  ;;  %v9171_v54 = vld [vmem:[%s14716_s6 + $0xc24] sm:$0xf]  ;;  %v8737_v2 = vld [vmem:[%s14716_s6 + $0xfa8] sm:$0xf]  ;;  %v7078_v53 = vor.u32 %v8868_v49, %v7075_v62 }
 0x584   :  { %6161 = vmatpush.bf16.msrb.mxu3 %v8282_v19  ;;  %6187 = vmatpush.bf16.msra.mxu1 %v7262_v16  ;;  %v13502_v58 = vpop.f32.mrf.mxu1  ;;  %v7458_v19 = vor.u32 %v8972_v8, %v7457_v38  ;;  %v9203_v16 = vld [vmem:[%s14716_s6 + $0xd24] sm:$0xf]  ;;  %v9292_v29 = vld [vmem:[%s14716_s6 + $0xfe4] sm:$0xf0]  ;;  %v8286_v8 = vor.u32 %v9171_v54, %v8283_v26  ;;  %v8964_v26 = vld [vmem:[%s14716_s6 + $0x5ac] sm:$0xf] }
 0x585   :  { %6220 = vmatpush.bf16.msrb.mxu0 %v7138_v43  ;;  %6194 = vmatpush.bf16.msra.mxu2 %v8158_v9  ;;  %v8812_v43 = vld [vmem:[%s14716_s6 + $0xe4] sm:$0xf0]  ;;  %v5942_v40 = vpop.f32.mrf.mxu2 }
 0x586   :  { %v6818_v50 = vor.u32 %v8812_v43, %v6817_v30  ;;  %v5943_v28 = vadd.f32 %v5942_v40, %v5930_v61  ;;  %v8097_v40 = vld [vmem:[%s14716_s6 + $0xaa8] sm:$0xf] }
 0x587   :  { %6162 = vmatmul.bf16.vlgmr.msrb.gmra.mxu3 %v11998_v42  ;;  %6188 = vmatmul.bf16.vlgmr.msra.gmra.mxu1 %v11861_v31  ;;  %v5970_v9 = vpop.f32.mrf.mxu0  ;;  %v8481_v54 = vld [vmem:[%s14716_s6 + $0xda8] sm:$0xf] }
 0x588   :  { %6206 = vmatpush.bf16.msra.mxu3 %v8734_v36  ;;  %6232 = vmatpush.bf16.msrb.mxu1 %v7714_v44  ;;  %v8411_v36 = vld [vmem:[%s14716_s6 + $0xd60] sm:$0xf0]  ;;  %v8956_v44 = vld [vmem:[%s14716_s6 + $0x564] sm:$0xf0] }
 0x589   :  { %6221 = vmatpush.bf16.msrb.mxu0 %v7074_v7  ;;  %6195 = vmatpush.bf16.msra.mxu2 %v8094_v59  ;;  %v6753_v7 = vld [vmem:[%s14716_s6 + $0x28] sm:$0xf]  ;;  %v8414_v5 = vor.u32 %v9203_v16, %v8411_v36  ;;  %v7394_v14 = vor.u32 %v8956_v44, %v7393_v34  ;;  %v7651_v16 = vld [vmem:[%s14716_s6 + $0x768] sm:$0xf0] }
 0x58a   :  { %v8225_v59 = vld [vmem:[%s14716_s6 + $0xba8] sm:$0xf]  ;;  %v6754_v45 = vor.u32 %v8796_v47, %v6753_v7  ;;  %v8852_v36 = vld [vmem:[%s14716_s6 + $0x22c] sm:$0xf] }
 0x58b   :  { %v8673_v9 = vld [vmem:[%s14716_s6 + $0xf28] sm:$0xf]  ;;  %v7011_v34 = vld [vmem:[%s14716_s6 + $0x268] sm:$0xf0] }
 0x58c   :  { %6207 = vmatpush.bf16.msra.mxu3 %v8670_v10  ;;  %6233 = vmatpush.bf16.msrb.mxu1 %v7650_v32  ;;  %v5955_v10 = vpop.f32.mrf.mxu3  ;;  %v9164_v32 = vld [vmem:[%s14716_s6 + $0xbe4] sm:$0xf0]  ;;  %v7014_v35 = vor.u32 %v8852_v36, %v7011_v34 }
 0x58d   :  { %6222 = vmatpush.bf16.msrb.mxu0 %v7010_v15  ;;  %6196 = vmatpush.bf16.msra.mxu2 %v8030_v24  ;;  %v9187_v15 = vld [vmem:[%s14716_s6 + $0xca4] sm:$0xf]  ;;  %v5956_v21 = vadd.f32 %v5955_v10, %v5943_v28  ;;  %v8161_v24 = vld [vmem:[%s14716_s6 + $0xb28] sm:$0xf]  ;;  %v5944_v25 = vpop.f32.mrf.mxu2 }
 0x58e   :  { %v8350_v46 = vor.u32 %v9187_v15, %v8347_v63  ;;  %v8162_v38 = vor.u32 %v9148_v20, %v8161_v24  ;;  %v8033_v7 = vld [vmem:[%s14716_s6 + $0xa28] sm:$0xf]  ;;  %v8820_v24 = vld [vmem:[%s14716_s6 + $0x12c] sm:$0xf] }
 0x58f   :  { %6535 = vst [vmem:[%s14717_s7 + $0x20] sm:$0xff] %v5956_v21  ;;  %v9116_v47 = vld [vmem:[%s14716_s6 + $0xa64] sm:$0xf0] }
 0x590   :  { %6208 = vmatpush.bf16.msra.mxu3 %v8606_v27  ;;  %6234 = vmatpush.bf16.msrb.mxu1 %v7586_v56  ;;  %v8884_v27 = vld [vmem:[%s14716_s6 + $0x32c] sm:$0xf]  ;;  %v5983_v56 = vpop.f32.mrf.mxu1  ;;  %v9260_v28 = vld [vmem:[%s14716_s6 + $0xee4] sm:$0xf0]  ;;  %v8034_v10 = vor.u32 %v9116_v47, %v8033_v7 }
 0x591   :  { %6223 = vmatpush.bf16.msrb.mxu0 %v6946_v37  ;;  %6197 = vmatpush.bf16.msra.mxu2 %v7966_v48  ;;  %v8226_v37 = vor.u32 %v9164_v32, %v8225_v59  ;;  %v8924_v48 = vld [vmem:[%s14716_s6 + $0x464] sm:$0xf0]  ;;  %v6947_v59 = vld [vmem:[%s14716_s6 + $0x1e8] sm:$0xf0] }
 0x592   :  { %v7266_v43 = vor.u32 %v8924_v48, %v7265_v1  ;;  %v9100_v32 = vld [vmem:[%s14716_s6 + $0x9e4] sm:$0xf0]  ;;  %v6950_v21 = vor.u32 %v8836_v22, %v6947_v59  ;;  %v7459_v1 = vld [vmem:[%s14716_s6 + $0x5e8] sm:$0xf0] }
 0x593   :  { %v7905_v56 = vld [vmem:[%s14716_s6 + $0x928] sm:$0xf]  ;;  %v8804_v48 = vld [vmem:[%s14716_s6 + $0xac] sm:$0xf] }
 0x594   :  { %6209 = vmatpush.bf16.msra.mxu3 %v8542_v55  ;;  %6235 = vmatpush.bf16.msrb.mxu1 %v7522_v4  ;;  %v7142_v55 = vor.u32 %v8884_v27, %v7139_v11  ;;  %v9028_v4 = vld [vmem:[%s14716_s6 + $0x7ac] sm:$0xf]  ;;  %v5957_v30 = vpop.f32.mrf.mxu3  ;;  %v7841_v49 = vld [vmem:[%s14716_s6 + $0x8a8] sm:$0xf] }
 0x595   :  { %6224 = vmatpush.bf16.msrb.mxu0 %v6882_v23  ;;  %6198 = vmatpush.bf16.msra.mxu2 %v7902_v3  ;;  %v7715_v23 = vld [vmem:[%s14716_s6 + $0x7e8] sm:$0xf0]  ;;  %v8738_v3 = vor.u32 %v9292_v29, %v8737_v2  ;;  %v9068_v62 = vld [vmem:[%s14716_s6 + $0x8e4] sm:$0xf0] }
 0x596   :  { %v7718_v51 = vor.u32 %v9028_v4, %v7715_v23  ;;  %v6883_v27 = vld [vmem:[%s14716_s6 + $0x168] sm:$0xf0]  ;;  %v7777_v36 = vld [vmem:[%s14716_s6 + $0x828] sm:$0xf] }
 0x597   :  { %v6886_v20 = vor.u32 %v8820_v24, %v6883_v27  ;;  %v9052_v34 = vld [vmem:[%s14716_s6 + $0x864] sm:$0xf0]  ;;  %v7331_v22 = vld [vmem:[%s14716_s6 + $0x4e8] sm:$0xf0] }
 0x598   :  { %6210 = vmatpush.bf16.msra.mxu3 %v8478_v18  ;;  %6236 = vmatpush.bf16.msrb.mxu1 %v7458_v19  ;;  %v9132_v18 = vld [vmem:[%s14716_s6 + $0xae4] sm:$0xf0]  ;;  %v7778_v59 = vor.u32 %v9052_v34, %v7777_v36  ;;  %v8916_v27 = vld [vmem:[%s14716_s6 + $0x42c] sm:$0xf]  ;;  %v9005_v36 = vld [vmem:[%s14716_s6 + $0x6ec] sm:$0xf0] }
 0x599   :  { %6225 = vmatpush.bf16.msrb.mxu0 %v6818_v50  ;;  %6199 = vmatpush.bf16.msra.mxu2 %v7838_v39  ;;  %v9276_v19 = vld [vmem:[%s14716_s6 + $0xf64] sm:$0xf0]  ;;  %v9012_v50 = vld [vmem:[%s14716_s6 + $0x72c] sm:$0xf]  ;;  %v8098_v61 = vor.u32 %v9132_v18, %v8097_v40  ;;  %v5982_v18 = vadd.f32 %v13502_v58, %v13458_v33  ;;  %v8909_v33 = vld [vmem:[%s14716_s6 + $0x3ec] sm:$0xf0] }
 0x59a   :  { %v8674_v44 = vor.u32 %v9276_v19, %v8673_v9  ;;  %v7654_v39 = vor.u32 %v9012_v50, %v7651_v16  ;;  %v8948_v40 = vld [vmem:[%s14716_s6 + $0x52c] sm:$0xf]  ;;  %v7842_v19 = vor.u32 %v9068_v62, %v7841_v49  ;;  %v7209_v50 = vld [vmem:[%s14716_s6 + $0x3b0] sm:$0xf]  ;;  %v9180_v24 = vld [vmem:[%s14716_s6 + $0xc64] sm:$0xf0] }
 0x59b   :  { %v6755_v9 = vld [vmem:[%s14716_s6 + $0x68] sm:$0xf0]  ;;  %v6953_v34 = vld [vmem:[%s14716_s6 + $0x1b0] sm:$0xf] }
 0x59c   :  { %6211 = vmatpush.bf16.msra.mxu3 %v8414_v5  ;;  %6237 = vmatpush.bf16.msrb.mxu1 %v7394_v14  ;;  %v8996_v5 = vld [vmem:[%s14716_s6 + $0x6ac] sm:$0xf]  ;;  %v8610_v14 = vor.u32 %v9260_v28, %v8609_v0  ;;  %v9196_v0 = vld [vmem:[%s14716_s6 + $0xce4] sm:$0xf0] }
 0x59d   :  { %6226 = vmatpush.bf16.msrb.mxu0 %v6754_v45  ;;  %6200 = vmatpush.bf16.msra.mxu2 %v7774_v6  ;;  %v7969_v45 = vld [vmem:[%s14716_s6 + $0x9a8] sm:$0xf]  ;;  %v7590_v63 = vor.u32 %v8996_v5, %v7587_v17  ;;  %v7523_v6 = vld [vmem:[%s14716_s6 + $0x668] sm:$0xf0]  ;;  %v7210_v5 = vor.u32 %v8909_v33, %v7209_v50 }
 0x59e   :  { %v7970_v11 = vor.u32 %v9100_v32, %v7969_v45  ;;  %v8932_v17 = vld [vmem:[%s14716_s6 + $0x4ac] sm:$0xf]  ;;  %v8893_v45 = vld [vmem:[%s14716_s6 + $0x36c] sm:$0xf0] }
 0x59f   :  { %v13663_v15 = vpop.f32.mrf.mxu0  ;;  %v9252_v33 = vld [vmem:[%s14716_s6 + $0xeac] sm:$0xf] }
 0x5a0   :  { %6212 = vmatpush.bf16.msra.mxu3 %v8350_v46  ;;  %6238 = vmatpush.bf16.msrb.mxu1 %v7330_v13  ;;  %v7526_v46 = vor.u32 %v8980_v52, %v7523_v6  ;;  %v9228_v13 = vld [vmem:[%s14716_s6 + $0xde4] sm:$0xf0]  ;;  %v7334_v6 = vor.u32 %v8932_v17, %v7331_v22  ;;  %v8547_v17 = vld [vmem:[%s14716_s6 + $0xe68] sm:$0xf0]  ;;  %v7529_v22 = vld [vmem:[%s14716_s6 + $0x630] sm:$0xf] }
 0x5a1   :  { %6271 = vmatpush.bf16.msra.mxu0 %v7206_v41  ;;  %6245 = vmatpush.bf16.msrb.mxu2 %v8226_v37  ;;  %v8545_v41 = vld [vmem:[%s14716_s6 + $0xe28] sm:$0xf]  ;;  %v8482_v23 = vor.u32 %v9228_v13, %v8481_v54  ;;  %v7081_v54 = vld [vmem:[%s14716_s6 + $0x2b0] sm:$0xf] }
 0x5a2   :  { %6227 = vmatmul.bf16.vlgmr.msrb.gmra.mxu0 %v11824_v12  ;;  %6201 = vmatmul.bf16.vlgmr.msra.gmra.mxu2 %v11948_v57  ;;  %v8546_v25 = vor.u32 %v9244_v60, %v8545_v41  ;;  %v9084_v37 = vld [vmem:[%s14716_s6 + $0x964] sm:$0xf0]  ;;  %v8163_v60 = vld [vmem:[%s14716_s6 + $0xb68] sm:$0xf0]  ;;  %v8877_v13 = vld [vmem:[%s14716_s6 + $0x2ec] sm:$0xf0] }
 0x5a3   :  { %v7906_v2 = vor.u32 %v9084_v37, %v7905_v56  ;;  %v8289_v52 = vld [vmem:[%s14716_s6 + $0xc28] sm:$0xf]  ;;  %v9284_v56 = vld [vmem:[%s14716_s6 + $0xfac] sm:$0xf]  ;;  %v7082_v62 = vor.u32 %v8877_v13, %v7081_v54 }
 0x5a4   :  { %6213 = vmatpush.bf16.msra.mxu3 %v8286_v8  ;;  %6239 = vmatpush.bf16.msrb.mxu1 %v7266_v43  ;;  %v13707_v4 = vpop.f32.mrf.mxu1  ;;  %v7462_v8 = vor.u32 %v8964_v26, %v7459_v1  ;;  %v8417_v43 = vld [vmem:[%s14716_s6 + $0xd28] sm:$0xf]  ;;  %v8739_v37 = vld [vmem:[%s14716_s6 + $0xfe8] sm:$0xf0]  ;;  %v8290_v1 = vor.u32 %v9180_v24, %v8289_v52  ;;  %v7465_v24 = vld [vmem:[%s14716_s6 + $0x5b0] sm:$0xf] }
 0x5a5   :  { %6272 = vmatpush.bf16.msra.mxu0 %v7142_v55  ;;  %6246 = vmatpush.bf16.msrb.mxu2 %v8162_v38  ;;  %v6819_v55 = vld [vmem:[%s14716_s6 + $0xe8] sm:$0xf0]  ;;  %v5994_v29 = vpop.f32.mrf.mxu2 }
 0x5a6   :  { %v6822_v30 = vor.u32 %v8804_v48, %v6819_v55  ;;  %v5995_v58 = vadd.f32 %v5994_v29, %v5982_v18  ;;  %v9124_v29 = vld [vmem:[%s14716_s6 + $0xaac] sm:$0xf] }
 0x5a7   :  { %6214 = vmatmul.bf16.vlgmr.msra.gmra.mxu3 %v11998_v42  ;;  %6240 = vmatmul.bf16.vlgmr.msrb.gmra.mxu1 %v11861_v31  ;;  %v6022_v38 = vpop.f32.mrf.mxu0  ;;  %v9220_v52 = vld [vmem:[%s14716_s6 + $0xdac] sm:$0xf] }
 0x5a8   :  { %6258 = vmatpush.bf16.msrb.mxu3 %v8738_v3  ;;  %6284 = vmatpush.bf16.msra.mxu1 %v7718_v51  ;;  %v9212_v3 = vld [vmem:[%s14716_s6 + $0xd64] sm:$0xf0]  ;;  %v7395_v51 = vld [vmem:[%s14716_s6 + $0x568] sm:$0xf0] }
 0x5a9   :  { %6273 = vmatpush.bf16.msra.mxu0 %v7078_v53  ;;  %6247 = vmatpush.bf16.msrb.mxu2 %v8098_v61  ;;  %v8788_v53 = vld [vmem:[%s14716_s6 + $0x2c] sm:$0xf]  ;;  %v8418_v16 = vor.u32 %v9212_v3, %v8417_v43  ;;  %v7398_v7 = vor.u32 %v8948_v40, %v7395_v51  ;;  %v9021_v43 = vld [vmem:[%s14716_s6 + $0x76c] sm:$0xf0] }
 0x5aa   :  { %v9156_v61 = vld [vmem:[%s14716_s6 + $0xbac] sm:$0xf]  ;;  %v6758_v47 = vor.u32 %v8788_v53, %v6755_v9  ;;  %v7017_v3 = vld [vmem:[%s14716_s6 + $0x230] sm:$0xf] }
 0x5ab   :  { %v9268_v38 = vld [vmem:[%s14716_s6 + $0xf2c] sm:$0xf]  ;;  %v8861_v40 = vld [vmem:[%s14716_s6 + $0x26c] sm:$0xf0] }
 0x5ac   :  { %6259 = vmatpush.bf16.msrb.mxu3 %v8674_v44  ;;  %6285 = vmatpush.bf16.msra.mxu1 %v7654_v39  ;;  %v6007_v44 = vpop.f32.mrf.mxu3  ;;  %v8227_v39 = vld [vmem:[%s14716_s6 + $0xbe8] sm:$0xf0]  ;;  %v7018_v50 = vor.u32 %v8861_v40, %v7017_v3 }
 0x5ad   :  { %6274 = vmatpush.bf16.msra.mxu0 %v7014_v35  ;;  %6248 = vmatpush.bf16.msrb.mxu2 %v8034_v10  ;;  %v8353_v35 = vld [vmem:[%s14716_s6 + $0xca8] sm:$0xf]  ;;  %v6008_v28 = vadd.f32 %v6007_v44, %v5995_v58  ;;  %v9140_v10 = vld [vmem:[%s14716_s6 + $0xb2c] sm:$0xf]  ;;  %v5996_v32 = vpop.f32.mrf.mxu2 }
 0x5ae   :  { %v8354_v41 = vor.u32 %v9196_v0, %v8353_v35  ;;  %v8166_v26 = vor.u32 %v9140_v10, %v8163_v60  ;;  %v9108_v53 = vld [vmem:[%s14716_s6 + $0xa2c] sm:$0xf]  ;;  %v6889_v10 = vld [vmem:[%s14716_s6 + $0x130] sm:$0xf] }
 0x5af   :  { %6536 = vst [vmem:[%s14717_s7 + $0x28] sm:$0xff] %v6008_v28  ;;  %v8035_v9 = vld [vmem:[%s14716_s6 + $0xa68] sm:$0xf0] }
 0x5b0   :  { %6260 = vmatpush.bf16.msrb.mxu3 %v8610_v14  ;;  %6286 = vmatpush.bf16.msra.mxu1 %v7590_v63  ;;  %v7145_v14 = vld [vmem:[%s14716_s6 + $0x330] sm:$0xf]  ;;  %v6035_v63 = vpop.f32.mrf.mxu1  ;;  %v8611_v58 = vld [vmem:[%s14716_s6 + $0xee8] sm:$0xf0]  ;;  %v8038_v44 = vor.u32 %v9108_v53, %v8035_v9 }
 0x5b1   :  { %6275 = vmatpush.bf16.msra.mxu0 %v6950_v21  ;;  %6249 = vmatpush.bf16.msrb.mxu2 %v7970_v11  ;;  %v8230_v21 = vor.u32 %v9156_v61, %v8227_v39  ;;  %v7267_v11 = vld [vmem:[%s14716_s6 + $0x468] sm:$0xf0]  ;;  %v8845_v61 = vld [vmem:[%s14716_s6 + $0x1ec] sm:$0xf0] }
 0x5b2   :  { %v7270_v55 = vor.u32 %v8916_v27, %v7267_v11  ;;  %v7971_v39 = vld [vmem:[%s14716_s6 + $0x9e8] sm:$0xf0]  ;;  %v6954_v28 = vor.u32 %v8845_v61, %v6953_v34  ;;  %v8973_v27 = vld [vmem:[%s14716_s6 + $0x5ec] sm:$0xf0] }
 0x5b3   :  { %v9076_v63 = vld [vmem:[%s14716_s6 + $0x92c] sm:$0xf]  ;;  %v6825_v11 = vld [vmem:[%s14716_s6 + $0xb0] sm:$0xf] }
 0x5b4   :  { %6261 = vmatpush.bf16.msrb.mxu3 %v8546_v25  ;;  %6287 = vmatpush.bf16.msra.mxu1 %v7526_v46  ;;  %v7146_v25 = vor.u32 %v8893_v45, %v7145_v14  ;;  %v7721_v46 = vld [vmem:[%s14716_s6 + $0x7b0] sm:$0xf]  ;;  %v6009_v48 = vpop.f32.mrf.mxu3  ;;  %v9060_v54 = vld [vmem:[%s14716_s6 + $0x8ac] sm:$0xf] }
 0x5b5   :  { %6276 = vmatpush.bf16.msra.mxu0 %v6886_v20  ;;  %6250 = vmatpush.bf16.msrb.mxu2 %v7906_v2  ;;  %v9037_v20 = vld [vmem:[%s14716_s6 + $0x7ec] sm:$0xf0]  ;;  %v8742_v2 = vor.u32 %v9284_v56, %v8739_v37  ;;  %v7843_v13 = vld [vmem:[%s14716_s6 + $0x8e8] sm:$0xf0] }
 0x5b6   :  { %v7722_v49 = vor.u32 %v9037_v20, %v7721_v46  ;;  %v8829_v14 = vld [vmem:[%s14716_s6 + $0x16c] sm:$0xf0]  ;;  %v9044_v3 = vld [vmem:[%s14716_s6 + $0x82c] sm:$0xf] }
 0x5b7   :  { %v6890_v60 = vor.u32 %v8829_v14, %v6889_v10  ;;  %v7779_v40 = vld [vmem:[%s14716_s6 + $0x868] sm:$0xf0]  ;;  %v8941_v34 = vld [vmem:[%s14716_s6 + $0x4ec] sm:$0xf0] }
 0x5b8   :  { %6262 = vmatpush.bf16.msrb.mxu3 %v8482_v23  ;;  %6288 = vmatpush.bf16.msra.mxu1 %v7462_v8  ;;  %v8099_v23 = vld [vmem:[%s14716_s6 + $0xae8] sm:$0xf0]  ;;  %v7782_v61 = vor.u32 %v9044_v3, %v7779_v40  ;;  %v7273_v14 = vld [vmem:[%s14716_s6 + $0x430] sm:$0xf]  ;;  %v7595_v3 = vld [vmem:[%s14716_s6 + $0x6f0] sm:$0xf0] }
 0x5b9   :  { %6277 = vmatpush.bf16.msra.mxu0 %v6822_v30  ;;  %6251 = vmatpush.bf16.msrb.mxu2 %v7842_v19  ;;  %v8675_v8 = vld [vmem:[%s14716_s6 + $0xf68] sm:$0xf0]  ;;  %v7657_v30 = vld [vmem:[%s14716_s6 + $0x730] sm:$0xf]  ;;  %v8102_v18 = vor.u32 %v9124_v29, %v8099_v23  ;;  %v6034_v23 = vadd.f32 %v13707_v4, %v13663_v15  ;;  %v7211_v15 = vld [vmem:[%s14716_s6 + $0x3f0] sm:$0xf0] }
 0x5ba   :  { %v8678_v51 = vor.u32 %v9268_v38, %v8675_v8  ;;  %v7658_v19 = vor.u32 %v9021_v43, %v7657_v30  ;;  %v7401_v29 = vld [vmem:[%s14716_s6 + $0x530] sm:$0xf]  ;;  %v7846_v8 = vor.u32 %v9060_v54, %v7843_v13  ;;  %v8901_v30 = vld [vmem:[%s14716_s6 + $0x3b4] sm:$0xf]  ;;  %v8291_v10 = vld [vmem:[%s14716_s6 + $0xc68] sm:$0xf0] }
 0x5bb   :  { %v8797_v38 = vld [vmem:[%s14716_s6 + $0x6c] sm:$0xf0]  ;;  %v8837_v40 = vld [vmem:[%s14716_s6 + $0x1b4] sm:$0xf] }
 0x5bc   :  { %6263 = vmatpush.bf16.msrb.mxu3 %v8418_v16  ;;  %6289 = vmatpush.bf16.msra.mxu1 %v7398_v7  ;;  %v7593_v16 = vld [vmem:[%s14716_s6 + $0x6b0] sm:$0xf]  ;;  %v8614_v7 = vor.u32 %v9252_v33, %v8611_v58  ;;  %v8355_v33 = vld [vmem:[%s14716_s6 + $0xce8] sm:$0xf0] }
 0x5bd   :  { %6278 = vmatpush.bf16.msra.mxu0 %v6758_v47  ;;  %6252 = vmatpush.bf16.msrb.mxu2 %v7778_v59  ;;  %v9092_v47 = vld [vmem:[%s14716_s6 + $0x9ac] sm:$0xf]  ;;  %v7594_v0 = vor.u32 %v9005_v36, %v7593_v16  ;;  %v8989_v59 = vld [vmem:[%s14716_s6 + $0x66c] sm:$0xf0]  ;;  %v7214_v16 = vor.u32 %v8901_v30, %v7211_v15 }
 0x5be   :  { %v7974_v45 = vor.u32 %v9092_v47, %v7971_v39  ;;  %v7337_v36 = vld [vmem:[%s14716_s6 + $0x4b0] sm:$0xf]  ;;  %v7147_v47 = vld [vmem:[%s14716_s6 + $0x370] sm:$0xf0] }
 0x5bf   :  { %v13868_v35 = vpop.f32.mrf.mxu0  ;;  %v8617_v15 = vld [vmem:[%s14716_s6 + $0xeb0] sm:$0xf] }
 0x5c0   :  { %6264 = vmatpush.bf16.msrb.mxu3 %v8354_v41  ;;  %6290 = vmatpush.bf16.msra.mxu1 %v7334_v6  ;;  %v7530_v41 = vor.u32 %v8989_v59, %v7529_v22  ;;  %v8483_v6 = vld [vmem:[%s14716_s6 + $0xde8] sm:$0xf0]  ;;  %v7338_v59 = vor.u32 %v8941_v34, %v7337_v36  ;;  %v9245_v36 = vld [vmem:[%s14716_s6 + $0xe6c] sm:$0xf0]  ;;  %v8981_v34 = vld [vmem:[%s14716_s6 + $0x634] sm:$0xf] }
 0x5c1   :  { %6323 = vmatpush.bf16.msrb.mxu0 %v7210_v5  ;;  %6297 = vmatpush.bf16.msra.mxu2 %v8230_v21  ;;  %v9236_v5 = vld [vmem:[%s14716_s6 + $0xe2c] sm:$0xf]  ;;  %v8486_v20 = vor.u32 %v9220_v52, %v8483_v6  ;;  %v8869_v52 = vld [vmem:[%s14716_s6 + $0x2b4] sm:$0xf] }
 0x5c2   :  { %6279 = vmatmul.bf16.vlgmr.msra.gmra.mxu0 %v11824_v12  ;;  %6253 = vmatmul.bf16.vlgmr.msrb.gmra.mxu2 %v11948_v57  ;;  %v8550_v32 = vor.u32 %v9236_v5, %v8547_v17  ;;  %v7907_v21 = vld [vmem:[%s14716_s6 + $0x968] sm:$0xf0]  ;;  %v9149_v17 = vld [vmem:[%s14716_s6 + $0xb6c] sm:$0xf0]  ;;  %v7083_v6 = vld [vmem:[%s14716_s6 + $0x2f0] sm:$0xf0] }
 0x5c3   :  { %v7910_v56 = vor.u32 %v9076_v63, %v7907_v21  ;;  %v9172_v22 = vld [vmem:[%s14716_s6 + $0xc2c] sm:$0xf]  ;;  %v8745_v63 = vld [vmem:[%s14716_s6 + $0xfb0] sm:$0xf]  ;;  %v7086_v13 = vor.u32 %v8869_v52, %v7083_v6 }
 0x5c4   :  { %6265 = vmatpush.bf16.msrb.mxu3 %v8290_v1  ;;  %6291 = vmatpush.bf16.msra.mxu1 %v7270_v55  ;;  %v13912_v46 = vpop.f32.mrf.mxu1  ;;  %v7466_v1 = vor.u32 %v8973_v27, %v7465_v24  ;;  %v9204_v55 = vld [vmem:[%s14716_s6 + $0xd2c] sm:$0xf]  ;;  %v9293_v21 = vld [vmem:[%s14716_s6 + $0xfec] sm:$0xf0]  ;;  %v8294_v27 = vor.u32 %v9172_v22, %v8291_v10  ;;  %v8965_v10 = vld [vmem:[%s14716_s6 + $0x5b4] sm:$0xf] }
 0x5c5   :  { %6324 = vmatpush.bf16.msrb.mxu0 %v7146_v25  ;;  %6298 = vmatpush.bf16.msra.mxu2 %v8166_v26  ;;  %v8813_v25 = vld [vmem:[%s14716_s6 + $0xec] sm:$0xf0]  ;;  %v6046_v37 = vpop.f32.mrf.mxu2 }
 0x5c6   :  { %v6826_v48 = vor.u32 %v8813_v25, %v6825_v11  ;;  %v6047_v4 = vadd.f32 %v6046_v37, %v6034_v23  ;;  %v8105_v37 = vld [vmem:[%s14716_s6 + $0xab0] sm:$0xf] }
 0x5c7   :  { %6266 = vmatmul.bf16.vlgmr.msrb.gmra.mxu3 %v11998_v42  ;;  %6292 = vmatmul.bf16.vlgmr.msra.gmra.mxu1 %v11861_v31  ;;  %v6074_v26 = vpop.f32.mrf.mxu0  ;;  %v8489_v22 = vld [vmem:[%s14716_s6 + $0xdb0] sm:$0xf] }
 0x5c8   :  { %6310 = vmatpush.bf16.msra.mxu3 %v8742_v2  ;;  %6336 = vmatpush.bf16.msrb.mxu1 %v7722_v49  ;;  %v8419_v2 = vld [vmem:[%s14716_s6 + $0xd68] sm:$0xf0]  ;;  %v8957_v49 = vld [vmem:[%s14716_s6 + $0x56c] sm:$0xf0] }
 0x5c9   :  { %6325 = vmatpush.bf16.msrb.mxu0 %v7082_v62  ;;  %6299 = vmatpush.bf16.msra.mxu2 %v8102_v18  ;;  %v6761_v62 = vld [vmem:[%s14716_s6 + $0x30] sm:$0xf]  ;;  %v8422_v43 = vor.u32 %v9204_v55, %v8419_v2  ;;  %v7402_v53 = vor.u32 %v8957_v49, %v7401_v29  ;;  %v7659_v55 = vld [vmem:[%s14716_s6 + $0x770] sm:$0xf0] }
 0x5ca   :  { %v8233_v18 = vld [vmem:[%s14716_s6 + $0xbb0] sm:$0xf]  ;;  %v6762_v9 = vor.u32 %v8797_v38, %v6761_v62  ;;  %v8853_v2 = vld [vmem:[%s14716_s6 + $0x234] sm:$0xf] }
 0x5cb   :  { %v8681_v26 = vld [vmem:[%s14716_s6 + $0xf30] sm:$0xf]  ;;  %v7019_v29 = vld [vmem:[%s14716_s6 + $0x270] sm:$0xf0] }
 0x5cc   :  { %6311 = vmatpush.bf16.msra.mxu3 %v8678_v51  ;;  %6337 = vmatpush.bf16.msrb.mxu1 %v7658_v19  ;;  %v6059_v51 = vpop.f32.mrf.mxu3  ;;  %v9165_v19 = vld [vmem:[%s14716_s6 + $0xbec] sm:$0xf0]  ;;  %v7022_v30 = vor.u32 %v8853_v2, %v7019_v29 }
 0x5cd   :  { %6326 = vmatpush.bf16.msrb.mxu0 %v7018_v50  ;;  %6300 = vmatpush.bf16.msra.mxu2 %v8038_v44  ;;  %v9188_v50 = vld [vmem:[%s14716_s6 + $0xcac] sm:$0xf]  ;;  %v6060_v58 = vadd.f32 %v6059_v51, %v6047_v4  ;;  %v8169_v44 = vld [vmem:[%s14716_s6 + $0xb30] sm:$0xf]  ;;  %v6048_v39 = vpop.f32.mrf.mxu2 }
 0x5ce   :  { %v8358_v5 = vor.u32 %v9188_v50, %v8355_v33  ;;  %v8170_v24 = vor.u32 %v9149_v17, %v8169_v44  ;;  %v8041_v62 = vld [vmem:[%s14716_s6 + $0xa30] sm:$0xf]  ;;  %v8821_v44 = vld [vmem:[%s14716_s6 + $0x134] sm:$0xf] }
 0x5cf   :  { %6537 = vst [vmem:[%s14717_s7 + $0x30] sm:$0xff] %v6060_v58  ;;  %v9117_v38 = vld [vmem:[%s14716_s6 + $0xa6c] sm:$0xf0] }
 0x5d0   :  { %6312 = vmatpush.bf16.msra.mxu3 %v8614_v7  ;;  %6338 = vmatpush.bf16.msrb.mxu1 %v7594_v0  ;;  %v8885_v7 = vld [vmem:[%s14716_s6 + $0x334] sm:$0xf]  ;;  %v6087_v0 = vpop.f32.mrf.mxu1  ;;  %v9261_v4 = vld [vmem:[%s14716_s6 + $0xeec] sm:$0xf0]  ;;  %v8042_v51 = vor.u32 %v9117_v38, %v8041_v62 }
 0x5d1   :  { %6327 = vmatpush.bf16.msrb.mxu0 %v6954_v28  ;;  %6301 = vmatpush.bf16.msra.mxu2 %v7974_v45  ;;  %v8234_v28 = vor.u32 %v9165_v19, %v8233_v18  ;;  %v8925_v45 = vld [vmem:[%s14716_s6 + $0x46c] sm:$0xf0]  ;;  %v6955_v18 = vld [vmem:[%s14716_s6 + $0x1f0] sm:$0xf0] }
 0x5d2   :  { %v7274_v25 = vor.u32 %v8925_v45, %v7273_v14  ;;  %v9101_v19 = vld [vmem:[%s14716_s6 + $0x9ec] sm:$0xf0]  ;;  %v6958_v58 = vor.u32 %v8837_v40, %v6955_v18  ;;  %v7467_v14 = vld [vmem:[%s14716_s6 + $0x5f0] sm:$0xf0] }
 0x5d3   :  { %v7913_v0 = vld [vmem:[%s14716_s6 + $0x930] sm:$0xf]  ;;  %v8805_v45 = vld [vmem:[%s14716_s6 + $0xb4] sm:$0xf] }
 0x5d4   :  { %6313 = vmatpush.bf16.msra.mxu3 %v8550_v32  ;;  %6339 = vmatpush.bf16.msrb.mxu1 %v7530_v41  ;;  %v7150_v32 = vor.u32 %v8885_v7, %v7147_v47  ;;  %v9029_v41 = vld [vmem:[%s14716_s6 + $0x7b4] sm:$0xf]  ;;  %v6061_v11 = vpop.f32.mrf.mxu3  ;;  %v7849_v52 = vld [vmem:[%s14716_s6 + $0x8b0] sm:$0xf] }
 0x5d5   :  { %6328 = vmatpush.bf16.msrb.mxu0 %v6890_v60  ;;  %6302 = vmatpush.bf16.msra.mxu2 %v7910_v56  ;;  %v7723_v60 = vld [vmem:[%s14716_s6 + $0x7f0] sm:$0xf0]  ;;  %v8746_v56 = vor.u32 %v9293_v21, %v8745_v63  ;;  %v9069_v6 = vld [vmem:[%s14716_s6 + $0x8ec] sm:$0xf0] }
 0x5d6   :  { %v7726_v54 = vor.u32 %v9029_v41, %v7723_v60  ;;  %v6891_v7 = vld [vmem:[%s14716_s6 + $0x170] sm:$0xf0]  ;;  %v7785_v2 = vld [vmem:[%s14716_s6 + $0x830] sm:$0xf] }
 0x5d7   :  { %v6894_v17 = vor.u32 %v8821_v44, %v6891_v7  ;;  %v9053_v29 = vld [vmem:[%s14716_s6 + $0x86c] sm:$0xf0]  ;;  %v7339_v40 = vld [vmem:[%s14716_s6 + $0x4f0] sm:$0xf0] }
 0x5d8   :  { %6314 = vmatpush.bf16.msra.mxu3 %v8486_v20  ;;  %6340 = vmatpush.bf16.msrb.mxu1 %v7466_v1  ;;  %v9133_v20 = vld [vmem:[%s14716_s6 + $0xaec] sm:$0xf0]  ;;  %v7786_v18 = vor.u32 %v9053_v29, %v7785_v2  ;;  %v8917_v7 = vld [vmem:[%s14716_s6 + $0x434] sm:$0xf]  ;;  %v9006_v2 = vld [vmem:[%s14716_s6 + $0x6f4] sm:$0xf0] }
 0x5d9   :  { %6329 = vmatpush.bf16.msrb.mxu0 %v6826_v48  ;;  %6303 = vmatpush.bf16.msra.mxu2 %v7846_v8  ;;  %v9277_v1 = vld [vmem:[%s14716_s6 + $0xf6c] sm:$0xf0]  ;;  %v9013_v48 = vld [vmem:[%s14716_s6 + $0x734] sm:$0xf]  ;;  %v8106_v23 = vor.u32 %v9133_v20, %v8105_v37  ;;  %v6086_v20 = vadd.f32 %v13912_v46, %v13868_v35  ;;  %v8910_v35 = vld [vmem:[%s14716_s6 + $0x3f4] sm:$0xf0] }
 0x5da   :  { %v8682_v49 = vor.u32 %v9277_v1, %v8681_v26  ;;  %v7662_v8 = vor.u32 %v9013_v48, %v7659_v55  ;;  %v8949_v37 = vld [vmem:[%s14716_s6 + $0x534] sm:$0xf]  ;;  %v7850_v1 = vor.u32 %v9069_v6, %v7849_v52  ;;  %v7217_v48 = vld [vmem:[%s14716_s6 + $0x3b8] sm:$0xf]  ;;  %v9181_v44 = vld [vmem:[%s14716_s6 + $0xc6c] sm:$0xf0] }
 0x5db   :  { %v6763_v26 = vld [vmem:[%s14716_s6 + $0x70] sm:$0xf0]  ;;  %v6961_v29 = vld [vmem:[%s14716_s6 + $0x1b8] sm:$0xf] }
 0x5dc   :  { %6315 = vmatpush.bf16.msra.mxu3 %v8422_v43  ;;  %6341 = vmatpush.bf16.msrb.mxu1 %v7402_v53  ;;  %v8997_v43 = vld [vmem:[%s14716_s6 + $0x6b4] sm:$0xf]  ;;  %v8618_v53 = vor.u32 %v9261_v4, %v8617_v15  ;;  %v9197_v15 = vld [vmem:[%s14716_s6 + $0xcec] sm:$0xf0] }
 0x5dd   :  { %6330 = vmatpush.bf16.msrb.mxu0 %v6762_v9  ;;  %6304 = vmatpush.bf16.msra.mxu2 %v7782_v61  ;;  %v7977_v9 = vld [vmem:[%s14716_s6 + $0x9b0] sm:$0xf]  ;;  %v7598_v33 = vor.u32 %v8997_v43, %v7595_v3  ;;  %v7531_v61 = vld [vmem:[%s14716_s6 + $0x670] sm:$0xf0]  ;;  %v7218_v43 = vor.u32 %v8910_v35, %v7217_v48 }
 0x5de   :  { %v7978_v47 = vor.u32 %v9101_v19, %v7977_v9  ;;  %v8933_v3 = vld [vmem:[%s14716_s6 + $0x4b4] sm:$0xf]  ;;  %v8894_v9 = vld [vmem:[%s14716_s6 + $0x374] sm:$0xf0] }
 0x5df   :  { %v14073_v50 = vpop.f32.mrf.mxu0  ;;  %v9253_v35 = vld [vmem:[%s14716_s6 + $0xeb4] sm:$0xf] }
 0x5e0   :  { %6316 = vmatpush.bf16.msra.mxu3 %v8358_v5  ;;  %6342 = vmatpush.bf16.msrb.mxu1 %v7338_v59  ;;  %v7534_v5 = vor.u32 %v8981_v34, %v7531_v61  ;;  %v9229_v59 = vld [vmem:[%s14716_s6 + $0xdec] sm:$0xf0]  ;;  %v7342_v61 = vor.u32 %v8933_v3, %v7339_v40  ;;  %v8555_v3 = vld [vmem:[%s14716_s6 + $0xe70] sm:$0xf0]  ;;  %v7537_v40 = vld [vmem:[%s14716_s6 + $0x638] sm:$0xf] }
 0x5e1   :  { %6375 = vmatpush.bf16.msra.mxu0 %v7214_v16  ;;  %6349 = vmatpush.bf16.msrb.mxu2 %v8234_v28  ;;  %v8553_v16 = vld [vmem:[%s14716_s6 + $0xe30] sm:$0xf]  ;;  %v8490_v60 = vor.u32 %v9229_v59, %v8489_v22  ;;  %v7089_v22 = vld [vmem:[%s14716_s6 + $0x2b8] sm:$0xf] }
 0x5e2   :  { %6331 = vmatmul.bf16.vlgmr.msrb.gmra.mxu0 %v11824_v12  ;;  %6305 = vmatmul.bf16.vlgmr.msra.gmra.mxu2 %v11948_v57  ;;  %v8554_v39 = vor.u32 %v9245_v36, %v8553_v16  ;;  %v9085_v28 = vld [vmem:[%s14716_s6 + $0x96c] sm:$0xf0]  ;;  %v8171_v36 = vld [vmem:[%s14716_s6 + $0xb70] sm:$0xf0]  ;;  %v8878_v59 = vld [vmem:[%s14716_s6 + $0x2f4] sm:$0xf0] }
 0x5e3   :  { %v7914_v63 = vor.u32 %v9085_v28, %v7913_v0  ;;  %v8297_v34 = vld [vmem:[%s14716_s6 + $0xc30] sm:$0xf]  ;;  %v9285_v0 = vld [vmem:[%s14716_s6 + $0xfb4] sm:$0xf]  ;;  %v7090_v6 = vor.u32 %v8878_v59, %v7089_v22 }
 0x5e4   :  { %6317 = vmatpush.bf16.msra.mxu3 %v8294_v27  ;;  %6343 = vmatpush.bf16.msrb.mxu1 %v7274_v25  ;;  %v14117_v41 = vpop.f32.mrf.mxu1  ;;  %v7470_v27 = vor.u32 %v8965_v10, %v7467_v14  ;;  %v8425_v25 = vld [vmem:[%s14716_s6 + $0xd30] sm:$0xf]  ;;  %v8747_v28 = vld [vmem:[%s14716_s6 + $0xff0] sm:$0xf0]  ;;  %v8298_v14 = vor.u32 %v9181_v44, %v8297_v34  ;;  %v7473_v44 = vld [vmem:[%s14716_s6 + $0x5b8] sm:$0xf] }
 0x5e5   :  { %6376 = vmatpush.bf16.msra.mxu0 %v7150_v32  ;;  %6350 = vmatpush.bf16.msrb.mxu2 %v8170_v24  ;;  %v6827_v32 = vld [vmem:[%s14716_s6 + $0xf0] sm:$0xf0]  ;;  %v6098_v21 = vpop.f32.mrf.mxu2 }
 0x5e6   :  { %v6830_v11 = vor.u32 %v8805_v45, %v6827_v32  ;;  %v6099_v46 = vadd.f32 %v6098_v21, %v6086_v20  ;;  %v9125_v21 = vld [vmem:[%s14716_s6 + $0xab4] sm:$0xf] }
 0x5e7   :  { %6318 = vmatmul.bf16.vlgmr.msra.gmra.mxu3 %v11998_v42  ;;  %6344 = vmatmul.bf16.vlgmr.msrb.gmra.mxu1 %v11861_v31  ;;  %v6126_v24 = vpop.f32.mrf.mxu0  ;;  %v9221_v34 = vld [vmem:[%s14716_s6 + $0xdb4] sm:$0xf] }
 0x5e8   :  { %6362 = vmatpush.bf16.msrb.mxu3 %v8746_v56  ;;  %6388 = vmatpush.bf16.msra.mxu1 %v7726_v54  ;;  %v9213_v56 = vld [vmem:[%s14716_s6 + $0xd6c] sm:$0xf0]  ;;  %v7403_v54 = vld [vmem:[%s14716_s6 + $0x570] sm:$0xf0] }
 0x5e9   :  { %6377 = vmatpush.bf16.msra.mxu0 %v7086_v13  ;;  %6351 = vmatpush.bf16.msrb.mxu2 %v8106_v23  ;;  %v8789_v13 = vld [vmem:[%s14716_s6 + $0x34] sm:$0xf]  ;;  %v8426_v55 = vor.u32 %v9213_v56, %v8425_v25  ;;  %v7406_v62 = vor.u32 %v8949_v37, %v7403_v54  ;;  %v9022_v25 = vld [vmem:[%s14716_s6 + $0x774] sm:$0xf0] }
 0x5ea   :  { %v9157_v23 = vld [vmem:[%s14716_s6 + $0xbb4] sm:$0xf]  ;;  %v6766_v38 = vor.u32 %v8789_v13, %v6763_v26  ;;  %v7025_v56 = vld [vmem:[%s14716_s6 + $0x238] sm:$0xf] }
 0x5eb   :  { %v9269_v24 = vld [vmem:[%s14716_s6 + $0xf34] sm:$0xf]  ;;  %v8862_v37 = vld [vmem:[%s14716_s6 + $0x274] sm:$0xf0] }
 0x5ec   :  { %6363 = vmatpush.bf16.msrb.mxu3 %v8682_v49  ;;  %6389 = vmatpush.bf16.msra.mxu1 %v7662_v8  ;;  %v6111_v49 = vpop.f32.mrf.mxu3  ;;  %v8235_v8 = vld [vmem:[%s14716_s6 + $0xbf0] sm:$0xf0]  ;;  %v7026_v48 = vor.u32 %v8862_v37, %v7025_v56 }
 0x5ed   :  { %6378 = vmatpush.bf16.msra.mxu0 %v7022_v30  ;;  %6352 = vmatpush.bf16.msrb.mxu2 %v8042_v51  ;;  %v8361_v30 = vld [vmem:[%s14716_s6 + $0xcb0] sm:$0xf]  ;;  %v6112_v4 = vadd.f32 %v6111_v49, %v6099_v46  ;;  %v9141_v51 = vld [vmem:[%s14716_s6 + $0xb34] sm:$0xf]  ;;  %v6100_v19 = vpop.f32.mrf.mxu2 }
 0x5ee   :  { %v8362_v16 = vor.u32 %v9197_v15, %v8361_v30  ;;  %v8174_v10 = vor.u32 %v9141_v51, %v8171_v36  ;;  %v9109_v13 = vld [vmem:[%s14716_s6 + $0xa34] sm:$0xf]  ;;  %v6897_v51 = vld [vmem:[%s14716_s6 + $0x138] sm:$0xf] }
 0x5ef   :  { %6538 = vst [vmem:[%s14717_s7 + $0x38] sm:$0xff] %v6112_v4  ;;  %v8043_v26 = vld [vmem:[%s14716_s6 + $0xa70] sm:$0xf0] }
 0x5f0   :  { %6364 = vmatpush.bf16.msrb.mxu3 %v8618_v53  ;;  %6390 = vmatpush.bf16.msra.mxu1 %v7598_v33  ;;  %v7153_v53 = vld [vmem:[%s14716_s6 + $0x338] sm:$0xf]  ;;  %v6139_v33 = vpop.f32.mrf.mxu1  ;;  %v8619_v46 = vld [vmem:[%s14716_s6 + $0xef0] sm:$0xf0]  ;;  %v8046_v49 = vor.u32 %v9109_v13, %v8043_v26 }
 0x5f1   :  { %6379 = vmatpush.bf16.msra.mxu0 %v6958_v58  ;;  %6353 = vmatpush.bf16.msrb.mxu2 %v7978_v47  ;;  %v8238_v58 = vor.u32 %v9157_v23, %v8235_v8  ;;  %v7275_v47 = vld [vmem:[%s14716_s6 + $0x470] sm:$0xf0]  ;;  %v8846_v23 = vld [vmem:[%s14716_s6 + $0x1f4] sm:$0xf0] }
 0x5f2   :  { %v7278_v32 = vor.u32 %v8917_v7, %v7275_v47  ;;  %v7979_v8 = vld [vmem:[%s14716_s6 + $0x9f0] sm:$0xf0]  ;;  %v6962_v4 = vor.u32 %v8846_v23, %v6961_v29  ;;  %v8974_v7 = vld [vmem:[%s14716_s6 + $0x5f4] sm:$0xf0] }
 0x5f3   :  { %v9077_v33 = vld [vmem:[%s14716_s6 + $0x934] sm:$0xf]  ;;  %v6833_v47 = vld [vmem:[%s14716_s6 + $0xb8] sm:$0xf] }
 0x5f4   :  { %6365 = vmatpush.bf16.msrb.mxu3 %v8554_v39  ;;  %6391 = vmatpush.bf16.msra.mxu1 %v7534_v5  ;;  %v7154_v39 = vor.u32 %v8894_v9, %v7153_v53  ;;  %v7729_v5 = vld [vmem:[%s14716_s6 + $0x7b8] sm:$0xf]  ;;  %v6113_v45 = vpop.f32.mrf.mxu3  ;;  %v9061_v22 = vld [vmem:[%s14716_s6 + $0x8b4] sm:$0xf] }
 0x5f5   :  { %6380 = vmatpush.bf16.msra.mxu0 %v6894_v17  ;;  %6354 = vmatpush.bf16.msrb.mxu2 %v7914_v63  ;;  %v9038_v17 = vld [vmem:[%s14716_s6 + $0x7f4] sm:$0xf0]  ;;  %v8750_v63 = vor.u32 %v9285_v0, %v8747_v28  ;;  %v7851_v59 = vld [vmem:[%s14716_s6 + $0x8f0] sm:$0xf0] }
 0x5f6   :  { %v7730_v52 = vor.u32 %v9038_v17, %v7729_v5  ;;  %v8830_v53 = vld [vmem:[%s14716_s6 + $0x174] sm:$0xf0]  ;;  %v9045_v56 = vld [vmem:[%s14716_s6 + $0x834] sm:$0xf] }
 0x5f7   :  { %v6898_v36 = vor.u32 %v8830_v53, %v6897_v51  ;;  %v7787_v37 = vld [vmem:[%s14716_s6 + $0x870] sm:$0xf0]  ;;  %v8942_v29 = vld [vmem:[%s14716_s6 + $0x4f4] sm:$0xf0] }
 0x5f8   :  { %6366 = vmatpush.bf16.msrb.mxu3 %v8490_v60  ;;  %6392 = vmatpush.bf16.msra.mxu1 %v7470_v27  ;;  %v8107_v60 = vld [vmem:[%s14716_s6 + $0xaf0] sm:$0xf0]  ;;  %v7790_v23 = vor.u32 %v9045_v56, %v7787_v37  ;;  %v7281_v53 = vld [vmem:[%s14716_s6 + $0x438] sm:$0xf]  ;;  %v7603_v56 = vld [vmem:[%s14716_s6 + $0x6f8] sm:$0xf0] }
 0x5f9   :  { %6381 = vmatpush.bf16.msra.mxu0 %v6830_v11  ;;  %6355 = vmatpush.bf16.msrb.mxu2 %v7850_v1  ;;  %v8683_v27 = vld [vmem:[%s14716_s6 + $0xf70] sm:$0xf0]  ;;  %v7665_v11 = vld [vmem:[%s14716_s6 + $0x738] sm:$0xf]  ;;  %v8110_v20 = vor.u32 %v9125_v21, %v8107_v60  ;;  %v6138_v60 = vadd.f32 %v14117_v41, %v14073_v50  ;;  %v7219_v50 = vld [vmem:[%s14716_s6 + $0x3f8] sm:$0xf0] }
 0x5fa   :  { %v8686_v54 = vor.u32 %v9269_v24, %v8683_v27  ;;  %v7666_v1 = vor.u32 %v9022_v25, %v7665_v11  ;;  %v7409_v21 = vld [vmem:[%s14716_s6 + $0x538] sm:$0xf]  ;;  %v7854_v27 = vor.u32 %v9061_v22, %v7851_v59  ;;  %v8902_v11 = vld [vmem:[%s14716_s6 + $0x3bc] sm:$0xf]  ;;  %v8299_v51 = vld [vmem:[%s14716_s6 + $0xc70] sm:$0xf0] }
 0x5fb   :  { %v8798_v24 = vld [vmem:[%s14716_s6 + $0x74] sm:$0xf0]  ;;  %v8838_v37 = vld [vmem:[%s14716_s6 + $0x1bc] sm:$0xf] }
 0x5fc   :  { %6367 = vmatpush.bf16.msrb.mxu3 %v8426_v55  ;;  %6393 = vmatpush.bf16.msra.mxu1 %v7406_v62  ;;  %v7601_v55 = vld [vmem:[%s14716_s6 + $0x6b8] sm:$0xf]  ;;  %v8622_v62 = vor.u32 %v9253_v35, %v8619_v46  ;;  %v8363_v35 = vld [vmem:[%s14716_s6 + $0xcf0] sm:$0xf0] }
 0x5fd   :  { %6382 = vmatpush.bf16.msra.mxu0 %v6766_v38  ;;  %6356 = vmatpush.bf16.msrb.mxu2 %v7786_v18  ;;  %v9093_v38 = vld [vmem:[%s14716_s6 + $0x9b4] sm:$0xf]  ;;  %v7602_v15 = vor.u32 %v9006_v2, %v7601_v55  ;;  %v8990_v18 = vld [vmem:[%s14716_s6 + $0x674] sm:$0xf0]  ;;  %v7222_v55 = vor.u32 %v8902_v11, %v7219_v50 }
 0x5fe   :  { %v7982_v9 = vor.u32 %v9093_v38, %v7979_v8  ;;  %v7345_v2 = vld [vmem:[%s14716_s6 + $0x4b8] sm:$0xf]  ;;  %v7155_v38 = vld [vmem:[%s14716_s6 + $0x378] sm:$0xf0] }
 0x5ff   :  { %v14278_v30 = vpop.f32.mrf.mxu0  ;;  %v8625_v50 = vld [vmem:[%s14716_s6 + $0xeb8] sm:$0xf] }
 0x600   :  { %6368 = vmatpush.bf16.msrb.mxu3 %v8362_v16  ;;  %6394 = vmatpush.bf16.msra.mxu1 %v7342_v61  ;;  %v7538_v16 = vor.u32 %v8990_v18, %v7537_v40  ;;  %v8491_v61 = vld [vmem:[%s14716_s6 + $0xdf0] sm:$0xf0]  ;;  %v7346_v18 = vor.u32 %v8942_v29, %v7345_v2  ;;  %v9246_v2 = vld [vmem:[%s14716_s6 + $0xe74] sm:$0xf0]  ;;  %v8982_v29 = vld [vmem:[%s14716_s6 + $0x63c] sm:$0xf] }
 0x601   :  { %6427 = vmatpush.bf16.msrb.mxu0 %v7218_v43  ;;  %6401 = vmatpush.bf16.msra.mxu2 %v8238_v58  ;;  %v9237_v43 = vld [vmem:[%s14716_s6 + $0xe34] sm:$0xf]  ;;  %v8494_v17 = vor.u32 %v9221_v34, %v8491_v61  ;;  %v8870_v34 = vld [vmem:[%s14716_s6 + $0x2bc] sm:$0xf] }
 0x602   :  { %6383 = vmatmul.bf16.vlgmr.msra.gmra.mxu0 %v11824_v12  ;;  %6357 = vmatmul.bf16.vlgmr.msrb.gmra.mxu2 %v11948_v57  ;;  %v8558_v19 = vor.u32 %v9237_v43, %v8555_v3  ;;  %v7915_v58 = vld [vmem:[%s14716_s6 + $0x970] sm:$0xf0]  ;;  %v9150_v3 = vld [vmem:[%s14716_s6 + $0xb74] sm:$0xf0]  ;;  %v7091_v61 = vld [vmem:[%s14716_s6 + $0x2f8] sm:$0xf0] }
 0x603   :  { %v7918_v0 = vor.u32 %v9077_v33, %v7915_v58  ;;  %v9173_v40 = vld [vmem:[%s14716_s6 + $0xc34] sm:$0xf]  ;;  %v8753_v33 = vld [vmem:[%s14716_s6 + $0xfb8] sm:$0xf]  ;;  %v7094_v59 = vor.u32 %v8870_v34, %v7091_v61 }
 0x604   :  { %6369 = vmatpush.bf16.msrb.mxu3 %v8298_v14  ;;  %6395 = vmatpush.bf16.msra.mxu1 %v7278_v32  ;;  %v14322_v5 = vpop.f32.mrf.mxu1  ;;  %v7474_v14 = vor.u32 %v8974_v7, %v7473_v44  ;;  %v9205_v32 = vld [vmem:[%s14716_s6 + $0xd34] sm:$0xf]  ;;  %v9294_v58 = vld [vmem:[%s14716_s6 + $0xff4] sm:$0xf0]  ;;  %v8302_v7 = vor.u32 %v9173_v40, %v8299_v51  ;;  %v8966_v51 = vld [vmem:[%s14716_s6 + $0x5bc] sm:$0xf] }
 0x605   :  { %6428 = vmatpush.bf16.msrb.mxu0 %v7154_v39  ;;  %6402 = vmatpush.bf16.msra.mxu2 %v8174_v10  ;;  %v8814_v39 = vld [vmem:[%s14716_s6 + $0xf4] sm:$0xf0]  ;;  %v6150_v28 = vpop.f32.mrf.mxu2 }
 0x606   :  { %v6834_v45 = vor.u32 %v8814_v39, %v6833_v47  ;;  %v6151_v41 = vadd.f32 %v6150_v28, %v6138_v60  ;;  %v8113_v28 = vld [vmem:[%s14716_s6 + $0xab8] sm:$0xf] }
 0x607   :  { %6370 = vmatmul.bf16.vlgmr.msrb.gmra.mxu3 %v11998_v42  ;;  %6396 = vmatmul.bf16.vlgmr.msra.gmra.mxu1 %v11861_v31  ;;  %v6178_v10 = vpop.f32.mrf.mxu0  ;;  %v8497_v40 = vld [vmem:[%s14716_s6 + $0xdb8] sm:$0xf] }
 0x608   :  { %6414 = vmatpush.bf16.msra.mxu3 %v8750_v63  ;;  %6440 = vmatpush.bf16.msrb.mxu1 %v7730_v52  ;;  %v8427_v63 = vld [vmem:[%s14716_s6 + $0xd70] sm:$0xf0]  ;;  %v8958_v52 = vld [vmem:[%s14716_s6 + $0x574] sm:$0xf0] }
 0x609   :  { %6429 = vmatpush.bf16.msrb.mxu0 %v7090_v6  ;;  %6403 = vmatpush.bf16.msra.mxu2 %v8110_v20  ;;  %v6769_v6 = vld [vmem:[%s14716_s6 + $0x38] sm:$0xf]  ;;  %v8430_v25 = vor.u32 %v9205_v32, %v8427_v63  ;;  %v7410_v13 = vor.u32 %v8958_v52, %v7409_v21  ;;  %v7667_v32 = vld [vmem:[%s14716_s6 + $0x778] sm:$0xf0] }
 0x60a   :  { %v8241_v20 = vld [vmem:[%s14716_s6 + $0xbb8] sm:$0xf]  ;;  %v6770_v26 = vor.u32 %v8798_v24, %v6769_v6  ;;  %v8854_v63 = vld [vmem:[%s14716_s6 + $0x23c] sm:$0xf] }
 0x60b   :  { %v8689_v10 = vld [vmem:[%s14716_s6 + $0xf38] sm:$0xf]  ;;  %v7027_v21 = vld [vmem:[%s14716_s6 + $0x278] sm:$0xf0] }
 0x60c   :  { %6415 = vmatpush.bf16.msra.mxu3 %v8686_v54  ;;  %6441 = vmatpush.bf16.msrb.mxu1 %v7666_v1  ;;  %v6163_v54 = vpop.f32.mrf.mxu3  ;;  %v9166_v1 = vld [vmem:[%s14716_s6 + $0xbf4] sm:$0xf0]  ;;  %v7030_v11 = vor.u32 %v8854_v63, %v7027_v21  ;;  %v9158_v63 = vld [vmem:[%s14716_s6 + $0xbbc] sm:$0xf] }
 0x60d   :  { %6430 = vmatpush.bf16.msrb.mxu0 %v7026_v48  ;;  %6404 = vmatpush.bf16.msra.mxu2 %v8046_v49  ;;  %v9189_v48 = vld [vmem:[%s14716_s6 + $0xcb4] sm:$0xf]  ;;  %v6164_v46 = vadd.f32 %v6163_v54, %v6151_v41  ;;  %v8177_v49 = vld [vmem:[%s14716_s6 + $0xb38] sm:$0xf]  ;;  %v6152_v8 = vpop.f32.mrf.mxu2 }
 0x60e   :  { %v8366_v43 = vor.u32 %v9189_v48, %v8363_v35  ;;  %v8178_v44 = vor.u32 %v9150_v3, %v8177_v49  ;;  %v8049_v6 = vld [vmem:[%s14716_s6 + $0xa38] sm:$0xf]  ;;  %v8822_v49 = vld [vmem:[%s14716_s6 + $0x13c] sm:$0xf] }
 0x60f   :  { %6539 = vst [vmem:[%s14717_s7 + $0x40] sm:$0xff] %v6164_v46  ;;  %v9118_v24 = vld [vmem:[%s14716_s6 + $0xa74] sm:$0xf0] }
 0x610   :  { %6416 = vmatpush.bf16.msra.mxu3 %v8622_v62  ;;  %6442 = vmatpush.bf16.msrb.mxu1 %v7602_v15  ;;  %v8886_v62 = vld [vmem:[%s14716_s6 + $0x33c] sm:$0xf]  ;;  %v6191_v15 = vpop.f32.mrf.mxu1  ;;  %v9262_v41 = vld [vmem:[%s14716_s6 + $0xef4] sm:$0xf0]  ;;  %v8050_v54 = vor.u32 %v9118_v24, %v8049_v6 }
 0x611   :  { %6431 = vmatpush.bf16.msrb.mxu0 %v6962_v4  ;;  %6405 = vmatpush.bf16.msra.mxu2 %v7982_v9  ;;  %v8242_v4 = vor.u32 %v9166_v1, %v8241_v20  ;;  %v8926_v9 = vld [vmem:[%s14716_s6 + $0x474] sm:$0xf0]  ;;  %v6963_v20 = vld [vmem:[%s14716_s6 + $0x1f8] sm:$0xf0] }
 0x612   :  { %v7282_v39 = vor.u32 %v8926_v9, %v7281_v53  ;;  %v9102_v1 = vld [vmem:[%s14716_s6 + $0x9f4] sm:$0xf0]  ;;  %v6966_v46 = vor.u32 %v8838_v37, %v6963_v20  ;;  %v7475_v53 = vld [vmem:[%s14716_s6 + $0x5f8] sm:$0xf0] }
 0x613   :  { %v7921_v15 = vld [vmem:[%s14716_s6 + $0x938] sm:$0xf]  ;;  %v8806_v9 = vld [vmem:[%s14716_s6 + $0xbc] sm:$0xf] }
 0x614   :  { %6417 = vmatpush.bf16.msra.mxu3 %v8558_v19  ;;  %6443 = vmatpush.bf16.msrb.mxu1 %v7538_v16  ;;  %v7158_v19 = vor.u32 %v8886_v62, %v7155_v38  ;;  %v9030_v16 = vld [vmem:[%s14716_s6 + $0x7bc] sm:$0xf]  ;;  %v6165_v47 = vpop.f32.mrf.mxu3  ;;  %v7857_v34 = vld [vmem:[%s14716_s6 + $0x8b8] sm:$0xf] }
 0x615   :  { %6432 = vmatpush.bf16.msrb.mxu0 %v6898_v36  ;;  %6406 = vmatpush.bf16.msra.mxu2 %v7918_v0  ;;  %v7731_v36 = vld [vmem:[%s14716_s6 + $0x7f8] sm:$0xf0]  ;;  %v8754_v0 = vor.u32 %v9294_v58, %v8753_v33  ;;  %v9070_v61 = vld [vmem:[%s14716_s6 + $0x8f4] sm:$0xf0] }
 0x616   :  { %v7734_v22 = vor.u32 %v9030_v16, %v7731_v36  ;;  %v6899_v62 = vld [vmem:[%s14716_s6 + $0x178] sm:$0xf0]  ;;  %v8369_v24 = vld [vmem:[%s14716_s6 + $0xcb8] sm:$0xf] }
 0x617   :  { %v6902_v3 = vor.u32 %v8822_v49, %v6899_v62  ;;  %v8243_v6 = vld [vmem:[%s14716_s6 + $0xbf8] sm:$0xf0] }
 0x618   :  { %6418 = vmatpush.bf16.msra.mxu3 %v8494_v17  ;;  %6444 = vmatpush.bf16.msrb.mxu1 %v7474_v14  ;;  %v9134_v17 = vld [vmem:[%s14716_s6 + $0xaf4] sm:$0xf0]  ;;  %v8246_v20 = vor.u32 %v9158_v63, %v8243_v6  ;;  %v8435_v63 = vld [vmem:[%s14716_s6 + $0xd78] sm:$0xf0] }
 0x619   :  { %6433 = vmatpush.bf16.msrb.mxu0 %v6834_v45  ;;  %6407 = vmatpush.bf16.msra.mxu2 %v7854_v27  ;;  %v9278_v14 = vld [vmem:[%s14716_s6 + $0xf74] sm:$0xf0]  ;;  %v9014_v45 = vld [vmem:[%s14716_s6 + $0x73c] sm:$0xf]  ;;  %v8114_v60 = vor.u32 %v9134_v17, %v8113_v28  ;;  %v6190_v17 = vadd.f32 %v14322_v5, %v14278_v30 }
 0x61a   :  { %v8690_v52 = vor.u32 %v9278_v14, %v8689_v10  ;;  %v7670_v27 = vor.u32 %v9014_v45, %v7667_v32  ;;  %v8950_v28 = vld [vmem:[%s14716_s6 + $0x53c] sm:$0xf]  ;;  %v7858_v14 = vor.u32 %v9070_v61, %v7857_v34  ;;  %v7793_v30 = vld [vmem:[%s14716_s6 + $0x838] sm:$0xf] }
 0x61b   :  { %v6771_v10 = vld [vmem:[%s14716_s6 + $0x78] sm:$0xf0]  ;;  %v9054_v5 = vld [vmem:[%s14716_s6 + $0x874] sm:$0xf0] }
 0x61c   :  { %6419 = vmatpush.bf16.msra.mxu3 %v8430_v25  ;;  %6445 = vmatpush.bf16.msrb.mxu1 %v7410_v13  ;;  %v8998_v25 = vld [vmem:[%s14716_s6 + $0x6bc] sm:$0xf]  ;;  %v8626_v13 = vor.u32 %v9262_v41, %v8625_v50 }
 0x61d   :  { %6434 = vmatpush.bf16.msrb.mxu0 %v6770_v26  ;;  %6408 = vmatpush.bf16.msra.mxu2 %v7790_v23  ;;  %v7985_v26 = vld [vmem:[%s14716_s6 + $0x9b8] sm:$0xf]  ;;  %v7606_v35 = vor.u32 %v8998_v25, %v7603_v56  ;;  %v7539_v23 = vld [vmem:[%s14716_s6 + $0x678] sm:$0xf0]  ;;  %v7794_v25 = vor.u32 %v9054_v5, %v7793_v30 }
 0x61e   :  { %v7986_v38 = vor.u32 %v9102_v1, %v7985_v26  ;;  %v8934_v50 = vld [vmem:[%s14716_s6 + $0x4bc] sm:$0xf] }
 0x61f   :  { %v14483_v48 = vpop.f32.mrf.mxu0  ;;  %v7347_v41 = vld [vmem:[%s14716_s6 + $0x4f8] sm:$0xf0] }
 0x620   :  { %6420 = vmatpush.bf16.msra.mxu3 %v8366_v43  ;;  %6446 = vmatpush.bf16.msrb.mxu1 %v7346_v18  ;;  %v7542_v43 = vor.u32 %v8982_v29, %v7539_v23  ;;  %v9230_v18 = vld [vmem:[%s14716_s6 + $0xdf4] sm:$0xf0]  ;;  %v8179_v26 = vld [vmem:[%s14716_s6 + $0xb78] sm:$0xf0]  ;;  %v7350_v1 = vor.u32 %v8934_v50, %v7347_v41 }
 0x621   :  { %6479 = vmatpush.bf16.msra.mxu0 %v7222_v55  ;;  %6453 = vmatpush.bf16.msrb.mxu2 %v8242_v4  ;;  %v8561_v55 = vld [vmem:[%s14716_s6 + $0xe38] sm:$0xf]  ;;  %v8498_v36 = vor.u32 %v9230_v18, %v8497_v40  ;;  %v9286_v29 = vld [vmem:[%s14716_s6 + $0xfbc] sm:$0xf] }
 0x622   :  { %6435 = vmatmul.bf16.vlgmr.msrb.gmra.mxu0 %v11824_v12  ;;  %6409 = vmatmul.bf16.vlgmr.msra.gmra.mxu2 %v11948_v57  ;;  %v8562_v8 = vor.u32 %v9246_v2, %v8561_v55  ;;  %v9086_v4 = vld [vmem:[%s14716_s6 + $0x974] sm:$0xf0]  ;;  %v8918_v55 = vld [vmem:[%s14716_s6 + $0x43c] sm:$0xf] }
 0x623   :  { %v7922_v33 = vor.u32 %v9086_v4, %v7921_v15  ;;  %v7283_v2 = vld [vmem:[%s14716_s6 + $0x478] sm:$0xf0] }
 0x624   :  { %6421 = vmatpush.bf16.msra.mxu3 %v8302_v7  ;;  %6447 = vmatpush.bf16.msrb.mxu1 %v7282_v39  ;;  %v14527_v16 = vpop.f32.mrf.mxu1  ;;  %v7478_v7 = vor.u32 %v8966_v51, %v7475_v53  ;;  %v8433_v39 = vld [vmem:[%s14716_s6 + $0xd38] sm:$0xf]  ;;  %v8755_v23 = vld [vmem:[%s14716_s6 + $0xff8] sm:$0xf0] }
 0x625   :  { %6480 = vmatpush.bf16.msra.mxu0 %v7158_v19  ;;  %6454 = vmatpush.bf16.msrb.mxu2 %v8178_v44  ;;  %v6835_v19 = vld [vmem:[%s14716_s6 + $0xf8] sm:$0xf0]  ;;  %v6202_v58 = vpop.f32.mrf.mxu2  ;;  %v8758_v15 = vor.u32 %v9286_v29, %v8755_v23 }
 0x626   :  { %v6838_v47 = vor.u32 %v8806_v9, %v6835_v19  ;;  %v6203_v45 = vadd.f32 %v6202_v58, %v6190_v17  ;;  %v9126_v4 = vld [vmem:[%s14716_s6 + $0xabc] sm:$0xf] }
 0x627   :  { %6422 = vmatmul.bf16.vlgmr.msra.gmra.mxu3 %v11998_v42  ;;  %6448 = vmatmul.bf16.vlgmr.msrb.gmra.mxu1 %v11861_v31  ;;  %v6230_v44 = vpop.f32.mrf.mxu0  ;;  %v9110_v51 = vld [vmem:[%s14716_s6 + $0xa3c] sm:$0xf] }
 0x628   :  { %6466 = vmatpush.bf16.msrb.mxu3 %v8754_v0  ;;  %6492 = vmatpush.bf16.msra.mxu1 %v7734_v22  ;;  %v9214_v0 = vld [vmem:[%s14716_s6 + $0xd74] sm:$0xf0]  ;;  %v7411_v22 = vld [vmem:[%s14716_s6 + $0x578] sm:$0xf0] }
 0x629   :  { %6481 = vmatpush.bf16.msra.mxu0 %v7094_v59  ;;  %6455 = vmatpush.bf16.msrb.mxu2 %v8114_v60  ;;  %v8790_v59 = vld [vmem:[%s14716_s6 + $0x3c] sm:$0xf]  ;;  %v8434_v32 = vor.u32 %v9214_v0, %v8433_v39  ;;  %v7414_v60 = vor.u32 %v8950_v28, %v7411_v22 }
 0x62a   :  { %v6215_v21 = vpop.f32.mrf.mxu3  ;;  %v8051_v53 = vld [vmem:[%s14716_s6 + $0xa78] sm:$0xf0] }
 0x62b   :  { %v9254_v9 = vld [vmem:[%s14716_s6 + $0xebc] sm:$0xf] }
 0x62c   :  { %6467 = vmatpush.bf16.msrb.mxu3 %v8690_v52  ;;  %6493 = vmatpush.bf16.msra.mxu1 %v7670_v27  ;;  %v6774_v52 = vor.u32 %v8790_v59, %v6771_v10  ;;  %v9198_v27 = vld [vmem:[%s14716_s6 + $0xcf4] sm:$0xf0]  ;;  %v6243_v37 = vpop.f32.mrf.mxu1  ;;  %v8627_v19 = vld [vmem:[%s14716_s6 + $0xef8] sm:$0xf0] }
 0x62d   :  { %6482 = vmatpush.bf16.msra.mxu0 %v7030_v11  ;;  %6456 = vmatpush.bf16.msrb.mxu2 %v8050_v54  ;;  %v6216_v11 = vadd.f32 %v6215_v21, %v6203_v45  ;;  %v6204_v56 = vpop.f32.mrf.mxu2  ;;  %v8370_v54 = vor.u32 %v9198_v27, %v8369_v24  ;;  %v8630_v58 = vor.u32 %v9254_v9, %v8627_v19  ;;  %v7987_v34 = vld [vmem:[%s14716_s6 + $0x9f8] sm:$0xf0] }
 0x62e   :  { %v9238_v44 = vld [vmem:[%s14716_s6 + $0xe3c] sm:$0xf]  ;;  %v6242_v21 = vadd.f32 %v14527_v16, %v14483_v48 }
 0x62f   :  { %6540 = vst [vmem:[%s14717_s7 + $0x48] sm:$0xff] %v6216_v11  ;;  %v9078_v39 = vld [vmem:[%s14716_s6 + $0x93c] sm:$0xf] }
 0x630   :  { %6468 = vmatpush.bf16.msrb.mxu3 %v8626_v13  ;;  %6494 = vmatpush.bf16.msra.mxu1 %v7606_v35  ;;  %v9142_v13 = vld [vmem:[%s14716_s6 + $0xb3c] sm:$0xf]  ;;  %v8305_v35 = vld [vmem:[%s14716_s6 + $0xc38] sm:$0xf] }
 0x631   :  { %6483 = vmatpush.bf16.msra.mxu0 %v6966_v46  ;;  %6457 = vmatpush.bf16.msrb.mxu2 %v7986_v38  ;;  %v9182_v46 = vld [vmem:[%s14716_s6 + $0xc74] sm:$0xf0]  ;;  %v8182_v49 = vor.u32 %v9142_v13, %v8179_v26  ;;  %v7923_v0 = vld [vmem:[%s14716_s6 + $0x978] sm:$0xf0] }
 0x632   :  { %v8306_v62 = vor.u32 %v9182_v46, %v8305_v35  ;;  %v6217_v38 = vpop.f32.mrf.mxu3  ;;  %v9222_v28 = vld [vmem:[%s14716_s6 + $0xdbc] sm:$0xf]  ;;  %v7926_v22 = vor.u32 %v9078_v39, %v7923_v0 }
 0x633   :  { %v8499_v17 = vld [vmem:[%s14716_s6 + $0xdf8] sm:$0xf0] }
 0x634   :  { %6469 = vmatpush.bf16.msrb.mxu3 %v8562_v8  ;;  %6495 = vmatpush.bf16.msra.mxu1 %v7542_v43  ;;  %v7286_v8 = vor.u32 %v8918_v55, %v7283_v2  ;;  %v8115_v43 = vld [vmem:[%s14716_s6 + $0xaf8] sm:$0xf0] }
 0x635   :  { %6484 = vmatpush.bf16.msra.mxu0 %v6902_v3  ;;  %6458 = vmatpush.bf16.msrb.mxu2 %v7922_v33  ;;  %v9270_v3 = vld [vmem:[%s14716_s6 + $0xf3c] sm:$0xf]  ;;  %v8118_v40 = vor.u32 %v9126_v4, %v8115_v43  ;;  %v8054_v33 = vor.u32 %v9110_v51, %v8051_v53 }
 0x636   :  { %v9062_v45 = vld [vmem:[%s14716_s6 + $0x8bc] sm:$0xf] }
 0x637   :  { %v9206_v5 = vld [vmem:[%s14716_s6 + $0xd3c] sm:$0xf] }
 0x638   :  { %6470 = vmatpush.bf16.msrb.mxu3 %v8498_v36  ;;  %6496 = vmatpush.bf16.msra.mxu1 %v7478_v7  ;;  %v9094_v36 = vld [vmem:[%s14716_s6 + $0x9bc] sm:$0xf]  ;;  %v8438_v6 = vor.u32 %v9206_v5, %v8435_v63 }
 0x639   :  { %6485 = vmatpush.bf16.msra.mxu0 %v6838_v47  ;;  %6459 = vmatpush.bf16.msrb.mxu2 %v7858_v14  ;;  %v7990_v7 = vor.u32 %v9094_v36, %v7987_v34  ;;  %v8502_v14 = vor.u32 %v9222_v28, %v8499_v17  ;;  %v9046_v24 = vld [vmem:[%s14716_s6 + $0x83c] sm:$0xf] }
 0x63a   :  { %v7795_v27 = vld [vmem:[%s14716_s6 + $0x878] sm:$0xf0] }
 0x63b   :  { %v9190_v50 = vld [vmem:[%s14716_s6 + $0xcbc] sm:$0xf]  ;;  %v7798_v41 = vor.u32 %v9046_v24, %v7795_v27 }
 0x63c   :  { %6471 = vmatpush.bf16.msrb.mxu3 %v8434_v32  ;;  %6497 = vmatpush.bf16.msra.mxu1 %v7414_v60  ;;  %v7859_v32 = vld [vmem:[%s14716_s6 + $0x8f8] sm:$0xf0] }
 0x63d   :  { %6486 = vmatpush.bf16.msra.mxu0 %v6774_v52  ;;  %6460 = vmatpush.bf16.msrb.mxu2 %v7794_v25  ;;  %v7862_v60 = vor.u32 %v9062_v45, %v7859_v32  ;;  %v8371_v48 = vld [vmem:[%s14716_s6 + $0xcf8] sm:$0xf0] }
 0x63e   :  { %v8374_v37 = vor.u32 %v9190_v50, %v8371_v48 }
 0x63f   :  { %v6280_v61 = vpop.f32.mrf.mxu0 }
 0x640   :  { %6472 = vmatpush.bf16.msrb.mxu3 %v8370_v54  ;;  %6498 = vmatpush.bf16.msra.mxu1 %v7350_v1  ;;  %v8307_v54 = vld [vmem:[%s14716_s6 + $0xc78] sm:$0xf0] }
 0x641   :  { %6505 = vmatpush.bf16.msra.mxu2 %v8246_v20  ;;  %6487 = vmatmul.bf16.vlgmr.msra.gmra.mxu0 %v11824_v12  ;;  %v8691_v12 = vld [vmem:[%s14716_s6 + $0xf78] sm:$0xf0] }
 0x642   :  { %6461 = vmatmul.bf16.vlgmr.msrb.gmra.mxu2 %v11948_v57  ;;  %v8694_v18 = vor.u32 %v9270_v3, %v8691_v12  ;;  %v9174_v20 = vld [vmem:[%s14716_s6 + $0xc3c] sm:$0xf] }
 0x643   :  { %v8310_v13 = vor.u32 %v9174_v20, %v8307_v54 }
 0x644   :  { %6473 = vmatpush.bf16.msrb.mxu3 %v8306_v62  ;;  %6499 = vmatpush.bf16.msra.mxu1 %v7286_v8  ;;  %v6293_v10 = vpop.f32.mrf.mxu1 }
 0x645   :  { %6506 = vmatpush.bf16.msra.mxu2 %v8182_v49  ;;  %v6254_v59 = vpop.f32.mrf.mxu2  ;;  %v6294_v2 = vadd.f32 %v6293_v10, %v6280_v61 }
 0x646   :  { %v6255_v52 = vadd.f32 %v6254_v59, %v6242_v21 }
 0x647   :  { %6474 = vmatmul.bf16.vlgmr.msrb.gmra.mxu3 %v11998_v42  ;;  %6500 = vmatmul.bf16.vlgmr.msra.gmra.mxu1 %v11861_v31  ;;  %v8563_v31 = vld [vmem:[%s14716_s6 + $0xe78] sm:$0xf0]  ;;  %v6282_v30 = vpop.f32.mrf.mxu0 }
 0x648   :  { %6518 = vmatpush.bf16.msra.mxu3 %v8758_v15  ;;  %v8566_v47 = vor.u32 %v9238_v44, %v8563_v31 }
 0x649   :  { %6507 = vmatpush.bf16.msra.mxu2 %v8118_v40 }
 0x64a   :  { %v6267_v11 = vpop.f32.mrf.mxu3 }
 0x64b   :  { %v6268_v16 = vadd.f32 %v6267_v11, %v6255_v52 }
 0x64c   :  { %6519 = vmatpush.bf16.msra.mxu3 %v8694_v18  ;;  %v6295_v56 = vpop.f32.mrf.mxu1 }
 0x64d   :  { %6508 = vmatpush.bf16.msra.mxu2 %v8054_v33  ;;  %6541 = vst [vmem:[%s14717_s7 + $0x50] sm:$0xff] %v6268_v16  ;;  %v6256_v25 = vpop.f32.mrf.mxu2 }
 0x650   :  { %6520 = vmatpush.bf16.msra.mxu3 %v8630_v58 }
 0x651   :  { %6509 = vmatpush.bf16.msra.mxu2 %v7990_v7 }
 0x652   :  { %v6269_v26 = vpop.f32.mrf.mxu3 }
 0x654   :  { %6521 = vmatpush.bf16.msra.mxu3 %v8566_v47 }
 0x655   :  { %6510 = vmatpush.bf16.msra.mxu2 %v7926_v22 }
 0x658   :  { %6522 = vmatpush.bf16.msra.mxu3 %v8502_v14 }
 0x659   :  { %6511 = vmatpush.bf16.msra.mxu2 %v7862_v60 }
 0x65c   :  { %6523 = vmatpush.bf16.msra.mxu3 %v8438_v6 }
 0x65d   :  { %6512 = vmatpush.bf16.msra.mxu2 %v7798_v41 }
 0x65f   :  { %v6332_v1 = vpop.f32.mrf.mxu0 }
 0x660   :  { %6524 = vmatpush.bf16.msra.mxu3 %v8374_v37  ;;  %6513 = vmatmul.bf16.vlgmr.msra.gmra.mxu2 %v11948_v57 }
 0x664   :  { %6525 = vmatpush.bf16.msra.mxu3 %v8310_v13  ;;  %v6345_v46 = vpop.f32.mrf.mxu1 }
 0x665   :  { %v6306_v35 = vpop.f32.mrf.mxu2 }
 0x666   :  { %v6307_v29 = vadd.f32 %v6306_v35, %v6294_v2 }
 0x667   :  { %6526 = vmatmul.bf16.vlgmr.msra.gmra.mxu3 %v11998_v42  ;;  %v6334_v55 = vpop.f32.mrf.mxu0  ;;  %v6346_v42 = vadd.f32 %v6345_v46, %v6332_v1 }
 0x66a   :  { %v6319_v23 = vpop.f32.mrf.mxu3 }
 0x66b   :  { %v6320_v49 = vadd.f32 %v6319_v23, %v6307_v29 }
 0x66c   :  { %v6347_v38 = vpop.f32.mrf.mxu1 }
 0x66d   :  { %6542 = vst [vmem:[%s14717_s7 + $0x58] sm:$0xff] %v6320_v49  ;;  %v6308_v62 = vpop.f32.mrf.mxu2 }
 0x672   :  { %v6321_v8 = vpop.f32.mrf.mxu3 }
 0x67f   :  { %v6384_v15 = vpop.f32.mrf.mxu0 }
 0x684   :  { %v6397_v4 = vpop.f32.mrf.mxu1 }
 0x685   :  { %v6358_v57 = vpop.f32.mrf.mxu2  ;;  %v6398_v36 = vadd.f32 %v6397_v4, %v6384_v15 }
 0x686   :  { %v6359_v3 = vadd.f32 %v6358_v57, %v6346_v42 }
 0x687   :  { %v6386_v43 = vpop.f32.mrf.mxu0 }
 0x68a   :  { %v6371_v12 = vpop.f32.mrf.mxu3 }
 0x68b   :  { %v6372_v40 = vadd.f32 %v6371_v12, %v6359_v3 }
 0x68c   :  { %v6399_v51 = vpop.f32.mrf.mxu1 }
 0x68d   :  { %6543 = vst [vmem:[%s14717_s7 + $0x60] sm:$0xff] %v6372_v40  ;;  %v6360_v18 = vpop.f32.mrf.mxu2 }
 0x692   :  { %v6373_v53 = vpop.f32.mrf.mxu3 }
 0x69f   :  { %v6436_v9 = vpop.f32.mrf.mxu0 }
 0x6a4   :  { %v6449_v33 = vpop.f32.mrf.mxu1 }
 0x6a5   :  { %v6410_v19 = vpop.f32.mrf.mxu2  ;;  %v6450_v22 = vadd.f32 %v6449_v33, %v6436_v9 }
 0x6a6   :  { %v6411_v34 = vadd.f32 %v6410_v19, %v6398_v36 }
 0x6a7   :  { %v6438_v58 = vpop.f32.mrf.mxu0 }
 0x6aa   :  { %v6423_v61 = vpop.f32.mrf.mxu3 }
 0x6ab   :  { %v6424_v44 = vadd.f32 %v6423_v61, %v6411_v34 }
 0x6ac   :  { %v6451_v7 = vpop.f32.mrf.mxu1 }
 0x6ad   :  { %6544 = vst [vmem:[%s14717_s7 + $0x68] sm:$0xff] %v6424_v44  ;;  %v6412_v31 = vpop.f32.mrf.mxu2 }
 0x6b2   :  { %v6425_v47 = vpop.f32.mrf.mxu3 }
 0x6be   :  { %v6488_v39 = vpop.f32.mrf.mxu0 }
 0x6c4   :  { %v6501_v28 = vpop.f32.mrf.mxu1 }
 0x6c5   :  { %v6462_v0 = vpop.f32.mrf.mxu2  ;;  %v6502_v63 = vadd.f32 %v6501_v28, %v6488_v39 }
 0x6c6   :  { %v6490_v17 = vpop.f32.mrf.mxu0  ;;  %v6463_v59 = vadd.f32 %v6462_v0, %v6450_v22 }
 0x6ca   :  { %v6475_v10 = vpop.f32.mrf.mxu3 }
 0x6cb   :  { %v6476_v14 = vadd.f32 %v6475_v10, %v6463_v59 }
 0x6cc   :  { %v6503_v32 = vpop.f32.mrf.mxu1 }
 0x6cd   :  { %6545 = vst [vmem:[%s14717_s7 + $0x70] sm:$0xff] %v6476_v14  ;;  %v6464_v45 = vpop.f32.mrf.mxu2 }
 0x6d2   :  { %v6477_v30 = vpop.f32.mrf.mxu3 }
 0x6e3   :  { %v6514_v5 = vpop.f32.mrf.mxu2 }
 0x6e4   :  { %v6515_v21 = vadd.f32 %v6514_v5, %v6502_v63 }
 0x6ea   :  { %v6527_v60 = vpop.f32.mrf.mxu3 }
 0x6eb   :  { %v6528_v52 = vadd.f32 %v6527_v60, %v6515_v21  ;;  %v6516_v6 = vpop.f32.mrf.mxu2 }
 0x6ed   :  { %6546 = vst [vmem:[%s14717_s7 + $0x78] sm:$0xff] %v6528_v52 }
 0x6f2   :  { %v6529_v24 = vpop.f32.mrf.mxu3 }

</bundles_post_ra>
